<compile_context>
chip_gen: v7x
topology: tpu7x:2x2x1
jax: 0.10.0
libtpu: 0.0.40
codegen_flags: <defaults>
</compile_context>

<pallas_src>
import functools

import jax
import jax.numpy as jnp
from jax.experimental import pallas as pl
from jax.experimental.pallas import tpu as pltpu


def _attention_kernel(x_ref, wq_ref, bq_ref, wkv_ref, bkv_ref, wproj_ref,
                      bproj_ref, o_ref, kT_scratch, v_scratch,
                      *, num_head: int, head_dim: int, q_tile: int):
    N = x_ref.shape[1]
    C = num_head * head_dim
    qi = pl.program_id(1)

    # ---- K/V projection over the full sequence: once per batch element. ----
    # NOTE: this relies on the query-tile grid axis staying "arbitrary"
    # (sequential) so qi == 0 runs before the other tiles of the same batch
    # element, and on scratch being per-core (only the batch axis is parallel).
    @pl.when(qi == 0)
    def _project_kv():
        x_full = x_ref[0]                                            # (N, C) bf16
        # One wide matmul for K and V together (full MXU output width),
        # f32 accumulation + f32 bias, then bf16 for storage.
        kv = (jnp.dot(x_full, wkv_ref[...],
                      preferred_element_type=jnp.float32)
              + bkv_ref[...]).astype(jnp.bfloat16)                   # (N, 2C)
        k_full = kv[:, :C]                                           # (N, C)
        v_full = kv[:, C:]                                           # (N, C)
        # Pre-transpose K once per batch; per-tile score matmuls then use a
        # standard contraction with no per-tile relayout of K.
        kT_scratch[...] = k_full.T                                   # (C, N)
        for h in range(num_head):
            v_scratch[h] = v_full[:, h * head_dim:(h + 1) * head_dim]

    # ---- attention for this query tile ----
    q_start = pl.multiple_of(qi * q_tile, q_tile)
    x_q = x_ref[0, pl.ds(q_start, q_tile), :]                        # (TQ, C) bf16

    # Fused full-width Q projection (softmax scale folded into wq/bq).
    q_full = (jnp.dot(x_q, wq_ref[...], preferred_element_type=jnp.float32)
              + bq_ref[...]).astype(jnp.bfloat16)                    # (TQ, C)

    # TODO(synk): for num_head >= 8 convert this static unroll to lax.fori_loop
    # with a VMEM accumulator so only one head's (TQ, N) temporaries stay live.
    heads = []
    for h in range(num_head):
        q_h = q_full[:, h * head_dim:(h + 1) * head_dim]             # (TQ, hd)
        k_h = kT_scratch[pl.ds(h * head_dim, head_dim), :]           # (hd, N)
        s = jnp.dot(q_h, k_h, preferred_element_type=jnp.float32)    # (TQ, N)

        # Unnormalized softmax (f32 exp: safe on v5e too); normalization is
        # applied after the PV matmul on the (TQ, hd) output instead of the
        # (TQ, N) probabilities.
        s = s - jnp.max(s, axis=-1, keepdims=True)
        p = jnp.exp(s)
        row_sum = jnp.sum(p, axis=-1, keepdims=True)                 # (TQ, 1)

        o_h = jnp.dot(p.astype(jnp.bfloat16), v_scratch[h],
                      preferred_element_type=jnp.float32)            # (TQ, hd)
        o_h = o_h * pl.reciprocal(row_sum, approx=False)             # EUP slot
        heads.append(o_h.astype(jnp.bfloat16))

    # Single wide output projection: concat heads -> (TQ, C) @ (C, C).
    attn = jnp.concatenate(heads, axis=-1)                           # (TQ, C) bf16
    out = (jnp.dot(attn, wproj_ref[...], preferred_element_type=jnp.float32)
           + bproj_ref[...])
    o_ref[0] = out.astype(o_ref.dtype)


def prepare_params(wqkv, bqkv, wproj, bproj, *, num_head: int,
                   param_dtype=jnp.bfloat16):
    """One-time (init-time) parameter preparation.

    Splits the fused qkv weight into a scaled Q weight and a fused [K | V]
    weight (single wide matmul in the kernel), folds the softmax scale into
    Q weight/bias, and casts weights to bf16 (biases stay f32).
    """
    C = wproj.shape[0]
    assert C % num_head == 0
    head_dim = C // num_head
    scale = float(head_dim) ** (-0.5)

    w = wqkv.reshape(C, 3, C)                 # columns factored as (k, h, c)
    b = bqkv.reshape(3, C)
    wq = w[:, 0] * scale                      # (C, C), softmax scale folded
    wkv = jnp.concatenate([w[:, 1], w[:, 2]], axis=1)      # (C, 2C) = [K | V]
    bq = (b[0] * scale)[None, :]              # (1, C)
    bkv = jnp.concatenate([b[1], b[2]])[None, :]            # (1, 2C)

    return dict(
        wq=wq.astype(param_dtype),
        wkv=wkv.astype(param_dtype),
        wproj=wproj.astype(param_dtype),
        bq=bq.astype(jnp.float32),
        bkv=bkv.astype(jnp.float32),
        bproj=bproj.astype(jnp.float32),
    )


def attention_forward(x, params, *, num_head: int, q_tile: int | None = None):
    B, N, C = x.shape
    assert C % num_head == 0
    head_dim = C // num_head
    # Keep the output last dim lane-dense (multiple of 128).
    assert C % 128 == 0, "num_channel must be a multiple of 128 for the TPU kernel"

    if q_tile is None:
        q_tile = 256 if N % 256 == 0 else (128 if N % 128 == 0 else N)
    q_tile = min(q_tile, N)
    assert N % q_tile == 0 and q_tile % 8 == 0

    out_dtype = x.dtype
    x = x.astype(jnp.bfloat16)   # halve the full-seq x DMA; kernel is bf16 anyway

    # Rough VMEM footprint (double-buffered pipeline blocks + scratch + temps):
    # avoids requesting the whole of a v7x core's 64 MiB VMEM.
    out_itemsize = jnp.dtype(out_dtype).itemsize
    vmem_bytes = (
        2 * N * C * 2                        # x block (bf16, double-buffered)
        + 2 * q_tile * C * out_itemsize      # out block (double-buffered)
        + 2 * (4 * C * C * 2 + 4 * C * 4)    # weights/biases (double-buffered)
        + 3 * N * C * 2                      # K^T + V scratch + (N, 2C) KV temp
        + 4 * q_tile * N * 4                 # score/prob temporaries headroom
    )
    vmem_limit = min(max(vmem_bytes + (4 << 20), 16 << 20), 100 << 20)
    # TODO(synk): single-buffer the grid-invariant weights and add a flash-style
    # KV-tile grid axis (online softmax) for long sequences; both matter first
    # on v7x's 64 MiB VMEM and are left out of this version for simplicity.

    kernel = functools.partial(_attention_kernel, num_head=num_head,
                               head_dim=head_dim, q_tile=q_tile)

    fixed = lambda b, qi: (0, 0)   # grid-invariant weight blocks (DMA'd once)

    return pl.pallas_call(
        kernel,
        out_shape=jax.ShapeDtypeStruct((B, N, C), out_dtype),
        grid=(B, N // q_tile),
        in_specs=[
            pl.BlockSpec((1, N, C), lambda b, qi: (b, 0, 0)),   # x (full seq, bf16)
            pl.BlockSpec((C, C), fixed),                        # wq (scale folded)
            pl.BlockSpec((1, C), fixed),                        # bq (scaled)
            pl.BlockSpec((C, 2 * C), fixed),                    # wkv = [wk | wv]
            pl.BlockSpec((1, 2 * C), fixed),                    # bkv
            pl.BlockSpec((C, C), fixed),                        # wproj
            pl.BlockSpec((1, C), fixed),                        # bproj
        ],
        out_specs=pl.BlockSpec((1, q_tile, C), lambda b, qi: (b, qi, 0)),
        scratch_shapes=[
            pltpu.VMEM((C, N), jnp.bfloat16),                   # K^T (per batch)
            pltpu.VMEM((num_head, N, head_dim), jnp.bfloat16),  # V   (per batch)
        ],
        compiler_params=pltpu.CompilerParams(
            # Query-tile axis MUST stay "arbitrary": the qi==0 K/V projection
            # has to run before the other tiles of the same batch element.
            dimension_semantics=("parallel", "arbitrary"),
            vmem_limit_bytes=vmem_limit),
    )(x, params["wq"], params["bq"], params["wkv"], params["bkv"],
      params["wproj"], params["bproj"])


def attention_reference(x, wqkv, bqkv, wproj, bproj, *, num_head: int):
    """Pure-JAX f32 reference mirroring the PyTorch forward."""
    B, N, C = x.shape
    head_dim = C // num_head
    scale = float(head_dim) ** (-0.5)
    qkv = x @ wqkv + bqkv[0]                               # (B, N, 3C)
    qkv = qkv.reshape(B, N, 3, num_head, head_dim)         # (b n k h c)
    qkv = jnp.transpose(qkv, (2, 0, 3, 1, 4))              # (k b h n c)
    q, k, v = qkv[0] * scale, qkv[1], qkv[2]
    p = jax.nn.softmax(jnp.einsum('bhnc,bhmc->bhnm', q, k), axis=-1)
    o = jnp.einsum('bhnm,bhmc->bhnc', p, v)
    o = jnp.transpose(o, (0, 2, 1, 3)).reshape(B, N, C)    # 'b h n c -> b n (h c)'
    return o @ wproj + bproj[0]


if __name__ == "__main__":
    B, N, C, num_head = 2, 256, 128, 4

    key = jax.random.PRNGKey(0)
    kx, k1, k2, k3, k4 = jax.random.split(key, 5)

    x = jax.random.normal(kx, (B, N, C), dtype=jnp.float32)
    # nn.Linear parameters, stored transposed (y = x @ W + b).
    wqkv = jax.random.normal(k1, (C, 3 * C), dtype=jnp.float32) * 0.05
    bqkv = jax.random.normal(k2, (1, 3 * C), dtype=jnp.float32) * 0.05
    wproj = jax.random.normal(k3, (C, C), dtype=jnp.float32) * 0.05
    bproj = jax.random.normal(k4, (1, C), dtype=jnp.float32) * 0.05

    params = prepare_params(wqkv, bqkv, wproj, bproj, num_head=num_head)

    out = attention_forward(x, params, num_head=num_head)
    out = jax.block_until_ready(out)

    ref = attention_reference(x, wqkv, bqkv, wproj, bproj, num_head=num_head)
    assert out.shape == (B, N, C)
    # bf16 matmuls -> compare with a loose tolerance.
    assert jnp.allclose(out, ref, atol=2e-2, rtol=2e-2), (
        f"mismatch vs reference: max abs err {float(jnp.max(jnp.abs(out - ref)))}")

    print("KERNEL_OK")
</pallas_src>

<mosaic_0001>
module attributes {stable_mosaic.version = 11 : i64} {
  func.func @_attention_kernel(%arg0: i32, %arg1: i32, %arg2: memref<1x256x128xbf16, #tpu.memory_space<vmem>>, %arg3: memref<128x128xbf16, #tpu.memory_space<vmem>>, %arg4: memref<1x128xf32, #tpu.memory_space<vmem>>, %arg5: memref<128x256xbf16, #tpu.memory_space<vmem>>, %arg6: memref<1x256xf32, #tpu.memory_space<vmem>>, %arg7: memref<128x128xbf16, #tpu.memory_space<vmem>>, %arg8: memref<1x128xf32, #tpu.memory_space<vmem>>, %arg9: memref<1x256x128xf32, #tpu.memory_space<vmem>>, %arg10: memref<128x256xbf16, #tpu.memory_space<vmem>>, %arg11: memref<4x256x32xbf16, #tpu.memory_space<vmem>>) attributes {dimension_semantics = [#tpu.dimension_semantics<parallel>, #tpu.dimension_semantics<arbitrary>], iteration_bounds = array<i64: 2, 1>, scalar_prefetch = 0 : i64, scratch_operands = 2 : i64, tpu.core_type = #tpu.core_type<tc>, window_params = [{transform_indices = @transform_0, window_bounds = array<i64: 1, 256, 128>}, {pipeline_mode = #tpu.pipeline_mode<synchronous>, transform_indices = @transform_1, window_bounds = array<i64: 128, 128>}, {pipeline_mode = #tpu.pipeline_mode<synchronous>, transform_indices = @transform_2, window_bounds = array<i64: 1, 128>}, {pipeline_mode = #tpu.pipeline_mode<synchronous>, transform_indices = @transform_3, window_bounds = array<i64: 128, 256>}, {pipeline_mode = #tpu.pipeline_mode<synchronous>, transform_indices = @transform_4, window_bounds = array<i64: 1, 256>}, {pipeline_mode = #tpu.pipeline_mode<synchronous>, transform_indices = @transform_5, window_bounds = array<i64: 128, 128>}, {pipeline_mode = #tpu.pipeline_mode<synchronous>, transform_indices = @transform_6, window_bounds = array<i64: 1, 128>}, {transform_indices = @transform_7, window_bounds = array<i64: 1, 256, 128>}]} {
    %c0_i32 = arith.constant 0 : i32
    %0 = arith.cmpi eq, %arg1, %c0_i32 : i32
    %1 = arith.extui %0 : i1 to i32
    %c0_i32_0 = arith.constant 0 : i32
    %2 = arith.cmpi ne, %1, %c0_i32_0 : i32
    scf.if %2 {
      %c0_44 = arith.constant 0 : index
      %c0_45 = arith.constant 0 : index
      %c0_46 = arith.constant 0 : index
      %95 = vector.load %arg2[%c0_44, %c0_45, %c0_46] : memref<1x256x128xbf16, #tpu.memory_space<vmem>>, vector<1x256x128xbf16>
      %96 = vector.shape_cast %95 : vector<1x256x128xbf16> to vector<256x128xbf16>
      %c0_47 = arith.constant 0 : index
      %c0_48 = arith.constant 0 : index
      %97 = vector.load %arg5[%c0_47, %c0_48] : memref<128x256xbf16, #tpu.memory_space<vmem>>, vector<128x256xbf16>
      %cst_49 = arith.constant dense<0.000000e+00> : vector<256x256xf32>
      %98 = tpu.matmul %96, %97, %cst_49 {dimension_numbers = #tpu.dot_dimension_numbers<[1], [0], [0], [1], [0, 0, 1, 1], [], []>} : vector<256x128xbf16>, vector<128x256xbf16>, vector<256x256xf32> -> vector<256x256xf32>
      %c0_50 = arith.constant 0 : index
      %c0_51 = arith.constant 0 : index
      %99 = vector.load %arg6[%c0_50, %c0_51] : memref<1x256xf32, #tpu.memory_space<vmem>>, vector<1x256xf32>
      %100 = vector.broadcast %99 : vector<1x256xf32> to vector<256x256xf32>
      %101 = arith.addf %98, %100 : vector<256x256xf32>
      %102 = arith.truncf %101 : vector<256x256xf32> to vector<256x256xbf16>
      %103 = vector.extract_strided_slice %102 {offsets = [0, 0], sizes = [256, 128], strides = [1, 1]} : vector<256x256xbf16> to vector<256x128xbf16>
      %104 = vector.extract_strided_slice %102 {offsets = [0, 128], sizes = [256, 128], strides = [1, 1]} : vector<256x256xbf16> to vector<256x128xbf16>
      %105 = tpu.transpose %103, [1, 0] : vector<256x128xbf16> -> vector<128x256xbf16>
      %c0_52 = arith.constant 0 : index
      %c0_53 = arith.constant 0 : index
      %106 = vector.load %arg10[%c0_52, %c0_53] : memref<128x256xbf16, #tpu.memory_space<vmem>>, vector<128x256xbf16>
      tpu.vector_store %arg10[%c0_52, %c0_53], %105 {strides = array<i32>} : memref<128x256xbf16, #tpu.memory_space<vmem>>, vector<128x256xbf16>,
      %107 = vector.extract_strided_slice %104 {offsets = [0, 0], sizes = [256, 32], strides = [1, 1]} : vector<256x128xbf16> to vector<256x32xbf16>
      %c0_54 = arith.constant 0 : index
      %c0_55 = arith.constant 0 : index
      %c0_56 = arith.constant 0 : index
      %108 = vector.load %arg11[%c0_54, %c0_55, %c0_56] : memref<4x256x32xbf16, #tpu.memory_space<vmem>>, vector<1x256x32xbf16>
      %109 = vector.shape_cast %108 : vector<1x256x32xbf16> to vector<256x32xbf16>
      %110 = vector.shape_cast %107 : vector<256x32xbf16> to vector<1x256x32xbf16>
      tpu.vector_store %arg11[%c0_54, %c0_55, %c0_56], %110 {strides = array<i32>} : memref<4x256x32xbf16, #tpu.memory_space<vmem>>, vector<1x256x32xbf16>,
      %111 = vector.extract_strided_slice %104 {offsets = [0, 32], sizes = [256, 32], strides = [1, 1]} : vector<256x128xbf16> to vector<256x32xbf16>
      %c1_57 = arith.constant 1 : index
      %c0_58 = arith.constant 0 : index
      %c0_59 = arith.constant 0 : index
      %112 = vector.load %arg11[%c1_57, %c0_58, %c0_59] : memref<4x256x32xbf16, #tpu.memory_space<vmem>>, vector<1x256x32xbf16>
      %113 = vector.shape_cast %112 : vector<1x256x32xbf16> to vector<256x32xbf16>
      %114 = vector.shape_cast %111 : vector<256x32xbf16> to vector<1x256x32xbf16>
      tpu.vector_store %arg11[%c1_57, %c0_58, %c0_59], %114 {strides = array<i32>} : memref<4x256x32xbf16, #tpu.memory_space<vmem>>, vector<1x256x32xbf16>,
      %115 = vector.extract_strided_slice %104 {offsets = [0, 64], sizes = [256, 32], strides = [1, 1]} : vector<256x128xbf16> to vector<256x32xbf16>
      %c2_60 = arith.constant 2 : index
      %c0_61 = arith.constant 0 : index
      %c0_62 = arith.constant 0 : index
      %116 = vector.load %arg11[%c2_60, %c0_61, %c0_62] : memref<4x256x32xbf16, #tpu.memory_space<vmem>>, vector<1x256x32xbf16>
      %117 = vector.shape_cast %116 : vector<1x256x32xbf16> to vector<256x32xbf16>
      %118 = vector.shape_cast %115 : vector<256x32xbf16> to vector<1x256x32xbf16>
      tpu.vector_store %arg11[%c2_60, %c0_61, %c0_62], %118 {strides = array<i32>} : memref<4x256x32xbf16, #tpu.memory_space<vmem>>, vector<1x256x32xbf16>,
      %119 = vector.extract_strided_slice %104 {offsets = [0, 96], sizes = [256, 32], strides = [1, 1]} : vector<256x128xbf16> to vector<256x32xbf16>
      %c3_63 = arith.constant 3 : index
      %c0_64 = arith.constant 0 : index
      %c0_65 = arith.constant 0 : index
      %120 = vector.load %arg11[%c3_63, %c0_64, %c0_65] : memref<4x256x32xbf16, #tpu.memory_space<vmem>>, vector<1x256x32xbf16>
      %121 = vector.shape_cast %120 : vector<1x256x32xbf16> to vector<256x32xbf16>
      %122 = vector.shape_cast %119 : vector<256x32xbf16> to vector<1x256x32xbf16>
      tpu.vector_store %arg11[%c3_63, %c0_64, %c0_65], %122 {strides = array<i32>} : memref<4x256x32xbf16, #tpu.memory_space<vmem>>, vector<1x256x32xbf16>,
    } else {
    }
    %c256_i32 = arith.constant 256 : i32
    %3 = arith.muli %arg1, %c256_i32 : i32
    %4 = tpu.assume_multiple %3, 256 : i32
    %c0 = arith.constant 0 : index
    %5 = arith.index_cast %4 : i32 to index
    %c0_1 = arith.constant 0 : index
    %6 = vector.load %arg2[%c0, %5, %c0_1] : memref<1x256x128xbf16, #tpu.memory_space<vmem>>, vector<1x256x128xbf16>
    %7 = vector.shape_cast %6 : vector<1x256x128xbf16> to vector<256x128xbf16>
    %c0_2 = arith.constant 0 : index
    %c0_3 = arith.constant 0 : index
    %8 = vector.load %arg3[%c0_2, %c0_3] : memref<128x128xbf16, #tpu.memory_space<vmem>>, vector<128x128xbf16>
    %cst = arith.constant dense<0.000000e+00> : vector<256x128xf32>
    %9 = tpu.matmul %7, %8, %cst {dimension_numbers = #tpu.dot_dimension_numbers<[1], [0], [0], [1], [0, 0, 1, 1], [], []>} : vector<256x128xbf16>, vector<128x128xbf16>, vector<256x128xf32> -> vector<256x128xf32>
    %c0_4 = arith.constant 0 : index
    %c0_5 = arith.constant 0 : index
    %10 = vector.load %arg4[%c0_4, %c0_5] : memref<1x128xf32, #tpu.memory_space<vmem>>, vector<1x128xf32>
    %11 = vector.broadcast %10 : vector<1x128xf32> to vector<256x128xf32>
    %12 = arith.addf %9, %11 : vector<256x128xf32>
    %13 = arith.truncf %12 : vector<256x128xf32> to vector<256x128xbf16>
    %14 = vector.extract_strided_slice %13 {offsets = [0, 0], sizes = [256, 32], strides = [1, 1]} : vector<256x128xbf16> to vector<256x32xbf16>
    %c0_6 = arith.constant 0 : index
    %c0_7 = arith.constant 0 : index
    %15 = vector.load %arg10[%c0_6, %c0_7] : memref<128x256xbf16, #tpu.memory_space<vmem>>, vector<32x256xbf16>
    %cst_8 = arith.constant dense<0.000000e+00> : vector<256x256xf32>
    %16 = tpu.matmul %14, %15, %cst_8 {dimension_numbers = #tpu.dot_dimension_numbers<[1], [0], [0], [1], [0, 0, 1, 1], [], []>} : vector<256x32xbf16>, vector<32x256xbf16>, vector<256x256xf32> -> vector<256x256xf32>
    %cst_9 = arith.constant dense<0xFF800000> : vector<256xf32>
    %17 = vector.multi_reduction <maximumf>, %16, %cst_9 [1] : vector<256x256xf32> to vector<256xf32>
    %18 = vector.shape_cast %17 : vector<256xf32> to vector<256x1xf32>
    %19 = vector.broadcast %18 : vector<256x1xf32> to vector<256x256xf32>
    %20 = arith.subf %16, %19 : vector<256x256xf32>
    %21 = math.exp %20 : vector<256x256xf32>
    %cst_10 = arith.constant dense<0.000000e+00> : vector<256xf32>
    %22 = vector.multi_reduction <add>, %21, %cst_10 [1] : vector<256x256xf32> to vector<256xf32>
    %23 = vector.shape_cast %22 : vector<256xf32> to vector<256x1xf32>
    %24 = arith.truncf %21 : vector<256x256xf32> to vector<256x256xbf16>
    %c0_11 = arith.constant 0 : index
    %c0_12 = arith.constant 0 : index
    %c0_13 = arith.constant 0 : index
    %25 = vector.load %arg11[%c0_11, %c0_12, %c0_13] : memref<4x256x32xbf16, #tpu.memory_space<vmem>>, vector<1x256x32xbf16>
    %26 = vector.shape_cast %25 : vector<1x256x32xbf16> to vector<256x32xbf16>
    %cst_14 = arith.constant dense<0.000000e+00> : vector<256x32xf32>
    %27 = tpu.matmul %24, %26, %cst_14 {dimension_numbers = #tpu.dot_dimension_numbers<[1], [0], [0], [1], [0, 0, 1, 1], [], []>} : vector<256x256xbf16>, vector<256x32xbf16>, vector<256x32xf32> -> vector<256x32xf32>
    %28 = tpu.reciprocal %23 : vector<256x1xf32> -> vector<256x1xf32>
    %29 = vector.broadcast %28 : vector<256x1xf32> to vector<256x32xf32>
    %30 = arith.mulf %27, %29 : vector<256x32xf32>
    %31 = arith.truncf %30 : vector<256x32xf32> to vector<256x32xbf16>
    %32 = vector.extract_strided_slice %13 {offsets = [0, 32], sizes = [256, 32], strides = [1, 1]} : vector<256x128xbf16> to vector<256x32xbf16>
    %c32 = arith.constant 32 : index
    %c0_15 = arith.constant 0 : index
    %33 = vector.load %arg10[%c32, %c0_15] : memref<128x256xbf16, #tpu.memory_space<vmem>>, vector<32x256xbf16>
    %cst_16 = arith.constant dense<0.000000e+00> : vector<256x256xf32>
    %34 = tpu.matmul %32, %33, %cst_16 {dimension_numbers = #tpu.dot_dimension_numbers<[1], [0], [0], [1], [0, 0, 1, 1], [], []>} : vector<256x32xbf16>, vector<32x256xbf16>, vector<256x256xf32> -> vector<256x256xf32>
    %cst_17 = arith.constant dense<0xFF800000> : vector<256xf32>
    %35 = vector.multi_reduction <maximumf>, %34, %cst_17 [1] : vector<256x256xf32> to vector<256xf32>
    %36 = vector.shape_cast %35 : vector<256xf32> to vector<256x1xf32>
    %37 = vector.broadcast %36 : vector<256x1xf32> to vector<256x256xf32>
    %38 = arith.subf %34, %37 : vector<256x256xf32>
    %39 = math.exp %38 : vector<256x256xf32>
    %cst_18 = arith.constant dense<0.000000e+00> : vector<256xf32>
    %40 = vector.multi_reduction <add>, %39, %cst_18 [1] : vector<256x256xf32> to vector<256xf32>
    %41 = vector.shape_cast %40 : vector<256xf32> to vector<256x1xf32>
    %42 = arith.truncf %39 : vector<256x256xf32> to vector<256x256xbf16>
    %c1 = arith.constant 1 : index
    %c0_19 = arith.constant 0 : index
    %c0_20 = arith.constant 0 : index
    %43 = vector.load %arg11[%c1, %c0_19, %c0_20] : memref<4x256x32xbf16, #tpu.memory_space<vmem>>, vector<1x256x32xbf16>
    %44 = vector.shape_cast %43 : vector<1x256x32xbf16> to vector<256x32xbf16>
    %cst_21 = arith.constant dense<0.000000e+00> : vector<256x32xf32>
    %45 = tpu.matmul %42, %44, %cst_21 {dimension_numbers = #tpu.dot_dimension_numbers<[1], [0], [0], [1], [0, 0, 1, 1], [], []>} : vector<256x256xbf16>, vector<256x32xbf16>, vector<256x32xf32> -> vector<256x32xf32>
    %46 = tpu.reciprocal %41 : vector<256x1xf32> -> vector<256x1xf32>
    %47 = vector.broadcast %46 : vector<256x1xf32> to vector<256x32xf32>
    %48 = arith.mulf %45, %47 : vector<256x32xf32>
    %49 = arith.truncf %48 : vector<256x32xf32> to vector<256x32xbf16>
    %50 = vector.extract_strided_slice %13 {offsets = [0, 64], sizes = [256, 32], strides = [1, 1]} : vector<256x128xbf16> to vector<256x32xbf16>
    %c64 = arith.constant 64 : index
    %c0_22 = arith.constant 0 : index
    %51 = vector.load %arg10[%c64, %c0_22] : memref<128x256xbf16, #tpu.memory_space<vmem>>, vector<32x256xbf16>
    %cst_23 = arith.constant dense<0.000000e+00> : vector<256x256xf32>
    %52 = tpu.matmul %50, %51, %cst_23 {dimension_numbers = #tpu.dot_dimension_numbers<[1], [0], [0], [1], [0, 0, 1, 1], [], []>} : vector<256x32xbf16>, vector<32x256xbf16>, vector<256x256xf32> -> vector<256x256xf32>
    %cst_24 = arith.constant dense<0xFF800000> : vector<256xf32>
    %53 = vector.multi_reduction <maximumf>, %52, %cst_24 [1] : vector<256x256xf32> to vector<256xf32>
    %54 = vector.shape_cast %53 : vector<256xf32> to vector<256x1xf32>
    %55 = vector.broadcast %54 : vector<256x1xf32> to vector<256x256xf32>
    %56 = arith.subf %52, %55 : vector<256x256xf32>
    %57 = math.exp %56 : vector<256x256xf32>
    %cst_25 = arith.constant dense<0.000000e+00> : vector<256xf32>
    %58 = vector.multi_reduction <add>, %57, %cst_25 [1] : vector<256x256xf32> to vector<256xf32>
    %59 = vector.shape_cast %58 : vector<256xf32> to vector<256x1xf32>
    %60 = arith.truncf %57 : vector<256x256xf32> to vector<256x256xbf16>
    %c2 = arith.constant 2 : index
    %c0_26 = arith.constant 0 : index
    %c0_27 = arith.constant 0 : index
    %61 = vector.load %arg11[%c2, %c0_26, %c0_27] : memref<4x256x32xbf16, #tpu.memory_space<vmem>>, vector<1x256x32xbf16>
    %62 = vector.shape_cast %61 : vector<1x256x32xbf16> to vector<256x32xbf16>
    %cst_28 = arith.constant dense<0.000000e+00> : vector<256x32xf32>
    %63 = tpu.matmul %60, %62, %cst_28 {dimension_numbers = #tpu.dot_dimension_numbers<[1], [0], [0], [1], [0, 0, 1, 1], [], []>} : vector<256x256xbf16>, vector<256x32xbf16>, vector<256x32xf32> -> vector<256x32xf32>
    %64 = tpu.reciprocal %59 : vector<256x1xf32> -> vector<256x1xf32>
    %65 = vector.broadcast %64 : vector<256x1xf32> to vector<256x32xf32>
    %66 = arith.mulf %63, %65 : vector<256x32xf32>
    %67 = arith.truncf %66 : vector<256x32xf32> to vector<256x32xbf16>
    %68 = vector.extract_strided_slice %13 {offsets = [0, 96], sizes = [256, 32], strides = [1, 1]} : vector<256x128xbf16> to vector<256x32xbf16>
    %c96 = arith.constant 96 : index
    %c0_29 = arith.constant 0 : index
    %69 = vector.load %arg10[%c96, %c0_29] : memref<128x256xbf16, #tpu.memory_space<vmem>>, vector<32x256xbf16>
    %cst_30 = arith.constant dense<0.000000e+00> : vector<256x256xf32>
    %70 = tpu.matmul %68, %69, %cst_30 {dimension_numbers = #tpu.dot_dimension_numbers<[1], [0], [0], [1], [0, 0, 1, 1], [], []>} : vector<256x32xbf16>, vector<32x256xbf16>, vector<256x256xf32> -> vector<256x256xf32>
    %cst_31 = arith.constant dense<0xFF800000> : vector<256xf32>
    %71 = vector.multi_reduction <maximumf>, %70, %cst_31 [1] : vector<256x256xf32> to vector<256xf32>
    %72 = vector.shape_cast %71 : vector<256xf32> to vector<256x1xf32>
    %73 = vector.broadcast %72 : vector<256x1xf32> to vector<256x256xf32>
    %74 = arith.subf %70, %73 : vector<256x256xf32>
    %75 = math.exp %74 : vector<256x256xf32>
    %cst_32 = arith.constant dense<0.000000e+00> : vector<256xf32>
    %76 = vector.multi_reduction <add>, %75, %cst_32 [1] : vector<256x256xf32> to vector<256xf32>
    %77 = vector.shape_cast %76 : vector<256xf32> to vector<256x1xf32>
    %78 = arith.truncf %75 : vector<256x256xf32> to vector<256x256xbf16>
    %c3 = arith.constant 3 : index
    %c0_33 = arith.constant 0 : index
    %c0_34 = arith.constant 0 : index
    %79 = vector.load %arg11[%c3, %c0_33, %c0_34] : memref<4x256x32xbf16, #tpu.memory_space<vmem>>, vector<1x256x32xbf16>
    %80 = vector.shape_cast %79 : vector<1x256x32xbf16> to vector<256x32xbf16>
    %cst_35 = arith.constant dense<0.000000e+00> : vector<256x32xf32>
    %81 = tpu.matmul %78, %80, %cst_35 {dimension_numbers = #tpu.dot_dimension_numbers<[1], [0], [0], [1], [0, 0, 1, 1], [], []>} : vector<256x256xbf16>, vector<256x32xbf16>, vector<256x32xf32> -> vector<256x32xf32>
    %82 = tpu.reciprocal %77 : vector<256x1xf32> -> vector<256x1xf32>
    %83 = vector.broadcast %82 : vector<256x1xf32> to vector<256x32xf32>
    %84 = arith.mulf %81, %83 : vector<256x32xf32>
    %85 = arith.truncf %84 : vector<256x32xf32> to vector<256x32xbf16>
    %86 = tpu.concatenate %31, %49, %67, %85 in 1 : vector<256x32xbf16>, vector<256x32xbf16>, vector<256x32xbf16>, vector<256x32xbf16> -> vector<256x128xbf16>
    %c0_36 = arith.constant 0 : index
    %c0_37 = arith.constant 0 : index
    %87 = vector.load %arg7[%c0_36, %c0_37] : memref<128x128xbf16, #tpu.memory_space<vmem>>, vector<128x128xbf16>
    %cst_38 = arith.constant dense<0.000000e+00> : vector<256x128xf32>
    %88 = tpu.matmul %86, %87, %cst_38 {dimension_numbers = #tpu.dot_dimension_numbers<[1], [0], [0], [1], [0, 0, 1, 1], [], []>} : vector<256x128xbf16>, vector<128x128xbf16>, vector<256x128xf32> -> vector<256x128xf32>
    %c0_39 = arith.constant 0 : index
    %c0_40 = arith.constant 0 : index
    %89 = vector.load %arg8[%c0_39, %c0_40] : memref<1x128xf32, #tpu.memory_space<vmem>>, vector<1x128xf32>
    %90 = vector.broadcast %89 : vector<1x128xf32> to vector<256x128xf32>
    %91 = arith.addf %88, %90 : vector<256x128xf32>
    %c0_41 = arith.constant 0 : index
    %c0_42 = arith.constant 0 : index
    %c0_43 = arith.constant 0 : index
    %92 = vector.load %arg9[%c0_41, %c0_42, %c0_43] : memref<1x256x128xf32, #tpu.memory_space<vmem>>, vector<1x256x128xf32>
    %93 = vector.shape_cast %92 : vector<1x256x128xf32> to vector<256x128xf32>
    %94 = vector.shape_cast %91 : vector<256x128xf32> to vector<1x256x128xf32>
    tpu.vector_store %arg9[%c0_41, %c0_42, %c0_43], %94 {strides = array<i32>} : memref<1x256x128xf32, #tpu.memory_space<vmem>>, vector<1x256x128xf32>,
    return
  }
  func.func @transform_0(%arg0: i32, %arg1: i32) -> (i32, i32, i32) {
    %c0_i32 = arith.constant 0 : i32
    %c0_i32_0 = arith.constant 0 : i32
    %c0_i32_1 = arith.constant 0 : i32
    return %arg0, %c0_i32, %c0_i32_0 : i32, i32, i32
  }
  func.func @transform_1(%arg0: i32, %arg1: i32) -> (i32, i32) {
    %c0_i32 = arith.constant 0 : i32
    %c0_i32_0 = arith.constant 0 : i32
    %c0_i32_1 = arith.constant 0 : i32
    return %c0_i32, %c0_i32_0 : i32, i32
  }
  func.func @transform_2(%arg0: i32, %arg1: i32) -> (i32, i32) {
    %c0_i32 = arith.constant 0 : i32
    %c0_i32_0 = arith.constant 0 : i32
    %c0_i32_1 = arith.constant 0 : i32
    return %c0_i32, %c0_i32_0 : i32, i32
  }
  func.func @transform_3(%arg0: i32, %arg1: i32) -> (i32, i32) {
    %c0_i32 = arith.constant 0 : i32
    %c0_i32_0 = arith.constant 0 : i32
    %c0_i32_1 = arith.constant 0 : i32
    return %c0_i32, %c0_i32_0 : i32, i32
  }
  func.func @transform_4(%arg0: i32, %arg1: i32) -> (i32, i32) {
    %c0_i32 = arith.constant 0 : i32
    %c0_i32_0 = arith.constant 0 : i32
    %c0_i32_1 = arith.constant 0 : i32
    return %c0_i32, %c0_i32_0 : i32, i32
  }
  func.func @transform_5(%arg0: i32, %arg1: i32) -> (i32, i32) {
    %c0_i32 = arith.constant 0 : i32
    %c0_i32_0 = arith.constant 0 : i32
    %c0_i32_1 = arith.constant 0 : i32
    return %c0_i32, %c0_i32_0 : i32, i32
  }
  func.func @transform_6(%arg0: i32, %arg1: i32) -> (i32, i32) {
    %c0_i32 = arith.constant 0 : i32
    %c0_i32_0 = arith.constant 0 : i32
    %c0_i32_1 = arith.constant 0 : i32
    return %c0_i32, %c0_i32_0 : i32, i32
  }
  func.func @transform_7(%arg0: i32, %arg1: i32) -> (i32, i32, i32) {
    %c0_i32 = arith.constant 0 : i32
    %c0_i32_0 = arith.constant 0 : i32
    return %arg0, %arg1, %c0_i32 : i32, i32, i32
  }
}

</mosaic_0001>

<bundles_post_ra>
// kernel: tpu_custom_call.1
= control target key start
LH: loop header
LB: loop body
LE: loop exit
PB: predicated region body
PF: predicated region fallthrough
CT: control target
= control target key end

     0   :  { %s12315_s0 = inlined_call_operand.hbm [shape: bf16[2,256,128], index: 0, kind: input, shape index: {}]   ;;  %s12316_s1 = inlined_call_operand.hbm [shape: bf16[128,128], index: 1, kind: input, shape index: {}]   ;;  %s12317_s2 = inlined_call_operand.vmem [shape: f32[1,128], index: 2, kind: input, shape index: {}]   ;;  %s12318_s3 = inlined_call_operand.hbm [shape: bf16[128,256], index: 3, kind: input, shape index: {}]   ;;  %s12319_s4 = inlined_call_operand.vmem [shape: f32[1,256], index: 4, kind: input, shape index: {}]   ;;  %s12320_s5 = inlined_call_operand.hbm [shape: bf16[128,128], index: 5, kind: input, shape index: {}]   ;;  %s12321_s6 = inlined_call_operand.vmem [shape: f32[1,128], index: 6, kind: input, shape index: {}]   ;;  %s12322_s7 = inlined_call_operand.hbm [shape: f32[2,256,128], index: 7, kind: output, shape index: {}]  }
   0x1   :  { %12682 = sst [smem:[#allocation235_spill]] %s12316_s1 }
   0x2   :  { %12683 = sst [smem:[#allocation236_spill]] %s12322_s7 }
   0x3   :  { %12 = vsyncpa [#allocation5], 0 }
   0x4   :  { %14 = vsyncpa [#allocation5 + $0x1], 0 }
   0x5   :  { %15 = vsyncpa [#allocation8], 0 }
   0x6   :  { %16 = vsyncpa [#allocation11], 0 }
   0x7   :  { %17 = vsyncpa [#allocation6], 0 }
   0x8   :  { %19 = vsyncpa [#allocation6 + $0x1], 0  ;;  %s7885_s24 = smov 0   ;;  %s7887_s25 = smov 0  }
   0x9   :  { %s7889_s26 = smov 0   ;;  %s7891_s27 = smov 0  }
   0xa   :  { %s7893_s28 = smov 0   ;;  %s7895_s29 = smov 0  }
   0xb LB: > { %12684 = sst [smem:[#allocation17_spill]] %s7808_s24  ;;  %s5936_s30 = sadd.s32 4294967295, %s7828_s29   ;;  %s7828_s29 = sphi %s7895_s29, %s25_s29   ;;  %s7824_s28 = sphi %s7893_s28, %s13739_s28   ;;  %s7820_s27 = sphi %s7891_s27, %s13738_s27   ;;  %s7816_s26 = sphi %s7889_s26, %s13737_s26   ;;  %s7812_s25 = sphi %s7887_s25, %s13736_s25   ;;  %s7808_s24 = sphi %s7885_s24, %s13735_s24  }
   0xc   : > { %s5937_s8 = sadd.s32 4294967294, %s7828_s29   ;;  %p57_p0 = scmp.ne.s32.totalorder %s7812_s25, %s7808_s24 }
   0xd   : > { %p7919_p1 = scmp.eq.s32.totalorder %s5936_s30, 0  ;;  %p7923_p2 = scmp.eq.s32.totalorder %s5936_s30, 1 }
   0xe   : > { %p215_p3 = scmp.eq.s32.totalorder %s5937_s8, 1  ;;  %p5938_p5 = scmp.ge.s32.totalorder %s7828_s29, 1 }
   0xf   : > { %s12685_s9 = scalar_select %p7919_p1, 1, 0 }
  0x10   : > { %s12686_s10 = scalar_select %p7923_p2, 1, 0 }
  0x11   : > { %p7929_p4 = por %p7919_p1, %p57_p0  ;;  %p7934_p6 = por %p215_p3, %p57_p0 }
  0x12   : > { %p222_p7 = scmp.lt.s32.totalorder %s7828_s29, 3  ;;  %s7830_s14 = smov [#allocation7]  }
  0x13   : > { %s12687_s11 = scalar_select %p7929_p4, 1, 0 }
  0x14   : > { %s12688_s12 = scalar_select %p7934_p6, 1, 0 }
  0x15   : > { %p7939_p8 = pnand %p5938_p5, %p222_p7  ;;  %s234_s15 = sshll.u32 %s7830_s14, 4  ;;  %s7943_s15 = int_to_ptr.vmem [resolvable:$true] %s234_s15 }
  0x16   : > { %12689 = sst [smem:[#allocation18_spill]] %s12688_s12  ;;  %s7831_s17 = smov [#allocation9]  }
  0x17   : > { %s12690_s13 = scalar_select %p7939_p8, 1, 0 }
  0x18   : > { %p6697_p9 = pneg %p7939_p8  ;;  %s250_s18 = sshll.u32 %s7831_s17, 4  ;;  %s7954_s18 = int_to_ptr.vmem [resolvable:$true] %s250_s18 }
  0x19   : > { %s12692_s1 = sld [smem:[#allocation235_spill]] }
  0x1a   : > { %p7950_p11 = pnand %p6697_p9, %p7919_p1 }
  0x1c   : > { %p7964_p13 = pneg %p7950_p11 }
  0x1f   : > { %s7624_s21 = scalar_lea.hbm %s12692_s1, 1024 }
  0x20   : > { %p7625_p12 = scmp.ne.s32.totalorder %s12692_s1, %s7624_s21  ;;  %p7631_p5 = scmp.lt.u32.totalorder %s7624_s21, %s12692_s1 }
  0x22   : > { %p7627_p0 = pnand %p7964_p13, %p7625_p12 }
  0x24   : > { %p7628_p3 = pneg %p7627_p0 }
  0x26   : > { %p7633_p7 = pnand %p7631_p5, %p7628_p3 }
  0x28   : > { %7636 = shalt.err (!%p7633_p7)
}
  0x29   : > { %s7637_s17 = scalar_lea.vmem %s7943_s15, 1024  ;;  %p7645_p1 = scmp.lt.s32.totalorder %s7943_s15, %s7943_s15 }
  0x2a   : > { %p7638_p9 = scmp.ne.s32.totalorder %s7943_s15, %s7637_s17  ;;  %p7646_p4 = scmp.lt.s32.totalorder %s7637_s17, %s7637_s17 }
  0x2c   : > { %p7640_p10 = pnand %p7638_p9, %p7964_p13  ;;  %p7647_p12 = por %p7646_p4, %p7645_p1 }
  0x2e   : > { %p7641_p6 = pneg %p7640_p10 }
  0x30   : > { %p7648_p0 = pnand %p7647_p12, %p7641_p6 }
  0x32   : > { %7651 = shalt.err (!%p7648_p0)
}
  0x33   : > { %s12329_s19 = smov 64   ;;  %s12331_s20 = smov 4  }
  0x34   : > { %6700 = dma.hbm_to_vmem [thread:$0]  (!%p7950_p11), %s12692_s1, 1024, %s7943_s15, [#allocation8], %s12329_s19, %s12329_s19, %s12331_s20  }
  0x35   : > { %s7652_s14 = scalar_lea.hbm %s12318_s3, 2048 }
  0x36   : > { %p7653_p1 = scmp.ne.s32.totalorder %s12318_s3, %s7652_s14  ;;  %p7659_p10 = scmp.lt.u32.totalorder %s7652_s14, %s12318_s3 }
  0x38   : > { %p7655_p4 = pnand %p7653_p1, %p7964_p13 }
  0x3a   : > { %p7656_p6 = pneg %p7655_p4 }
  0x3c   : > { %p7661_p3 = pnand %p7659_p10, %p7656_p6 }
  0x3e   : > { %7664 = shalt.err (!%p7661_p3)
}
  0x3f   : > { %s7665_s15 = scalar_lea.vmem %s7954_s18, 2048  ;;  %p7673_p12 = scmp.lt.s32.totalorder %s7954_s18, %s7954_s18 }
  0x40   : > { %p7666_p5 = scmp.ne.s32.totalorder %s7954_s18, %s7665_s15  ;;  %p7674_p0 = scmp.lt.s32.totalorder %s7665_s15, %s7665_s15 }
  0x42   : > { %p7668_p7 = pnand %p7666_p5, %p7964_p13  ;;  %p7675_p1 = por %p7674_p0, %p7673_p12 }
  0x44   : > { %p7669_p9 = pneg %p7668_p7 }
  0x46   : > { %p7676_p4 = pnand %p7675_p1, %p7669_p9 }
  0x48   : > { %7679 = shalt.err (!%p7676_p4)
}
  0x49   : > { %s7834_s12 = smov 128   ;;  %s7835_s7 = smov 8  }
  0x4a   : > { %6703 = dma.hbm_to_vmem [thread:$0]  (!%p7950_p11), %s12318_s3, 2048, %s7954_s18, [#allocation8], %s7834_s12, %s7834_s12, %s7835_s7  }
  0x4b   : > { %s7836_s22 = smov [#allocation10]   ;;  %s7680_s17 = scalar_lea.hbm %s12320_s5, 1024 }
  0x4c   : > { %s266_s23 = sshll.u32 %s7836_s22, 4  ;;  %p7681_p6 = scmp.ne.s32.totalorder %s12320_s5, %s7680_s17  ;;  %s267_s23 = int_to_ptr.vmem [resolvable:$true] %s266_s23 }
  0x4d   : > { %p7687_p5 = scmp.lt.u32.totalorder %s7680_s17, %s12320_s5 }
  0x4e   : > { %p7683_p10 = pnand %p7681_p6, %p7964_p13 }
  0x50   : > { %p7684_p3 = pneg %p7683_p10 }
  0x52   : > { %p7689_p7 = pnand %p7687_p5, %p7684_p3 }
  0x54   : > { %7692 = shalt.err (!%p7689_p7)
}
  0x55   : > { %s7693_s18 = scalar_lea.vmem %s267_s23, 1024  ;;  %p7701_p1 = scmp.lt.s32.totalorder %s267_s23, %s267_s23 }
  0x56   : > { %p7694_p9 = scmp.ne.s32.totalorder %s267_s23, %s7693_s18  ;;  %p7702_p4 = scmp.lt.s32.totalorder %s7693_s18, %s7693_s18 }
  0x58   : > { %p7696_p12 = pnand %p7694_p9, %p7964_p13  ;;  %p7703_p8 = por %p7702_p4, %p7701_p1 }
  0x5a   : > { %p7697_p0 = pneg %p7696_p12 }
  0x5c   : > { %p7704_p2 = pnand %p7703_p8, %p7697_p0 }
  0x5e   : > { %7707 = shalt.err (!%p7704_p2)
}
  0x5f   : > { %s12694_s19 = smov 4   ;;  %s12695_s12 = smov 64  }
  0x60   : > { %6706 = dma.hbm_to_vmem [thread:$0]  (!%p7950_p11), %s12320_s5, 1024, %s267_s23, [#allocation11], %s12695_s12, %s12695_s12, %s12694_s19  }
  0x61   : > { %s37_s30 = sadd.s32 1, %s7824_s28  ;;  %s44_s16 = sadd.s32 1, %s7816_s26 }
  0x62   : > { %p39_p2 = scmp.ge.s32.totalorder %s37_s30, 2  ;;  %p51_p8 = scmp.ne.s32.totalorder %s7816_s26, %s7812_s25 }
  0x63   : > { %p52_p13 = scmp.eq.s32.totalorder %s7828_s29, 0  ;;  %p12697_p10 = scmp.ne.s32.totalorder %s12686_s10, 0 }
  0x64   : > { %s13741_s30 = smov (%p39_p2, %s37_s30), 0  ;;  %p6718_p11 = scmp.lt.s32.totalorder %s7828_s29, 2 }
  0x65   : > { %p8039_p6 = por %p52_p13, %p51_p8  ;;  %p8045_p3 = por %p12697_p10, %p51_p8 }
  0x66   : > { %s41_s21 = ssub.s32 %s7824_s28, %s13741_s30  ;;  %s283_s22 = sand.u32 1, %s7816_s26  }
  0x67   : > { %p42_p5 = scmp.eq.s32.totalorder %s41_s21, 0  ;;  %s5943_s23 = sshll.u32 %s283_s22, 7 }
  0x68   : > { %s6087_s14 = sshll.u32 %s7824_s28, 11  ;;  %s287_s10 = scalar_lea.vmem [#allocation4], %s5943_s23 }
  0x69   : > { %s8054_s8 = scalar_select %p42_p5, %s7816_s26, %s44_s16  }
  0x6a   : > { %s8060_s18 = scalar_lea.hbm %s12315_s0, %s6087_s14  ;;  %s294_s1 = sshll.u32 %s287_s10, 4  ;;  %s8062_s1 = int_to_ptr.vmem [resolvable:$true] %s294_s1 }
  0x6b   : > { %p8066_p7 = pnand %p6718_p11, %p8039_p6  ;;  %s8070_s16 = scalar_lea.sflag [#allocation5], %s283_s22 }
  0x6c   : > { %s7708_s21 = scalar_lea.hbm %s8060_s18, 2048  ;;  %s7713_s7 = scalar_lea.hbm %s12315_s0, 4096 }
  0x6d   : > { %p7709_p9 = scmp.ne.s32.totalorder %s8060_s18, %s7708_s21  ;;  %p7710_p12 = pneg %p8066_p7 }
  0x6e   : > { %p7714_p4 = scmp.lt.u32.totalorder %s8060_s18, %s12315_s0  ;;  %p7715_p2 = scmp.lt.u32.totalorder %s7713_s7, %s7708_s21 }
  0x6f   : > { %p7711_p0 = pnand %p7710_p12, %p7709_p9  ;;  %p7717_p13 = scmp.lt.u32.totalorder %s7708_s21, %s8060_s18 }
  0x70   : > { %p7716_p8 = por %p7715_p2, %p7714_p4 }
  0x71   : > { %p7712_p1 = pneg %p7711_p0 }
  0x72   : > { %p7718_p6 = por %p7717_p13, %p7716_p8 }
  0x74   : > { %p7719_p10 = pnand %p7718_p6, %p7712_p1 }
  0x76   : > { %7722 = shalt.err (!%p7719_p10)
}
  0x77   : > { %s7723_s22 = scalar_lea.vmem %s8062_s1, 2048  ;;  %s7837_s10 = smov [#allocation4]  }
  0x78   : > { %p7724_p11 = scmp.ne.s32.totalorder %s8062_s1, %s7723_s22  ;;  %s7728_s23 = sshll.u32 %s7837_s10, 4  ;;  %s7729_s23 = int_to_ptr.vmem [resolvable:$false] %s7728_s23 }
  0x79   : > { %s7730_s14 = scalar_lea.vmem %s7729_s23, 4096  ;;  %p7731_p0 = scmp.lt.s32.totalorder %s8062_s1, %s7729_s23 }
  0x7a   : > { %p7726_p5 = pnand %p7724_p11, %p7710_p12  ;;  %p7732_p4 = scmp.lt.s32.totalorder %s7730_s14, %s7723_s22 }
  0x7c   : > { %p7727_p9 = pneg %p7726_p5  ;;  %p7733_p2 = por %p7732_p4, %p7731_p0 }
  0x7e   : > { %p7734_p8 = pnand %p7733_p2, %p7727_p9 }
  0x80   : > { %7737 = shalt.err (!%p7734_p8)
}
  0x81   : > { %6710 = dma.hbm_to_vmem [thread:$0]  (!%p8066_p7), %s8060_s18, 2048, %s8062_s1, %s8070_s16, %s12695_s12, %s12695_s12, %s12694_s19  }
  0x82   : > { %p12700_p12 = scmp.ne.s32.totalorder %s12690_s13, 0 }
  0x84   : > { %306 = sbr.rel (%p12700_p12) target bundleno = 2803 (0xaf3), region = 48 }
  0x8b   : > { %s8104_s21 = sand.u32 1, %s7812_s25   ;;  %p12701_p1 = scmp.ne.s32.totalorder %s12687_s11, 0 }
  0x8c   : > { %s5947_s7 = sshll.u32 %s8104_s21, 7  ;;  %s309_s17 = scalar_lea.sflag [#allocation5], %s8104_s21 }
  0x8d   : > { %s8108_s15 = scalar_lea.vmem [#allocation4], %s5947_s7 }
  0x8e   : > { %7791 = dma.done.wait (%p12701_p1), %s309_s17, 2048  }
  0x8f   : > { %7793 = vsyncadd (%p12701_p1), %s309_s17, 4294965248  ;;  %p12702_p7 = scmp.ne.s32.totalorder %s12685_s9, 0 }
  0x91   : > { %7795 = dma.done.wait (%p12702_p7), [#allocation8], 3072  }
  0x92   : > { %7797 = vsyncadd (%p12702_p7), [#allocation8], 4294964224 }
  0x93   : > { %7799 = dma.done.wait (%p12702_p7), [#allocation11], 1024  }
  0x94   : > { %7801 = vsyncadd (%p12702_p7), [#allocation11], 4294966272  ;;  %v12334_v0 = vmov 0   ;;  %v6784_v1 = vld [vmem:[#allocation9 + $0x4] ss:$8 sps:$4 sm:$0xff]   ;;  %v6794_v8 = vld [vmem:[#allocation7 + $0x10] sm:$0xff]   ;;  %v411_v53 = vlaneseq }
  0x95   : > { %629 = vmatprep.mubr.bf16.mxu0 %v12334_v0  ;;  %v6786_v2 = vld [vmem:[#allocation7] sm:$0xff]   ;;  %597 = vmatprep.subr.bf16.mxu0 %v6784_v1  ;;  %v6788_v4 = vld [vmem:[#allocation9 + $0x14] ss:$8 sps:$4 sm:$0xff]   ;;  %v6790_v5 = vld [vmem:[#allocation7 + $0x8] sm:$0xff]   ;;  %vm870_vm0 = vcmask 261120   ;;  %s7839_s12 = smov 32  }
  0x96   : > { %v6787_v3 = vld [vmem:[#allocation9] ss:$8 sps:$4 sm:$0xff]   ;;  %6585 = vmatprep.subr.bf16.mxu1 %v6786_v2  ;;  %v6791_v6 = vld [vmem:[#allocation9 + $0x10] ss:$8 sps:$4 sm:$0xff]   ;;  %v6792_v7 = vld [vmem:[#allocation9 + $0x24] ss:$8 sps:$4 sm:$0xff]  }
  0x97   : > { %598 = vmatpush1.bf16.msra.mxu0 %v6787_v3  ;;  %6586 = vmatpush3.bf16.msra.mxu1 %v6786_v2  ;;  %v6795_v9 = vld [vmem:[#allocation9 + $0x20] ss:$8 sps:$4 sm:$0xff]   ;;  %v6796_v10 = vld [vmem:[#allocation9 + $0x34] ss:$8 sps:$4 sm:$0xff]   ;;  %v6799_v12 = vld [vmem:[#allocation9 + $0x30] ss:$8 sps:$4 sm:$0xff]  }
  0x98   : > { %599 = vmatprep.subr.bf16.mxu0 %v6788_v4  ;;  %6587 = vmatprep.subr.bf16.mxu1 %v6790_v5  ;;  %v6798_v11 = vld [vmem:[#allocation7 + $0x18] sm:$0xff]   ;;  %v6800_v13 = vld [vmem:[#allocation9 + $0x44] ss:$8 sps:$4 sm:$0xff]   ;;  %v6803_v15 = vld [vmem:[#allocation9 + $0x40] ss:$8 sps:$4 sm:$0xff]   ;;  %v412_v54 = vshrl.u32 %v411_v53, 7 }
  0x99   : > { %v6802_v14 = vld [vmem:[#allocation7 + $0x20] sm:$0xff]   ;;  %v6804_v16 = vld [vmem:[#allocation9 + $0x54] ss:$8 sps:$4 sm:$0xff]   ;;  %v6806_v17 = vld [vmem:[#allocation7 + $0x28] sm:$0xff]   ;;  %s7840_s18 = smov 96   ;;  %s7841_s1 = smov 64  }
  0x9a   : > { %v6807_v18 = vld [vmem:[#allocation9 + $0x50] ss:$8 sps:$4 sm:$0xff]   ;;  %v6816_v19 = vld [vmem:[%s8108_s15] sm:$0xff]   ;;  %v6812_v23 = vld [vmem:[#allocation9 + $0x74] ss:$8 sps:$4 sm:$0xff]   ;;  %v413_v56 = vsub.s32 0, %v412_v54 }
  0x9b   : > { %600 = vmatpush1.bf16.msra.mxu0 %v6791_v6  ;;  %6588 = vmatpush3.bf16.msra.mxu1 %v6790_v5  ;;  %v6808_v20 = vld [vmem:[#allocation9 + $0x64] ss:$8 sps:$4 sm:$0xff]   ;;  %v6810_v21 = vld [vmem:[#allocation7 + $0x30] sm:$0xff]   ;;  %v6811_v22 = vld [vmem:[#allocation9 + $0x60] ss:$8 sps:$4 sm:$0xff]   ;;  %v417_v62 = vsub.s32 1, %v412_v54 }
  0x9c   : > { %601 = vmatprep.subr.bf16.mxu0 %v6792_v7  ;;  %6589 = vmatprep.subr.bf16.mxu1 %v6794_v8  ;;  %v6814_v24 = vld [vmem:[#allocation7 + $0x38] sm:$0xff]   ;;  %v6817_v26 = vld [vmem:[%s8108_s15] sm:$0xff]   ;;  %v6818_v27 = vld [vmem:[%s8108_s15 + $0x8] sm:$0xff]   ;;  %vm5459_vm1 = vcmask 523264   ;;  %vm5492_vm2 = vcmask 785408   ;;  %s5951_s20 = sshll.u32 %s8104_s21, 8 }
  0x9d   : > { %6601 = vmatprep.mubr.bf16.mxu1 %v6816_v19  ;;  %v6815_v25 = vld [vmem:[#allocation9 + $0x70] ss:$8 sps:$4 sm:$0xff]   ;;  %v6819_v29 = vld [vmem:[%s8108_s15 + $0x8] sm:$0xff]   ;;  %v6823_v31 = vld [vmem:[%s8108_s15 + $0x20] sm:$0xff]   ;;  %s12162_s10 = scalar_lea.vmem [#allocation12], %s5951_s20  ;;  %s6088_s23 = sshll.u32 %s7820_s27, 12 }
  0x9e   : > { %v6820_v28 = vld [vmem:[%s8108_s15 + $0x10] sm:$0xff]   ;;  %v6821_v30 = vld [vmem:[%s8108_s15 + $0x18] sm:$0xff]   ;;  %v6825_v33 = vld [vmem:[%s8108_s15 + $0x28] sm:$0xff]   ;;  %s5821_s14 = sshll.u32 %s12162_s10, 4  ;;  %s5806_s27 = scalar_lea.sflag [#allocation6], %s8104_s21  ;;  %s12262_s14 = int_to_ptr.vmem [resolvable:$true] %s5821_s14 }
  0x9f   : > { %602 = vmatpush1.bf16.msra.mxu0 %v6795_v9  ;;  %6590 = vmatpush3.bf16.msra.mxu1 %v6794_v8  ;;  %v6822_v32 = vld [vmem:[%s8108_s15 + $0x10] sm:$0xff]   ;;  %v6824_v35 = vld [vmem:[%s8108_s15 + $0x18] sm:$0xff]   ;;  %v6829_v37 = vld [vmem:[%s8108_s15 + $0x40] sm:$0xff]   ;;  %s7738_s11 = scalar_lea.vmem %s12262_s14, 4096  ;;  %s7842_s13 = smov [#allocation12]  }
  0xa0   : > { %603 = vmatprep.subr.bf16.mxu0 %v6796_v10  ;;  %6591 = vmatprep.subr.bf16.mxu1 %v6798_v11  ;;  %v6826_v34 = vld [vmem:[%s8108_s15 + $0x30] sm:$0xff]   ;;  %v6828_v36 = vld [vmem:[%s8108_s15 + $0x38] sm:$0xff]   ;;  %v6827_v38 = vld [vmem:[%s8108_s15 + $0x20] sm:$0xff]   ;;  %p7739_p13 = scmp.ne.s32.totalorder %s12262_s14, %s7738_s11  ;;  %s7742_s19 = sshll.u32 %s7842_s13, 4  ;;  %s7743_s19 = int_to_ptr.vmem [resolvable:$false] %s7742_s19 }
  0xa1   : > { %v6831_v39 = vld [vmem:[%s8108_s15 + $0x48] sm:$0xff]   ;;  %v6832_v40 = vld [vmem:[%s8108_s15 + $0x50] sm:$0xff]   ;;  %v6834_v42 = vld [vmem:[%s8108_s15 + $0x58] sm:$0xff]   ;;  %p7745_p11 = scmp.lt.s32.totalorder %s12262_s14, %s7743_s19 }
  0xa2   : > { %v6830_v41 = vld [vmem:[%s8108_s15 + $0x28] sm:$0xff]   ;;  %v6836_v43 = vld [vmem:[%s8108_s15 + $0x60] sm:$0xff]   ;;  %v6833_v44 = vld [vmem:[%s8108_s15 + $0x30] sm:$0xff]   ;;  %p7740_p6 = pnand %p7739_p13, %p8045_p3 }
  0xa3   : > { %604 = vmatpush1.bf16.msra.mxu0 %v6799_v12  ;;  %6592 = vmatpush3.bf16.msra.mxu1 %v6798_v11  ;;  %v6837_v45 = vld [vmem:[%s8108_s15 + $0x68] sm:$0xff]   ;;  %v6841_v46 = vld [vmem:[%s8108_s15 + $0x70] sm:$0xff]   ;;  %v6835_v47 = vld [vmem:[%s8108_s15 + $0x38] sm:$0xff]  }
  0xa4   : > { %605 = vmatprep.subr.bf16.mxu0 %v6800_v13  ;;  %6593 = vmatprep.subr.bf16.mxu1 %v6802_v14  ;;  %v6842_v48 = vld [vmem:[%s8108_s15 + $0x78] sm:$0xff]   ;;  %v6838_v49 = vld [vmem:[%s8108_s15 + $0x40] sm:$0xff]   ;;  %v6839_v50 = vld [vmem:[%s8108_s15 + $0x48] sm:$0xff]   ;;  %p7741_p10 = pneg %p7740_p6 }
  0xa5   : > { %v6840_v51 = vld [vmem:[%s8108_s15 + $0x50] sm:$0xff]   ;;  %v6843_v52 = vld [vmem:[%s8108_s15 + $0x58] sm:$0xff]   ;;  %v409_v55 = vld [vmem:[%s12319_s4] sm:$0x3] }
  0xa6   : > { %v6844_v57 = vld [vmem:[%s8108_s15 + $0x60] sm:$0xff]   ;;  %v8168_v58 = vrot.slane %v409_v55, %v413_v56  ;;  %v6845_v59 = vld [vmem:[%s8108_s15 + $0x68] sm:$0xff]   ;;  %v6846_v60 = vld [vmem:[%s8108_s15 + $0x70] sm:$0xff]   ;;  %v8176_v63 = vrot.slane %v409_v55, %v417_v62 }
  0xa7   : > { %606 = vmatpush1.bf16.msra.mxu0 %v6803_v15  ;;  %6594 = vmatpush3.bf16.msra.mxu1 %v6802_v14  ;;  %v6847_v61 = vld [vmem:[%s8108_s15 + $0x78] sm:$0xff]   ;;  %v8181_v2 = vld [vmem:[%s12317_s2] ss:$0 sm:$0xff]  ;;  %s13730_s15 = sld [smem:[#allocation236_spill]] }
  0xa8   : > { %607 = vmatprep.subr.bf16.mxu0 %v6804_v16  ;;  %6595 = vmatprep.subr.bf16.mxu1 %v6806_v17 }
  0xab   : > { %608 = vmatpush1.bf16.msra.mxu0 %v6807_v18  ;;  %6596 = vmatpush3.bf16.msra.mxu1 %v6806_v17 }
  0xac   : > { %609 = vmatprep.subr.bf16.mxu0 %v6808_v20  ;;  %6597 = vmatprep.subr.bf16.mxu1 %v6810_v21 }
  0xad   : > { %s12260_s9 = scalar_lea.hbm %s13730_s15, %s6088_s23 }
  0xaf   : > { %610 = vmatpush1.bf16.msra.mxu0 %v6811_v22  ;;  %6598 = vmatpush3.bf16.msra.mxu1 %v6810_v21 }
  0xb0   : > { %611 = vmatprep.subr.bf16.mxu0 %v6812_v23  ;;  %6599 = vmatprep.subr.bf16.mxu1 %v6814_v24 }
  0xb3   : > { %612 = vmatpush1.bf16.msra.mxu0 %v6815_v25  ;;  %6600 = vmatpush3.bf16.msra.mxu1 %v6814_v24 }
  0xb6   : > { %630 = vmatmul.mubr.bf16.vlgmr.msra.gmra.mrb[0].mxu0 %v6817_v26  ;;  %6602 = vmatmul.mubr.bf16.vlgmr.msra.gmra.mrb[0].mxu1 %v6818_v27 }
  0xb7   : > { %639 = vmatprep.mubr.bf16.mxu0 %v12334_v0  ;;  %6605 = vmatprep.mubr.bf16.mxu1 %v6820_v28 }
  0xbe   : > { %640 = vmatmul.mubr.bf16.gmra.mrb[4].mxu0 %v6819_v29  ;;  %6606 = vmatmul.mubr.bf16.gmra.mrb[4].mxu1 %v6821_v30 }
  0xbf   : > { %649 = vmatprep.mubr.bf16.mxu0 %v12334_v0  ;;  %6609 = vmatprep.mubr.bf16.mxu1 %v6823_v31 }
  0xc6   : > { %650 = vmatmul.mubr.bf16.gmra.mrb[8].mxu0 %v6822_v32  ;;  %6610 = vmatmul.mubr.bf16.gmra.mrb[8].mxu1 %v6825_v33 }
  0xc7   : > { %659 = vmatprep.mubr.bf16.mxu0 %v12334_v0  ;;  %6613 = vmatprep.mubr.bf16.mxu1 %v6826_v34 }
  0xce   : > { %660 = vmatmul.mubr.bf16.gmra.mrb[12].mxu0 %v6824_v35  ;;  %6614 = vmatmul.mubr.bf16.gmra.mrb[12].mxu1 %v6828_v36 }
  0xcf   : > { %669 = vmatprep.mubr.bf16.mxu0 %v12334_v0  ;;  %6617 = vmatprep.mubr.bf16.mxu1 %v6829_v37 }
  0xd6   : > { %670 = vmatmul.mubr.bf16.gmra.mrb[16].mxu0 %v6827_v38  ;;  %6618 = vmatmul.mubr.bf16.gmra.mrb[16].mxu1 %v6831_v39 }
  0xd7   : > { %679 = vmatprep.mubr.bf16.mxu0 %v12334_v0  ;;  %6621 = vmatprep.mubr.bf16.mxu1 %v6832_v40 }
  0xde   : > { %680 = vmatmul.mubr.bf16.gmra.mrb[20].mxu0 %v6830_v41  ;;  %6622 = vmatmul.mubr.bf16.gmra.mrb[20].mxu1 %v6834_v42 }
  0xdf   : > { %689 = vmatprep.mubr.bf16.mxu0 %v12334_v0  ;;  %6625 = vmatprep.mubr.bf16.mxu1 %v6836_v43 }
  0xe6   : > { %690 = vmatmul.mubr.bf16.gmra.mrb[24].mxu0 %v6833_v44  ;;  %6626 = vmatmul.mubr.bf16.gmra.mrb[24].mxu1 %v6837_v45 }
  0xe7   : > { %699 = vmatprep.mubr.bf16.mxu0 %v12334_v0  ;;  %6629 = vmatprep.mubr.bf16.mxu1 %v6841_v46 }
  0xee   : > { %700 = vmatmul.mubr.bf16.gmra.mrb[28].mxu0 %v6835_v47  ;;  %6630 = vmatmul.mubr.bf16.gmra.mrb[28].mxu1 %v6842_v48 }
  0xef   : > { %709 = vmatprep.mubr.bf16.mxu0 %v12334_v0  ;;  %1564 = vmatprep.mubr.bf16.mxu1 %v12334_v0 }
  0xf6   : > { %710 = vmatmul.mubr.bf16.gmra.mrb[32].mxu0 %v6838_v49 }
  0xf7   : > { %719 = vmatprep.mubr.bf16.mxu0 %v12334_v0 }
  0xfe   : > { %720 = vmatmul.mubr.bf16.gmra.mrb[36].mxu0 %v6839_v50 }
  0xff   : > { %729 = vmatprep.mubr.bf16.mxu0 %v12334_v0 }
 0x106   : > { %730 = vmatmul.mubr.bf16.gmra.mrb[40].mxu0 %v6840_v51 }
 0x107   : > { %739 = vmatprep.mubr.bf16.mxu0 %v12334_v0 }
 0x10e   : > { %740 = vmatmul.mubr.bf16.gmra.mrb[44].mxu0 %v6843_v52 }
 0x10f   : > { %749 = vmatprep.mubr.bf16.mxu0 %v12334_v0 }
 0x116   : > { %750 = vmatmul.mubr.bf16.gmra.mrb[48].mxu0 %v6844_v57 }
 0x117   : > { %759 = vmatprep.mubr.bf16.mxu0 %v12334_v0 }
 0x11e   : > { %760 = vmatmul.mubr.bf16.gmra.mrb[52].mxu0 %v6845_v59 }
 0x11f   : > { %769 = vmatprep.mubr.bf16.mxu0 %v12334_v0 }
 0x126   : > { %770 = vmatmul.mubr.bf16.gmra.mrb[56].mxu0 %v6846_v60 }
 0x127   : > { %779 = vmatprep.mubr.bf16.mxu0 %v12334_v0 }
 0x12e   : > { %780 = vmatmul.mubr.bf16.gmra.mrb[60].mxu0 %v6847_v61 }
 0x189   : > { %v6603_v1 = vpop.f32.mrb[0].mxu1  ;;  %v631_v3 = vpop.f32.mrb[0].mxu0 }
 0x18a   : > { %v1336_v4 = vpop.f32.mrb[1].mxu1  ;;  %v633_v5 = vpop.f32.mrb[1].mxu0  ;;  %v8184_v6 = vadd.f32 %v631_v3, %v8168_v58  ;;  %v1345_v10 = vadd.f32 %v6603_v1, %v8181_v2 }
 0x18b   : > { %v6604_v7 = vpop.f32.mrb[2].mxu1  ;;  %v634_v8 = vadd.f32 %v633_v5, %v8176_v63  ;;  %v635_v9 = vpop.f32.mrb[2].mxu0  ;;  %v1337_v15 = vadd.f32 %v8181_v2, %v1336_v4 }
 0x18c   : > { %v1348_v11 = vadd.f32 %v6604_v7, %v8181_v2  ;;  %v1339_v12 = vpop.f32.mrb[3].mxu1  ;;  %v637_v13 = vpop.f32.mrb[3].mxu0  ;;  %v8190_v14 = vadd.f32 %v635_v9, %v8168_v58 }
 0x18d   : > { %v1340_v16 = vadd.f32 %v8181_v2, %v1339_v12  ;;  %v638_v17 = vadd.f32 %v637_v13, %v8176_v63 }
 0x18e   : > { %v8195_v18 = vpack.c.bf16 %v1348_v11, %v1345_v10 }
 0x18f   : > { %v8199_v20 = vpack.c.bf16 %v1340_v16, %v1337_v15  ;;  %v8201_v21 = vpack.c.bf16 %v638_v17, %v634_v8 }
 0x190   : > { %4322 = vrot.lane.b32.xlu0 %v8195_v18, %s7839_s12  ;;  %2420 = vrot.lane.b32.xlu1 %v8195_v18, %s7840_s18 }
 0x191   : > { %12703 = vst [vmem:[#allocation19_spill] sm:$0xff] %v8201_v21  ;;  %871 = vst.msk [vmem:[#allocation3] sm:$0xff] %vm870_vm0, %v8201_v21  ;;  %v6607_v22 = vpop.f32.mrb[4].mxu1  ;;  %v641_v23 = vpop.f32.mrb[4].mxu0 }
 0x192   : > { %v1361_v24 = vadd.f32 %v6607_v22, %v8181_v2  ;;  %v1352_v25 = vpop.f32.mrb[5].mxu1  ;;  %v8211_v26 = vadd.f32 %v641_v23, %v8168_v58  ;;  %v643_v27 = vpop.f32.mrb[5].mxu0 }
 0x193   : > { %v1353_v28 = vadd.f32 %v8181_v2, %v1352_v25  ;;  %v6608_v29 = vpop.f32.mrb[6].mxu1  ;;  %v644_v30 = vadd.f32 %v643_v27, %v8176_v63  ;;  %v645_v31 = vpop.f32.mrb[6].mxu0 }
 0x194   : > { %3371 = vrot.lane.b32.xlu1 %v8195_v18, %s7841_s1  ;;  %2418 = vrot.lane.b32.xlu0 %v8199_v20, %s7840_s18  ;;  %v1364_v32 = vadd.f32 %v6608_v29, %v8181_v2  ;;  %v1355_v33 = vpop.f32.mrb[7].mxu1  ;;  %v8221_v34 = vadd.f32 %v645_v31, %v8168_v58  ;;  %v647_v35 = vpop.f32.mrb[7].mxu0 }
 0x195   : > { %v1356_v36 = vadd.f32 %v8181_v2, %v1355_v33  ;;  %v648_v37 = vadd.f32 %v647_v35, %v8176_v63 }
 0x196   : > { %v8225_v38 = vpack.c.bf16 %v1364_v32, %v1361_v24 }
 0x197   : > { %v8229_v40 = vpack.c.bf16 %v1356_v36, %v1353_v28  ;;  %v8231_v41 = vpack.c.bf16 %v648_v37, %v644_v30 }
 0x198   : > { %4320 = vrot.lane.b32.xlu1 %v8199_v20, %s7839_s12  ;;  %3369 = vrot.lane.b32.xlu0 %v8199_v20, %s7841_s1 }
 0x199   : > { %12704 = vst [vmem:[#allocation20_spill] sm:$0xff] %v8231_v41  ;;  %872 = vst.msk [vmem:[#allocation3 + $0x8] sm:$0xff] %vm870_vm0, %v8231_v41  ;;  %v651_v42 = vpop.f32.mrb[8].mxu0  ;;  %v6611_v43 = vpop.f32.mrb[8].mxu1 }
 0x19a   : > { %v8240_v44 = vadd.f32 %v651_v42, %v8168_v58  ;;  %v1377_v45 = vadd.f32 %v6611_v43, %v8181_v2  ;;  %v653_v46 = vpop.f32.mrb[9].mxu0  ;;  %v1368_v47 = vpop.f32.mrb[9].mxu1 }
 0x19b   : > { %v654_v48 = vadd.f32 %v653_v46, %v8176_v63  ;;  %v1369_v49 = vadd.f32 %v8181_v2, %v1368_v47  ;;  %v655_v50 = vpop.f32.mrb[10].mxu0  ;;  %v6612_v51 = vpop.f32.mrb[10].mxu1 }
 0x19c   : > { %2424 = vrot.lane.b32.xlu1 %v8225_v38, %s7840_s18  ;;  %903 = vrot.lane.b32.xlu0 %v8201_v21, %s7840_s18  ;;  %v8250_v52 = vadd.f32 %v655_v50, %v8168_v58  ;;  %v1380_v53 = vadd.f32 %v6612_v51, %v8181_v2  ;;  %v657_v54 = vpop.f32.mrb[11].mxu0  ;;  %v1371_v55 = vpop.f32.mrb[11].mxu1 }
 0x19d   : > { %v658_v56 = vadd.f32 %v657_v54, %v8176_v63  ;;  %v1372_v57 = vadd.f32 %v8181_v2, %v1371_v55 }
 0x19e   : > { %v8255_v59 = vpack.c.bf16 %v1380_v53, %v1377_v45 }
 0x19f   : > { %v8259_v61 = vpack.c.bf16 %v658_v56, %v654_v48  ;;  %v8261_v62 = vpack.c.bf16 %v1372_v57, %v1369_v49 }
 0x1a0   : > { %4326 = vrot.lane.b32.xlu1 %v8225_v38, %s7839_s12  ;;  %3375 = vrot.lane.b32.xlu0 %v8225_v38, %s7841_s1 }
 0x1a1   : > { %12705 = vst [vmem:[#allocation21_spill] sm:$0xff] %v8259_v61  ;;  %873 = vst.msk [vmem:[#allocation3 + $0x10] sm:$0xff] %vm870_vm0, %v8259_v61  ;;  %v661_v1 = vpop.f32.mrb[12].mxu0  ;;  %v6615_v3 = vpop.f32.mrb[12].mxu1 }
 0x1a2   : > { %v8270_v4 = vadd.f32 %v661_v1, %v8168_v58  ;;  %v1393_v5 = vadd.f32 %v6615_v3, %v8181_v2  ;;  %v663_v7 = vpop.f32.mrb[13].mxu0  ;;  %v1384_v8 = vpop.f32.mrb[13].mxu1 }
 0x1a3   : > { %v664_v9 = vadd.f32 %v663_v7, %v8176_v63  ;;  %v1385_v10 = vadd.f32 %v8181_v2, %v1384_v8  ;;  %v665_v11 = vpop.f32.mrb[14].mxu0  ;;  %v6616_v12 = vpop.f32.mrb[14].mxu1 }
 0x1a4   : > { %2422 = vrot.lane.b32.xlu1 %v8229_v40, %s7840_s18  ;;  %3373 = vrot.lane.b32.xlu0 %v8229_v40, %s7841_s1  ;;  %v8280_v13 = vadd.f32 %v665_v11, %v8168_v58  ;;  %v1396_v15 = vadd.f32 %v6616_v12, %v8181_v2  ;;  %v667_v16 = vpop.f32.mrb[15].mxu0  ;;  %v1387_v17 = vpop.f32.mrb[15].mxu1 }
 0x1a5   : > { %v668_v22 = vadd.f32 %v667_v16, %v8176_v63  ;;  %v1388_v23 = vadd.f32 %v8181_v2, %v1387_v17 }
 0x1a6   : > { %v8285_v24 = vpack.c.bf16 %v1396_v15, %v1393_v5 }
 0x1a7   : > { %v8289_v27 = vpack.c.bf16 %v668_v22, %v664_v9  ;;  %v8291_v28 = vpack.c.bf16 %v1388_v23, %v1385_v10 }
 0x1a8   : > { %2428 = vrot.lane.b32.xlu1 %v8255_v59, %s7840_s18  ;;  %905 = vrot.lane.b32.xlu0 %v8231_v41, %s7840_s18 }
 0x1a9   : > { %12706 = vst [vmem:[#allocation22_spill] sm:$0xff] %v8289_v27  ;;  %874 = vst.msk [vmem:[#allocation3 + $0x18] sm:$0xff] %vm870_vm0, %v8289_v27  ;;  %v671_v29 = vpop.f32.mrb[16].mxu0  ;;  %v6619_v30 = vpop.f32.mrb[16].mxu1 }
 0x1aa   : > { %v8300_v31 = vadd.f32 %v671_v29, %v8168_v58  ;;  %v1409_v32 = vadd.f32 %v6619_v30, %v8181_v2  ;;  %v673_v33 = vpop.f32.mrb[17].mxu0  ;;  %v1400_v35 = vpop.f32.mrb[17].mxu1 }
 0x1ab   : > { %v674_v36 = vadd.f32 %v673_v33, %v8176_v63  ;;  %v1401_v37 = vadd.f32 %v8181_v2, %v1400_v35  ;;  %v675_v42 = vpop.f32.mrb[18].mxu0  ;;  %v6620_v43 = vpop.f32.mrb[18].mxu1 }
 0x1ac   : > { %3377 = vrot.lane.b32.xlu1 %v8261_v62, %s7841_s1  ;;  %4324 = vrot.lane.b32.xlu0 %v8229_v40, %s7839_s12  ;;  %v8310_v45 = vadd.f32 %v675_v42, %v8168_v58  ;;  %v1412_v46 = vadd.f32 %v6620_v43, %v8181_v2  ;;  %v677_v47 = vpop.f32.mrb[19].mxu0  ;;  %v1403_v48 = vpop.f32.mrb[19].mxu1 }
 0x1ad   : > { %v678_v49 = vadd.f32 %v677_v47, %v8176_v63  ;;  %v1404_v50 = vadd.f32 %v8181_v2, %v1403_v48 }
 0x1ae   : > { %v8315_v51 = vpack.c.bf16 %v1412_v46, %v1409_v32 }
 0x1af   : > { %v8319_v54 = vpack.c.bf16 %v678_v49, %v674_v36  ;;  %v8321_v55 = vpack.c.bf16 %v1404_v50, %v1401_v37 }
 0x1b0   : > { %2432 = vrot.lane.b32.xlu1 %v8285_v24, %s7840_s18  ;;  %3379 = vrot.lane.b32.xlu0 %v8255_v59, %s7841_s1 }
 0x1b1   : > { %12707 = vst [vmem:[#allocation23_spill] sm:$0xff] %v8319_v54  ;;  %875 = vst.msk [vmem:[#allocation3 + $0x20] sm:$0xff] %vm870_vm0, %v8319_v54  ;;  %v681_v56 = vpop.f32.mrb[20].mxu0  ;;  %v6623_v57 = vpop.f32.mrb[20].mxu1 }
 0x1b2   : > { %v8330_v1 = vadd.f32 %v681_v56, %v8168_v58  ;;  %v1425_v3 = vadd.f32 %v6623_v57, %v8181_v2  ;;  %v683_v5 = vpop.f32.mrb[21].mxu0  ;;  %v1416_v7 = vpop.f32.mrb[21].mxu1 }
 0x1b3   : > { %v684_v8 = vadd.f32 %v683_v5, %v8176_v63  ;;  %v1417_v9 = vadd.f32 %v8181_v2, %v1416_v7  ;;  %v685_v10 = vpop.f32.mrb[22].mxu0  ;;  %v6624_v11 = vpop.f32.mrb[22].mxu1 }
 0x1b4   : > { %3381 = vrot.lane.b32.xlu1 %v8291_v28, %s7841_s1  ;;  %2426 = vrot.lane.b32.xlu0 %v8261_v62, %s7840_s18  ;;  %v8340_v12 = vadd.f32 %v685_v10, %v8168_v58  ;;  %v1428_v15 = vadd.f32 %v6624_v11, %v8181_v2  ;;  %v687_v16 = vpop.f32.mrb[23].mxu0  ;;  %v1419_v17 = vpop.f32.mrb[23].mxu1 }
 0x1b5   : > { %v688_v22 = vadd.f32 %v687_v16, %v8176_v63  ;;  %v1420_v23 = vadd.f32 %v8181_v2, %v1419_v17 }
 0x1b6   : > { %v8345_v29 = vpack.c.bf16 %v1428_v15, %v1425_v3 }
 0x1b7   : > { %v8349_v32 = vpack.c.bf16 %v688_v22, %v684_v8  ;;  %v8351_v33 = vpack.c.bf16 %v1420_v23, %v1417_v9 }
 0x1b8   : > { %12708 = vst [vmem:[#allocation24_spill] sm:$0xff] %v8345_v29  ;;  %2436 = vrot.lane.b32.xlu1 %v8315_v51, %s7840_s18  ;;  %907 = vrot.lane.b32.xlu0 %v8259_v61, %s7840_s18 }
 0x1b9   : > { %12709 = vst [vmem:[#allocation25_spill] sm:$0xff] %v8349_v32  ;;  %876 = vst.msk [vmem:[#allocation3 + $0x28] sm:$0xff] %vm870_vm0, %v8349_v32  ;;  %v691_v35 = vpop.f32.mrb[24].mxu0  ;;  %v6627_v36 = vpop.f32.mrb[24].mxu1 }
 0x1ba   : > { %v8360_v37 = vadd.f32 %v691_v35, %v8168_v58  ;;  %v693_v42 = vpop.f32.mrb[25].mxu0  ;;  %v1441_v43 = vadd.f32 %v6627_v36, %v8181_v2  ;;  %v1432_v46 = vpop.f32.mrb[25].mxu1 }
 0x1bb   : > { %v694_v47 = vadd.f32 %v693_v42, %v8176_v63  ;;  %v695_v48 = vpop.f32.mrb[26].mxu0  ;;  %v1433_v49 = vadd.f32 %v8181_v2, %v1432_v46  ;;  %v6628_v50 = vpop.f32.mrb[26].mxu1 }
 0x1bc   : > { %3385 = vrot.lane.b32.xlu1 %v8321_v55, %s7841_s1  ;;  %4328 = vrot.lane.b32.xlu0 %v8261_v62, %s7839_s12  ;;  %v8370_v56 = vadd.f32 %v695_v48, %v8168_v58  ;;  %v697_v57 = vpop.f32.mrb[27].mxu0  ;;  %v1444_v3 = vadd.f32 %v6628_v50, %v8181_v2  ;;  %v1435_v5 = vpop.f32.mrb[27].mxu1 }
 0x1bd   : > { %v698_v7 = vadd.f32 %v697_v57, %v8176_v63  ;;  %v1436_v8 = vadd.f32 %v8181_v2, %v1435_v5 }
 0x1be   : > { %v8375_v9 = vpack.c.bf16 %v1444_v3, %v1441_v43 }
 0x1bf   : > { %v8379_v11 = vpack.c.bf16 %v698_v7, %v694_v47  ;;  %v8381_v15 = vpack.c.bf16 %v1436_v8, %v1433_v49 }
 0x1c0   : > { %12710 = vst [vmem:[#allocation26_spill] sm:$0xff] %v8375_v9  ;;  %2440 = vrot.lane.b32.xlu1 %v8345_v29, %s7840_s18  ;;  %3383 = vrot.lane.b32.xlu0 %v8285_v24, %s7841_s1 }
 0x1c1   : > { %12711 = vst [vmem:[#allocation27_spill] sm:$0xff] %v8379_v11  ;;  %12712 = vst [vmem:[#allocation28_spill] sm:$0xff] %v8381_v15  ;;  %v701_v16 = vpop.f32.mrb[28].mxu0  ;;  %v6631_v17 = vpop.f32.mrb[28].mxu1 }
 0x1c2   : > { %877 = vst.msk [vmem:[#allocation3 + $0x30] sm:$0xff] %vm870_vm0, %v8379_v11  ;;  %v8390_v22 = vadd.f32 %v701_v16, %v8168_v58  ;;  %v703_v23 = vpop.f32.mrb[29].mxu0  ;;  %v1457_v35 = vadd.f32 %v6631_v17, %v8181_v2  ;;  %v1448_v36 = vpop.f32.mrb[29].mxu1 }
 0x1c3   : > { %v704_v42 = vadd.f32 %v703_v23, %v8176_v63  ;;  %v705_v43 = vpop.f32.mrb[30].mxu0  ;;  %v1449_v46 = vadd.f32 %v8181_v2, %v1448_v36  ;;  %v6632_v47 = vpop.f32.mrb[30].mxu1 }
 0x1c4   : > { %3389 = vrot.lane.b32.xlu1 %v8351_v33, %s7841_s1  ;;  %2430 = vrot.lane.b32.xlu0 %v8291_v28, %s7840_s18  ;;  %v8400_v48 = vadd.f32 %v705_v43, %v8168_v58  ;;  %v707_v49 = vpop.f32.mrb[31].mxu0  ;;  %v1460_v50 = vadd.f32 %v6632_v47, %v8181_v2  ;;  %v1451_v57 = vpop.f32.mrb[31].mxu1 }
 0x1c5   : > { %v708_v3 = vadd.f32 %v707_v49, %v8176_v63  ;;  %v1452_v5 = vadd.f32 %v8181_v2, %v1451_v57 }
 0x1c6   : > { %v8405_v7 = vpack.c.bf16 %v1460_v50, %v1457_v35 }
 0x1c7   : > { %v8409_v16 = vpack.c.bf16 %v708_v3, %v704_v42  ;;  %v8411_v17 = vpack.c.bf16 %v1452_v5, %v1449_v46 }
 0x1c8   : > { %12713 = vst [vmem:[#allocation29_spill] sm:$0xff] %v8405_v7  ;;  %913 = vrot.lane.b32.xlu1 %v8349_v32, %s7840_s18  ;;  %909 = vrot.lane.b32.xlu0 %v8289_v27, %s7840_s18 }
 0x1c9   : > { %12714 = vst [vmem:[#allocation30_spill] sm:$0xff] %v8409_v16  ;;  %12715 = vst [vmem:[#allocation31_spill] sm:$0xff] %v8411_v17  ;;  %v711_v23 = vpop.f32.mrb[32].mxu0 }
 0x1ca   : > { %878 = vst.msk [vmem:[#allocation3 + $0x38] sm:$0xff] %vm870_vm0, %v8409_v16  ;;  %v713_v2 = vpop.f32.mrb[33].mxu0  ;;  %v8420_v35 = vadd.f32 %v711_v23, %v8168_v58 }
 0x1cb   : > { %v714_v36 = vadd.f32 %v713_v2, %v8176_v63  ;;  %v715_v42 = vpop.f32.mrb[34].mxu0 }
 0x1cc   : > { %v717_v43 = vpop.f32.mrb[35].mxu0  ;;  %2444 = vrot.lane.b32.xlu1 %v8375_v9, %s7840_s18  ;;  %3387 = vrot.lane.b32.xlu0 %v8315_v51, %s7841_s1  ;;  %v8428_v46 = vadd.f32 %v715_v42, %v8168_v58 }
 0x1cd   : > { %v718_v47 = vadd.f32 %v717_v43, %v8176_v63 }
 0x1cf   : > { %v8433_v50 = vpack.c.bf16 %v718_v47, %v714_v36 }
 0x1d0   : > { %3393 = vrot.lane.b32.xlu1 %v8381_v15, %s7841_s1  ;;  %2434 = vrot.lane.b32.xlu0 %v8321_v55, %s7840_s18 }
 0x1d1   : > { %12716 = vst [vmem:[#allocation32_spill] sm:$0xff] %v8433_v50  ;;  %879 = vst.msk [vmem:[#allocation3 + $0x40] sm:$0xff] %vm870_vm0, %v8433_v50  ;;  %v721_v57 = vpop.f32.mrb[36].mxu0 }
 0x1d2   : > { %v8442_v3 = vadd.f32 %v721_v57, %v8168_v58  ;;  %v723_v5 = vpop.f32.mrb[37].mxu0 }
 0x1d3   : > { %v724_v23 = vadd.f32 %v723_v5, %v8176_v63  ;;  %v725_v2 = vpop.f32.mrb[38].mxu0 }
 0x1d4   : > { %v8446_v36 = vadd.f32 %v725_v2, %v8168_v58  ;;  %v727_v42 = vpop.f32.mrb[39].mxu0  ;;  %911 = vrot.lane.b32.xlu0 %v8319_v54, %s7840_s18  ;;  %v2141_v2 = vld [vmem:[#allocation3] sm:$0xff] }
 0x1d5   : > { %v728_v43 = vadd.f32 %v727_v42, %v8176_v63 }
 0x1d7   : > { %v8453_v0 = vpack.c.bf16 %v728_v43, %v724_v23 }
 0x1d8   : > { %3391 = vrot.lane.b32.xlu0 %v8345_v29, %s7841_s1  ;;  %v2149_v57 = vld [vmem:[#allocation3 + $0x40] sm:$0xff] }
 0x1d9   : > { %12717 = vst [vmem:[#allocation33_spill] sm:$0xff] %v8453_v0  ;;  %880 = vst.msk [vmem:[#allocation3 + $0x48] sm:$0xff] %vm870_vm0, %v8453_v0  ;;  %v731_v5 = vpop.f32.mrb[40].mxu0  ;;  %6113 = vmatprep.subr.bf16.mxu0 %v2149_v57 }
 0x1da   : > { %v8460_v49 = vadd.f32 %v731_v5, %v8168_v58  ;;  %v733_v8 = vpop.f32.mrb[41].mxu0  ;;  %6114 = vmatpush3.bf16.msra.mxu0 %v2141_v2 }
 0x1db   : > { %v734_v42 = vadd.f32 %v733_v8, %v8176_v63  ;;  %v735_v47 = vpop.f32.mrb[42].mxu0 }
 0x1dc   : > { %v8464_v23 = vadd.f32 %v735_v47, %v8168_v58  ;;  %v737_v43 = vpop.f32.mrb[43].mxu0  ;;  %2438 = vrot.lane.b32.xlu0 %v8351_v33, %s7840_s18  ;;  %v2142_v47 = vld [vmem:[#allocation3 + $0x8] sm:$0xff] }
 0x1dd   : > { %v738_v10 = vadd.f32 %v737_v43, %v8176_v63 }
 0x1df   : > { %v8471_v30 = vpack.c.bf16 %v738_v10, %v734_v42 }
 0x1e0   : > { %3395 = vrot.lane.b32.xlu0 %v8375_v9, %s7841_s1  ;;  %v2150_v5 = vld [vmem:[#allocation3 + $0x48] sm:$0xff] }
 0x1e1   : > { %12718 = vst [vmem:[#allocation34_spill] sm:$0xff] %v8471_v30  ;;  %881 = vst.msk [vmem:[#allocation3 + $0x50] sm:$0xff] %vm870_vm0, %v8471_v30  ;;  %v741_v8 = vpop.f32.mrb[44].mxu0  ;;  %6115 = vmatprep.subr.bf16.mxu0 %v2150_v5 }
 0x1e2   : > { %v8478_v2 = vadd.f32 %v741_v8, %v8168_v58  ;;  %v743_v53 = vpop.f32.mrb[45].mxu0  ;;  %6116 = vmatpush3.bf16.msra.mxu0 %v2142_v47 }
 0x1e3   : > { %v744_v43 = vadd.f32 %v743_v53, %v8176_v63  ;;  %v745_v57 = vpop.f32.mrb[46].mxu0 }
 0x1e4   : > { %v8482_v10 = vadd.f32 %v745_v57, %v8168_v58  ;;  %v747_v42 = vpop.f32.mrb[47].mxu0  ;;  %2442 = vrot.lane.b32.xlu0 %v8381_v15, %s7840_s18  ;;  %v2143_v57 = vld [vmem:[#allocation3 + $0x10] sm:$0xff] }
 0x1e5   : > { %v748_v25 = vadd.f32 %v747_v42, %v8176_v63 }
 0x1e7   : > { %v8489_v60 = vpack.c.bf16 %v748_v25, %v744_v43 }
 0x1e8   : > { %3399 = vrot.lane.b32.xlu0 %v8405_v7, %s7841_s1  ;;  %v2151_v8 = vld [vmem:[#allocation3 + $0x50] sm:$0xff] }
 0x1e9   : > { %12719 = vst [vmem:[#allocation35_spill] sm:$0xff] %v8489_v60  ;;  %882 = vst.msk [vmem:[#allocation3 + $0x58] sm:$0xff] %vm870_vm0, %v8489_v60  ;;  %v751_v53 = vpop.f32.mrb[48].mxu0  ;;  %6117 = vmatprep.subr.bf16.mxu0 %v2151_v8 }
 0x1ea   : > { %v8496_v47 = vadd.f32 %v751_v53, %v8168_v58  ;;  %v753_v39 = vpop.f32.mrb[49].mxu0  ;;  %6118 = vmatpush3.bf16.msra.mxu0 %v2143_v57 }
 0x1eb   : > { %v754_v42 = vadd.f32 %v753_v39, %v8176_v63  ;;  %v755_v5 = vpop.f32.mrb[50].mxu0 }
 0x1ec   : > { %v8500_v25 = vadd.f32 %v755_v5, %v8168_v58  ;;  %v757_v43 = vpop.f32.mrb[51].mxu0  ;;  %2446 = vrot.lane.b32.xlu0 %v8411_v17, %s7840_s18  ;;  %v2144_v5 = vld [vmem:[#allocation3 + $0x18] sm:$0xff] }
 0x1ed   : > { %v758_v19 = vadd.f32 %v757_v43, %v8176_v63 }
 0x1ef   : > { %v8507_v32 = vpack.c.bf16 %v758_v19, %v754_v42  ;;  %v12721_v19 = vpack.c.bf16 %v8190_v14, %v8184_v6 }
 0x1f0   : > { %915 = vrot.lane.b32.xlu0 %v8379_v11, %s7840_s18  ;;  %v2152_v53 = vld [vmem:[#allocation3 + $0x58] sm:$0xff] }
 0x1f1   : > { %12720 = vst [vmem:[#allocation36_spill] sm:$0xff] %v8507_v32  ;;  %883 = vst.msk [vmem:[#allocation3 + $0x60] sm:$0xff] %vm870_vm0, %v8507_v32  ;;  %v761_v39 = vpop.f32.mrb[52].mxu0  ;;  %6119 = vmatprep.subr.bf16.mxu0 %v2152_v53 }
 0x1f2   : > { %v8514_v57 = vadd.f32 %v761_v39, %v8168_v58  ;;  %v763_v54 = vpop.f32.mrb[53].mxu0  ;;  %6120 = vmatpush3.bf16.msra.mxu0 %v2144_v5 }
 0x1f3   : > { %v764_v43 = vadd.f32 %v763_v54, %v8176_v63  ;;  %v765_v8 = vpop.f32.mrb[54].mxu0  ;;  %822 = vxpose.xlu1.c.b16.start [1/8] %v12721_v19, 128  ;;  %v12723_v54 = vpack.c.bf16 %v8221_v34, %v8211_v26  ;;  %v12724_v26 = vpack.c.bf16 %v8250_v52, %v8240_v44 }
 0x1f4   : > { %v8521_v42 = vadd.f32 %v765_v8, %v8168_v58  ;;  %v767_v11 = vpop.f32.mrb[55].mxu0  ;;  %917 = vrot.lane.b32.xlu0 %v8409_v16, %s7840_s18  ;;  %v2145_v8 = vld [vmem:[#allocation3 + $0x20] sm:$0xff] }
 0x1f5   : > { %v768_v53 = vadd.f32 %v767_v11, %v8176_v63 }
 0x1f7   : > { %v8528_v5 = vpack.c.bf16 %v768_v53, %v764_v43  ;;  %823 = vxpose.xlu1.c.b16.cont [2/8] %v12723_v54, 128 }
 0x1f8   : > { %923 = vrot.lane.b32.xlu0 %v8471_v30, %s7840_s18  ;;  %v2153_v6 = vld [vmem:[#allocation3 + $0x60] sm:$0xff] }
 0x1f9   : > { %12722 = vst [vmem:[#allocation37_spill] sm:$0xff] %v8528_v5  ;;  %884 = vst.msk [vmem:[#allocation3 + $0x68] sm:$0xff] %vm870_vm0, %v8528_v5  ;;  %v771_v14 = vpop.f32.mrb[56].mxu0  ;;  %6121 = vmatprep.subr.bf16.mxu0 %v2153_v6 }
 0x1fa   : > { %v8538_v11 = vadd.f32 %v771_v14, %v8168_v58  ;;  %v773_v19 = vpop.f32.mrb[57].mxu0  ;;  %6122 = vmatpush3.bf16.msra.mxu0 %v2145_v8 }
 0x1fb   : > { %v774_v43 = vadd.f32 %v773_v19, %v8176_v63  ;;  %v775_v53 = vpop.f32.mrb[58].mxu0  ;;  %824 = vxpose.xlu1.c.b16.cont [3/8] %v12724_v26, 128  ;;  %v12726_v19 = vpack.c.bf16 %v8280_v13, %v8270_v4  ;;  %v12727_v4 = vpack.c.bf16 %v8310_v45, %v8300_v31 }
 0x1fc   : > { %v8545_v34 = vadd.f32 %v775_v53, %v8168_v58  ;;  %v777_v54 = vpop.f32.mrb[59].mxu0  ;;  %927 = vrot.lane.b32.xlu0 %v8507_v32, %s7840_s18  ;;  %v2146_v53 = vld [vmem:[#allocation3 + $0x28] sm:$0xff] }
 0x1fd   : > { %v778_v6 = vadd.f32 %v777_v54, %v8176_v63 }
 0x1ff   : > { %v8552_v8 = vpack.c.bf16 %v778_v6, %v774_v43  ;;  %825 = vxpose.xlu1.c.b16.cont [4/8] %v12726_v19, 128 }
 0x200   : > { %v2154_v44 = vld [vmem:[#allocation3 + $0x68] sm:$0xff] }
 0x201   : > { %12725 = vst [vmem:[#allocation38_spill] sm:$0xff] %v8552_v8  ;;  %885 = vst.msk [vmem:[#allocation3 + $0x70] sm:$0xff] %vm870_vm0, %v8552_v8  ;;  %v781_v52 = vpop.f32.mrb[60].mxu0  ;;  %6123 = vmatprep.subr.bf16.mxu0 %v2154_v44 }
 0x202   : > { %v8559_v26 = vpop.permute.xlu0 %4322  ;;  %v8561_v39 = vpop.permute.xlu1 %2420  ;;  %6124 = vmatpush3.bf16.msra.mxu0 %v2146_v53  ;;  %v8564_v54 = vadd.f32 %v781_v52, %v8168_v58  ;;  %v12728_v52 = vpack.c.bf16 %v8340_v12, %v8330_v1 }
 0x203   : > { %v783_v43 = vpop.f32.mrb[61].mxu0  ;;  %826 = vxpose.xlu1.c.b16.cont [5/8] %v12727_v4, 128  ;;  %v12730_v4 = vpack.c.bf16 %v8370_v56, %v8360_v37 }
 0x204   : > { %v784_v13 = vadd.f32 %v783_v43, %v8176_v63  ;;  %v785_v6 = vpop.f32.mrb[62].mxu0  ;;  %v2147_v43 = vld [vmem:[#allocation3 + $0x30] sm:$0xff] }
 0x205   : > { %v786_v19 = vadd.f32 %v785_v6, %v8168_v58  ;;  %v787_v44 = vpop.f32.mrb[63].mxu0 }
 0x206   : > { %v788_v14 = vadd.f32 %v787_v44, %v8176_v63  ;;  %v8572_v16 = vpop.permute.xlu1 %3371  ;;  %v8574_v32 = vpop.permute.xlu0 %2418 }
 0x207   : > { %827 = vxpose.xlu1.c.b16.cont [6/8] %v12728_v52, 128  ;;  %v820_v53 = vpack.c.bf16 %v786_v19, %v8564_v54  ;;  %v2148_v19 = vld [vmem:[#allocation3 + $0x38] sm:$0xff] }
 0x208   : > { %v8580_v31 = vpack.c.bf16 %v788_v14, %v784_v13  ;;  %v2155_v45 = vld [vmem:[#allocation3 + $0x70] sm:$0xff]  ;;  %v12731_v14 = vpack.c.bf16 %v8400_v48, %v8390_v22  ;;  %v12733_v48 = vpack.c.bf16 %v8428_v46, %v8420_v35  ;;  %v12736_v35 = vpack.c.bf16 %v8464_v23, %v8460_v49 }
 0x209   : > { %6125 = vmatprep.subr.bf16.mxu0 %v2155_v45  ;;  %v12734_v45 = vpack.c.bf16 %v8446_v36, %v8442_v3  ;;  %v12737_v3 = vpack.c.bf16 %v8482_v10, %v8478_v2  ;;  %v12738_v49 = vpack.c.bf16 %v8500_v25, %v8496_v47  ;;  %v12739_v2 = vpack.c.bf16 %v8521_v42, %v8514_v57 }
 0x20a   : > { %12729 = vst [vmem:[#allocation39_spill] sm:$0xff] %v8580_v31  ;;  %886 = vst.msk [vmem:[#allocation3 + $0x78] sm:$0xff] %vm870_vm0, %v8580_v31  ;;  %v8584_v58 = vpop.permute.xlu1 %4320  ;;  %v8586_v63 = vpop.permute.xlu0 %3369  ;;  %6126 = vmatpush3.bf16.msra.mxu0 %v2147_v43  ;;  %v12741_v47 = vpack.c.bf16 %v8545_v34, %v8538_v11 }
 0x20b   : > { %828 = vxpose.xlu1.c.b16.cont [7/8] %v12730_v4, 128 }
 0x20e   : > { %v8591_v1 = vpop.permute.xlu1 %2424  ;;  %v904_v12 = vpop.permute.xlu0 %903 }
 0x20f   : > { %952 = vst.msk [vmem:[#allocation3 + $0x80] sm:$0xff] %vm870_vm0, %v904_v12  ;;  %829 = vxpose.xlu1.c.b16.end [8/8] %v12731_v14, 128 }
 0x211   : > { %v2156_v54 = vld [vmem:[#allocation3 + $0x78] sm:$0xff] }
 0x212   : > { %6127 = vmatprep.subr.bf16.mxu0 %v2156_v54  ;;  %v8597_v13 = vpop.permute.xlu1 %4326  ;;  %v8599_v6 = vpop.permute.xlu0 %3375 }
 0x213   : > { %12732 = vst [vmem:[#allocation40_spill] sm:$0xff] %v8597_v13  ;;  %6128 = vmatpush3.bf16.msra.mxu0 %v2148_v19  ;;  %2448 = vrot.lane.b32.xlu1 %v8405_v7, %s7840_s18 }
 0x216   : > { %v8603_v37 = vpop.permute.xlu1 %2422  ;;  %v8605_v56 = vpop.permute.xlu0 %3373 }
 0x217   : > { %3397 = vrot.lane.b32.xlu1 %v8411_v17, %s7841_s1 }
 0x21a   : > { %v8609_v22 = vpop.permute.xlu1 %2428  ;;  %838 = vxpose.xlu0.c.b16.start [1/8] %v12733_v48, 128  ;;  %v906_v44 = vpop.permute.xlu0 %905 }
 0x21b   : > { %953 = vst.msk [vmem:[#allocation3 + $0x88] sm:$0xff] %vm870_vm0, %v906_v44  ;;  %4330 = vrot.lane.b32.xlu1 %v8255_v59, %s7839_s12 }
 0x21e   : > { %v8617_v52 = vpop.permute.xlu1 %3377  ;;  %839 = vxpose.xlu0.c.b16.cont [2/8] %v12734_v45, 128  ;;  %v8622_v43 = vpop.permute.xlu0 %4324 }
 0x21f   : > { %12735 = vst [vmem:[#allocation41_spill] sm:$0xff] %v8622_v43  ;;  %919 = vrot.lane.b32.xlu1 %v8433_v50, %s7840_s18 }
 0x222   : > { %v8626_v4 = vpop.permute.xlu1 %2432  ;;  %840 = vxpose.xlu0.c.b16.cont [3/8] %v12736_v35, 128  ;;  %v8631_v46 = vpop.permute.xlu0 %3379 }
 0x223   : > { %921 = vrot.lane.b32.xlu1 %v8453_v0, %s7840_s18 }
 0x226   : > { %v8635_v12 = vpop.permute.xlu1 %3381  ;;  %841 = vxpose.xlu0.c.b16.cont [4/8] %v12737_v3, 128  ;;  %v8640_v36 = vpop.permute.xlu0 %2426 }
 0x227   : > { %925 = vrot.lane.b32.xlu1 %v8489_v60, %s7840_s18 }
 0x22a   : > { %v8644_v14 = vpop.permute.xlu1 %2436  ;;  %842 = vxpose.xlu0.c.b16.cont [5/8] %v12738_v49, 128  ;;  %v908_v23 = vpop.permute.xlu0 %907 }
 0x22b   : > { %954 = vst.msk [vmem:[#allocation3 + $0x90] sm:$0xff] %vm870_vm0, %v908_v23  ;;  %929 = vrot.lane.b32.xlu1 %v8528_v5, %s7840_s18 }
 0x22e   : > { %v8652_v54 = vpop.permute.xlu1 %3385  ;;  %843 = vxpose.xlu0.c.b16.cont [6/8] %v12739_v2, 128  ;;  %v8657_v10 = vpop.permute.xlu0 %4328 }
 0x22f   : > { %12740 = vst [vmem:[#allocation42_spill] sm:$0xff] %v8657_v10  ;;  %931 = vrot.lane.b32.xlu1 %v8552_v8, %s7840_s18 }
 0x232   : > { %v8661_v19 = vpop.permute.xlu1 %2440  ;;  %844 = vxpose.xlu0.c.b16.cont [7/8] %v12741_v47, 128  ;;  %v8666_v25 = vpop.permute.xlu0 %3383 }
 0x233   : > { %4334 = vrot.lane.b32.xlu1 %v8285_v24, %s7839_s12 }
 0x236   : > { %v8670_v48 = vpop.permute.xlu1 %3389  ;;  %845 = vxpose.xlu0.c.b16.end [8/8] %v820_v53, 128  ;;  %v8672_v57 = vpop.permute.xlu0 %2430 }
 0x237   : > { %933 = vrot.lane.b32.xlu1 %v8580_v31, %s7840_s18 }
 0x23a   : > { %v914_v42 = vpop.permute.xlu1 %913  ;;  %v910_v44 = vpop.permute.xlu0 %909 }
 0x23b   : > { %957 = vst.msk [vmem:[#allocation3 + $0xa8] sm:$0xff] %vm870_vm0, %v914_v42  ;;  %955 = vst.msk [vmem:[#allocation3 + $0x98] sm:$0xff] %vm870_vm0, %v910_v44 }
 0x23e   : > { %v8678_v11 = vpop.permute.xlu0 %3387  ;;  %v8689_v3 = vpop.permute.xlu1 %2444 }
 0x23f   : > { %4332 = vrot.lane.b32.xlu0 %v8291_v28, %s7839_s12 }
 0x242   : > { %v8682_v34 = vpop.permute.xlu0 %2434  ;;  %v8693_v23 = vpop.permute.xlu1 %3393 }
 0x246   : > { %v912_v45 = vpop.permute.xlu0 %911 }
 0x247   : > { %956 = vst.msk [vmem:[#allocation3 + $0xa0] sm:$0xff] %vm870_vm0, %v912_v45 }
 0x24a   : > { %v8685_v53 = vpop.permute.xlu0 %3391 }
 0x24e   : > { %v8687_v35 = vpop.permute.xlu0 %2438 }
 0x252   : > { %v8691_v49 = vpop.permute.xlu0 %3395 }
 0x256   : > { %v8695_v2 = vpop.permute.xlu0 %2442 }
 0x259   : > { %v830_v47 = vpop.trf.xlu1 }
 0x25a   : > { %v8697_v42 = vpop.permute.xlu0 %3399 }
 0x25d   : > { %v831_v44 = vpop.trf.xlu1 }
 0x25e   : > { %v8699_v31 = vpop.permute.xlu0 %2446 }
 0x261   : > { %v832_v8 = vpop.trf.xlu1 }
 0x262   : > { %v916_v45 = vpop.permute.xlu0 %915 }
 0x263   : > { %958 = vst.msk [vmem:[#allocation3 + $0xb0] sm:$0xff] %vm870_vm0, %v916_v45 }
 0x265   : > { %v833_v27 = vpop.trf.xlu1 }
 0x266   : > { %v918_v5 = vpop.permute.xlu0 %917 }
 0x267   : > { %959 = vst.msk [vmem:[#allocation3 + $0xb8] sm:$0xff] %vm870_vm0, %v918_v5 }
 0x269   : > { %v8704_v61 = vpop.trf.xlu1 }
 0x26a   : > { %v924_v60 = vpop.permute.xlu0 %923 }
 0x26b   : > { %962 = vst.msk [vmem:[#allocation3 + $0xd0] sm:$0xff] %vm870_vm0, %v924_v60 }
 0x26d   : > { %v8707_v41 = vpop.trf.xlu1 }
 0x26e   : > { %v928_v30 = vpop.permute.xlu0 %927 }
 0x26f   : > { %964 = vst.msk [vmem:[#allocation3 + $0xe0] sm:$0xff] %vm870_vm0, %v928_v30  ;;  %v12742_v30 = vmov 0  }
 0x271   : > { %v8709_v0 = vpop.trf.xlu1 }
 0x275   : > { %v8711_v21 = vpop.trf.xlu1 }
 0x280   : > { %v846_v50 = vpop.trf.xlu0 }
 0x281   : > { %1532 = vmatprep.subr.bf16.mxu1 %v846_v50 }
 0x282   : > { %1533 = vmatpush1.bf16.msra.mxu1 %v830_v47 }
 0x284   : > { %v847_v45 = vpop.trf.xlu0 }
 0x285   : > { %1534 = vmatprep.subr.bf16.mxu1 %v847_v45  ;;  %v8713_v5 = vpop.permute.xlu1 %2448 }
 0x286   : > { %1535 = vmatpush1.bf16.msra.mxu1 %v831_v44 }
 0x288   : > { %v848_v60 = vpop.trf.xlu0 }
 0x289   : > { %6009 = vmatmul.mubr.msk.bf16.vlgmr.msra.gmra.mrb[32].mxu1 %vm870_vm0, %v8199_v20  ;;  %v8717_v10 = vpop.permute.xlu1 %3397  ;;  %2498 = vmatprep.subr.bf16.mxu1 %v848_v60 }
 0x28a   : > { %1574 = vmatprep.mubr.bf16.mxu1 %v12742_v30  ;;  %2499 = vmatpush1.bf16.msra.mxu1 %v832_v8 }
 0x28c   : > { %v849_v13 = vpop.trf.xlu0 }
 0x28d   : > { %v8720_v43 = vpop.permute.xlu1 %4330  ;;  %2500 = vmatprep.subr.bf16.mxu1 %v849_v13 }
 0x28e   : > { %2501 = vmatpush1.bf16.msra.mxu1 %v833_v27 }
 0x290   : > { %v850_v50 = vpop.trf.xlu0 }
 0x291   : > { %6010 = vmatmul.mubr.msk.bf16.gmra.mrb[36].mxu1 %vm870_vm0, %v8195_v18  ;;  %v920_v47 = vpop.permute.xlu1 %919  ;;  %3449 = vmatprep.subr.bf16.mxu1 %v850_v50 }
 0x292   : > { %960 = vst.msk [vmem:[#allocation3 + $0xc0] sm:$0xff] %vm870_vm0, %v920_v47  ;;  %1584 = vmatprep.mubr.bf16.mxu1 %v12742_v30 }
 0x295   : > { %v922_v20 = vpop.permute.xlu1 %921 }
 0x296   : > { %961 = vst.msk [vmem:[#allocation3 + $0xc8] sm:$0xff] %vm870_vm0, %v922_v20 }
 0x299   : > { %6011 = vmatmul.mubr.msk.bf16.gmra.mrb[40].mxu1 %vm870_vm0, %v8229_v40  ;;  %v926_v8 = vpop.permute.xlu1 %925  ;;  %v3116_v44 = vld [vmem:[#allocation3 + $0xc0] sm:$0xff] }
 0x29a   : > { %963 = vst.msk [vmem:[#allocation3 + $0xd8] sm:$0xff] %vm870_vm0, %v926_v8  ;;  %6225 = vmatprep.subr.bf16.mxu0 %v3116_v44  ;;  %1594 = vmatprep.mubr.bf16.mxu1 %v12742_v30 }
 0x29d   : > { %v930_v18 = vpop.permute.xlu1 %929 }
 0x29e   : > { %965 = vst.msk [vmem:[#allocation3 + $0xe8] sm:$0xff] %vm870_vm0, %v930_v18 }
 0x2a1   : > { %6012 = vmatmul.mubr.msk.bf16.gmra.mrb[44].mxu1 %vm870_vm0, %v8225_v38  ;;  %v932_v27 = vpop.permute.xlu1 %931  ;;  %v851_v38 = vpop.trf.xlu0 }
 0x2a2   : > { %966 = vst.msk [vmem:[#allocation3 + $0xf0] sm:$0xff] %vm870_vm0, %v932_v27  ;;  %1604 = vmatprep.mubr.bf16.mxu1 %v12742_v30 }
 0x2a5   : > { %v8736_v13 = vpop.permute.xlu1 %4334 }
 0x2a6   : > { %12743 = vst [vmem:[#allocation43_spill] sm:$0xff] %v8736_v13 }
 0x2a9   : > { %6013 = vmatmul.mubr.msk.bf16.gmra.mrb[48].mxu1 %vm870_vm0, %v8261_v62  ;;  %v934_v40 = vpop.permute.xlu1 %933 }
 0x2aa   : > { %967 = vst.msk [vmem:[#allocation3 + $0xf8] sm:$0xff] %vm870_vm0, %v934_v40  ;;  %1614 = vmatprep.mubr.bf16.mxu1 %v12742_v30 }
 0x2b1   : > { %6014 = vmatmul.mubr.msk.bf16.gmra.mrb[52].mxu1 %vm870_vm0, %v8255_v59  ;;  %v852_v59 = vpop.trf.xlu0 }
 0x2b2   : > { %1624 = vmatprep.mubr.bf16.mxu1 %v12742_v30 }
 0x2b9   : > { %6015 = vmatmul.mubr.msk.bf16.gmra.mrb[56].mxu1 %vm870_vm0, %v8291_v28 }
 0x2ba   : > { %1634 = vmatprep.mubr.bf16.mxu1 %v12742_v30 }
 0x2c1   : > { %6016 = vmatmul.mubr.msk.bf16.gmra.mrb[60].mxu1 %vm870_vm0, %v8285_v24 }
 0x2c2   : > { %1644 = vmatprep.mubr.bf16.mxu1 %v12742_v30 }
 0x2c9   : > { %6017 = vmatmul.mubr.msk.bf16.gmra.mrb[64].mxu1 %vm870_vm0, %v8321_v55 }
 0x2ca   : > { %1654 = vmatprep.mubr.bf16.mxu1 %v12742_v30 }
 0x2d1   : > { %6018 = vmatmul.mubr.msk.bf16.gmra.mrb[68].mxu1 %vm870_vm0, %v8315_v51 }
 0x2d2   : > { %1664 = vmatprep.mubr.bf16.mxu1 %v12742_v30 }
 0x2d9   : > { %6019 = vmatmul.mubr.msk.bf16.gmra.mrb[72].mxu1 %vm870_vm0, %v8351_v33 }
 0x2da   : > { %1674 = vmatprep.mubr.bf16.mxu1 %v12742_v30 }
 0x2e1   : > { %6020 = vmatmul.mubr.msk.bf16.gmra.mrb[76].mxu1 %vm870_vm0, %v8345_v29 }
 0x2e2   : > { %1684 = vmatprep.mubr.bf16.mxu1 %v12742_v30 }
 0x2e9   : > { %6021 = vmatmul.mubr.msk.bf16.gmra.mrb[80].mxu1 %vm870_vm0, %v8381_v15 }
 0x2ea   : > { %1694 = vmatprep.mubr.bf16.mxu1 %v12742_v30 }
 0x2f1   : > { %6022 = vmatmul.mubr.msk.bf16.gmra.mrb[84].mxu1 %vm870_vm0, %v8375_v9 }
 0x2f2   : > { %1704 = vmatprep.mubr.bf16.mxu1 %v12742_v30 }
 0x2f9   : > { %6023 = vmatmul.mubr.msk.bf16.gmra.mrb[88].mxu1 %vm870_vm0, %v8411_v17 }
 0x2fa   : > { %1714 = vmatprep.mubr.bf16.mxu1 %v12742_v30 }
 0x301   : > { %6024 = vmatmul.mubr.msk.bf16.gmra.mrb[92].mxu1 %vm870_vm0, %v8405_v7 }
 0x302   : > { %2530 = vmatprep.mubr.bf16.mxu1 %v12742_v30 }
 0x309   : > { %6025 = vmatmul.mubr.msk.bf16.vlgmr.msra.gmra.mrb[96].mxu1 %vm870_vm0, %v8574_v32 }
 0x30a   : > { %2540 = vmatprep.mubr.bf16.mxu1 %v12742_v30  ;;  %3450 = vmatpush1.bf16.msra.mxu1 %v8704_v61 }
 0x30b   : > { %3451 = vmatprep.subr.bf16.mxu1 %v851_v38 }
 0x30e   : > { %3452 = vmatpush1.bf16.msra.mxu1 %v8707_v41 }
 0x30f   : > { %4400 = vmatprep.subr.bf16.mxu1 %v852_v59 }
 0x311   : > { %6026 = vmatmul.mubr.msk.bf16.gmra.mrb[100].mxu1 %vm870_vm0, %v8561_v39 }
 0x312   : > { %2550 = vmatprep.mubr.bf16.mxu1 %v12742_v30 }
 0x319   : > { %6027 = vmatmul.mubr.msk.bf16.gmra.mrb[104].mxu1 %vm870_vm0, %v8603_v37 }
 0x31a   : > { %2560 = vmatprep.mubr.bf16.mxu1 %v12742_v30 }
 0x321   : > { %6028 = vmatmul.mubr.msk.bf16.gmra.mrb[108].mxu1 %vm870_vm0, %v8591_v1 }
 0x322   : > { %2570 = vmatprep.mubr.bf16.mxu1 %v12742_v30 }
 0x329   : > { %6029 = vmatmul.mubr.msk.bf16.gmra.mrb[112].mxu1 %vm870_vm0, %v8640_v36 }
 0x32a   : > { %2580 = vmatprep.mubr.bf16.mxu1 %v12742_v30 }
 0x331   : > { %6030 = vmatmul.mubr.msk.bf16.gmra.mrb[116].mxu1 %vm870_vm0, %v8609_v22 }
 0x332   : > { %2590 = vmatprep.mubr.bf16.mxu1 %v12742_v30 }
 0x339   : > { %6031 = vmatmul.mubr.msk.bf16.gmra.mrb[120].mxu1 %vm870_vm0, %v8672_v57 }
 0x33a   : > { %2600 = vmatprep.mubr.bf16.mxu1 %v12742_v30 }
 0x341   : > { %6032 = vmatmul.mubr.msk.bf16.gmra.mrb[124].mxu1 %vm870_vm0, %v8626_v4 }
 0x342   : > { %2610 = vmatprep.mubr.bf16.mxu1 %v12742_v30 }
 0x349   : > { %6033 = vmatmul.mubr.msk.bf16.gmra.mrb[128].mxu1 %vm870_vm0, %v8682_v34 }
 0x34a   : > { %2620 = vmatprep.mubr.bf16.mxu1 %v12742_v30 }
 0x351   : > { %6034 = vmatmul.mubr.msk.bf16.gmra.mrb[132].mxu1 %vm870_vm0, %v8644_v14 }
 0x352   : > { %2630 = vmatprep.mubr.bf16.mxu1 %v12742_v30 }
 0x359   : > { %6035 = vmatmul.mubr.msk.bf16.gmra.mrb[136].mxu1 %vm870_vm0, %v8687_v35 }
 0x35a   : > { %2640 = vmatprep.mubr.bf16.mxu1 %v12742_v30 }
 0x35c   : > { %v8810_v41 = vpop.f32.mrb[32].mxu1 }
 0x35d   : > { %v8812_v61 = vpop.f32.mrb[33].mxu1 }
 0x35e   : > { %v8814_v62 = vpop.f32.mrb[34].mxu1  ;;  %v1725_v24 = vmax.f32 %v8810_v41, %v8812_v61 }
 0x35f   : > { %v8818_v28 = vpop.f32.mrb[35].mxu1 }
 0x360   : > { %1726 = vmax.xlane.f32.xlu1 %v1725_v24  ;;  %v1728_v32 = vmax.f32 %v8814_v62, %v8818_v28 }
 0x361   : > { %6036 = vmatmul.mubr.msk.bf16.gmra.mrb[140].mxu1 %vm870_vm0, %v8661_v19 }
 0x362   : > { %1729 = vmax.xlane.f32.xlu0 %v1728_v32  ;;  %2650 = vmatprep.mubr.bf16.mxu1 %v12742_v30 }
 0x364   : > { %v8825_v39 = vpop.f32.mrb[36].mxu1 }
 0x365   : > { %v8827_v1 = vpop.f32.mrb[37].mxu1 }
 0x366   : > { %v8829_v37 = vpop.f32.mrb[38].mxu1  ;;  %v1731_v22 = vmax.f32 %v8825_v39, %v8827_v1 }
 0x367   : > { %v8833_v4 = vpop.f32.mrb[39].mxu1 }
 0x368   : > { %1732 = vmax.xlane.f32.xlu1 %v1731_v22  ;;  %v1734_v36 = vmax.f32 %v8829_v37, %v8833_v4 }
 0x369   : > { %6037 = vmatmul.mubr.msk.bf16.gmra.mrb[144].mxu1 %vm870_vm0, %v8695_v2 }
 0x36a   : > { %2660 = vmatprep.mubr.bf16.mxu1 %v12742_v30 }
 0x36c   : > { %1735 = vmax.xlane.f32.xlu1 %v1734_v36  ;;  %v8840_v14 = vpop.f32.mrb[40].mxu1 }
 0x36d   : > { %v8842_v19 = vpop.f32.mrb[41].mxu1 }
 0x36e   : > { %v8844_v57 = vpop.f32.mrb[42].mxu1  ;;  %v1737_v34 = vmax.f32 %v8840_v14, %v8842_v19 }
 0x36f   : > { %v8848_v35 = vpop.f32.mrb[43].mxu1 }
 0x370   : > { %1738 = vmax.xlane.f32.xlu0 %v1737_v34  ;;  %v1740_v45 = vmax.f32 %v8844_v57, %v8848_v35 }
 0x371   : > { %6038 = vmatmul.mubr.msk.bf16.gmra.mrb[148].mxu1 %vm870_vm0, %v8689_v3 }
 0x372   : > { %1741 = vmax.xlane.f32.xlu1 %v1740_v45  ;;  %2670 = vmatprep.mubr.bf16.mxu1 %v12742_v30 }
 0x374   : > { %v8855_v2 = vpop.f32.mrb[44].mxu1 }
 0x375   : > { %v8857_v60 = vpop.f32.mrb[45].mxu1 }
 0x376   : > { %v8859_v50 = vpop.f32.mrb[46].mxu1  ;;  %v1743_v47 = vmax.f32 %v8855_v2, %v8857_v60 }
 0x377   : > { %v8863_v20 = vpop.f32.mrb[47].mxu1 }
 0x378   : > { %1744 = vmax.xlane.f32.xlu1 %v1743_v47  ;;  %v1746_v8 = vmax.f32 %v8859_v50, %v8863_v20 }
 0x379   : > { %6039 = vmatmul.mubr.msk.bf16.gmra.mrb[152].mxu1 %vm870_vm0, %v8699_v31 }
 0x37a   : > { %2680 = vmatprep.mubr.bf16.mxu1 %v12742_v30 }
 0x37c   : > { %1747 = vmax.xlane.f32.xlu1 %v1746_v8  ;;  %v8870_v3 = vpop.f32.mrb[48].mxu1 }
 0x37d   : > { %v8872_v44 = vpop.f32.mrb[49].mxu1 }
 0x37e   : > { %v8874_v18 = vpop.f32.mrb[50].mxu1  ;;  %v1749_v27 = vmax.f32 %v8870_v3, %v8872_v44 }
 0x37f   : > { %v8878_v40 = vpop.f32.mrb[51].mxu1 }
 0x380   : > { %1750 = vmax.xlane.f32.xlu0 %v1749_v27  ;;  %v1752_v38 = vmax.f32 %v8874_v18, %v8878_v40 }
 0x381   : > { %6040 = vmatmul.mubr.msk.bf16.gmra.mrb[156].mxu1 %vm870_vm0, %v8713_v5  ;;  %v853_v5 = vpop.trf.xlu0 }
 0x382   : > { %1753 = vmax.xlane.f32.xlu1 %v1752_v38  ;;  %3481 = vmatprep.mubr.bf16.mxu1 %v12742_v30 }
 0x384   : > { %v8885_v31 = vpop.f32.mrb[52].mxu1 }
 0x385   : > { %v8887_v59 = vpop.f32.mrb[53].mxu1 }
 0x386   : > { %v8889_v24 = vpop.f32.mrb[54].mxu1  ;;  %v1755_v32 = vmax.f32 %v8885_v31, %v8887_v59 }
 0x387   : > { %v8893_v22 = vpop.f32.mrb[55].mxu1 }
 0x388   : > { %1756 = vmax.xlane.f32.xlu1 %v1755_v32  ;;  %v1758_v36 = vmax.f32 %v8889_v24, %v8893_v22 }
 0x389   : > { %6041 = vmatmul.mubr.msk.bf16.vlgmr.msra.gmra.mrb[160].mxu1 %vm870_vm0, %v8586_v63 }
 0x38a   : > { %1759 = vmax.xlane.f32.xlu0 %v1758_v36  ;;  %3491 = vmatprep.mubr.bf16.mxu1 %v12742_v30 }
 0x38b   : > { %4401 = vmatpush1.bf16.msra.mxu1 %v8709_v0 }
 0x38c   : > { %v8901_v34 = vpop.f32.mrb[56].mxu1  ;;  %4402 = vmatprep.subr.bf16.mxu1 %v853_v5 }
 0x38d   : > { %v8903_v45 = vpop.f32.mrb[57].mxu1 }
 0x38e   : > { %v8905_v47 = vpop.f32.mrb[58].mxu1  ;;  %v1761_v8 = vmax.f32 %v8901_v34, %v8903_v45 }
 0x38f   : > { %v8909_v27 = vpop.f32.mrb[59].mxu1  ;;  %4403 = vmatpush1.bf16.msra.mxu1 %v8711_v21 }
 0x390   : > { %1762 = vmax.xlane.f32.xlu1 %v1761_v8  ;;  %v1764_v63 = vmax.f32 %v8905_v47, %v8909_v27 }
 0x391   : > { %6042 = vmatmul.mubr.msk.bf16.gmra.mrb[164].mxu1 %vm870_vm0, %v8572_v16 }
 0x392   : > { %1765 = vmax.xlane.f32.xlu0 %v1764_v63  ;;  %3501 = vmatprep.mubr.bf16.mxu1 %v12742_v30 }
 0x394   : > { %v8917_v0 = vpop.f32.mrb[60].mxu1 }
 0x395   : > { %v8919_v38 = vpop.f32.mrb[61].mxu1 }
 0x396   : > { %v8921_v32 = vpop.f32.mrb[62].mxu1  ;;  %v1767_v36 = vmax.f32 %v8917_v0, %v8919_v38 }
 0x397   : > { %v8925_v21 = vpop.f32.mrb[63].mxu1 }
 0x398   : > { %1768 = vmax.xlane.f32.xlu1 %v1767_v36  ;;  %v1770_v5 = vmax.f32 %v8921_v32, %v8925_v21 }
 0x399   : > { %6043 = vmatmul.mubr.msk.bf16.gmra.mrb[168].mxu1 %vm870_vm0, %v8605_v56 }
 0x39a   : > { %1771 = vmax.xlane.f32.xlu0 %v1770_v5  ;;  %3511 = vmatprep.mubr.bf16.mxu1 %v12742_v30 }
 0x39c   : > { %v8932_v16 = vpop.f32.mrb[64].mxu1 }
 0x39d   : > { %v8934_v8 = vpop.f32.mrb[65].mxu1 }
 0x39e   : > { %v8936_v63 = vpop.f32.mrb[66].mxu1  ;;  %v1773_v7 = vmax.f32 %v8932_v16, %v8934_v8 }
 0x39f   : > { %v8940_v17 = vpop.f32.mrb[67].mxu1 }
 0x3a0   : > { %1774 = vmax.xlane.f32.xlu1 %v1773_v7  ;;  %v1776_v36 = vmax.f32 %v8936_v63, %v8940_v17 }
 0x3a1   : > { %6044 = vmatmul.mubr.msk.bf16.gmra.mrb[172].mxu1 %vm870_vm0, %v8599_v6 }
 0x3a2   : > { %1777 = vmax.xlane.f32.xlu0 %v1776_v36  ;;  %3521 = vmatprep.mubr.bf16.mxu1 %v12742_v30 }
 0x3a4   : > { %v8947_v56 = vpop.f32.mrb[68].mxu1 }
 0x3a5   : > { %12744 = vst [vmem:[#allocation44_spill] sm:$0xff] %v8947_v56  ;;  %v8949_v5 = vpop.f32.mrb[69].mxu1 }
 0x3a6   : > { %12745 = vst [vmem:[#allocation45_spill] sm:$0xff] %v8949_v5  ;;  %v8951_v9 = vpop.f32.mrb[70].mxu1  ;;  %v1779_v15 = vmax.f32 %v8947_v56, %v8949_v5 }
 0x3a7   : > { %v8955_v29 = vpop.f32.mrb[71].mxu1 }
 0x3a8   : > { %12746 = vst [vmem:[#allocation46_spill] sm:$0xff] %v8955_v29  ;;  %1780 = vmax.xlane.f32.xlu1 %v1779_v15  ;;  %v1782_v7 = vmax.f32 %v8951_v9, %v8955_v29 }
 0x3a9   : > { %6045 = vmatmul.mubr.msk.bf16.gmra.mrb[176].mxu1 %vm870_vm0, %v8617_v52 }
 0x3aa   : > { %1783 = vmax.xlane.f32.xlu0 %v1782_v7  ;;  %3531 = vmatprep.mubr.bf16.mxu1 %v12742_v30 }
 0x3ac   : > { %v8962_v6 = vpop.f32.mrb[72].mxu1 }
 0x3ad   : > { %12747 = vst [vmem:[#allocation47_spill] sm:$0xff] %v8962_v6  ;;  %v8964_v36 = vpop.f32.mrb[73].mxu1 }
 0x3ae   : > { %12748 = vst [vmem:[#allocation48_spill] sm:$0xff] %v8964_v36  ;;  %v8966_v13 = vpop.f32.mrb[74].mxu1  ;;  %v1785_v5 = vmax.f32 %v8962_v6, %v8964_v36 }
 0x3af   : > { %v8970_v56 = vpop.f32.mrb[75].mxu1 }
 0x3b0   : > { %12749 = vst [vmem:[#allocation49_spill] sm:$0xff] %v8970_v56  ;;  %1786 = vmax.xlane.f32.xlu1 %v1785_v5  ;;  %v1788_v15 = vmax.f32 %v8966_v13, %v8970_v56 }
 0x3b1   : > { %6046 = vmatmul.mubr.msk.bf16.gmra.mrb[180].mxu1 %vm870_vm0, %v8631_v46 }
 0x3b2   : > { %1789 = vmax.xlane.f32.xlu0 %v1788_v15  ;;  %3541 = vmatprep.mubr.bf16.mxu1 %v12742_v30 }
 0x3b4   : > { %v8977_v52 = vpop.f32.mrb[76].mxu1 }
 0x3b5   : > { %12750 = vst [vmem:[#allocation50_spill] sm:$0xff] %v8977_v52  ;;  %v8979_v7 = vpop.f32.mrb[77].mxu1 }
 0x3b6   : > { %12751 = vst [vmem:[#allocation51_spill] sm:$0xff] %v8979_v7  ;;  %v8981_v29 = vpop.f32.mrb[78].mxu1  ;;  %v1791_v36 = vmax.f32 %v8977_v52, %v8979_v7 }
 0x3b7   : > { %v8985_v6 = vpop.f32.mrb[79].mxu1 }
 0x3b8   : > { %12752 = vst [vmem:[#allocation52_spill] sm:$0xff] %v8985_v6  ;;  %1792 = vmax.xlane.f32.xlu1 %v1791_v36  ;;  %v1794_v5 = vmax.f32 %v8981_v29, %v8985_v6 }
 0x3b9   : > { %6047 = vmatmul.mubr.msk.bf16.gmra.mrb[184].mxu1 %vm870_vm0, %v8635_v12 }
 0x3ba   : > { %1795 = vmax.xlane.f32.xlu0 %v1794_v5  ;;  %3551 = vmatprep.mubr.bf16.mxu1 %v12742_v30 }
 0x3bc   : > { %v8992_v46 = vpop.f32.mrb[80].mxu1 }
 0x3bd   : > { %12753 = vst [vmem:[#allocation53_spill] sm:$0xff] %v8992_v46  ;;  %v8994_v15 = vpop.f32.mrb[81].mxu1 }
 0x3be   : > { %12754 = vst [vmem:[#allocation54_spill] sm:$0xff] %v8994_v15  ;;  %v1797_v56 = vmax.f32 %v8992_v46, %v8994_v15  ;;  %v8998_v7 = vpop.f32.mrb[82].mxu1 }
 0x3bf   : > { %12755 = vst [vmem:[#allocation55_spill] sm:$0xff] %v8998_v7  ;;  %v9000_v52 = vpop.f32.mrb[83].mxu1 }
 0x3c0   : > { %12756 = vst [vmem:[#allocation56_spill] sm:$0xff] %v9000_v52  ;;  %1798 = vmax.xlane.f32.xlu1 %v1797_v56  ;;  %v1800_v36 = vmax.f32 %v8998_v7, %v9000_v52 }
 0x3c1   : > { %6048 = vmatmul.mubr.msk.bf16.gmra.mrb[188].mxu1 %vm870_vm0, %v8666_v25 }
 0x3c2   : > { %1801 = vmax.xlane.f32.xlu0 %v1800_v36  ;;  %3561 = vmatprep.mubr.bf16.mxu1 %v12742_v30 }
 0x3c4   : > { %v9007_v12 = vpop.f32.mrb[84].mxu1 }
 0x3c5   : > { %12757 = vst [vmem:[#allocation57_spill] sm:$0xff] %v9007_v12  ;;  %v9009_v5 = vpop.f32.mrb[85].mxu1 }
 0x3c6   : > { %12758 = vst [vmem:[#allocation58_spill] sm:$0xff] %v9009_v5  ;;  %v1803_v15 = vmax.f32 %v9007_v12, %v9009_v5  ;;  %v9013_v46 = vpop.f32.mrb[86].mxu1 }
 0x3c7   : > { %12759 = vst [vmem:[#allocation59_spill] sm:$0xff] %v9013_v46  ;;  %v9015_v6 = vpop.f32.mrb[87].mxu1 }
 0x3c8   : > { %12760 = vst [vmem:[#allocation60_spill] sm:$0xff] %v9015_v6  ;;  %1804 = vmax.xlane.f32.xlu1 %v1803_v15  ;;  %v1806_v56 = vmax.f32 %v9013_v46, %v9015_v6 }
 0x3c9   : > { %6049 = vmatmul.mubr.msk.bf16.gmra.mrb[192].mxu1 %vm870_vm0, %v8652_v54 }
 0x3ca   : > { %1807 = vmax.xlane.f32.xlu0 %v1806_v56  ;;  %3571 = vmatprep.mubr.bf16.mxu1 %v12742_v30 }
 0x3cc   : > { %v9022_v25 = vpop.f32.mrb[88].mxu1 }
 0x3cd   : > { %12761 = vst [vmem:[#allocation61_spill] sm:$0xff] %v9022_v25  ;;  %v9024_v36 = vpop.f32.mrb[89].mxu1 }
 0x3ce   : > { %12762 = vst [vmem:[#allocation62_spill] sm:$0xff] %v9024_v36  ;;  %v1809_v5 = vmax.f32 %v9022_v25, %v9024_v36  ;;  %v9028_v12 = vpop.f32.mrb[90].mxu1 }
 0x3cf   : > { %12763 = vst [vmem:[#allocation63_spill] sm:$0xff] %v9028_v12  ;;  %v9030_v52 = vpop.f32.mrb[91].mxu1 }
 0x3d0   : > { %12764 = vst [vmem:[#allocation64_spill] sm:$0xff] %v9030_v52  ;;  %v1812_v15 = vmax.f32 %v9028_v12, %v9030_v52  ;;  %1810 = vmax.xlane.f32.xlu1 %v1809_v5 }
 0x3d1   : > { %6050 = vmatmul.mubr.msk.bf16.gmra.mrb[196].mxu1 %vm870_vm0, %v8678_v11 }
 0x3d2   : > { %1813 = vmax.xlane.f32.xlu0 %v1812_v15  ;;  %3581 = vmatprep.mubr.bf16.mxu1 %v12742_v30 }
 0x3d4   : > { %v9037_v54 = vpop.f32.mrb[92].mxu1 }
 0x3d5   : > { %12765 = vst [vmem:[#allocation65_spill] sm:$0xff] %v9037_v54  ;;  %v9039_v56 = vpop.f32.mrb[93].mxu1 }
 0x3d6   : > { %12766 = vst [vmem:[#allocation66_spill] sm:$0xff] %v9039_v56  ;;  %v1815_v36 = vmax.f32 %v9037_v54, %v9039_v56  ;;  %v9043_v25 = vpop.f32.mrb[94].mxu1 }
 0x3d7   : > { %12767 = vst [vmem:[#allocation67_spill] sm:$0xff] %v9043_v25  ;;  %v9045_v6 = vpop.f32.mrb[95].mxu1 }
 0x3d8   : > { %12768 = vst [vmem:[#allocation68_spill] sm:$0xff] %v9045_v6  ;;  %v1818_v5 = vmax.f32 %v9043_v25, %v9045_v6  ;;  %1816 = vmax.xlane.f32.xlu0 %v1815_v36 }
 0x3d9   : > { %6051 = vmatmul.mubr.msk.bf16.gmra.mrb[200].mxu1 %vm870_vm0, %v8670_v48 }
 0x3da   : > { %1819 = vmax.xlane.f32.xlu1 %v1818_v5  ;;  %3591 = vmatprep.mubr.bf16.mxu1 %v12742_v30 }
 0x3dc   : > { %v9052_v11 = vpop.f32.mrb[96].mxu1 }
 0x3dd   : > { %12769 = vst [vmem:[#allocation69_spill] sm:$0xff] %v9052_v11  ;;  %v9054_v15 = vpop.f32.mrb[97].mxu1 }
 0x3de   : > { %12770 = vst [vmem:[#allocation70_spill] sm:$0xff] %v9054_v15  ;;  %v2691_v56 = vmax.f32 %v9052_v11, %v9054_v15  ;;  %v9058_v54 = vpop.f32.mrb[98].mxu1 }
 0x3df   : > { %12771 = vst [vmem:[#allocation71_spill] sm:$0xff] %v9058_v54  ;;  %v9060_v52 = vpop.f32.mrb[99].mxu1 }
 0x3e0   : > { %12772 = vst [vmem:[#allocation72_spill] sm:$0xff] %v9060_v52  ;;  %v2694_v36 = vmax.f32 %v9058_v54, %v9060_v52  ;;  %2692 = vmax.xlane.f32.xlu0 %v2691_v56 }
 0x3e1   : > { %6052 = vmatmul.mubr.msk.bf16.gmra.mrb[204].mxu1 %vm870_vm0, %v8685_v53  ;;  %v9082_v53 = vpop.permute.xlu0 %4332 }
 0x3e2   : > { %2695 = vmax.xlane.f32.xlu1 %v2694_v36  ;;  %3601 = vmatprep.mubr.bf16.mxu1 %v12742_v30 }
 0x3e4   : > { %v9067_v48 = vpop.f32.mrb[100].mxu1 }
 0x3e5   : > { %12773 = vst [vmem:[#allocation73_spill] sm:$0xff] %v9067_v48  ;;  %v9069_v5 = vpop.f32.mrb[101].mxu1 }
 0x3e6   : > { %12774 = vst [vmem:[#allocation74_spill] sm:$0xff] %v9069_v5  ;;  %v2697_v15 = vmax.f32 %v9067_v48, %v9069_v5  ;;  %v9073_v11 = vpop.f32.mrb[102].mxu1 }
 0x3e7   : > { %12775 = vst [vmem:[#allocation75_spill] sm:$0xff] %v9073_v11  ;;  %v9075_v6 = vpop.f32.mrb[103].mxu1 }
 0x3e8   : > { %12776 = vst [vmem:[#allocation76_spill] sm:$0xff] %v9075_v6  ;;  %v2700_v56 = vmax.f32 %v9073_v11, %v9075_v6  ;;  %2698 = vmax.xlane.f32.xlu1 %v2697_v15 }
 0x3e9   : > { %6053 = vmatmul.mubr.msk.bf16.gmra.mrb[208].mxu1 %vm870_vm0, %v8693_v23 }
 0x3ea   : > { %2701 = vmax.xlane.f32.xlu0 %v2700_v56  ;;  %3611 = vmatprep.mubr.bf16.mxu1 %v12742_v30 }
 0x3ec   : > { %v9084_v36 = vpop.f32.mrb[104].mxu1 }
 0x3ed   : > { %v9086_v52 = vpop.f32.mrb[105].mxu1  ;;  %v1727_v5 = vpop.xlane.xlu1 %1726 }
 0x3ee   : > { %v2703_v48 = vmax.f32 %v9084_v36, %v9086_v52  ;;  %v1821_v54 = vsub.f32 %v8810_v41, %v1727_v5  ;;  %v1822_v15 = vsub.f32 %v8812_v61, %v1727_v5  ;;  %v9092_v6 = vpop.f32.mrb[106].mxu1 }
 0x3ef   : > { %v1730_v23 = vpop.xlane.xlu0 %1729  ;;  %v9094_v56 = vpop.f32.mrb[107].mxu1 }
 0x3f0   : > { %v1885_v11 = vmul.f32 1.442695, %v1821_v54  ;;  %v1887_v25 = vmul.f32 1.442695, %v1822_v15  ;;  %v1823_v12 = vsub.f32 %v8814_v62, %v1730_v23  ;;  %v1824_v46 = vsub.f32 %v8818_v28, %v1730_v23  ;;  %2704 = vmax.xlane.f32.xlu0 %v2703_v48 }
 0x3f1   : > { %v2706_v7 = vmax.f32 %v9092_v6, %v9094_v56  ;;  %6054 = vmatmul.mubr.msk.bf16.gmra.mrb[212].mxu1 %vm870_vm0, %v8691_v49 }
 0x3f2   : > { %6856 = vpow2.f32 %v1885_v11  ;;  %v1889_v41 = vmul.f32 1.442695, %v1823_v12  ;;  %v1891_v61 = vmul.f32 1.442695, %v1824_v46  ;;  %3621 = vmatprep.mubr.bf16.mxu1 %v12742_v30 }
 0x3f3   : > { %6858 = vpow2.f32 %v1887_v25  ;;  %2707 = vmax.xlane.f32.xlu1 %v2706_v7 }
 0x3f4   : > { %6860 = vpow2.f32 %v1889_v41  ;;  %v9103_v54 = vpop.f32.mrb[108].mxu1 }
 0x3f5   : > { %6862 = vpow2.f32 %v1891_v61  ;;  %v9105_v62 = vpop.f32.mrb[109].mxu1  ;;  %v1733_v28 = vpop.xlane.xlu1 %1732 }
 0x3f6   : > { %12777 = vst [vmem:[#allocation77_spill] sm:$0xff] %v9105_v62  ;;  %v2709_v48 = vmax.f32 %v9103_v54, %v9105_v62  ;;  %v1825_v5 = vsub.f32 %v8825_v39, %v1733_v28  ;;  %v1826_v49 = vsub.f32 %v8827_v1, %v1733_v28  ;;  %v9111_v12 = vpop.f32.mrb[110].mxu1 }
 0x3f7   : > { %12778 = vst [vmem:[#allocation78_spill] sm:$0xff] %v9111_v12  ;;  %v9113_v46 = vpop.f32.mrb[111].mxu1 }
 0x3f8   : > { %12779 = vst [vmem:[#allocation79_spill] sm:$0xff] %v9113_v46  ;;  %v1893_v25 = vmul.f32 1.442695, %v1825_v5  ;;  %v1895_v7 = vmul.f32 1.442695, %v1826_v49  ;;  %v2712_v11 = vmax.f32 %v9111_v12, %v9113_v46  ;;  %2710 = vmax.xlane.f32.xlu0 %v2709_v48 }
 0x3f9   : > { %6055 = vmatmul.mubr.msk.bf16.gmra.mrb[216].mxu1 %vm870_vm0, %v8717_v10  ;;  %v1736_v15 = vpop.xlane.xlu1 %1735 }
 0x3fa   : > { %6864 = vpow2.f32 %v1893_v25  ;;  %v1827_v23 = vsub.f32 %v8829_v37, %v1736_v15  ;;  %v1828_v39 = vsub.f32 %v8833_v4, %v1736_v15  ;;  %2713 = vmax.xlane.f32.xlu1 %v2712_v11  ;;  %3631 = vmatprep.mubr.bf16.mxu1 %v12742_v30 }
 0x3fb   : > { %6866 = vpow2.f32 %v1895_v7 }
 0x3fc   : > { %v6857_v1 = vpop.eup %6856  ;;  %v1897_v41 = vmul.f32 1.442695, %v1827_v23  ;;  %v1899_v61 = vmul.f32 1.442695, %v1828_v39  ;;  %v9122_v28 = vpop.f32.mrb[112].mxu1 }
 0x3fd   : > { %v6859_v5 = vpop.eup %6858  ;;  %v1739_v48 = vpop.xlane.xlu0 %1738 }
 0x3fe   : > { %v9124_v49 = vpop.f32.mrb[113].mxu1  ;;  %v6861_v10 = vpop.eup %6860  ;;  %6868 = vpow2.f32 %v1897_v41  ;;  %v1829_v25 = vsub.f32 %v8840_v14, %v1739_v48  ;;  %v1830_v37 = vsub.f32 %v8842_v19, %v1739_v48  ;;  %v9134_v46 = vadd.f32 %v6859_v5, %v6857_v1 }
 0x3ff   : > { %12780 = vst [vmem:[#allocation80_spill] sm:$0xff] %v9124_v49  ;;  %v2715_v4 = vmax.f32 %v9122_v28, %v9124_v49  ;;  %v9130_v11 = vpop.f32.mrb[114].mxu1  ;;  %v6863_v7 = vpop.eup %6862  ;;  %6870 = vpow2.f32 %v1899_v61  ;;  %v2109_v39 = vpack.c.bf16 %v6861_v10, %v6857_v1 }
 0x400   : > { %v9132_v15 = vpop.f32.mrb[115].mxu1  ;;  %v1742_v23 = vpop.xlane.xlu1 %1741  ;;  %12781 = vst [vmem:[#allocation81_spill] sm:$0xff] %v9134_v46  ;;  %v1901_v12 = vmul.f32 1.442695, %v1829_v25  ;;  %v1903_v62 = vmul.f32 1.442695, %v1830_v37  ;;  %v2110_v48 = vpack.c.bf16 %v6863_v7, %v6859_v5  ;;  %v9142_v61 = vadd.f32 %v6863_v7, %v6861_v10 }
 0x401   : > { %v2718_v14 = vmax.f32 %v9130_v11, %v9132_v15  ;;  %v1831_v19 = vsub.f32 %v8844_v57, %v1742_v23  ;;  %2716 = vmax.xlane.f32.xlu1 %v2715_v4  ;;  %v1832_v41 = vsub.f32 %v8848_v35, %v1742_v23  ;;  %6056 = vmatmul.mubr.msk.bf16.gmra.mrb[220].mxu1 %vm870_vm0, %v8697_v42  ;;  %v3108_v57 = vld [vmem:[#allocation3 + $0x80] sm:$0xff]  ;;  %v3117_v42 = vld [vmem:[#allocation3 + $0xc8] sm:$0xff]  ;;  %v3110_v46 = vld [vmem:[#allocation3 + $0x90] sm:$0xff] }
 0x402   : > { %12782 = vst [vmem:[#allocation82_spill] sm:$0xff] %v9142_v61  ;;  %6872 = vpow2.f32 %v1901_v12  ;;  %4432 = vmatprep.mubr.bf16.mxu1 %v12742_v30  ;;  %2189 = vmatprep.mubr.bf16.mxu0 %v2110_v48 }
 0x403   : > { %v1905_v49 = vmul.f32 1.442695, %v1831_v19  ;;  %6874 = vpow2.f32 %v1903_v62  ;;  %v1907_v1 = vmul.f32 1.442695, %v1832_v41  ;;  %2190 = vmatmul.mubr.bf16.vlgmr.msra.gmra.mrb[64].mxu0 %v2109_v39  ;;  %v3109_v41 = vld [vmem:[#allocation3 + $0x88] sm:$0xff] }
 0x404   : > { %v6865_v25 = vpop.eup %6864  ;;  %v9145_v37 = vpop.f32.mrb[116].mxu1  ;;  %6226 = vmatpush3.bf16.msra.mxu0 %v3108_v57  ;;  %v3118_v57 = vld [vmem:[#allocation3 + $0xd0] sm:$0xff] }
 0x405   : > { %6876 = vpow2.f32 %v1905_v49  ;;  %2719 = vmax.xlane.f32.xlu1 %v2718_v14  ;;  %v6867_v35 = vpop.eup %6866  ;;  %v9147_v5 = vpop.f32.mrb[117].mxu1  ;;  %6227 = vmatprep.subr.bf16.mxu0 %v3117_v42 }
 0x406   : > { %6878 = vpow2.f32 %v1907_v1  ;;  %v1745_v12 = vpop.xlane.xlu1 %1744  ;;  %v2721_v62 = vmax.f32 %v9145_v37, %v9147_v5  ;;  %v9153_v4 = vpop.f32.mrb[118].mxu1  ;;  %v9155_v7 = vadd.f32 %v6867_v35, %v6865_v25 }
 0x407   : > { %v1833_v10 = vsub.f32 %v8855_v2, %v1745_v12  ;;  %v1834_v49 = vsub.f32 %v8857_v60, %v1745_v12  ;;  %v9157_v23 = vpop.f32.mrb[119].mxu1 }
 0x408   : > { %12783 = vst [vmem:[#allocation83_spill] sm:$0xff] %v9155_v7  ;;  %v6869_v39 = vpop.eup %6868  ;;  %v2724_v48 = vmax.f32 %v9153_v4, %v9157_v23  ;;  %2722 = vmax.xlane.f32.xlu0 %v2721_v62  ;;  %6228 = vmatpush3.bf16.msra.mxu0 %v3109_v41 }
 0x409   : > { %v1909_v14 = vmul.f32 1.442695, %v1833_v10  ;;  %v1911_v19 = vmul.f32 1.442695, %v1834_v49  ;;  %v6871_v1 = vpop.eup %6870  ;;  %6057 = vmatmul.mubr.msk.bf16.vlgmr.msra.gmra.mrb[224].mxu1 %vm870_vm0, %v8584_v58  ;;  %v2111_v60 = vpack.c.bf16 %v6869_v39, %v6865_v25  ;;  %6229 = vmatprep.subr.bf16.mxu0 %v3118_v57 }
 0x40a   : > { %v1748_v2 = vpop.xlane.xlu1 %1747  ;;  %2725 = vmax.xlane.f32.xlu1 %v2724_v48  ;;  %v2112_v10 = vpack.c.bf16 %v6871_v1, %v6867_v35  ;;  %4442 = vmatprep.mubr.bf16.mxu1 %v12742_v30  ;;  %v9166_v62 = vadd.f32 %v6871_v1, %v6869_v39 }
 0x40b   : > { %6880 = vpow2.f32 %v1909_v14  ;;  %v1835_v42 = vsub.f32 %v8859_v50, %v1748_v2  ;;  %v1836_v12 = vsub.f32 %v8863_v20, %v1748_v2  ;;  %v3119_v14 = vld [vmem:[#allocation3 + $0xd8] sm:$0xff] }
 0x40c   : > { %6882 = vpow2.f32 %v1911_v19  ;;  %12784 = vst [vmem:[#allocation84_spill] sm:$0xff] %v9166_v62  ;;  %v6873_v49 = vpop.eup %6872  ;;  %2197 = vmatprep.mubr.bf16.mxu0 %v2112_v10  ;;  %v9168_v58 = vpop.f32.mrb[120].mxu1  ;;  %6230 = vmatpush3.bf16.msra.mxu0 %v3110_v46 }
 0x40d   : > { %v1913_v41 = vmul.f32 1.442695, %v1835_v42  ;;  %v1915_v7 = vmul.f32 1.442695, %v1836_v12  ;;  %v6875_v25 = vpop.eup %6874  ;;  %v1751_v50 = vpop.xlane.xlu0 %1750  ;;  %6231 = vmatprep.subr.bf16.mxu0 %v3119_v14  ;;  %2198 = vmatmul.mubr.bf16.gmra.mrb[68].mxu0 %v2111_v60  ;;  %v3111_v60 = vld [vmem:[#allocation3 + $0x98] sm:$0xff]  ;;  %v3120_v14 = vld [vmem:[#allocation3 + $0xe0] sm:$0xff] }
 0x40e   : > { %v9170_v57 = vpop.f32.mrb[121].mxu1  ;;  %v1837_v35 = vsub.f32 %v8870_v3, %v1751_v50  ;;  %v1838_v39 = vsub.f32 %v8872_v44, %v1751_v50  ;;  %v9180_v12 = vadd.f32 %v6875_v25, %v6873_v49 }
 0x40f   : > { %v6877_v20 = vpop.eup %6876  ;;  %6884 = vpow2.f32 %v1913_v41  ;;  %v2727_v19 = vmax.f32 %v9168_v58, %v9170_v57  ;;  %v9176_v48 = vpop.f32.mrb[122].mxu1 }
 0x410   : > { %v6879_v1 = vpop.eup %6878  ;;  %6886 = vpow2.f32 %v1915_v7  ;;  %v9178_v46 = vpop.f32.mrb[123].mxu1  ;;  %v2113_v42 = vpack.c.bf16 %v6877_v20, %v6873_v49  ;;  %12785 = vst [vmem:[#allocation85_spill] sm:$0xff] %v9180_v12  ;;  %v1917_v10 = vmul.f32 1.442695, %v1837_v35  ;;  %v1919_v41 = vmul.f32 1.442695, %v1838_v39  ;;  %6232 = vmatpush3.bf16.msra.mxu0 %v3111_v60 }
 0x411   : > { %v1754_v2 = vpop.xlane.xlu1 %1753  ;;  %v2730_v3 = vmax.f32 %v9176_v48, %v9178_v46  ;;  %2728 = vmax.xlane.f32.xlu1 %v2727_v19  ;;  %v2114_v7 = vpack.c.bf16 %v6879_v1, %v6875_v25  ;;  %6058 = vmatmul.mubr.msk.bf16.gmra.mrb[228].mxu1 %vm870_vm0, %v8559_v26  ;;  %v9188_v62 = vadd.f32 %v6879_v1, %v6877_v20  ;;  %v3112_v39 = vld [vmem:[#allocation3 + $0xa0] sm:$0xff]  ;;  %v3121_v26 = vld [vmem:[#allocation3 + $0xe8] sm:$0xff] }
 0x412   : > { %v1839_v44 = vsub.f32 %v8874_v18, %v1754_v2  ;;  %v1840_v50 = vsub.f32 %v8878_v40, %v1754_v2  ;;  %6888 = vpow2.f32 %v1917_v10  ;;  %6233 = vmatprep.subr.bf16.mxu0 %v3120_v14  ;;  %4452 = vmatprep.mubr.bf16.mxu1 %v12742_v30 }
 0x413   : > { %12786 = vst [vmem:[#allocation86_spill] sm:$0xff] %v9188_v62  ;;  %6890 = vpow2.f32 %v1919_v41  ;;  %2205 = vmatprep.mubr.bf16.mxu0 %v2114_v7  ;;  %v12822_v62 = vld [vmem:[#allocation52_spill] sm:$0xff] }
 0x414   : > { %v1921_v49 = vmul.f32 1.442695, %v1839_v44  ;;  %v1923_v35 = vmul.f32 1.442695, %v1840_v50  ;;  %v9191_v19 = vpop.f32.mrb[124].mxu1  ;;  %6234 = vmatpush3.bf16.msra.mxu0 %v3112_v39 }
 0x415   : > { %v6881_v18 = vpop.eup %6880  ;;  %2731 = vmax.xlane.f32.xlu1 %v2730_v3  ;;  %v9193_v25 = vpop.f32.mrb[125].mxu1  ;;  %6235 = vmatprep.subr.bf16.mxu0 %v3121_v26  ;;  %v12788_v26 = vld [vmem:[#allocation41_spill] sm:$0xff] }
 0x416   : > { %6892 = vpow2.f32 %v1921_v49  ;;  %v6883_v40 = vpop.eup %6882  ;;  %v1757_v20 = vpop.xlane.xlu1 %1756  ;;  %2206 = vmatmul.mubr.bf16.gmra.mrb[72].mxu0 %v2113_v42  ;;  %v2733_v1 = vmax.f32 %v9191_v19, %v9193_v25  ;;  %v3113_v49 = vld [vmem:[#allocation3 + $0xa8] sm:$0xff] }
 0x417   : > { %6894 = vpow2.f32 %v1923_v35  ;;  %v1841_v2 = vsub.f32 %v8885_v31, %v1757_v20  ;;  %v1842_v10 = vsub.f32 %v8887_v59, %v1757_v20  ;;  %v9199_v41 = vpop.f32.mrb[126].mxu1  ;;  %v1760_v60 = vpop.xlane.xlu0 %1759  ;;  %v9203_v44 = vadd.f32 %v6883_v40, %v6881_v18  ;;  %v3122_v59 = vld [vmem:[#allocation3 + $0xf0] sm:$0xff]  ;;  %v12795_v31 = vld [vmem:[#allocation40_spill] sm:$0xff] }
 0x418   : > { %v9201_v3 = vpop.f32.mrb[127].mxu1  ;;  %v1843_v42 = vsub.f32 %v8889_v24, %v1760_v60  ;;  %v1844_v35 = vsub.f32 %v8893_v22, %v1760_v60  ;;  %6236 = vmatpush3.bf16.msra.mxu0 %v3113_v49 }
 0x419   : > { %12787 = vst [vmem:[#allocation87_spill] sm:$0xff] %v9203_v44  ;;  %v6885_v14 = vpop.eup %6884  ;;  %v1925_v50 = vmul.f32 1.442695, %v1841_v2  ;;  %v1927_v7 = vmul.f32 1.442695, %v1842_v10  ;;  %2734 = vmax.xlane.f32.xlu1 %v2733_v1  ;;  %6059 = vmatmul.mubr.msk.bf16.gmra.mrb[232].mxu1 %vm870_vm0, %v12788_v26  ;;  %v3114_v1 = vld [vmem:[#allocation3 + $0xb0] sm:$0xff] }
 0x41a   : > { %v6887_v39 = vpop.eup %6886  ;;  %v2115_v20 = vpack.c.bf16 %v6885_v14, %v6881_v18  ;;  %v1929_v44 = vmul.f32 1.442695, %v1843_v42  ;;  %v1931_v2 = vmul.f32 1.442695, %v1844_v35  ;;  %6237 = vmatprep.subr.bf16.mxu0 %v3122_v59  ;;  %4462 = vmatprep.mubr.bf16.mxu1 %v12742_v30  ;;  %v3123_v18 = vld [vmem:[#allocation3 + $0xf8] sm:$0xff] }
 0x41b   : > { %6896 = vpow2.f32 %v1925_v50  ;;  %v2116_v10 = vpack.c.bf16 %v6887_v39, %v6883_v40  ;;  %v9212_v24 = vadd.f32 %v6887_v39, %v6885_v14 }
 0x41c   : > { %6898 = vpow2.f32 %v1927_v7  ;;  %v6889_v22 = vpop.eup %6888  ;;  %v9214_v60 = vpop.f32.mrb[128].mxu1  ;;  %6238 = vmatpush3.bf16.msra.mxu0 %v3114_v1 }
 0x41d   : > { %12789 = vst [vmem:[#allocation41_spill] sm:$0xff] %v9212_v24  ;;  %6900 = vpow2.f32 %v1929_v44  ;;  %2213 = vmatprep.mubr.bf16.mxu0 %v2116_v10  ;;  %12790 = vst [vmem:[#allocation88_spill] sm:$0xff] %v9214_v60  ;;  %v6891_v49 = vpop.eup %6890  ;;  %v9216_v50 = vpop.f32.mrb[129].mxu1  ;;  %6239 = vmatprep.subr.bf16.mxu0 %v3123_v18  ;;  %v3115_v18 = vld [vmem:[#allocation3 + $0xb8] sm:$0xff] }
 0x41e   : > { %6902 = vpow2.f32 %v1931_v2  ;;  %12791 = vst [vmem:[#allocation89_spill] sm:$0xff] %v9216_v50  ;;  %v1763_v42 = vpop.xlane.xlu1 %1762  ;;  %2214 = vmatmul.mubr.bf16.gmra.mrb[76].mxu0 %v2115_v20  ;;  %v9222_v7 = vpop.f32.mrb[130].mxu1  ;;  %4336 = vrot.lane.b32.xlu0 %v8321_v55, %s7839_s12  ;;  %v9228_v10 = vadd.f32 %v6891_v49, %v6889_v22 }
 0x41f   : > { %v1845_v14 = vsub.f32 %v8901_v34, %v1763_v42  ;;  %v1846_v44 = vsub.f32 %v8903_v45, %v1763_v42  ;;  %12792 = vst [vmem:[#allocation90_spill] sm:$0xff] %v9222_v7  ;;  %v1766_v59 = vpop.xlane.xlu0 %1765  ;;  %v9226_v26 = vpop.f32.mrb[131].mxu1 }
 0x420   : > { %v6893_v35 = vpop.eup %6892  ;;  %12793 = vst [vmem:[#allocation91_spill] sm:$0xff] %v9226_v26  ;;  %12794 = vst [vmem:[#allocation92_spill] sm:$0xff] %v9228_v10  ;;  %v1847_v40 = vsub.f32 %v8905_v47, %v1766_v59  ;;  %v1848_v34 = vsub.f32 %v8909_v27, %v1766_v59  ;;  %6240 = vmatpush3.bf16.msra.mxu0 %v3115_v18 }
 0x421   : > { %v6895_v39 = vpop.eup %6894  ;;  %v2117_v2 = vpack.c.bf16 %v6893_v35, %v6889_v22  ;;  %v1933_v20 = vmul.f32 1.442695, %v1845_v14  ;;  %v1935_v1 = vmul.f32 1.442695, %v1846_v44  ;;  %6060 = vmatmul.mubr.msk.bf16.gmra.mrb[236].mxu1 %vm870_vm0, %v12795_v31 }
 0x422   : > { %v2118_v42 = vpack.c.bf16 %v6895_v39, %v6891_v49  ;;  %v9236_v55 = vadd.f32 %v6895_v39, %v6893_v35  ;;  %v1937_v22 = vmul.f32 1.442695, %v1847_v40  ;;  %v1939_v10 = vmul.f32 1.442695, %v1848_v34  ;;  %4472 = vmatprep.mubr.bf16.mxu1 %v12742_v30  ;;  %4338 = vrot.lane.b32.xlu0 %v8315_v51, %s7839_s12 }
 0x423   : > { %6904 = vpow2.f32 %v1933_v20 }
 0x424   : > { %12796 = vst [vmem:[#allocation40_spill] sm:$0xff] %v9236_v55  ;;  %6906 = vpow2.f32 %v1935_v1  ;;  %2221 = vmatprep.mubr.bf16.mxu0 %v2118_v42  ;;  %v9241_v27 = vpop.f32.mrb[132].mxu1  ;;  %v12812_v55 = vld [vmem:[#allocation49_spill] sm:$0xff] }
 0x425   : > { %v6897_v47 = vpop.eup %6896  ;;  %6908 = vpow2.f32 %v1937_v22  ;;  %12797 = vst [vmem:[#allocation93_spill] sm:$0xff] %v9241_v27  ;;  %v9243_v14 = vpop.f32.mrb[133].mxu1 }
 0x426   : > { %v6899_v49 = vpop.eup %6898  ;;  %6910 = vpow2.f32 %v1939_v10  ;;  %12798 = vst [vmem:[#allocation94_spill] sm:$0xff] %v9243_v14  ;;  %v1769_v31 = vpop.xlane.xlu1 %1768  ;;  %2222 = vmatmul.mubr.bf16.gmra.mrb[80].mxu0 %v2117_v2 }
 0x427   : > { %v6901_v35 = vpop.eup %6900  ;;  %v1849_v44 = vsub.f32 %v8917_v0, %v1769_v31  ;;  %v1850_v39 = vsub.f32 %v8919_v38, %v1769_v31  ;;  %v9249_v59 = vpop.f32.mrb[134].mxu1  ;;  %v9251_v51 = vadd.f32 %v6899_v49, %v6897_v47  ;;  %v12800_v31 = vld [vmem:[#allocation42_spill] sm:$0xff] }
 0x428   : > { %v6903_v20 = vpop.eup %6902  ;;  %v1772_v1 = vpop.xlane.xlu0 %1771  ;;  %v2119_v10 = vpack.c.bf16 %v6901_v35, %v6897_v47 }
 0x429   : > { %12799 = vst [vmem:[#allocation95_spill] sm:$0xff] %v9251_v51  ;;  %v9253_v18 = vpop.f32.mrb[135].mxu1  ;;  %v1941_v34 = vmul.f32 1.442695, %v1849_v44  ;;  %v1943_v42 = vmul.f32 1.442695, %v1850_v39  ;;  %v1851_v2 = vsub.f32 %v8921_v32, %v1772_v1  ;;  %v1852_v22 = vsub.f32 %v8925_v21, %v1772_v1  ;;  %6061 = vmatmul.mubr.msk.bf16.gmra.mrb[240].mxu1 %vm870_vm0, %v12800_v31 }
 0x42a   : > { %4340 = vrot.lane.b32.xlu1 %v8351_v33, %s7839_s12  ;;  %v2120_v38 = vpack.c.bf16 %v6903_v20, %v6899_v49  ;;  %v9263_v40 = vadd.f32 %v6903_v20, %v6901_v35  ;;  %4482 = vmatprep.mubr.bf16.mxu1 %v12742_v30 }
 0x42b   : > { %6912 = vpow2.f32 %v1941_v34  ;;  %v1945_v47 = vmul.f32 1.442695, %v1851_v2  ;;  %v1947_v44 = vmul.f32 1.442695, %v1852_v22 }
 0x42c   : > { %12801 = vst [vmem:[#allocation42_spill] sm:$0xff] %v9263_v40  ;;  %6914 = vpow2.f32 %v1943_v42  ;;  %2229 = vmatprep.mubr.bf16.mxu0 %v2120_v38  ;;  %v9266_v21 = vpop.f32.mrb[136].mxu1 }
 0x42d   : > { %v6905_v32 = vpop.eup %6904  ;;  %6916 = vpow2.f32 %v1945_v47  ;;  %v9268_v33 = vpop.f32.mrb[137].mxu1 }
 0x42e   : > { %v6907_v39 = vpop.eup %6906  ;;  %6918 = vpow2.f32 %v1947_v44  ;;  %v1775_v49 = vpop.xlane.xlu1 %1774  ;;  %2230 = vmatmul.mubr.bf16.gmra.mrb[84].mxu0 %v2119_v10 }
 0x42f   : > { %v6909_v1 = vpop.eup %6908  ;;  %v1853_v20 = vsub.f32 %v8932_v16, %v1775_v49  ;;  %v1854_v34 = vsub.f32 %v8934_v8, %v1775_v49  ;;  %v9274_v42 = vpop.f32.mrb[138].mxu1  ;;  %v9276_v2 = vadd.f32 %v6907_v39, %v6905_v32 }
 0x430   : > { %v6911_v22 = vpop.eup %6910  ;;  %v1778_v38 = vpop.xlane.xlu0 %1777  ;;  %v2121_v47 = vpack.c.bf16 %v6909_v1, %v6905_v32 }
 0x431   : > { %12802 = vst [vmem:[#allocation96_spill] sm:$0xff] %v9276_v2  ;;  %v9278_v31 = vpop.f32.mrb[139].mxu1  ;;  %v1949_v44 = vmul.f32 1.442695, %v1853_v20  ;;  %v1951_v0 = vmul.f32 1.442695, %v1854_v34  ;;  %v1855_v10 = vsub.f32 %v8936_v63, %v1778_v38  ;;  %v1856_v45 = vsub.f32 %v8940_v17, %v1778_v38  ;;  %6062 = vmatmul.mubr.msk.bf16.gmra.mrb[244].mxu1 %vm870_vm0, %v8720_v43 }
 0x432   : > { %v2122_v35 = vpack.c.bf16 %v6911_v22, %v6907_v39  ;;  %v9286_v8 = vadd.f32 %v6911_v22, %v6909_v1  ;;  %4492 = vmatprep.mubr.bf16.mxu1 %v12742_v30  ;;  %v12804_v1 = vld [vmem:[#allocation44_spill] sm:$0xff]  ;;  %v12805_v22 = vld [vmem:[#allocation45_spill] sm:$0xff] }
 0x433   : > { %6920 = vpow2.f32 %v1949_v44  ;;  %v1953_v49 = vmul.f32 1.442695, %v1855_v10  ;;  %v1955_v2 = vmul.f32 1.442695, %v1856_v45 }
 0x434   : > { %12803 = vst [vmem:[#allocation97_spill] sm:$0xff] %v9286_v8  ;;  %6922 = vpow2.f32 %v1951_v0  ;;  %2237 = vmatprep.mubr.bf16.mxu0 %v2122_v35  ;;  %v9289_v63 = vpop.f32.mrb[140].mxu1  ;;  %v12807_v8 = vld [vmem:[#allocation46_spill] sm:$0xff] }
 0x435   : > { %v6913_v32 = vpop.eup %6912  ;;  %6924 = vpow2.f32 %v1953_v49  ;;  %v9291_v20 = vpop.f32.mrb[141].mxu1 }
 0x436   : > { %v6915_v17 = vpop.eup %6914  ;;  %6926 = vpow2.f32 %v1955_v2  ;;  %v1781_v39 = vpop.xlane.xlu1 %1780  ;;  %2238 = vmatmul.mubr.bf16.gmra.mrb[88].mxu0 %v2121_v47 }
 0x437   : > { %v6917_v34 = vpop.eup %6916  ;;  %v1857_v45 = vsub.f32 %v12804_v1, %v1781_v39  ;;  %v1858_v38 = vsub.f32 %v12805_v22, %v1781_v39  ;;  %v9297_v0 = vpop.f32.mrb[142].mxu1  ;;  %v9299_v35 = vadd.f32 %v6915_v17, %v6913_v32 }
 0x438   : > { %v6919_v44 = vpop.eup %6918  ;;  %v1784_v10 = vpop.xlane.xlu0 %1783  ;;  %v2123_v2 = vpack.c.bf16 %v6917_v34, %v6913_v32 }
 0x439   : > { %12806 = vst [vmem:[#allocation44_spill] sm:$0xff] %v9299_v35  ;;  %v9301_v49 = vpop.f32.mrb[143].mxu1  ;;  %v1957_v16 = vmul.f32 1.442695, %v1857_v45  ;;  %v1959_v51 = vmul.f32 1.442695, %v1858_v38  ;;  %v1859_v47 = vsub.f32 %v8951_v9, %v1784_v10  ;;  %v1860_v40 = vsub.f32 %v12807_v8, %v1784_v10  ;;  %6063 = vmatmul.mubr.msk.bf16.gmra.mrb[248].mxu1 %vm870_vm0, %v9082_v53 }
 0x43a   : > { %v2124_v43 = vpack.c.bf16 %v6919_v44, %v6915_v17  ;;  %v9309_v39 = vadd.f32 %v6919_v44, %v6917_v34  ;;  %4502 = vmatprep.mubr.bf16.mxu1 %v12742_v30  ;;  %v12810_v34 = vld [vmem:[#allocation48_spill] sm:$0xff] }
 0x43b   : > { %6928 = vpow2.f32 %v1957_v16  ;;  %v1961_v22 = vmul.f32 1.442695, %v1859_v47  ;;  %v1963_v35 = vmul.f32 1.442695, %v1860_v40  ;;  %v12809_v16 = vld [vmem:[#allocation47_spill] sm:$0xff] }
 0x43c   : > { %12808 = vst [vmem:[#allocation45_spill] sm:$0xff] %v9309_v39  ;;  %6930 = vpow2.f32 %v1959_v51  ;;  %2245 = vmatprep.mubr.bf16.mxu0 %v2124_v43  ;;  %v9312_v9 = vpop.f32.mrb[144].mxu1 }
 0x43d   : > { %v6921_v32 = vpop.eup %6920  ;;  %6932 = vpow2.f32 %v1961_v22  ;;  %v9314_v45 = vpop.f32.mrb[145].mxu1 }
 0x43e   : > { %v6923_v8 = vpop.eup %6922  ;;  %6934 = vpow2.f32 %v1963_v35  ;;  %v1787_v17 = vpop.xlane.xlu1 %1786  ;;  %2246 = vmatmul.mubr.bf16.gmra.mrb[92].mxu0 %v2123_v2 }
 0x43f   : > { %v6925_v38 = vpop.eup %6924  ;;  %v1861_v40 = vsub.f32 %v12809_v16, %v1787_v17  ;;  %v1862_v44 = vsub.f32 %v12810_v34, %v1787_v17  ;;  %v9320_v51 = vpop.f32.mrb[146].mxu1  ;;  %v9322_v43 = vadd.f32 %v6923_v8, %v6921_v32  ;;  %v12813_v17 = vld [vmem:[#allocation43_spill] sm:$0xff] }
 0x440   : > { %v6927_v10 = vpop.eup %6926  ;;  %v1790_v47 = vpop.xlane.xlu0 %1789  ;;  %v2125_v35 = vpack.c.bf16 %v6925_v38, %v6921_v32  ;;  %v12815_v32 = vmax.f32 %v9199_v41, %v9201_v3 }
 0x441   : > { %12811 = vst [vmem:[#allocation46_spill] sm:$0xff] %v9322_v43  ;;  %v9324_v22 = vpop.f32.mrb[147].mxu1  ;;  %v1965_v1 = vmul.f32 1.442695, %v1861_v40  ;;  %v1967_v39 = vmul.f32 1.442695, %v1862_v44  ;;  %v1863_v2 = vsub.f32 %v8966_v13, %v1790_v47  ;;  %v1864_v12 = vsub.f32 %v12812_v55, %v1790_v47  ;;  %6064 = vmatmul.mubr.msk.bf16.gmra.mrb[252].mxu1 %vm870_vm0, %v12813_v17 }
 0x442   : > { %v2126_v53 = vpack.c.bf16 %v6927_v10, %v6923_v8  ;;  %v9332_v34 = vadd.f32 %v6927_v10, %v6925_v38  ;;  %2737 = vmax.xlane.f32.xlu0 %v12815_v32  ;;  %4512 = vmatprep.mubr.bf16.mxu1 %v12742_v30  ;;  %v12818_v10 = vld [vmem:[#allocation51_spill] sm:$0xff] }
 0x443   : > { %6936 = vpow2.f32 %v1965_v1  ;;  %v1969_v43 = vmul.f32 1.442695, %v1863_v2  ;;  %v1971_v24 = vmul.f32 1.442695, %v1864_v12  ;;  %v12816_v12 = vmax.f32 %v9222_v7, %v9226_v26 }
 0x444   : > { %12814 = vst [vmem:[#allocation47_spill] sm:$0xff] %v9332_v34  ;;  %6938 = vpow2.f32 %v1967_v39  ;;  %2253 = vmatprep.mubr.bf16.mxu0 %v2126_v53  ;;  %v9338_v55 = vpop.f32.mrb[148].mxu1  ;;  %v12817_v39 = vld [vmem:[#allocation50_spill] sm:$0xff] }
 0x445   : > { %v6929_v13 = vpop.eup %6928  ;;  %6940 = vpow2.f32 %v1969_v43  ;;  %v9340_v40 = vpop.f32.mrb[149].mxu1 }
 0x446   : > { %v6931_v8 = vpop.eup %6930  ;;  %6942 = vpow2.f32 %v1971_v24  ;;  %v1793_v38 = vpop.xlane.xlu1 %1792  ;;  %2254 = vmatmul.mubr.bf16.gmra.mrb[96].mxu0 %v2125_v35  ;;  %2743 = vmax.xlane.f32.xlu0 %v12816_v12 }
 0x447   : > { %v6933_v1 = vpop.eup %6932  ;;  %v1865_v53 = vsub.f32 %v12817_v39, %v1793_v38  ;;  %v1866_v43 = vsub.f32 %v12818_v10, %v1793_v38  ;;  %v9349_v47 = vpop.f32.mrb[150].mxu1  ;;  %v9353_v16 = vadd.f32 %v6931_v8, %v6929_v13 }
 0x448   : > { %12819 = vst [vmem:[#allocation48_spill] sm:$0xff] %v9349_v47  ;;  %v6935_v2 = vpop.eup %6934  ;;  %v1796_v24 = vpop.xlane.xlu0 %1795  ;;  %v2127_v32 = vpack.c.bf16 %v6933_v1, %v6929_v13 }
 0x449   : > { %v9351_v17 = vpop.f32.mrb[151].mxu1  ;;  %12821 = vst [vmem:[#allocation43_spill] sm:$0xff] %v9353_v16  ;;  %v1973_v35 = vmul.f32 1.442695, %v1865_v53  ;;  %v1975_v34 = vmul.f32 1.442695, %v1866_v43  ;;  %v1867_v12 = vsub.f32 %v8981_v29, %v1796_v24  ;;  %v1868_v61 = vsub.f32 %v12822_v62, %v1796_v24 }
 0x44a   : > { %12820 = vst [vmem:[#allocation49_spill] sm:$0xff] %v9351_v17  ;;  %v2128_v44 = vpack.c.bf16 %v6935_v2, %v6931_v8  ;;  %v9359_v38 = vadd.f32 %v6935_v2, %v6933_v1  ;;  %v12824_v29 = vmax.f32 %v9214_v60, %v9216_v50  ;;  %v12826_v43 = vld [vmem:[#allocation54_spill] sm:$0xff]  ;;  %v12828_v16 = vld [vmem:[#allocation55_spill] sm:$0xff]  ;;  %v12829_v17 = vld [vmem:[#allocation56_spill] sm:$0xff] }
 0x44b   : > { %6944 = vpow2.f32 %v1973_v35  ;;  %v1977_v10 = vmul.f32 1.442695, %v1867_v12  ;;  %v1979_v26 = vmul.f32 1.442695, %v1868_v61 }
 0x44c   : > { %12823 = vst [vmem:[#allocation50_spill] sm:$0xff] %v9359_v38  ;;  %6946 = vpow2.f32 %v1975_v34  ;;  %2261 = vmatprep.mubr.bf16.mxu0 %v2128_v44  ;;  %v9361_v13 = vpop.f32.mrb[152].mxu1  ;;  %v12825_v34 = vld [vmem:[#allocation53_spill] sm:$0xff] }
 0x44d   : > { %v6937_v7 = vpop.eup %6936  ;;  %6948 = vpow2.f32 %v1977_v10  ;;  %v9366_v62 = vpop.f32.mrb[153].mxu1 }
 0x44e   : > { %v6939_v53 = vpop.eup %6938  ;;  %6950 = vpow2.f32 %v1979_v26  ;;  %2740 = vmax.xlane.f32.xlu1 %v12824_v29  ;;  %v1799_v8 = vpop.xlane.xlu1 %1798  ;;  %2262 = vmatmul.mubr.bf16.gmra.mrb[100].mxu0 %v2127_v32 }
 0x44f   : > { %v6941_v1 = vpop.eup %6940  ;;  %v1869_v44 = vsub.f32 %v12825_v34, %v1799_v8  ;;  %v1870_v2 = vsub.f32 %v12826_v43, %v1799_v8  ;;  %v9372_v24 = vpop.f32.mrb[154].mxu1  ;;  %v9374_v35 = vadd.f32 %v6939_v53, %v6937_v7  ;;  %v12830_v8 = vmax.f32 %v9241_v27, %v9243_v14  ;;  %v12839_v14 = vld [vmem:[#allocation59_spill] sm:$0xff]  ;;  %v12840_v27 = vld [vmem:[#allocation60_spill] sm:$0xff] }
 0x450   : > { %v6943_v26 = vpop.eup %6942  ;;  %v1802_v12 = vpop.xlane.xlu0 %1801  ;;  %v2129_v29 = vpack.c.bf16 %v6941_v1, %v6937_v7 }
 0x451   : > { %12827 = vst [vmem:[#allocation51_spill] sm:$0xff] %v9374_v35  ;;  %v9376_v10 = vpop.f32.mrb[155].mxu1  ;;  %v1981_v39 = vmul.f32 1.442695, %v1869_v44  ;;  %v1983_v38 = vmul.f32 1.442695, %v1870_v2  ;;  %v1871_v32 = vsub.f32 %v12828_v16, %v1802_v12  ;;  %v1872_v47 = vsub.f32 %v12829_v17, %v1802_v12 }
 0x452   : > { %2746 = vmax.xlane.f32.xlu1 %v12830_v8  ;;  %v2130_v43 = vpack.c.bf16 %v6943_v26, %v6939_v53  ;;  %v9385_v61 = vadd.f32 %v6943_v26, %v6941_v1  ;;  %v12834_v1 = vld [vmem:[#allocation57_spill] sm:$0xff]  ;;  %v12835_v26 = vld [vmem:[#allocation58_spill] sm:$0xff] }
 0x453   : > { %6952 = vpow2.f32 %v1981_v39  ;;  %v1985_v35 = vmul.f32 1.442695, %v1871_v32  ;;  %v1987_v50 = vmul.f32 1.442695, %v1872_v47 }
 0x454   : > { %12831 = vst [vmem:[#allocation52_spill] sm:$0xff] %v9385_v61  ;;  %6954 = vpow2.f32 %v1983_v38  ;;  %2269 = vmatprep.mubr.bf16.mxu0 %v2130_v43  ;;  %v9387_v16 = vpop.f32.mrb[156].mxu1 }
 0x455   : > { %v6945_v7 = vpop.eup %6944  ;;  %6956 = vpow2.f32 %v1985_v35  ;;  %12832 = vst [vmem:[#allocation53_spill] sm:$0xff] %v9387_v16  ;;  %v9389_v44 = vpop.f32.mrb[157].mxu1  ;;  %v12850_v16 = vld [vmem:[#allocation63_spill] sm:$0xff] }
 0x456   : > { %v6947_v17 = vpop.eup %6946  ;;  %6958 = vpow2.f32 %v1987_v50  ;;  %12833 = vst [vmem:[#allocation54_spill] sm:$0xff] %v9389_v44  ;;  %v1805_v2 = vpop.xlane.xlu1 %1804  ;;  %2270 = vmatmul.mubr.bf16.gmra.mrb[104].mxu0 %v2129_v29 }
 0x457   : > { %v6949_v12 = vpop.eup %6948  ;;  %v1873_v39 = vsub.f32 %v12834_v1, %v1805_v2  ;;  %v1874_v47 = vsub.f32 %v12835_v26, %v1805_v2  ;;  %v9395_v38 = vpop.f32.mrb[158].mxu1  ;;  %v9397_v32 = vadd.f32 %v6947_v17, %v6945_v7 }
 0x458   : > { %12836 = vst [vmem:[#allocation55_spill] sm:$0xff] %v9395_v38  ;;  %v6951_v35 = vpop.eup %6950  ;;  %v1808_v8 = vpop.xlane.xlu0 %1807  ;;  %v2131_v50 = vpack.c.bf16 %v6949_v12, %v6945_v7  ;;  %v12842_v7 = vld [vmem:[#allocation24_spill] sm:$0xff] }
 0x459   : > { %12837 = vst [vmem:[#allocation56_spill] sm:$0xff] %v9397_v32  ;;  %v9399_v43 = vpop.f32.mrb[159].mxu1  ;;  %v1989_v34 = vmul.f32 1.442695, %v1873_v39  ;;  %v1991_v61 = vmul.f32 1.442695, %v1874_v47  ;;  %v1875_v29 = vsub.f32 %v12839_v14, %v1808_v8  ;;  %v1876_v60 = vsub.f32 %v12840_v27, %v1808_v8 }
 0x45a   : > { %12838 = vst [vmem:[#allocation57_spill] sm:$0xff] %v9399_v43  ;;  %v2132_v53 = vpack.c.bf16 %v6951_v35, %v6947_v17  ;;  %v9405_v2 = vadd.f32 %v6951_v35, %v6949_v12  ;;  %v12846_v12 = vld [vmem:[#allocation62_spill] sm:$0xff]  ;;  %v12851_v43 = vld [vmem:[#allocation64_spill] sm:$0xff] }
 0x45b   : > { %6960 = vpow2.f32 %v1989_v34  ;;  %v1993_v26 = vmul.f32 1.442695, %v1875_v29  ;;  %v1995_v32 = vmul.f32 1.442695, %v1876_v60  ;;  %v12845_v60 = vld [vmem:[#allocation61_spill] sm:$0xff] }
 0x45c   : > { %12841 = vst [vmem:[#allocation58_spill] sm:$0xff] %v9405_v2  ;;  %6962 = vpow2.f32 %v1991_v61  ;;  %2277 = vmatprep.mubr.bf16.mxu0 %v2132_v53  ;;  %4342 = vrot.lane.b32.xlu0 %v12842_v7, %s7839_s12  ;;  %v9409_v39 = vpop.f32.mrb[160].mxu1 }
 0x45d   : > { %v6953_v44 = vpop.eup %6952  ;;  %6964 = vpow2.f32 %v1993_v26  ;;  %12843 = vst [vmem:[#allocation59_spill] sm:$0xff] %v9409_v39  ;;  %v9411_v27 = vpop.f32.mrb[161].mxu1 }
 0x45e   : > { %v6955_v14 = vpop.eup %6954  ;;  %6966 = vpow2.f32 %v1995_v32  ;;  %12844 = vst [vmem:[#allocation60_spill] sm:$0xff] %v9411_v27  ;;  %v1811_v47 = vpop.xlane.xlu1 %1810  ;;  %2278 = vmatmul.mubr.bf16.gmra.mrb[108].mxu0 %v2131_v50  ;;  %v12853_v27 = vld [vmem:[#allocation28_spill] sm:$0xff] }
 0x45f   : > { %v6957_v17 = vpop.eup %6956  ;;  %v1877_v61 = vsub.f32 %v12845_v60, %v1811_v47  ;;  %v1878_v53 = vsub.f32 %v12846_v12, %v1811_v47  ;;  %v9417_v35 = vpop.f32.mrb[162].mxu1  ;;  %v9419_v8 = vadd.f32 %v6955_v14, %v6953_v44 }
 0x460   : > { %12847 = vst [vmem:[#allocation24_spill] sm:$0xff] %v9417_v35  ;;  %v6959_v29 = vpop.eup %6958  ;;  %v1814_v26 = vpop.xlane.xlu0 %1813  ;;  %v2133_v32 = vpack.c.bf16 %v6957_v17, %v6953_v44 }
 0x461   : > { %12848 = vst [vmem:[#allocation61_spill] sm:$0xff] %v9419_v8  ;;  %v9421_v7 = vpop.f32.mrb[163].mxu1  ;;  %v1997_v1 = vmul.f32 1.442695, %v1877_v61  ;;  %v1999_v2 = vmul.f32 1.442695, %v1878_v53  ;;  %v1879_v50 = vsub.f32 %v12850_v16, %v1814_v26  ;;  %v1880_v38 = vsub.f32 %v12851_v43, %v1814_v26 }
 0x462   : > { %12849 = vst [vmem:[#allocation62_spill] sm:$0xff] %v9421_v7  ;;  %v2134_v34 = vpack.c.bf16 %v6959_v29, %v6955_v14  ;;  %v9427_v47 = vadd.f32 %v6959_v29, %v6957_v17  ;;  %v12856_v17 = vld [vmem:[#allocation65_spill] sm:$0xff]  ;;  %v12857_v29 = vld [vmem:[#allocation66_spill] sm:$0xff] }
 0x463   : > { %6968 = vpow2.f32 %v1997_v1  ;;  %v2001_v12 = vmul.f32 1.442695, %v1879_v50  ;;  %v2003_v8 = vmul.f32 1.442695, %v1880_v38  ;;  %4344 = vrot.lane.b32.xlu1 %v12853_v27, %s7839_s12 }
 0x464   : > { %12852 = vst [vmem:[#allocation63_spill] sm:$0xff] %v9427_v47  ;;  %6970 = vpow2.f32 %v1999_v2  ;;  %2285 = vmatprep.mubr.bf16.mxu0 %v2134_v34  ;;  %v9431_v61 = vpop.f32.mrb[164].mxu1 }
 0x465   : > { %v6961_v44 = vpop.eup %6960  ;;  %6972 = vpow2.f32 %v2001_v12  ;;  %12854 = vst [vmem:[#allocation64_spill] sm:$0xff] %v9431_v61  ;;  %v1817_v43 = vpop.xlane.xlu0 %1816 }
 0x466   : > { %v6963_v16 = vpop.eup %6962  ;;  %6974 = vpow2.f32 %v2003_v8  ;;  %v9433_v53 = vpop.f32.mrb[165].mxu1  ;;  %2286 = vmatmul.mubr.bf16.gmra.mrb[112].mxu0 %v2133_v32  ;;  %v1881_v1 = vsub.f32 %v12856_v17, %v1817_v43  ;;  %v1882_v38 = vsub.f32 %v12857_v29, %v1817_v43  ;;  %v12861_v17 = vld [vmem:[#allocation67_spill] sm:$0xff]  ;;  %v12862_v43 = vld [vmem:[#allocation68_spill] sm:$0xff] }
 0x467   : > { %12855 = vst [vmem:[#allocation28_spill] sm:$0xff] %v9433_v53  ;;  %v6965_v14 = vpop.eup %6964  ;;  %v9439_v2 = vpop.f32.mrb[166].mxu1  ;;  %v9441_v34 = vadd.f32 %v6963_v16, %v6961_v44 }
 0x468   : > { %12858 = vst [vmem:[#allocation65_spill] sm:$0xff] %v9439_v2  ;;  %v6967_v26 = vpop.eup %6966  ;;  %v9443_v50 = vpop.f32.mrb[167].mxu1  ;;  %v2135_v12 = vpack.c.bf16 %v6965_v14, %v6961_v44  ;;  %v2005_v60 = vmul.f32 1.442695, %v1881_v1  ;;  %v2007_v47 = vmul.f32 1.442695, %v1882_v38 }
 0x469   : > { %12859 = vst [vmem:[#allocation66_spill] sm:$0xff] %v9441_v34  ;;  %12860 = vst [vmem:[#allocation98_spill] sm:$0xff] %v9443_v50  ;;  %v1820_v8 = vpop.xlane.xlu1 %1819  ;;  %v2136_v35 = vpack.c.bf16 %v6967_v26, %v6963_v16  ;;  %v9449_v27 = vadd.f32 %v6967_v26, %v6965_v14  ;;  %v12867_v14 = vld [vmem:[#allocation70_spill] sm:$0xff] }
 0x46a   : > { %v1883_v7 = vsub.f32 %v12861_v17, %v1820_v8  ;;  %v1884_v29 = vsub.f32 %v12862_v43, %v1820_v8  ;;  %6976 = vpow2.f32 %v2005_v60  ;;  %v12866_v8 = vld [vmem:[#allocation69_spill] sm:$0xff] }
 0x46b   : > { %12863 = vst [vmem:[#allocation67_spill] sm:$0xff] %v9449_v27  ;;  %6978 = vpow2.f32 %v2007_v47  ;;  %2293 = vmatprep.mubr.bf16.mxu0 %v2136_v35 }
 0x46c   : > { %v2009_v53 = vmul.f32 1.442695, %v1883_v7  ;;  %v2011_v34 = vmul.f32 1.442695, %v1884_v29  ;;  %v9451_v44 = vpop.f32.mrb[168].mxu1 }
 0x46d   : > { %v6969_v61 = vpop.eup %6968  ;;  %12864 = vst [vmem:[#allocation68_spill] sm:$0xff] %v9451_v44  ;;  %v2693_v38 = vpop.xlane.xlu0 %2692 }
 0x46e   : > { %6980 = vpow2.f32 %v2009_v53  ;;  %v6971_v1 = vpop.eup %6970  ;;  %v9453_v32 = vpop.f32.mrb[169].mxu1  ;;  %2294 = vmatmul.mubr.bf16.gmra.mrb[116].mxu0 %v2135_v12  ;;  %v2787_v16 = vsub.f32 %v12866_v8, %v2693_v38  ;;  %v2788_v26 = vsub.f32 %v12867_v14, %v2693_v38  ;;  %v12871_v8 = vld [vmem:[#allocation71_spill] sm:$0xff]  ;;  %v12872_v38 = vld [vmem:[#allocation72_spill] sm:$0xff] }
 0x46f   : > { %6982 = vpow2.f32 %v2011_v34  ;;  %12865 = vst [vmem:[#allocation99_spill] sm:$0xff] %v9453_v32  ;;  %v6973_v17 = vpop.eup %6972  ;;  %v9459_v60 = vpop.f32.mrb[170].mxu1  ;;  %v9461_v35 = vadd.f32 %v6971_v1, %v6969_v61 }
 0x470   : > { %12868 = vst [vmem:[#allocation69_spill] sm:$0xff] %v9459_v60  ;;  %v6975_v47 = vpop.eup %6974  ;;  %v9463_v53 = vpop.f32.mrb[171].mxu1  ;;  %v2137_v43 = vpack.c.bf16 %v6973_v17, %v6969_v61  ;;  %v2851_v29 = vmul.f32 1.442695, %v2787_v16  ;;  %v2853_v27 = vmul.f32 1.442695, %v2788_v26 }
 0x471   : > { %12869 = vst [vmem:[#allocation70_spill] sm:$0xff] %v9461_v35  ;;  %12870 = vst [vmem:[#allocation100_spill] sm:$0xff] %v9463_v53  ;;  %v2696_v34 = vpop.xlane.xlu1 %2695  ;;  %v2138_v2 = vpack.c.bf16 %v6975_v47, %v6971_v1  ;;  %v9469_v7 = vadd.f32 %v6975_v47, %v6973_v17  ;;  %v12874_v17 = vld [vmem:[#allocation73_spill] sm:$0xff]  ;;  %v12877_v53 = vld [vmem:[#allocation75_spill] sm:$0xff] }
 0x472   : > { %v2789_v50 = vsub.f32 %v12871_v8, %v2696_v34  ;;  %v2790_v14 = vsub.f32 %v12872_v38, %v2696_v34  ;;  %6984 = vpow2.f32 %v2851_v29  ;;  %v12878_v60 = vld [vmem:[#allocation76_spill] sm:$0xff] }
 0x473   : > { %12873 = vst [vmem:[#allocation71_spill] sm:$0xff] %v9469_v7  ;;  %6986 = vpow2.f32 %v2853_v27  ;;  %2301 = vmatprep.mubr.bf16.mxu0 %v2138_v2 }
 0x474   : > { %v2855_v32 = vmul.f32 1.442695, %v2789_v50  ;;  %v2857_v35 = vmul.f32 1.442695, %v2790_v14  ;;  %v6977_v44 = vpop.eup %6976  ;;  %v9471_v61 = vpop.f32.mrb[172].mxu1  ;;  %v12875_v50 = vld [vmem:[#allocation74_spill] sm:$0xff] }
 0x475   : > { %v6979_v16 = vpop.eup %6978  ;;  %v9473_v26 = vpop.f32.mrb[173].mxu1 }
 0x476   : > { %6988 = vpow2.f32 %v2855_v32  ;;  %v2699_v12 = vpop.xlane.xlu1 %2698  ;;  %2302 = vmatmul.mubr.bf16.gmra.mrb[120].mxu0 %v2137_v43  ;;  %v9479_v34 = vpop.f32.mrb[174].mxu1  ;;  %v9481_v2 = vadd.f32 %v6979_v16, %v6977_v44 }
 0x477   : > { %6990 = vpow2.f32 %v2857_v35  ;;  %v2791_v47 = vsub.f32 %v12874_v17, %v2699_v12  ;;  %v2792_v27 = vsub.f32 %v12875_v50, %v2699_v12  ;;  %v2702_v29 = vpop.xlane.xlu0 %2701  ;;  %v9483_v38 = vpop.f32.mrb[175].mxu1 }
 0x478   : > { %v6981_v8 = vpop.eup %6980  ;;  %12876 = vst [vmem:[#allocation72_spill] sm:$0xff] %v9481_v2  ;;  %v2793_v43 = vsub.f32 %v12877_v53, %v2702_v29  ;;  %v2794_v39 = vsub.f32 %v12878_v60, %v2702_v29 }
 0x479   : > { %v6983_v32 = vpop.eup %6982  ;;  %v2139_v35 = vpack.c.bf16 %v6981_v8, %v6977_v44  ;;  %v2859_v14 = vmul.f32 1.442695, %v2791_v47  ;;  %v2861_v7 = vmul.f32 1.442695, %v2792_v27  ;;  %v12880_v44 = vmax.f32 %v9249_v59, %v9253_v18 }
 0x47a   : > { %v2140_v1 = vpack.c.bf16 %v6983_v32, %v6979_v16  ;;  %v9489_v12 = vadd.f32 %v6983_v32, %v6981_v8  ;;  %v2863_v50 = vmul.f32 1.442695, %v2793_v43  ;;  %v2865_v2 = vmul.f32 1.442695, %v2794_v39 }
 0x47b   : > { %6992 = vpow2.f32 %v2859_v14  ;;  %2749 = vmax.xlane.f32.xlu0 %v12880_v44 }
 0x47c   : > { %12879 = vst [vmem:[#allocation73_spill] sm:$0xff] %v9489_v12  ;;  %6994 = vpow2.f32 %v2861_v7  ;;  %2309 = vmatprep.mubr.bf16.mxu0 %v2140_v1  ;;  %v6985_v47 = vpop.eup %6984  ;;  %v9494_v53 = vpop.f32.mrb[176].mxu1 }
 0x47d   : > { %6996 = vpow2.f32 %v2863_v50  ;;  %v6987_v60 = vpop.eup %6986  ;;  %v2705_v27 = vpop.xlane.xlu0 %2704 }
 0x47e   : > { %6998 = vpow2.f32 %v2865_v2  ;;  %v9496_v29 = vpop.f32.mrb[177].mxu1  ;;  %2310 = vmatmul.mubr.bf16.gmra.mrb[124].mxu0 %v2139_v35  ;;  %v2795_v8 = vsub.f32 %v9084_v36, %v2705_v27  ;;  %v2796_v39 = vsub.f32 %v9086_v52, %v2705_v27  ;;  %v9504_v32 = vadd.f32 %v6987_v60, %v6985_v47 }
 0x47f   : > { %12881 = vst [vmem:[#allocation74_spill] sm:$0xff] %v9496_v29  ;;  %v9502_v1 = vpop.f32.mrb[178].mxu1  ;;  %v12883_v2 = vmax.f32 %v9274_v42, %v9278_v31 }
 0x480   : > { %v6989_v16 = vpop.eup %6988  ;;  %12882 = vst [vmem:[#allocation75_spill] sm:$0xff] %v9504_v32  ;;  %v9509_v43 = vpop.f32.mrb[179].mxu1  ;;  %v2867_v35 = vmul.f32 1.442695, %v2795_v8  ;;  %v2869_v44 = vmul.f32 1.442695, %v2796_v39 }
 0x481   : > { %v6991_v14 = vpop.eup %6990  ;;  %2755 = vmax.xlane.f32.xlu0 %v12883_v2  ;;  %12884 = vst [vmem:[#allocation76_spill] sm:$0xff] %v9509_v43  ;;  %v3075_v50 = vpack.c.bf16 %v6989_v16, %v6985_v47  ;;  %v2708_v36 = vpop.xlane.xlu1 %2707  ;;  %v12894_v43 = vmax.f32 %v9289_v63, %v9291_v20 }
 0x482   : > { %v3076_v27 = vpack.c.bf16 %v6991_v14, %v6987_v60  ;;  %v2797_v7 = vsub.f32 %v9092_v6, %v2708_v36  ;;  %v2798_v17 = vsub.f32 %v9094_v56, %v2708_v36  ;;  %v9515_v12 = vadd.f32 %v6991_v14, %v6989_v16  ;;  %v12888_v56 = vld [vmem:[#allocation77_spill] sm:$0xff]  ;;  %v12892_v14 = vld [vmem:[#allocation79_spill] sm:$0xff] }
 0x483   : > { %7000 = vpow2.f32 %v2867_v35 }
 0x484   : > { %12885 = vst [vmem:[#allocation101_spill] sm:$0xff] %v9515_v12  ;;  %3156 = vmatprep.mubr.bf16.mxu0 %v3076_v27  ;;  %7002 = vpow2.f32 %v2869_v44  ;;  %v2871_v2 = vmul.f32 1.442695, %v2797_v7  ;;  %v2873_v32 = vmul.f32 1.442695, %v2798_v17  ;;  %v9517_v47 = vpop.f32.mrb[180].mxu1  ;;  %v12889_v17 = vmax.f32 %v9266_v21, %v9268_v33 }
 0x485   : > { %v6993_v29 = vpop.eup %6992  ;;  %12886 = vst [vmem:[#allocation102_spill] sm:$0xff] %v9517_v47  ;;  %v2711_v39 = vpop.xlane.xlu0 %2710 }
 0x486   : > { %v6995_v8 = vpop.eup %6994  ;;  %7004 = vpow2.f32 %v2871_v2  ;;  %v9519_v52 = vpop.f32.mrb[181].mxu1  ;;  %3157 = vmatmul.mubr.bf16.vlgmr.msra.gmra.mrb[128].mxu0 %v3075_v50  ;;  %v2799_v6 = vsub.f32 %v9103_v54, %v2711_v39  ;;  %v2800_v16 = vsub.f32 %v12888_v56, %v2711_v39  ;;  %v12891_v39 = vld [vmem:[#allocation78_spill] sm:$0xff] }
 0x487   : > { %12887 = vst [vmem:[#allocation103_spill] sm:$0xff] %v9519_v52  ;;  %v6997_v60 = vpop.eup %6996  ;;  %7006 = vpow2.f32 %v2873_v32  ;;  %2752 = vmax.xlane.f32.xlu1 %v12889_v17  ;;  %v9528_v7 = vpop.f32.mrb[182].mxu1  ;;  %v9532_v32 = vadd.f32 %v6995_v8, %v6993_v29 }
 0x488   : > { %v6999_v35 = vpop.eup %6998  ;;  %v9530_v44 = vpop.f32.mrb[183].mxu1  ;;  %v3077_v27 = vpack.c.bf16 %v6997_v60, %v6993_v29  ;;  %v2875_v50 = vmul.f32 1.442695, %v2799_v6  ;;  %v2877_v54 = vmul.f32 1.442695, %v2800_v16 }
 0x489   : > { %v2714_v36 = vpop.xlane.xlu1 %2713  ;;  %12890 = vst [vmem:[#allocation77_spill] sm:$0xff] %v9532_v32  ;;  %v3078_v52 = vpack.c.bf16 %v6999_v35, %v6995_v8  ;;  %v9538_v17 = vadd.f32 %v6999_v35, %v6997_v60  ;;  %v12896_v35 = vld [vmem:[#allocation80_spill] sm:$0xff] }
 0x48a   : > { %v2801_v56 = vsub.f32 %v12891_v39, %v2714_v36  ;;  %v2802_v12 = vsub.f32 %v12892_v14, %v2714_v36  ;;  %7008 = vpow2.f32 %v2875_v50 }
 0x48b   : > { %12893 = vst [vmem:[#allocation78_spill] sm:$0xff] %v9538_v17  ;;  %2758 = vmax.xlane.f32.xlu1 %v12894_v43  ;;  %7010 = vpow2.f32 %v2877_v54  ;;  %3164 = vmatprep.mubr.bf16.mxu0 %v3078_v52 }
 0x48c   : > { %v2879_v47 = vmul.f32 1.442695, %v2801_v56  ;;  %v2881_v29 = vmul.f32 1.442695, %v2802_v12  ;;  %v9543_v16 = vpop.f32.mrb[184].mxu1 }
 0x48d   : > { %v7001_v6 = vpop.eup %7000  ;;  %v9545_v39 = vpop.f32.mrb[185].mxu1 }
 0x48e   : > { %7012 = vpow2.f32 %v2879_v47  ;;  %v7003_v2 = vpop.eup %7002  ;;  %12895 = vst [vmem:[#allocation79_spill] sm:$0xff] %v9545_v39  ;;  %v2717_v8 = vpop.xlane.xlu1 %2716  ;;  %3165 = vmatmul.mubr.bf16.gmra.mrb[132].mxu0 %v3077_v27  ;;  %v12900_v27 = vld [vmem:[#allocation26_spill] sm:$0xff] }
 0x48f   : > { %7014 = vpow2.f32 %v2881_v29  ;;  %v2803_v14 = vsub.f32 %v9122_v28, %v2717_v8  ;;  %v2804_v43 = vsub.f32 %v12896_v35, %v2717_v8  ;;  %v9551_v36 = vpop.f32.mrb[186].mxu1  ;;  %v9553_v12 = vadd.f32 %v7003_v2, %v7001_v6 }
 0x490   : > { %v7005_v52 = vpop.eup %7004  ;;  %v9555_v47 = vpop.f32.mrb[187].mxu1 }
 0x491   : > { %12897 = vst [vmem:[#allocation80_spill] sm:$0xff] %v9553_v12  ;;  %v7007_v50 = vpop.eup %7006  ;;  %v2883_v54 = vmul.f32 1.442695, %v2803_v14  ;;  %v2885_v56 = vmul.f32 1.442695, %v2804_v43  ;;  %v3079_v29 = vpack.c.bf16 %v7005_v52, %v7001_v6 }
 0x492   : > { %v3080_v32 = vpack.c.bf16 %v7007_v50, %v7003_v2  ;;  %v2720_v60 = vpop.xlane.xlu1 %2719  ;;  %v9559_v17 = vadd.f32 %v7007_v50, %v7005_v52 }
 0x493   : > { %7016 = vpow2.f32 %v2883_v54  ;;  %v2805_v28 = vsub.f32 %v9130_v11, %v2720_v60  ;;  %v2806_v8 = vsub.f32 %v9132_v15, %v2720_v60 }
 0x494   : > { %12898 = vst [vmem:[#allocation104_spill] sm:$0xff] %v9559_v17  ;;  %7018 = vpow2.f32 %v2885_v56  ;;  %3172 = vmatprep.mubr.bf16.mxu0 %v3080_v32  ;;  %v7009_v35 = vpop.eup %7008  ;;  %v9563_v14 = vpop.f32.mrb[188].mxu1 }
 0x495   : > { %v2887_v12 = vmul.f32 1.442695, %v2805_v28  ;;  %v2889_v39 = vmul.f32 1.442695, %v2806_v8  ;;  %12899 = vst [vmem:[#allocation105_spill] sm:$0xff] %v9563_v14  ;;  %v7011_v43 = vpop.eup %7010  ;;  %v2723_v2 = vpop.xlane.xlu0 %2722 }
 0x496   : > { %v9567_v6 = vpop.f32.mrb[189].mxu1  ;;  %3173 = vmatmul.mubr.bf16.gmra.mrb[136].mxu0 %v3079_v29  ;;  %v2807_v11 = vsub.f32 %v9145_v37, %v2723_v2  ;;  %v2808_v15 = vsub.f32 %v9147_v5, %v2723_v2  ;;  %v9577_v28 = vadd.f32 %v7011_v43, %v7009_v35 }
 0x497   : > { %4346 = vrot.lane.b32.xlu0 %v12900_v27, %s7839_s12  ;;  %12901 = vst [vmem:[#allocation26_spill] sm:$0xff] %v9567_v6  ;;  %7020 = vpow2.f32 %v2887_v12  ;;  %v9573_v60 = vpop.f32.mrb[190].mxu1  ;;  %v2726_v56 = vpop.xlane.xlu1 %2725 }
 0x498   : > { %v7013_v52 = vpop.eup %7012  ;;  %7022 = vpow2.f32 %v2889_v39  ;;  %v9575_v54 = vpop.f32.mrb[191].mxu1  ;;  %12902 = vst [vmem:[#allocation106_spill] sm:$0xff] %v9577_v28  ;;  %v2891_v8 = vmul.f32 1.442695, %v2807_v11  ;;  %v2893_v12 = vmul.f32 1.442695, %v2808_v15  ;;  %v2809_v5 = vsub.f32 %v9153_v4, %v2726_v56 }
 0x499   : > { %v7015_v50 = vpop.eup %7014  ;;  %v3081_v27 = vpack.c.bf16 %v7013_v52, %v7009_v35  ;;  %v2810_v29 = vsub.f32 %v9157_v23, %v2726_v56  ;;  %v4337_v2 = vpop.permute.xlu0 %4336  ;;  %v12904_v11 = vld [vmem:[#allocation31_spill] sm:$0xff] }
 0x49a   : > { %v3082_v32 = vpack.c.bf16 %v7015_v50, %v7011_v43  ;;  %v9583_v17 = vadd.f32 %v7015_v50, %v7013_v52  ;;  %7024 = vpow2.f32 %v2891_v8  ;;  %v2895_v39 = vmul.f32 1.442695, %v2809_v5  ;;  %6065 = vmatmul.mubr.msk.bf16.gmra.mrb[0].mxu1 %vm870_vm0, %v4337_v2 }
 0x49b   : > { %7026 = vpow2.f32 %v2893_v12  ;;  %v2897_v35 = vmul.f32 1.442695, %v2810_v29  ;;  %4522 = vmatprep.mubr.bf16.mxu1 %v12742_v30 }
 0x49c   : > { %12903 = vst [vmem:[#allocation107_spill] sm:$0xff] %v9583_v17  ;;  %3180 = vmatprep.mubr.bf16.mxu0 %v3082_v32  ;;  %4348 = vrot.lane.b32.xlu1 %v12904_v11, %s7839_s12  ;;  %7028 = vpow2.f32 %v2895_v39  ;;  %v9588_v37 = vpop.f32.mrb[192].mxu1 }
 0x49d   : > { %v7017_v15 = vpop.eup %7016  ;;  %12905 = vst [vmem:[#allocation31_spill] sm:$0xff] %v9588_v37  ;;  %7030 = vpow2.f32 %v2897_v35  ;;  %v9591_v23 = vpop.f32.mrb[193].mxu1 }
 0x49e   : > { %v7019_v4 = vpop.eup %7018  ;;  %12906 = vst [vmem:[#allocation108_spill] sm:$0xff] %v9591_v23  ;;  %3181 = vmatmul.mubr.bf16.gmra.mrb[140].mxu0 %v3081_v27  ;;  %v2729_v52 = vpop.xlane.xlu1 %2728  ;;  %v12942_v23 = vld [vmem:[#allocation91_spill] sm:$0xff] }
 0x49f   : > { %v9595_v50 = vpop.f32.mrb[194].mxu1  ;;  %v9597_v32 = vadd.f32 %v7019_v4, %v7017_v15  ;;  %v2811_v56 = vsub.f32 %v9168_v58, %v2729_v52  ;;  %v2812_v8 = vsub.f32 %v9170_v57, %v2729_v52  ;;  %v4339_v27 = vpop.permute.xlu0 %4338 }
 0x4a0   : > { %v9601_v12 = vpop.f32.mrb[195].mxu1 }
 0x4a1   : > { %12907 = vst [vmem:[#allocation109_spill] sm:$0xff] %v9597_v32  ;;  %v7021_v5 = vpop.eup %7020  ;;  %v2899_v39 = vmul.f32 1.442695, %v2811_v56  ;;  %v2901_v35 = vmul.f32 1.442695, %v2812_v8 }
 0x4a2   : > { %v7023_v2 = vpop.eup %7022  ;;  %v3083_v11 = vpack.c.bf16 %v7021_v5, %v7017_v15  ;;  %v2732_v43 = vpop.xlane.xlu1 %2731  ;;  %6066 = vmatmul.mubr.msk.bf16.gmra.mrb[4].mxu1 %vm870_vm0, %v4339_v27 }
 0x4a3   : > { %v3084_v28 = vpack.c.bf16 %v7023_v2, %v7019_v4  ;;  %v9606_v32 = vadd.f32 %v7023_v2, %v7021_v5  ;;  %7032 = vpow2.f32 %v2899_v39  ;;  %v2813_v58 = vsub.f32 %v9176_v48, %v2732_v43  ;;  %4532 = vmatprep.mubr.bf16.mxu1 %v12742_v30 }
 0x4a4   : > { %v2814_v57 = vsub.f32 %v9178_v46, %v2732_v43  ;;  %v7025_v52 = vpop.eup %7024  ;;  %7034 = vpow2.f32 %v2901_v35  ;;  %v9611_v29 = vpop.f32.mrb[196].mxu1 }
 0x4a5   : > { %12908 = vst [vmem:[#allocation110_spill] sm:$0xff] %v9606_v32  ;;  %3188 = vmatprep.mubr.bf16.mxu0 %v3084_v28  ;;  %12909 = vst [vmem:[#allocation111_spill] sm:$0xff] %v9611_v29  ;;  %v7027_v56 = vpop.eup %7026  ;;  %v2903_v15 = vmul.f32 1.442695, %v2813_v58  ;;  %v9613_v17 = vpop.f32.mrb[197].mxu1 }
 0x4a6   : > { %v2905_v8 = vmul.f32 1.442695, %v2814_v57  ;;  %12910 = vst [vmem:[#allocation112_spill] sm:$0xff] %v9613_v17  ;;  %v7029_v4 = vpop.eup %7028  ;;  %3189 = vmatmul.mubr.bf16.gmra.mrb[144].mxu0 %v3083_v11  ;;  %v2735_v48 = vpop.xlane.xlu1 %2734  ;;  %v9619_v46 = vadd.f32 %v7027_v56, %v7025_v52 }
 0x4a7   : > { %v9617_v2 = vpop.f32.mrb[198].mxu1  ;;  %v7031_v43 = vpop.eup %7030  ;;  %7036 = vpow2.f32 %v2903_v15  ;;  %v2815_v28 = vsub.f32 %v9191_v19, %v2735_v48  ;;  %v2816_v27 = vsub.f32 %v9193_v25, %v2735_v48  ;;  %v3085_v35 = vpack.c.bf16 %v7029_v4, %v7025_v52 }
 0x4a8   : > { %12911 = vst [vmem:[#allocation113_spill] sm:$0xff] %v9619_v46  ;;  %v9623_v39 = vpop.f32.mrb[199].mxu1  ;;  %7038 = vpow2.f32 %v2905_v8  ;;  %v3086_v58 = vpack.c.bf16 %v7031_v43, %v7027_v56  ;;  %v9627_v57 = vadd.f32 %v7031_v43, %v7029_v4 }
 0x4a9   : > { %v2907_v5 = vmul.f32 1.442695, %v2815_v28  ;;  %v2909_v32 = vmul.f32 1.442695, %v2816_v27 }
 0x4aa   : > { %12912 = vst [vmem:[#allocation114_spill] sm:$0xff] %v9627_v57  ;;  %3196 = vmatprep.mubr.bf16.mxu0 %v3086_v58  ;;  %v4341_v46 = vpop.permute.xlu1 %4340  ;;  %v12927_v57 = vmax.f32 %v9312_v9, %v9314_v45 }
 0x4ab   : > { %7040 = vpow2.f32 %v2907_v5  ;;  %6067 = vmatmul.mubr.msk.bf16.gmra.mrb[8].mxu1 %vm870_vm0, %v4341_v46 }
 0x4ac   : > { %7042 = vpow2.f32 %v2909_v32  ;;  %v9630_v19 = vpop.f32.mrb[200].mxu1  ;;  %4542 = vmatprep.mubr.bf16.mxu1 %v12742_v30 }
 0x4ad   : > { %12913 = vst [vmem:[#allocation115_spill] sm:$0xff] %v9630_v19  ;;  %v7033_v25 = vpop.eup %7032  ;;  %v9633_v52 = vpop.f32.mrb[201].mxu1 }
 0x4ae   : > { %12914 = vst [vmem:[#allocation116_spill] sm:$0xff] %v9633_v52  ;;  %v7035_v15 = vpop.eup %7034  ;;  %3197 = vmatmul.mubr.bf16.gmra.mrb[148].mxu0 %v3085_v35  ;;  %v9637_v8 = vpop.f32.mrb[202].mxu1  ;;  %v12917_v35 = vmax.f32 %v9297_v0, %v9301_v49 }
 0x4af   : > { %v9639_v4 = vpop.f32.mrb[203].mxu1  ;;  %v9641_v5 = vadd.f32 %v7035_v15, %v7033_v25 }
 0x4b1   : > { %12915 = vst [vmem:[#allocation117_spill] sm:$0xff] %v9641_v5  ;;  %v7037_v48 = vpop.eup %7036 }
 0x4b2   : > { %v7039_v46 = vpop.eup %7038  ;;  %v3087_v43 = vpack.c.bf16 %v7037_v48, %v7033_v25  ;;  %v12938_v25 = vld [vmem:[#allocation29_spill] sm:$0xff] }
 0x4b3   : > { %v3088_v28 = vpack.c.bf16 %v7039_v46, %v7035_v15  ;;  %v9645_v27 = vadd.f32 %v7039_v46, %v7037_v48 }
 0x4b4   : > { %v9650_v58 = vpop.f32.mrb[204].mxu1 }
 0x4b5   : > { %12916 = vst [vmem:[#allocation118_spill] sm:$0xff] %v9645_v27  ;;  %12918 = vst [vmem:[#allocation119_spill] sm:$0xff] %v9650_v58  ;;  %v9652_v56 = vpop.eup %7040  ;;  %3204 = vmatprep.mubr.bf16.mxu0 %v3088_v28  ;;  %v9654_v11 = vpop.f32.mrb[205].mxu1  ;;  %v12929_v28 = vmax.f32 %v9338_v55, %v9340_v40 }
 0x4b6   : > { %2761 = vmax.xlane.f32.xlu0 %v12917_v35  ;;  %12919 = vst [vmem:[#allocation120_spill] sm:$0xff] %v9654_v11  ;;  %v9656_v5 = vpop.eup %7042  ;;  %3205 = vmatmul.mubr.bf16.gmra.mrb[152].mxu0 %v3087_v43  ;;  %v9660_v15 = vpop.f32.mrb[206].mxu1  ;;  %v12923_v35 = vmax.f32 %v9320_v51, %v9324_v22 }
 0x4b7   : > { %12920 = vst [vmem:[#allocation121_spill] sm:$0xff] %v9660_v15  ;;  %v9662_v48 = vpop.f32.mrb[207].mxu1  ;;  %v9666_v46 = vadd.f32 %v9656_v5, %v9652_v56 }
 0x4b8   : > { %12921 = vst [vmem:[#allocation122_spill] sm:$0xff] %v9662_v48 }
 0x4b9   : > { %12922 = vst [vmem:[#allocation123_spill] sm:$0xff] %v9666_v46 }
 0x4ba   : > { %2767 = vmax.xlane.f32.xlu0 %v12923_v35 }
 0x4bc   : > { %v9673_v32 = vpop.f32.mrb[208].mxu1 }
 0x4bd   : > { %12924 = vst [vmem:[#allocation124_spill] sm:$0xff] %v9673_v32  ;;  %v9675_v43 = vpop.f32.mrb[209].mxu1 }
 0x4be   : > { %12925 = vst [vmem:[#allocation125_spill] sm:$0xff] %v9675_v43  ;;  %v9679_v27 = vpop.f32.mrb[210].mxu1 }
 0x4bf   : > { %12926 = vst [vmem:[#allocation126_spill] sm:$0xff] %v9679_v27  ;;  %v9684_v46 = vpop.f32.mrb[211].mxu1 }
 0x4c0   : > { %2764 = vmax.xlane.f32.xlu1 %v12927_v57  ;;  %12928 = vst [vmem:[#allocation127_spill] sm:$0xff] %v9684_v46  ;;  %v12933_v57 = vmax.f32 %v9361_v13, %v9366_v62 }
 0x4c4   : > { %2770 = vmax.xlane.f32.xlu1 %v12929_v28  ;;  %v9691_v11 = vpop.f32.mrb[212].mxu1  ;;  %v12935_v28 = vmax.f32 %v9372_v24, %v9376_v10 }
 0x4c5   : > { %12930 = vst [vmem:[#allocation128_spill] sm:$0xff] %v9691_v11  ;;  %v9693_v58 = vpop.f32.mrb[213].mxu1 }
 0x4c6   : > { %12931 = vst [vmem:[#allocation129_spill] sm:$0xff] %v9693_v58  ;;  %v9697_v43 = vpop.f32.mrb[214].mxu1 }
 0x4c7   : > { %12932 = vst [vmem:[#allocation130_spill] sm:$0xff] %v9697_v43  ;;  %v9702_v32 = vpop.f32.mrb[215].mxu1 }
 0x4c8   : > { %2776 = vmax.xlane.f32.xlu1 %v12933_v57  ;;  %12934 = vst [vmem:[#allocation131_spill] sm:$0xff] %v9702_v32 }
 0x4cc   : > { %2779 = vmax.xlane.f32.xlu1 %v12935_v28  ;;  %v9709_v52 = vpop.f32.mrb[216].mxu1 }
 0x4cd   : > { %12936 = vst [vmem:[#allocation132_spill] sm:$0xff] %v9709_v52  ;;  %v9711_v19 = vpop.f32.mrb[217].mxu1 }
 0x4ce   : > { %12937 = vst [vmem:[#allocation133_spill] sm:$0xff] %v9711_v19  ;;  %v9717_v57 = vpop.f32.mrb[218].mxu1 }
 0x4cf   : > { %12939 = vst [vmem:[#allocation29_spill] sm:$0xff] %v9717_v57  ;;  %v2738_v11 = vpop.xlane.xlu0 %2737  ;;  %v9719_v17 = vpop.f32.mrb[219].mxu1 }
 0x4d0   : > { %4350 = vrot.lane.b32.xlu0 %v12938_v25, %s7839_s12  ;;  %12940 = vst [vmem:[#allocation134_spill] sm:$0xff] %v9719_v17  ;;  %v2817_v35 = vsub.f32 %v9199_v41, %v2738_v11  ;;  %v2818_v32 = vsub.f32 %v9201_v3, %v2738_v11  ;;  %v12941_v25 = vld [vmem:[#allocation90_spill] sm:$0xff]  ;;  %v12949_v3 = vld [vmem:[#allocation88_spill] sm:$0xff] }
 0x4d1   : > { %v12951_v17 = vld [vmem:[#allocation32_spill] sm:$0xff] }
 0x4d2   : > { %v2911_v43 = vmul.f32 1.442695, %v2817_v35  ;;  %v2913_v29 = vmul.f32 1.442695, %v2818_v32 }
 0x4d3   : > { %v2744_v46 = vpop.xlane.xlu0 %2743 }
 0x4d4   : > { %7044 = vpow2.f32 %v2911_v43  ;;  %v2821_v27 = vsub.f32 %v12941_v25, %v2744_v46  ;;  %v2822_v58 = vsub.f32 %v12942_v23, %v2744_v46  ;;  %v9727_v19 = vpop.f32.mrb[220].mxu1 }
 0x4d5   : > { %12943 = vst [vmem:[#allocation90_spill] sm:$0xff] %v9727_v19  ;;  %7046 = vpow2.f32 %v2913_v29  ;;  %v9729_v52 = vpop.f32.mrb[221].mxu1 }
 0x4d6   : > { %12944 = vst [vmem:[#allocation91_spill] sm:$0xff] %v9729_v52  ;;  %v2919_v37 = vmul.f32 1.442695, %v2821_v27  ;;  %v2921_v41 = vmul.f32 1.442695, %v2822_v58  ;;  %v9733_v11 = vpop.f32.mrb[222].mxu1 }
 0x4d7   : > { %12945 = vst [vmem:[#allocation135_spill] sm:$0xff] %v9733_v11  ;;  %v6129_v35 = vpop.f32.mrb[64].mxu0  ;;  %v4343_v32 = vpop.permute.xlu0 %4342  ;;  %v12950_v52 = vld [vmem:[#allocation89_spill] sm:$0xff] }
 0x4d8   : > { %7048 = vpow2.f32 %v2919_v37  ;;  %v6130_v43 = vpop.f32.mrb[65].mxu0  ;;  %v9735_v28 = vpop.f32.mrb[223].mxu1  ;;  %6068 = vmatmul.mubr.msk.bf16.gmra.mrb[12].mxu1 %vm870_vm0, %v4343_v32 }
 0x4d9   : > { %12946 = vst [vmem:[#allocation136_spill] sm:$0xff] %v9735_v28  ;;  %7050 = vpow2.f32 %v2921_v41  ;;  %v9738_v23 = vadd.f32 %v6130_v43, %v6129_v35  ;;  %v6132_v29 = vpop.f32.mrb[66].mxu0  ;;  %4552 = vmatprep.mubr.bf16.mxu1 %v12742_v30 }
 0x4da   : > { %v6133_v58 = vpop.f32.mrb[67].mxu0 }
 0x4db   : > { %12947 = vst [vmem:[#allocation137_spill] sm:$0xff] %v9738_v23  ;;  %v2741_v46 = vpop.xlane.xlu1 %2740  ;;  %v9743_v25 = vadd.f32 %v6133_v58, %v6132_v29 }
 0x4dc   : > { %v2819_v37 = vsub.f32 %v12949_v3, %v2741_v46  ;;  %v2820_v19 = vsub.f32 %v12950_v52, %v2741_v46  ;;  %v9749_v41 = vpop.f32.mrb[224].mxu1  ;;  %v12955_v3 = vld [vmem:[#allocation93_spill] sm:$0xff]  ;;  %v12956_v46 = vld [vmem:[#allocation94_spill] sm:$0xff] }
 0x4dd   : > { %12948 = vst [vmem:[#allocation138_spill] sm:$0xff] %v9743_v25  ;;  %984 = vrot.lane.b32.xlu1 %v12951_v17, %s7841_s1  ;;  %12952 = vst [vmem:[#allocation88_spill] sm:$0xff] %v9749_v41  ;;  %v9751_v43 = vpop.f32.mrb[225].mxu1 }
 0x4de   : > { %v2915_v35 = vmul.f32 1.442695, %v2819_v37  ;;  %v2917_v32 = vmul.f32 1.442695, %v2820_v19  ;;  %12953 = vst [vmem:[#allocation89_spill] sm:$0xff] %v9751_v43  ;;  %v7045_v27 = vpop.eup %7044  ;;  %v9755_v28 = vpop.f32.mrb[226].mxu1 }
 0x4df   : > { %12954 = vst [vmem:[#allocation139_spill] sm:$0xff] %v9755_v28  ;;  %v2747_v29 = vpop.xlane.xlu1 %2746  ;;  %v7047_v58 = vpop.eup %7046  ;;  %v3089_v37 = vpack.c.bf16 %v7045_v27, %v9652_v56 }
 0x4e0   : > { %7052 = vpow2.f32 %v2915_v35  ;;  %v2823_v52 = vsub.f32 %v12955_v3, %v2747_v29  ;;  %v2824_v25 = vsub.f32 %v12956_v46, %v2747_v29  ;;  %v9759_v17 = vpop.f32.mrb[227].mxu1  ;;  %v3090_v11 = vpack.c.bf16 %v7047_v58, %v9656_v5  ;;  %v6135_v57 = vpop.f32.mrb[68].mxu0 }
 0x4e1   : > { %12957 = vst [vmem:[#allocation93_spill] sm:$0xff] %v9759_v17  ;;  %7054 = vpow2.f32 %v2917_v32  ;;  %v9765_v23 = vadd.f32 %v7047_v58, %v7045_v27  ;;  %v6136_v48 = vpop.f32.mrb[69].mxu0 }
 0x4e2   : > { %v2923_v43 = vmul.f32 1.442695, %v2823_v52  ;;  %v2925_v41 = vmul.f32 1.442695, %v2824_v25  ;;  %v7049_v35 = vpop.eup %7048  ;;  %3212 = vmatprep.mubr.bf16.mxu0 %v3090_v11  ;;  %v9767_v46 = vadd.f32 %v6136_v48, %v6135_v57  ;;  %v6138_v56 = vpop.f32.mrb[70].mxu0 }
 0x4e3   : > { %12958 = vst [vmem:[#allocation94_spill] sm:$0xff] %v9765_v23  ;;  %v4345_v3 = vpop.permute.xlu1 %4344  ;;  %v7051_v29 = vpop.eup %7050  ;;  %3213 = vmatmul.mubr.bf16.gmra.mrb[156].mxu0 %v3089_v37 }
 0x4e4   : > { %7056 = vpow2.f32 %v2923_v43  ;;  %12959 = vst [vmem:[#allocation140_spill] sm:$0xff] %v9767_v46  ;;  %6069 = vmatmul.mubr.msk.bf16.gmra.mrb[16].mxu1 %vm870_vm0, %v4345_v3  ;;  %v6139_v32 = vpop.f32.mrb[71].mxu0  ;;  %v9770_v5 = vpop.f32.mrb[228].mxu1  ;;  %v9773_v27 = vadd.f32 %v7051_v29, %v7049_v35 }
 0x4e5   : > { %7058 = vpow2.f32 %v2925_v41  ;;  %12960 = vst [vmem:[#allocation141_spill] sm:$0xff] %v9770_v5  ;;  %4562 = vmatprep.mubr.bf16.mxu1 %v12742_v30  ;;  %v9775_v25 = vadd.f32 %v6139_v32, %v6138_v56  ;;  %v9777_v11 = vpop.f32.mrb[229].mxu1  ;;  %v12970_v5 = vld [vmem:[#allocation48_spill] sm:$0xff]  ;;  %v12971_v41 = vld [vmem:[#allocation49_spill] sm:$0xff] }
 0x4e6   : > { %12961 = vst [vmem:[#allocation142_spill] sm:$0xff] %v9773_v27  ;;  %12963 = vst [vmem:[#allocation144_spill] sm:$0xff] %v9777_v11  ;;  %v9781_v57 = vpop.f32.mrb[230].mxu1 }
 0x4e7   : > { %12962 = vst [vmem:[#allocation143_spill] sm:$0xff] %v9775_v25  ;;  %12964 = vst [vmem:[#allocation145_spill] sm:$0xff] %v9781_v57  ;;  %v9783_v43 = vpop.f32.mrb[231].mxu1 }
 0x4e8   : > { %12965 = vst [vmem:[#allocation146_spill] sm:$0xff] %v9783_v43  ;;  %v12972_v43 = vmax.f32 %v12970_v5, %v12971_v41 }
 0x4e9   : > { %v6141_v52 = vpop.f32.mrb[72].mxu0 }
 0x4ea   : > { %v7053_v58 = vpop.eup %7052  ;;  %v6142_v3 = vpop.f32.mrb[73].mxu0 }
 0x4eb   : > { %v7055_v37 = vpop.eup %7054  ;;  %v3091_v19 = vpack.c.bf16 %v7049_v35, %v7053_v58  ;;  %v9787_v46 = vadd.f32 %v6142_v3, %v6141_v52  ;;  %v6144_v56 = vpop.f32.mrb[74].mxu0  ;;  %v12977_v3 = vld [vmem:[#allocation55_spill] sm:$0xff] }
 0x4ec   : > { %v3092_v32 = vpack.c.bf16 %v7051_v29, %v7055_v37  ;;  %v9789_v25 = vadd.f32 %v7055_v37, %v7053_v58  ;;  %v6145_v27 = vpop.f32.mrb[75].mxu0  ;;  %v9791_v48 = vpop.f32.mrb[232].mxu1 }
 0x4ed   : > { %12966 = vst [vmem:[#allocation147_spill] sm:$0xff] %v9787_v46  ;;  %12968 = vst [vmem:[#allocation149_spill] sm:$0xff] %v9791_v48  ;;  %v9795_v11 = vadd.f32 %v6145_v27, %v6144_v56  ;;  %v9800_v57 = vpop.f32.mrb[233].mxu1  ;;  %v12978_v56 = vld [vmem:[#allocation57_spill] sm:$0xff] }
 0x4ee   : > { %12967 = vst [vmem:[#allocation148_spill] sm:$0xff] %v9789_v25  ;;  %v9793_v23 = vpop.eup %7056  ;;  %3220 = vmatprep.mubr.bf16.mxu0 %v3092_v32  ;;  %12973 = vst [vmem:[#allocation48_spill] sm:$0xff] %v9800_v57  ;;  %v9806_v58 = vpop.f32.mrb[234].mxu1  ;;  %v12979_v32 = vmax.f32 %v12977_v3, %v12978_v56 }
 0x4ef   : > { %12969 = vst [vmem:[#allocation150_spill] sm:$0xff] %v9795_v11  ;;  %2773 = vmax.xlane.f32.xlu0 %v12972_v43  ;;  %v9802_v35 = vpop.eup %7058  ;;  %3221 = vmatmul.mubr.bf16.gmra.mrb[160].mxu0 %v3091_v19  ;;  %12974 = vst [vmem:[#allocation49_spill] sm:$0xff] %v9806_v58  ;;  %v9808_v52 = vpop.f32.mrb[235].mxu1 }
 0x4f0   : > { %12975 = vst [vmem:[#allocation151_spill] sm:$0xff] %v9808_v52  ;;  %v9812_v27 = vadd.f32 %v9802_v35, %v9793_v23 }
 0x4f1   : > { %v6147_v37 = vpop.f32.mrb[76].mxu0 }
 0x4f2   : > { %12976 = vst [vmem:[#allocation152_spill] sm:$0xff] %v9812_v27  ;;  %v6148_v19 = vpop.f32.mrb[77].mxu0 }
 0x4f3   : > { %2785 = vmax.xlane.f32.xlu0 %v12979_v32  ;;  %v9819_v46 = vadd.f32 %v6148_v19, %v6147_v37  ;;  %v6150_v29 = vpop.f32.mrb[78].mxu0 }
 0x4f4   : > { %v6151_v11 = vpop.f32.mrb[79].mxu0  ;;  %v9821_v25 = vpop.f32.mrb[236].mxu1 }
 0x4f5   : > { %12980 = vst [vmem:[#allocation55_spill] sm:$0xff] %v9819_v46  ;;  %12981 = vst [vmem:[#allocation57_spill] sm:$0xff] %v9821_v25  ;;  %v9823_v57 = vadd.f32 %v6151_v11, %v6150_v29  ;;  %v9825_v48 = vpop.f32.mrb[237].mxu1 }
 0x4f6   : > { %12983 = vst [vmem:[#allocation154_spill] sm:$0xff] %v9825_v48  ;;  %v9829_v43 = vpop.f32.mrb[238].mxu1 }
 0x4f7   : > { %12982 = vst [vmem:[#allocation153_spill] sm:$0xff] %v9823_v57  ;;  %12984 = vst [vmem:[#allocation155_spill] sm:$0xff] %v9829_v43  ;;  %v9831_v52 = vpop.f32.mrb[239].mxu1 }
 0x4f8   : > { %12985 = vst [vmem:[#allocation156_spill] sm:$0xff] %v9831_v52 }
 0x4f9   : > { %v6153_v37 = vpop.f32.mrb[80].mxu0 }
 0x4fa   : > { %v6154_v19 = vpop.f32.mrb[81].mxu0 }
 0x4fb   : > { %v9835_v46 = vadd.f32 %v6154_v19, %v6153_v37  ;;  %v6156_v58 = vpop.f32.mrb[82].mxu0  ;;  %v12992_v37 = vld [vmem:[#allocation53_spill] sm:$0xff]  ;;  %v12993_v19 = vld [vmem:[#allocation54_spill] sm:$0xff] }
 0x4fc   : > { %v6157_v17 = vpop.f32.mrb[83].mxu0  ;;  %v9837_v11 = vpop.f32.mrb[240].mxu1 }
 0x4fd   : > { %12986 = vst [vmem:[#allocation157_spill] sm:$0xff] %v9835_v46  ;;  %12987 = vst [vmem:[#allocation158_spill] sm:$0xff] %v9837_v11  ;;  %v9839_v29 = vadd.f32 %v6157_v17, %v6156_v58  ;;  %v9841_v57 = vpop.f32.mrb[241].mxu1  ;;  %v12994_v46 = vmax.f32 %v12992_v37, %v12993_v19 }
 0x4fe   : > { %12989 = vst [vmem:[#allocation160_spill] sm:$0xff] %v9841_v57  ;;  %v9845_v48 = vpop.f32.mrb[242].mxu1 }
 0x4ff   : > { %12988 = vst [vmem:[#allocation159_spill] sm:$0xff] %v9839_v29  ;;  %12990 = vst [vmem:[#allocation161_spill] sm:$0xff] %v9845_v48  ;;  %v9847_v25 = vpop.f32.mrb[243].mxu1 }
 0x500   : > { %12991 = vst [vmem:[#allocation162_spill] sm:$0xff] %v9847_v25  ;;  %v13000_v25 = vld [vmem:[#allocation19_spill] sm:$0xff] }
 0x501   : > { %2782 = vmax.xlane.f32.xlu1 %v12994_v46  ;;  %v6159_v52 = vpop.f32.mrb[84].mxu0 }
 0x502   : > { %v6160_v43 = vpop.f32.mrb[85].mxu0 }
 0x503   : > { %v9854_v17 = vadd.f32 %v6160_v43, %v6159_v52  ;;  %v6162_v58 = vpop.f32.mrb[86].mxu0 }
 0x504   : > { %v6163_v29 = vpop.f32.mrb[87].mxu0  ;;  %v9856_v28 = vpop.f32.mrb[244].mxu1 }
 0x505   : > { %12995 = vst [vmem:[#allocation53_spill] sm:$0xff] %v9854_v17  ;;  %12996 = vst [vmem:[#allocation54_spill] sm:$0xff] %v9856_v28  ;;  %v9858_v27 = vadd.f32 %v6163_v29, %v6162_v58  ;;  %v9860_v57 = vpop.f32.mrb[245].mxu1  ;;  %v13003_v28 = vld [vmem:[#allocation33_spill] sm:$0xff] }
 0x506   : > { %12998 = vst [vmem:[#allocation164_spill] sm:$0xff] %v9860_v57  ;;  %v9864_v32 = vpop.f32.mrb[246].mxu1 }
 0x507   : > { %12997 = vst [vmem:[#allocation163_spill] sm:$0xff] %v9858_v27  ;;  %12999 = vst [vmem:[#allocation165_spill] sm:$0xff] %v9864_v32  ;;  %v9868_v46 = vpop.f32.mrb[247].mxu1 }
 0x508   : > { %13001 = vst [vmem:[#allocation166_spill] sm:$0xff] %v9868_v46  ;;  %v2750_v52 = vpop.xlane.xlu0 %2749 }
 0x509   : > { %968 = vrot.lane.b32.xlu0 %v13000_v25, %s7841_s1  ;;  %v2825_v17 = vsub.f32 %v9249_v59, %v2750_v52  ;;  %v2826_v29 = vsub.f32 %v9253_v18, %v2750_v52  ;;  %v6165_v58 = vpop.f32.mrb[88].mxu0 }
 0x50a   : > { %v6166_v27 = vpop.f32.mrb[89].mxu0 }
 0x50b   : > { %v2927_v48 = vmul.f32 1.442695, %v2825_v17  ;;  %v2929_v15 = vmul.f32 1.442695, %v2826_v29  ;;  %v9874_v11 = vadd.f32 %v6166_v27, %v6165_v58  ;;  %v6168_v57 = vpop.f32.mrb[90].mxu0  ;;  %v13007_v58 = vld [vmem:[#allocation20_spill] sm:$0xff] }
 0x50c   : > { %v6169_v25 = vpop.f32.mrb[91].mxu0  ;;  %v9882_v18 = vpop.f32.mrb[248].mxu1 }
 0x50d   : > { %13002 = vst [vmem:[#allocation167_spill] sm:$0xff] %v9874_v11  ;;  %986 = vrot.lane.b32.xlu0 %v13003_v28, %s7841_s1  ;;  %7060 = vpow2.f32 %v2927_v48  ;;  %v9878_v14 = vadd.f32 %v6169_v25, %v6168_v57  ;;  %13005 = vst [vmem:[#allocation168_spill] sm:$0xff] %v9882_v18  ;;  %v9884_v17 = vpop.f32.mrb[249].mxu1 }
 0x50e   : > { %v2756_v6 = vpop.xlane.xlu0 %2755  ;;  %7062 = vpow2.f32 %v2929_v15  ;;  %13006 = vst [vmem:[#allocation169_spill] sm:$0xff] %v9884_v17  ;;  %v9890_v48 = vpop.f32.mrb[250].mxu1 }
 0x50f   : > { %13004 = vst [vmem:[#allocation33_spill] sm:$0xff] %v9878_v14  ;;  %v2829_v43 = vsub.f32 %v9274_v42, %v2756_v6  ;;  %v2830_v59 = vsub.f32 %v9278_v31, %v2756_v6  ;;  %13008 = vst [vmem:[#allocation20_spill] sm:$0xff] %v9890_v48  ;;  %v9892_v57 = vpop.f32.mrb[251].mxu1  ;;  %v13010_v6 = vld [vmem:[#allocation34_spill] sm:$0xff] }
 0x510   : > { %13009 = vst [vmem:[#allocation170_spill] sm:$0xff] %v9892_v57 }
 0x511   : > { %v2935_v27 = vmul.f32 1.442695, %v2829_v43  ;;  %v2937_v52 = vmul.f32 1.442695, %v2830_v59  ;;  %970 = vrot.lane.b32.xlu0 %v13007_v58, %s7841_s1  ;;  %v6171_v42 = vpop.f32.mrb[92].mxu0 }
 0x512   : > { %v4347_v25 = vpop.permute.xlu0 %4346  ;;  %988 = vrot.lane.b32.xlu1 %v13010_v6, %s7841_s1  ;;  %v6172_v15 = vpop.f32.mrb[93].mxu0 }
 0x513   : > { %7064 = vpow2.f32 %v2935_v27  ;;  %6070 = vmatmul.mubr.msk.bf16.gmra.mrb[20].mxu1 %vm870_vm0, %v4347_v25  ;;  %v9900_v43 = vadd.f32 %v6172_v15, %v6171_v42  ;;  %v6174_v59 = vpop.f32.mrb[94].mxu0 }
 0x514   : > { %7066 = vpow2.f32 %v2937_v52  ;;  %4572 = vmatprep.mubr.bf16.mxu1 %v12742_v30  ;;  %v2753_v29 = vpop.xlane.xlu1 %2752  ;;  %v6175_v11 = vpop.f32.mrb[95].mxu0 }
 0x515   : > { %13011 = vst [vmem:[#allocation34_spill] sm:$0xff] %v9900_v43  ;;  %v2827_v27 = vsub.f32 %v9266_v21, %v2753_v29  ;;  %v2828_v14 = vsub.f32 %v9268_v33, %v2753_v29  ;;  %v9904_v17 = vpop.f32.mrb[252].mxu1  ;;  %v9906_v31 = vadd.f32 %v6175_v11, %v6174_v59 }
 0x516   : > { %13012 = vst [vmem:[#allocation171_spill] sm:$0xff] %v9904_v17  ;;  %v9908_v25 = vpop.f32.mrb[253].mxu1 }
 0x517   : > { %13013 = vst [vmem:[#allocation172_spill] sm:$0xff] %v9906_v31  ;;  %13014 = vst [vmem:[#allocation173_spill] sm:$0xff] %v9908_v25  ;;  %v2931_v18 = vmul.f32 1.442695, %v2827_v27  ;;  %v2933_v52 = vmul.f32 1.442695, %v2828_v14  ;;  %v7061_v15 = vpop.eup %7060 }
 0x518   : > { %v9912_v42 = vpop.f32.mrb[254].mxu1  ;;  %v2759_v48 = vpop.xlane.xlu1 %2758  ;;  %v3093_v27 = vpack.c.bf16 %v7061_v15, %v9793_v23 }
 0x519   : > { %13015 = vst [vmem:[#allocation174_spill] sm:$0xff] %v9912_v42  ;;  %v9914_v43 = vpop.f32.mrb[255].mxu1  ;;  %v7063_v21 = vpop.eup %7062  ;;  %7068 = vpow2.f32 %v2931_v18  ;;  %v2831_v11 = vsub.f32 %v9289_v63, %v2759_v48  ;;  %v2832_v29 = vsub.f32 %v9291_v20, %v2759_v48  ;;  %v13150_v42 = vld [vmem:[#allocation31_spill] sm:$0xff] }
 0x51a   : > { %13016 = vst [vmem:[#allocation175_spill] sm:$0xff] %v9914_v43  ;;  %7070 = vpow2.f32 %v2933_v52  ;;  %v6177_v14 = vpop.f32.mrb[96].mxu0  ;;  %v3094_v59 = vpack.c.bf16 %v7063_v21, %v9802_v35  ;;  %v9922_v57 = vadd.f32 %v7063_v21, %v7061_v15 }
 0x51b   : > { %v2939_v31 = vmul.f32 1.442695, %v2831_v11  ;;  %v2941_v25 = vmul.f32 1.442695, %v2832_v29  ;;  %v6178_v17 = vpop.f32.mrb[97].mxu0 }
 0x51c   : > { %13017 = vst [vmem:[#allocation176_spill] sm:$0xff] %v9922_v57  ;;  %v9924_v18 = vadd.f32 %v6178_v17, %v6177_v14  ;;  %v6180_v32 = vpop.f32.mrb[98].mxu0  ;;  %3228 = vmatprep.mubr.bf16.mxu0 %v3094_v59  ;;  %v4349_v33 = vpop.permute.xlu1 %4348 }
 0x51d   : > { %v7065_v46 = vpop.eup %7064  ;;  %7072 = vpow2.f32 %v2939_v31  ;;  %v6181_v20 = vpop.f32.mrb[99].mxu0  ;;  %3229 = vmatmul.mubr.bf16.gmra.mrb[164].mxu0 %v3093_v27  ;;  %6071 = vmatmul.mubr.msk.bf16.gmra.mrb[24].mxu1 %vm870_vm0, %v4349_v33 }
 0x51e   : > { %13018 = vst [vmem:[#allocation177_spill] sm:$0xff] %v9924_v18  ;;  %v7067_v63 = vpop.eup %7066  ;;  %7074 = vpow2.f32 %v2941_v25  ;;  %v9927_v35 = vadd.f32 %v6181_v20, %v6180_v32  ;;  %4582 = vmatprep.mubr.bf16.mxu1 %v12742_v30  ;;  %v13032_v18 = vld [vmem:[#allocation24_spill] sm:$0xff] }
 0x51f   : > { %v9930_v23 = vadd.f32 %v7067_v63, %v7065_v46 }
 0x520   : > { %13019 = vst [vmem:[#allocation178_spill] sm:$0xff] %v9927_v35 }
 0x521   : > { %13020 = vst [vmem:[#allocation179_spill] sm:$0xff] %v9930_v23  ;;  %v6183_v48 = vpop.f32.mrb[100].mxu0 }
 0x522   : > { %v6184_v17 = vpop.f32.mrb[101].mxu0 }
 0x523   : > { %v7069_v52 = vpop.eup %7068  ;;  %v9932_v21 = vadd.f32 %v6184_v17, %v6183_v48  ;;  %v6186_v11 = vpop.f32.mrb[102].mxu0  ;;  %v13027_v17 = vld [vmem:[#allocation59_spill] sm:$0xff] }
 0x524   : > { %v7071_v15 = vpop.eup %7070  ;;  %v3095_v29 = vpack.c.bf16 %v7065_v46, %v7069_v52  ;;  %v6187_v31 = vpop.f32.mrb[103].mxu0 }
 0x525   : > { %13021 = vst [vmem:[#allocation180_spill] sm:$0xff] %v9932_v21  ;;  %v3096_v14 = vpack.c.bf16 %v7067_v63, %v7071_v15  ;;  %v9934_v59 = vadd.f32 %v7071_v15, %v7069_v52  ;;  %v9936_v33 = vadd.f32 %v6187_v31, %v6186_v11  ;;  %v13028_v15 = vld [vmem:[#allocation60_spill] sm:$0xff] }
 0x526   : > { %v13029_v11 = vmax.f32 %v13027_v17, %v13028_v15 }
 0x527   : > { %13022 = vst [vmem:[#allocation181_spill] sm:$0xff] %v9934_v59  ;;  %13023 = vst [vmem:[#allocation182_spill] sm:$0xff] %v9936_v33  ;;  %v9938_v32 = vpop.eup %7072  ;;  %3236 = vmatprep.mubr.bf16.mxu0 %v3096_v14 }
 0x528   : > { %v9940_v30 = vpop.eup %7074  ;;  %3237 = vmatmul.mubr.bf16.gmra.mrb[168].mxu0 %v3095_v29 }
 0x529   : > { %v9944_v25 = vadd.f32 %v9940_v30, %v9938_v32  ;;  %v6189_v27 = vpop.f32.mrb[104].mxu0 }
 0x52a   : > { %v6190_v20 = vpop.f32.mrb[105].mxu0 }
 0x52b   : > { %13024 = vst [vmem:[#allocation183_spill] sm:$0xff] %v9944_v25  ;;  %v9946_v48 = vadd.f32 %v6190_v20, %v6189_v27  ;;  %v6192_v46 = vpop.f32.mrb[106].mxu0  ;;  %v13033_v25 = vld [vmem:[#allocation62_spill] sm:$0xff] }
 0x52c   : > { %v6193_v63 = vpop.f32.mrb[107].mxu0  ;;  %v13034_v27 = vmax.f32 %v13032_v18, %v13033_v25 }
 0x52d   : > { %13025 = vst [vmem:[#allocation184_spill] sm:$0xff] %v9946_v48  ;;  %v9948_v52 = vadd.f32 %v6193_v63, %v6192_v46 }
 0x52f   : > { %13026 = vst [vmem:[#allocation185_spill] sm:$0xff] %v9948_v52 }
 0x530   : > { %3643 = vmax.xlane.f32.xlu0 %v13029_v11 }
 0x531   : > { %v6195_v31 = vpop.f32.mrb[108].mxu0 }
 0x532   : > { %v6196_v14 = vpop.f32.mrb[109].mxu0 }
 0x533   : > { %v9953_v33 = vadd.f32 %v6196_v14, %v6195_v31  ;;  %v6198_v29 = vpop.f32.mrb[110].mxu0 }
 0x534   : > { %v6199_v21 = vpop.f32.mrb[111].mxu0 }
 0x535   : > { %13030 = vst [vmem:[#allocation59_spill] sm:$0xff] %v9953_v33  ;;  %v9955_v35 = vadd.f32 %v6199_v21, %v6198_v29 }
 0x536   : > { %3646 = vmax.xlane.f32.xlu1 %v13034_v27 }
 0x537   : > { %13031 = vst [vmem:[#allocation60_spill] sm:$0xff] %v9955_v35 }
 0x539   : > { %v6201_v20 = vpop.f32.mrb[112].mxu0 }
 0x53a   : > { %v6202_v48 = vpop.f32.mrb[113].mxu0 }
 0x53b   : > { %v9960_v46 = vadd.f32 %v6202_v48, %v6201_v20  ;;  %v6204_v63 = vpop.f32.mrb[114].mxu0  ;;  %v13038_v48 = vld [vmem:[#allocation21_spill] sm:$0xff] }
 0x53c   : > { %v6205_v52 = vpop.f32.mrb[115].mxu0 }
 0x53d   : > { %13035 = vst [vmem:[#allocation24_spill] sm:$0xff] %v9960_v46  ;;  %v9962_v59 = vadd.f32 %v6205_v52, %v6204_v63 }
 0x53f   : > { %13036 = vst [vmem:[#allocation62_spill] sm:$0xff] %v9962_v59 }
 0x541   : > { %v6207_v11 = vpop.f32.mrb[116].mxu0 }
 0x542   : > { %v6208_v21 = vpop.f32.mrb[117].mxu0 }
 0x543   : > { %v2762_v23 = vpop.xlane.xlu0 %2761  ;;  %v9966_v29 = vadd.f32 %v6208_v21, %v6207_v11  ;;  %v6210_v35 = vpop.f32.mrb[118].mxu0 }
 0x544   : > { %v2833_v31 = vsub.f32 %v9297_v0, %v2762_v23  ;;  %v2834_v14 = vsub.f32 %v9301_v49, %v2762_v23  ;;  %v6211_v57 = vpop.f32.mrb[119].mxu0  ;;  %v13040_v49 = vld [vmem:[#allocation35_spill] sm:$0xff] }
 0x545   : > { %13037 = vst [vmem:[#allocation186_spill] sm:$0xff] %v9966_v29  ;;  %v9970_v20 = vadd.f32 %v6211_v57, %v6210_v35 }
 0x546   : > { %v2943_v33 = vmul.f32 1.442695, %v2833_v31  ;;  %v2945_v27 = vmul.f32 1.442695, %v2834_v14  ;;  %972 = vrot.lane.b32.xlu0 %v13038_v48, %s7841_s1  ;;  %v13041_v31 = vld [vmem:[#allocation22_spill] sm:$0xff] }
 0x547   : > { %13039 = vst [vmem:[#allocation21_spill] sm:$0xff] %v9970_v20  ;;  %v2768_v52 = vpop.xlane.xlu0 %2767  ;;  %990 = vrot.lane.b32.xlu1 %v13040_v49, %s7841_s1 }
 0x548   : > { %7076 = vpow2.f32 %v2943_v33  ;;  %v2837_v63 = vsub.f32 %v9320_v51, %v2768_v52  ;;  %v2838_v0 = vsub.f32 %v9324_v22, %v2768_v52  ;;  %v13043_v33 = vld [vmem:[#allocation36_spill] sm:$0xff] }
 0x549   : > { %7078 = vpow2.f32 %v2945_v27  ;;  %v6213_v14 = vpop.f32.mrb[120].mxu0 }
 0x54a   : > { %v2951_v23 = vmul.f32 1.442695, %v2837_v63  ;;  %v2953_v11 = vmul.f32 1.442695, %v2838_v0  ;;  %974 = vrot.lane.b32.xlu0 %v13041_v31, %s7841_s1  ;;  %v6214_v57 = vpop.f32.mrb[121].mxu0 }
 0x54b   : > { %v4351_v21 = vpop.permute.xlu0 %4350  ;;  %v9979_v35 = vadd.f32 %v6214_v57, %v6213_v14  ;;  %v6216_v51 = vpop.f32.mrb[122].mxu0 }
 0x54c   : > { %7080 = vpow2.f32 %v2951_v23  ;;  %6072 = vmatmul.mubr.msk.bf16.gmra.mrb[28].mxu1 %vm870_vm0, %v4351_v21  ;;  %v6217_v22 = vpop.f32.mrb[123].mxu0 }
 0x54d   : > { %7082 = vpow2.f32 %v2953_v11  ;;  %13042 = vst [vmem:[#allocation35_spill] sm:$0xff] %v9979_v35  ;;  %v2765_v27 = vpop.xlane.xlu1 %2764  ;;  %v9983_v52 = vadd.f32 %v6217_v22, %v6216_v51 }
 0x54e   : > { %992 = vrot.lane.b32.xlu0 %v13043_v33, %s7841_s1  ;;  %v2835_v63 = vsub.f32 %v9312_v9, %v2765_v27  ;;  %v2836_v0 = vsub.f32 %v9314_v45, %v2765_v27 }
 0x54f   : > { %13044 = vst [vmem:[#allocation22_spill] sm:$0xff] %v9983_v52 }
 0x550   : > { %v2947_v20 = vmul.f32 1.442695, %v2835_v63  ;;  %v2949_v23 = vmul.f32 1.442695, %v2836_v0 }
 0x551   : > { %v2771_v59 = vpop.xlane.xlu1 %2770  ;;  %v6219_v11 = vpop.f32.mrb[124].mxu0 }
 0x552   : > { %v7077_v29 = vpop.eup %7076  ;;  %7084 = vpow2.f32 %v2947_v20  ;;  %v2839_v14 = vsub.f32 %v9338_v55, %v2771_v59  ;;  %v2840_v57 = vsub.f32 %v9340_v40, %v2771_v59  ;;  %v6220_v51 = vpop.f32.mrb[125].mxu0 }
 0x553   : > { %v7079_v21 = vpop.eup %7078  ;;  %v3097_v35 = vpack.c.bf16 %v7077_v29, %v9938_v32  ;;  %7086 = vpow2.f32 %v2949_v23  ;;  %v9993_v45 = vadd.f32 %v6220_v51, %v6219_v11  ;;  %v6222_v0 = vpop.f32.mrb[126].mxu0 }
 0x554   : > { %v3098_v22 = vpack.c.bf16 %v7079_v21, %v9940_v30  ;;  %v9991_v9 = vadd.f32 %v7079_v21, %v7077_v29  ;;  %v2955_v27 = vmul.f32 1.442695, %v2839_v14  ;;  %v2957_v63 = vmul.f32 1.442695, %v2840_v57  ;;  %v6223_v20 = vpop.f32.mrb[127].mxu0 }
 0x555   : > { %13046 = vst [vmem:[#allocation187_spill] sm:$0xff] %v9993_v45  ;;  %v2777_v46 = vpop.xlane.xlu1 %2776  ;;  %v9995_v40 = vadd.f32 %v6223_v20, %v6222_v0  ;;  %v13061_v45 = vld [vmem:[#allocation64_spill] sm:$0xff] }
 0x556   : > { %13045 = vst [vmem:[#allocation36_spill] sm:$0xff] %v9991_v9  ;;  %v7081_v52 = vpop.eup %7080  ;;  %3244 = vmatprep.mubr.bf16.mxu0 %v3098_v22  ;;  %7088 = vpow2.f32 %v2955_v27  ;;  %v2843_v59 = vsub.f32 %v9361_v13, %v2777_v46  ;;  %v2844_v32 = vsub.f32 %v9366_v62, %v2777_v46 }
 0x557   : > { %v7083_v55 = vpop.eup %7082  ;;  %13047 = vst [vmem:[#allocation188_spill] sm:$0xff] %v9995_v40  ;;  %3245 = vmatmul.mubr.bf16.gmra.mrb[172].mxu0 %v3097_v35  ;;  %7090 = vpow2.f32 %v2957_v63 }
 0x558   : > { %v9999_v30 = vadd.f32 %v7083_v55, %v7081_v52  ;;  %v2963_v29 = vmul.f32 1.442695, %v2843_v59  ;;  %v2965_v23 = vmul.f32 1.442695, %v2844_v32 }
 0x559   : > { %v2780_v21 = vpop.xlane.xlu1 %2779  ;;  %v6241_v11 = vpop.f32.mrb[128].mxu0 }
 0x55a   : > { %13048 = vst [vmem:[#allocation189_spill] sm:$0xff] %v9999_v30  ;;  %7092 = vpow2.f32 %v2963_v29  ;;  %v2845_v14 = vsub.f32 %v9372_v24, %v2780_v21  ;;  %v2846_v57 = vsub.f32 %v9376_v10, %v2780_v21  ;;  %v6242_v51 = vpop.f32.mrb[129].mxu0 }
 0x55b   : > { %7094 = vpow2.f32 %v2965_v23  ;;  %v10003_v35 = vadd.f32 %v6242_v51, %v6241_v11  ;;  %v6244_v62 = vpop.f32.mrb[130].mxu0 }
 0x55c   : > { %v7085_v22 = vpop.eup %7084  ;;  %v2967_v13 = vmul.f32 1.442695, %v2845_v14  ;;  %v2969_v27 = vmul.f32 1.442695, %v2846_v57  ;;  %v6245_v63 = vpop.f32.mrb[131].mxu0 }
 0x55d   : > { %13049 = vst [vmem:[#allocation190_spill] sm:$0xff] %v10003_v35  ;;  %v7087_v46 = vpop.eup %7086  ;;  %v985_v0 = vpop.permute.xlu1 %984  ;;  %v3099_v20 = vpack.c.bf16 %v7081_v52, %v7085_v22  ;;  %v10005_v59 = vadd.f32 %v6245_v63, %v6244_v62 }
 0x55e   : > { %7096 = vpow2.f32 %v2967_v13  ;;  %1025 = vst.msk [vmem:[#allocation3 + $0x140] sm:$0xff] %vm870_vm0, %v985_v0  ;;  %v3100_v24 = vpack.c.bf16 %v7083_v55, %v7087_v46  ;;  %v10008_v32 = vadd.f32 %v7087_v46, %v7085_v22 }
 0x55f   : > { %13050 = vst [vmem:[#allocation191_spill] sm:$0xff] %v10005_v59  ;;  %7098 = vpow2.f32 %v2969_v27 }
 0x560   : > { %13051 = vst [vmem:[#allocation192_spill] sm:$0xff] %v10008_v32  ;;  %v10010_v10 = vpop.eup %7088  ;;  %3252 = vmatprep.mubr.bf16.mxu0 %v3100_v24 }
 0x561   : > { %v10012_v29 = vpop.eup %7090  ;;  %3253 = vmatmul.mubr.bf16.gmra.mrb[176].mxu0 %v3099_v20  ;;  %v6247_v23 = vpop.f32.mrb[132].mxu0 }
 0x562   : > { %v10016_v21 = vadd.f32 %v10012_v29, %v10010_v10  ;;  %v6248_v52 = vpop.f32.mrb[133].mxu0 }
 0x563   : > { %v10020_v14 = vadd.f32 %v6248_v52, %v6247_v23  ;;  %v6250_v55 = vpop.f32.mrb[134].mxu0  ;;  %v13057_v52 = vld [vmem:[#allocation65_spill] sm:$0xff] }
 0x564   : > { %13052 = vst [vmem:[#allocation193_spill] sm:$0xff] %v10016_v21  ;;  %v10018_v11 = vpop.eup %7092  ;;  %v6251_v51 = vpop.f32.mrb[135].mxu0 }
 0x565   : > { %13053 = vst [vmem:[#allocation194_spill] sm:$0xff] %v10020_v14  ;;  %v10022_v57 = vpop.eup %7094  ;;  %v4067_v22 = vld [vmem:[#allocation3 + $0x140] sm:$0xff]  ;;  %v10024_v13 = vadd.f32 %v6251_v51, %v6250_v55  ;;  %v13058_v55 = vld [vmem:[#allocation98_spill] sm:$0xff] }
 0x566   : > { %6337 = vmatprep.subr.bf16.mxu0 %v4067_v22  ;;  %v10028_v27 = vadd.f32 %v10022_v57, %v10018_v11  ;;  %v13059_v51 = vmax.f32 %v13057_v52, %v13058_v55 }
 0x567   : > { %13054 = vst [vmem:[#allocation195_spill] sm:$0xff] %v10024_v13 }
 0x568   : > { %13055 = vst [vmem:[#allocation196_spill] sm:$0xff] %v10028_v27  ;;  %v10030_v62 = vpop.eup %7096  ;;  %v13062_v27 = vld [vmem:[#allocation28_spill] sm:$0xff] }
 0x569   : > { %v10032_v46 = vpop.eup %7098  ;;  %v6253_v0 = vpop.f32.mrb[136].mxu0  ;;  %v13063_v21 = vmax.f32 %v13061_v45, %v13062_v27 }
 0x56a   : > { %v10040_v24 = vadd.f32 %v10032_v46, %v10030_v62  ;;  %v6254_v23 = vpop.f32.mrb[137].mxu0 }
 0x56b   : > { %3652 = vmax.xlane.f32.xlu1 %v13059_v51  ;;  %v10045_v22 = vadd.f32 %v6254_v23, %v6253_v0  ;;  %v6256_v40 = vpop.f32.mrb[138].mxu0 }
 0x56c   : > { %13056 = vst [vmem:[#allocation197_spill] sm:$0xff] %v10040_v24  ;;  %v6257_v63 = vpop.f32.mrb[139].mxu0 }
 0x56d   : > { %13060 = vst [vmem:[#allocation65_spill] sm:$0xff] %v10045_v22  ;;  %3649 = vmax.xlane.f32.xlu0 %v13063_v21  ;;  %v10050_v32 = vadd.f32 %v6257_v63, %v6256_v40  ;;  %v10052_v20 = vpop.f32.mrb[0].mxu1 }
 0x56e   : > { %13065 = vst [vmem:[#allocation64_spill] sm:$0xff] %v10052_v20  ;;  %v10054_v30 = vpop.f32.mrb[1].mxu1  ;;  %v13076_v20 = vld [vmem:[#allocation37_spill] sm:$0xff] }
 0x56f   : > { %13064 = vst [vmem:[#allocation98_spill] sm:$0xff] %v10050_v32  ;;  %13066 = vst [vmem:[#allocation28_spill] sm:$0xff] %v10054_v30  ;;  %v10058_v9 = vpop.f32.mrb[2].mxu1 }
 0x570   : > { %13067 = vst [vmem:[#allocation198_spill] sm:$0xff] %v10058_v9  ;;  %v10060_v51 = vpop.f32.mrb[3].mxu1 }
 0x571   : > { %13068 = vst [vmem:[#allocation199_spill] sm:$0xff] %v10060_v51  ;;  %v6259_v0 = vpop.f32.mrb[140].mxu0 }
 0x572   : > { %v6260_v22 = vpop.f32.mrb[141].mxu0 }
 0x573   : > { %v10064_v21 = vadd.f32 %v6260_v22, %v6259_v0  ;;  %v6262_v40 = vpop.f32.mrb[142].mxu0 }
 0x574   : > { %v6263_v63 = vpop.f32.mrb[143].mxu0 }
 0x575   : > { %13069 = vst [vmem:[#allocation200_spill] sm:$0xff] %v10064_v21  ;;  %v10066_v32 = vadd.f32 %v6263_v63, %v6262_v40  ;;  %v10068_v13 = vpop.f32.mrb[4].mxu1 }
 0x576   : > { %13071 = vst [vmem:[#allocation202_spill] sm:$0xff] %v10068_v13  ;;  %v10070_v14 = vpop.f32.mrb[5].mxu1 }
 0x577   : > { %13070 = vst [vmem:[#allocation201_spill] sm:$0xff] %v10066_v32  ;;  %13072 = vst [vmem:[#allocation203_spill] sm:$0xff] %v10070_v14  ;;  %v10074_v59 = vpop.f32.mrb[6].mxu1 }
 0x578   : > { %13073 = vst [vmem:[#allocation204_spill] sm:$0xff] %v10074_v59  ;;  %v10076_v35 = vpop.f32.mrb[7].mxu1 }
 0x579   : > { %13074 = vst [vmem:[#allocation205_spill] sm:$0xff] %v10076_v35  ;;  %v6265_v30 = vpop.f32.mrb[144].mxu0 }
 0x57a   : > { %v6266_v0 = vpop.f32.mrb[145].mxu0 }
 0x57b   : > { %v10080_v21 = vadd.f32 %v6266_v0, %v6265_v30  ;;  %v6268_v32 = vpop.f32.mrb[146].mxu0 }
 0x57c   : > { %v2774_v23 = vpop.xlane.xlu0 %2773  ;;  %994 = vrot.lane.b32.xlu1 %v13076_v20, %s7841_s1  ;;  %v6269_v24 = vpop.f32.mrb[147].mxu0 }
 0x57d   : > { %13075 = vst [vmem:[#allocation206_spill] sm:$0xff] %v10080_v21  ;;  %v2841_v40 = vsub.f32 %v12970_v5, %v2774_v23  ;;  %v2842_v63 = vsub.f32 %v12971_v41, %v2774_v23  ;;  %v10086_v51 = vadd.f32 %v6269_v24, %v6268_v32  ;;  %v13081_v24 = vld [vmem:[#allocation23_spill] sm:$0xff]  ;;  %v13085_v41 = vld [vmem:[#allocation25_spill] sm:$0xff] }
 0x57e   : > { %v10088_v43 = vpop.f32.mrb[8].mxu1 }
 0x57f   : > { %v2959_v14 = vmul.f32 1.442695, %v2841_v40  ;;  %v2961_v13 = vmul.f32 1.442695, %v2842_v63  ;;  %13077 = vst [vmem:[#allocation207_spill] sm:$0xff] %v10086_v51  ;;  %13078 = vst [vmem:[#allocation208_spill] sm:$0xff] %v10088_v43 }
 0x580   : > { %v2786_v9 = vpop.xlane.xlu0 %2785  ;;  %v10092_v5 = vpop.f32.mrb[9].mxu1 }
 0x581   : > { %7100 = vpow2.f32 %v2959_v14  ;;  %v2849_v30 = vsub.f32 %v12977_v3, %v2786_v9  ;;  %v2850_v0 = vsub.f32 %v12978_v56, %v2786_v9  ;;  %13079 = vst [vmem:[#allocation209_spill] sm:$0xff] %v10092_v5  ;;  %v10096_v23 = vpop.f32.mrb[10].mxu1  ;;  %v6271_v32 = vpop.f32.mrb[148].mxu0  ;;  %v13086_v3 = vld [vmem:[#allocation38_spill] sm:$0xff] }
 0x582   : > { %7102 = vpow2.f32 %v2961_v13  ;;  %13080 = vst [vmem:[#allocation210_spill] sm:$0xff] %v10096_v23  ;;  %v10100_v22 = vpop.f32.mrb[11].mxu1  ;;  %v6272_v14 = vpop.f32.mrb[149].mxu0 }
 0x583   : > { %v2975_v40 = vmul.f32 1.442695, %v2849_v30  ;;  %v2977_v63 = vmul.f32 1.442695, %v2850_v0  ;;  %976 = vrot.lane.b32.xlu0 %v13081_v24, %s7841_s1  ;;  %13082 = vst [vmem:[#allocation211_spill] sm:$0xff] %v10100_v22  ;;  %v10104_v9 = vadd.f32 %v6272_v14, %v6271_v32  ;;  %v6274_v13 = vpop.f32.mrb[150].mxu0 }
 0x584   : > { %v969_v56 = vpop.permute.xlu0 %968  ;;  %v6275_v30 = vpop.f32.mrb[151].mxu0 }
 0x585   : > { %7104 = vpow2.f32 %v2975_v40  ;;  %13083 = vst [vmem:[#allocation212_spill] sm:$0xff] %v10104_v9  ;;  %1017 = vst.msk [vmem:[#allocation3 + $0x100] sm:$0xff] %vm870_vm0, %v969_v56  ;;  %v10107_v0 = vadd.f32 %v6275_v30, %v6274_v13 }
 0x586   : > { %7106 = vpow2.f32 %v2977_v63 }
 0x587   : > { %13084 = vst [vmem:[#allocation213_spill] sm:$0xff] %v10107_v0  ;;  %978 = vrot.lane.b32.xlu0 %v13085_v41, %s7841_s1 }
 0x588   : > { %v987_v51 = vpop.permute.xlu0 %986 }
 0x589   : > { %1026 = vst.msk [vmem:[#allocation3 + $0x148] sm:$0xff] %vm870_vm0, %v987_v51  ;;  %v6277_v5 = vpop.f32.mrb[152].mxu0 }
 0x58a   : > { %v6278_v32 = vpop.f32.mrb[153].mxu0 }
 0x58b   : > { %v7101_v21 = vpop.eup %7100  ;;  %996 = vrot.lane.b32.xlu0 %v13086_v3, %s7841_s1  ;;  %v10115_v9 = vadd.f32 %v6278_v32, %v6277_v5  ;;  %v6280_v13 = vpop.f32.mrb[154].mxu0 }
 0x58c   : > { %v7103_v40 = vpop.eup %7102  ;;  %v971_v14 = vpop.permute.xlu0 %970  ;;  %v4059_v56 = vld [vmem:[#allocation3 + $0x100] sm:$0xff]  ;;  %v3101_v63 = vpack.c.bf16 %v7101_v21, %v10010_v10 }
 0x58d   : > { %13087 = vst [vmem:[#allocation214_spill] sm:$0xff] %v10115_v9  ;;  %1018 = vst.msk [vmem:[#allocation3 + $0x108] sm:$0xff] %vm870_vm0, %v971_v14  ;;  %6338 = vmatpush3.bf16.msra.mxu0 %v4059_v56  ;;  %v3102_v30 = vpack.c.bf16 %v7103_v40, %v10012_v29  ;;  %v10119_v51 = vadd.f32 %v7103_v40, %v7101_v21  ;;  %v6281_v0 = vpop.f32.mrb[155].mxu0  ;;  %v13090_v14 = vpack.c.bf16 %v10032_v46, %v10022_v57 }
 0x58e   : > { %v10121_v22 = vadd.f32 %v6281_v0, %v6280_v13  ;;  %v2783_v23 = vpop.xlane.xlu1 %2782 }
 0x58f   : > { %13088 = vst [vmem:[#allocation215_spill] sm:$0xff] %v10119_v51  ;;  %v7105_v43 = vpop.eup %7104  ;;  %3260 = vmatprep.mubr.bf16.mxu0 %v3102_v30  ;;  %v2847_v10 = vsub.f32 %v12992_v37, %v2783_v23  ;;  %v2848_v5 = vsub.f32 %v12993_v19, %v2783_v23  ;;  %v13092_v37 = vpack.c.bf16 %v10030_v62, %v10018_v11  ;;  %v13094_v30 = vld [vmem:[#allocation68_spill] sm:$0xff] }
 0x590   : > { %13089 = vst [vmem:[#allocation216_spill] sm:$0xff] %v10121_v22  ;;  %v7107_v35 = vpop.eup %7106  ;;  %3261 = vmatmul.mubr.bf16.gmra.mrb[180].mxu0 %v3101_v63  ;;  %v4068_v32 = vld [vmem:[#allocation3 + $0x148] sm:$0xff] }
 0x591   : > { %3268 = vmatprep.mubr.bf16.mxu0 %v13090_v14  ;;  %6339 = vmatprep.subr.bf16.mxu0 %v4068_v32  ;;  %v10128_v29 = vadd.f32 %v7107_v35, %v7105_v43  ;;  %v2971_v21 = vmul.f32 1.442695, %v2847_v10  ;;  %v2973_v40 = vmul.f32 1.442695, %v2848_v5  ;;  %v13095_v10 = vld [vmem:[#allocation99_spill] sm:$0xff]  ;;  %v13097_v32 = vld [vmem:[#allocation69_spill] sm:$0xff] }
 0x592   : > { %v989_v0 = vpop.permute.xlu1 %988  ;;  %v13096_v5 = vmax.f32 %v13094_v30, %v13095_v10  ;;  %v13098_v14 = vld [vmem:[#allocation100_spill] sm:$0xff] }
 0x593   : > { %13091 = vst [vmem:[#allocation217_spill] sm:$0xff] %v10128_v29  ;;  %7108 = vpow2.f32 %v2971_v21  ;;  %1027 = vst.msk [vmem:[#allocation3 + $0x150] sm:$0xff] %vm870_vm0, %v989_v0  ;;  %v13099_v21 = vmax.f32 %v13097_v32, %v13098_v14 }
 0x594   : > { %v4060_v56 = vld [vmem:[#allocation3 + $0x108] sm:$0xff]  ;;  %7110 = vpow2.f32 %v2973_v40 }
 0x595   : > { %6340 = vmatpush3.bf16.msra.mxu0 %v4060_v56  ;;  %v13104_v56 = vld [vmem:[#allocation39_spill] sm:$0xff] }
 0x598   : > { %3269 = vmatmul.mubr.bf16.gmra.mrb[184].mxu0 %v13092_v37  ;;  %v13105_v37 = vld [vmem:[#allocation30_spill] sm:$0xff] }
 0x59a   : > { %v4069_v19 = vld [vmem:[#allocation3 + $0x150] sm:$0xff] }
 0x59b   : > { %6341 = vmatprep.subr.bf16.mxu0 %v4069_v19 }
 0x59d   : > { %v7109_v57 = vpop.eup %7108 }
 0x59e   : > { %v7111_v46 = vpop.eup %7110  ;;  %v3105_v23 = vpack.c.bf16 %v7105_v43, %v7109_v57 }
 0x59f   : > { %v3106_v63 = vpack.c.bf16 %v7107_v35, %v7111_v46  ;;  %v10134_v13 = vadd.f32 %v7111_v46, %v7109_v57 }
 0x5a0   : > { %3655 = vmax.xlane.f32.xlu1 %v13096_v5 }
 0x5a1   : > { %13093 = vst [vmem:[#allocation218_spill] sm:$0xff] %v10134_v13  ;;  %3276 = vmatprep.mubr.bf16.mxu0 %v3106_v63 }
 0x5a2   : > { %3277 = vmatmul.mubr.bf16.gmra.mrb[188].mxu0 %v3105_v23 }
 0x5aa   : > { %3658 = vmax.xlane.f32.xlu0 %v13099_v21 }
 0x5ab   : > { %v10142_v11 = vpop.f32.mrb[12].mxu1 }
 0x5ac   : > { %13100 = vst [vmem:[#allocation68_spill] sm:$0xff] %v10142_v11  ;;  %v10144_v62 = vpop.f32.mrb[13].mxu1  ;;  %v13138_v11 = vmax.f32 %v9637_v8, %v9639_v4 }
 0x5ad   : > { %13101 = vst [vmem:[#allocation99_spill] sm:$0xff] %v10144_v62  ;;  %v10148_v35 = vpop.f32.mrb[14].mxu1  ;;  %v13112_v62 = vld [vmem:[#allocation27_spill] sm:$0xff] }
 0x5ae   : > { %13102 = vst [vmem:[#allocation69_spill] sm:$0xff] %v10148_v35  ;;  %v10150_v40 = vpop.f32.mrb[15].mxu1 }
 0x5af   : > { %13103 = vst [vmem:[#allocation100_spill] sm:$0xff] %v10150_v40 }
 0x5b1   : > { %998 = vrot.lane.b32.xlu1 %v13104_v56, %s7841_s1  ;;  %v13153_v56 = vld [vmem:[#allocation126_spill] sm:$0xff] }
 0x5b5   : > { %982 = vrot.lane.b32.xlu1 %v13105_v37, %s7841_s1 }
 0x5b6   : > { %v6283_v19 = vpop.f32.mrb[156].mxu0 }
 0x5b7   : > { %v10158_v57 = vpop.f32.mrb[16].mxu1  ;;  %v6284_v46 = vpop.f32.mrb[157].mxu0 }
 0x5b8   : > { %13106 = vst [vmem:[#allocation219_spill] sm:$0xff] %v10158_v57  ;;  %v10160_v23 = vpop.f32.mrb[17].mxu1  ;;  %v10162_v63 = vadd.f32 %v6284_v46, %v6283_v19  ;;  %v6286_v5 = vpop.f32.mrb[158].mxu0 }
 0x5b9   : > { %13107 = vst [vmem:[#allocation220_spill] sm:$0xff] %v10160_v23  ;;  %v10166_v43 = vpop.f32.mrb[18].mxu1  ;;  %v6287_v0 = vpop.f32.mrb[159].mxu0 }
 0x5ba   : > { %13108 = vst [vmem:[#allocation221_spill] sm:$0xff] %v10162_v63  ;;  %13109 = vst [vmem:[#allocation222_spill] sm:$0xff] %v10166_v43  ;;  %v10168_v22 = vpop.f32.mrb[19].mxu1  ;;  %v10170_v9 = vadd.f32 %v6287_v0, %v6286_v5 }
 0x5bb   : > { %13110 = vst [vmem:[#allocation223_spill] sm:$0xff] %v10168_v22  ;;  %v13142_v22 = vld [vmem:[#allocation26_spill] sm:$0xff] }
 0x5bc   : > { %13111 = vst [vmem:[#allocation224_spill] sm:$0xff] %v10170_v9 }
 0x5bd   : > { %v3644_v29 = vpop.xlane.xlu0 %3643 }
 0x5be   : > { %v3738_v51 = vsub.f32 %v13027_v17, %v3644_v29  ;;  %v3739_v19 = vsub.f32 %v13028_v15, %v3644_v29 }
 0x5c0   : > { %v3802_v46 = vmul.f32 1.442695, %v3738_v51  ;;  %v3804_v63 = vmul.f32 1.442695, %v3739_v19  ;;  %980 = vrot.lane.b32.xlu0 %v13112_v62, %s7841_s1  ;;  %v13151_v62 = vld [vmem:[#allocation108_spill] sm:$0xff] }
 0x5c1   : > { %v973_v21 = vpop.permute.xlu0 %972 }
 0x5c2   : > { %7112 = vpow2.f32 %v3802_v46  ;;  %1019 = vst.msk [vmem:[#allocation3 + $0x110] sm:$0xff] %vm870_vm0, %v973_v21  ;;  %v6289_v0 = vpop.f32.mrb[160].mxu0 }
 0x5c3   : > { %7114 = vpow2.f32 %v3804_v63  ;;  %v6290_v5 = vpop.f32.mrb[161].mxu0  ;;  %v3647_v9 = vpop.xlane.xlu1 %3646 }
 0x5c4   : > { %v10179_v23 = vadd.f32 %v6290_v5, %v6289_v0  ;;  %v6292_v57 = vpop.f32.mrb[162].mxu0  ;;  %v3740_v17 = vsub.f32 %v13032_v18, %v3647_v9  ;;  %v3741_v15 = vsub.f32 %v13033_v25, %v3647_v9 }
 0x5c5   : > { %v975_v13 = vpop.permute.xlu0 %974  ;;  %v6293_v51 = vpop.f32.mrb[163].mxu0 }
 0x5c6   : > { %13113 = vst [vmem:[#allocation225_spill] sm:$0xff] %v10179_v23  ;;  %1020 = vst.msk [vmem:[#allocation3 + $0x118] sm:$0xff] %vm870_vm0, %v975_v13  ;;  %v3806_v29 = vmul.f32 1.442695, %v3740_v17  ;;  %v3808_v19 = vmul.f32 1.442695, %v3741_v15  ;;  %v10184_v46 = vadd.f32 %v6293_v51, %v6292_v57 }
 0x5c7   : > { %v991_v21 = vpop.permute.xlu1 %990  ;;  %v13132_v23 = vld [vmem:[#allocation103_spill] sm:$0xff] }
 0x5c8   : > { %13114 = vst [vmem:[#allocation226_spill] sm:$0xff] %v10184_v46  ;;  %7116 = vpow2.f32 %v3806_v29  ;;  %1028 = vst.msk [vmem:[#allocation3 + $0x158] sm:$0xff] %vm870_vm0, %v991_v21  ;;  %v13117_v21 = vmax.f32 %v9479_v34, %v9483_v38  ;;  %v13130_v46 = vmax.f32 %v9595_v50, %v9601_v12 }
 0x5c9   : > { %v993_v63 = vpop.permute.xlu0 %992  ;;  %v4061_v0 = vld [vmem:[#allocation3 + $0x110] sm:$0xff]  ;;  %7118 = vpow2.f32 %v3808_v19 }
 0x5ca   : > { %1029 = vst.msk [vmem:[#allocation3 + $0x160] sm:$0xff] %vm870_vm0, %v993_v63  ;;  %6342 = vmatpush3.bf16.msra.mxu0 %v4061_v0  ;;  %v13118_v63 = vmax.f32 %v9528_v7, %v9530_v44  ;;  %v13119_v0 = vmax.f32 %v9471_v61, %v9473_v26 }
 0x5cc   : > { %v10188_v18 = vpop.eup %7112 }
 0x5cd   : > { %v7115_v25 = vpop.eup %7114  ;;  %v4062_v57 = vld [vmem:[#allocation3 + $0x118] sm:$0xff] }
 0x5ce   : > { %v10191_v9 = vadd.f32 %v7115_v25, %v10188_v18 }
 0x5cf   : > { %v4070_v13 = vld [vmem:[#allocation3 + $0x158] sm:$0xff] }
 0x5d0   : > { %13115 = vst [vmem:[#allocation227_spill] sm:$0xff] %v10191_v9  ;;  %6343 = vmatprep.subr.bf16.mxu0 %v4070_v13  ;;  %v13120_v13 = vmax.f32 %v9551_v36, %v9555_v47 }
 0x5d1   : > { %6344 = vmatpush3.bf16.msra.mxu0 %v4062_v57  ;;  %v4071_v5 = vld [vmem:[#allocation3 + $0x160] sm:$0xff] }
 0x5d2   : > { %v10193_v17 = vpop.eup %7116  ;;  %6345 = vmatprep.subr.bf16.mxu0 %v4071_v5 }
 0x5d3   : > { %v7119_v15 = vpop.eup %7118 }
 0x5d4   : > { %v4027_v29 = vpack.c.bf16 %v7119_v15, %v7115_v25  ;;  %v10198_v19 = vadd.f32 %v7119_v15, %v10193_v17  ;;  %v13121_v25 = vld [vmem:[#allocation74_spill] sm:$0xff]  ;;  %v13124_v15 = vmax.f32 %v9573_v60, %v9575_v54 }
 0x5d5   : > { %v13122_v57 = vmax.f32 %v9494_v53, %v13121_v25 }
 0x5d6   : > { %13116 = vst [vmem:[#allocation228_spill] sm:$0xff] %v10198_v19  ;;  %4107 = vmatprep.mubr.bf16.mxu0 %v4027_v29  ;;  %v13125_v29 = vld [vmem:[#allocation76_spill] sm:$0xff] }
 0x5d9   : > { %3664 = vmax.xlane.f32.xlu1 %v13117_v21  ;;  %v13126_v21 = vmax.f32 %v9502_v1, %v13125_v29 }
 0x5dd   : > { %3676 = vmax.xlane.f32.xlu1 %v13118_v63 }
 0x5df   : > { %3661 = vmax.xlane.f32.xlu0 %v13119_v0  ;;  %v13135_v0 = vld [vmem:[#allocation79_spill] sm:$0xff] }
 0x5e0   : > { %v13136_v19 = vmax.f32 %v9543_v16, %v13135_v0 }
 0x5e1   : > { %3682 = vmax.xlane.f32.xlu1 %v13120_v13 }
 0x5e3   : > { %3667 = vmax.xlane.f32.xlu0 %v13122_v57 }
 0x5e5   : > { %3688 = vmax.xlane.f32.xlu1 %v13124_v15  ;;  %v13131_v15 = vld [vmem:[#allocation102_spill] sm:$0xff] }
 0x5e6   : > { %v10215_v5 = vpop.f32.mrb[20].mxu1  ;;  %v13133_v9 = vmax.f32 %v13131_v15, %v13132_v23 }
 0x5e7   : > { %13123 = vst [vmem:[#allocation74_spill] sm:$0xff] %v10215_v5  ;;  %3670 = vmax.xlane.f32.xlu0 %v13126_v21  ;;  %v10223_v63 = vpop.f32.mrb[21].mxu1  ;;  %v13134_v21 = vmax.f32 %v9617_v2, %v9623_v39 }
 0x5e8   : > { %13127 = vst [vmem:[#allocation76_spill] sm:$0xff] %v10223_v63  ;;  %v10227_v13 = vpop.f32.mrb[22].mxu1 }
 0x5e9   : > { %13128 = vst [vmem:[#allocation229_spill] sm:$0xff] %v10227_v13  ;;  %v10229_v51 = vpop.f32.mrb[23].mxu1  ;;  %3694 = vmax.xlane.f32.xlu1 %v13130_v46  ;;  %v13141_v13 = vld [vmem:[#allocation105_spill] sm:$0xff] }
 0x5ea   : > { %13129 = vst [vmem:[#allocation230_spill] sm:$0xff] %v10229_v51 }
 0x5eb   : > { %3673 = vmax.xlane.f32.xlu0 %v13133_v9 }
 0x5ed   : > { %3700 = vmax.xlane.f32.xlu1 %v13134_v21  ;;  %v13143_v21 = vmax.f32 %v13141_v13, %v13142_v22 }
 0x5ef   : > { %3679 = vmax.xlane.f32.xlu0 %v13136_v19 }
 0x5f0   : > { %v6295_v63 = vpop.f32.mrb[164].mxu0  ;;  %v10245_v5 = vpop.f32.mrb[24].mxu1 }
 0x5f1   : > { %13137 = vst [vmem:[#allocation102_spill] sm:$0xff] %v10245_v5  ;;  %v6296_v57 = vpop.f32.mrb[165].mxu0  ;;  %3706 = vmax.xlane.f32.xlu1 %v13138_v11  ;;  %v10250_v46 = vpop.f32.mrb[25].mxu1 }
 0x5f2   : > { %13139 = vst [vmem:[#allocation103_spill] sm:$0xff] %v10250_v46  ;;  %v10252_v51 = vadd.f32 %v6296_v57, %v6295_v63  ;;  %v6298_v9 = vpop.f32.mrb[166].mxu0  ;;  %v10259_v43 = vpop.f32.mrb[26].mxu1  ;;  %v13147_v63 = vld [vmem:[#allocation121_spill] sm:$0xff]  ;;  %v13148_v57 = vld [vmem:[#allocation122_spill] sm:$0xff] }
 0x5f3   : > { %3685 = vmax.xlane.f32.xlu0 %v13143_v21  ;;  %13144 = vst [vmem:[#allocation105_spill] sm:$0xff] %v10259_v43  ;;  %v6299_v40 = vpop.f32.mrb[167].mxu0  ;;  %v10261_v35 = vpop.f32.mrb[27].mxu1  ;;  %v13152_v21 = vmax.f32 %v13150_v42, %v13151_v62 }
 0x5f4   : > { %13140 = vst [vmem:[#allocation79_spill] sm:$0xff] %v10252_v51  ;;  %13145 = vst [vmem:[#allocation26_spill] sm:$0xff] %v10261_v35  ;;  %v10263_v59 = vadd.f32 %v6299_v40, %v6298_v9  ;;  %v13149_v51 = vmax.f32 %v13147_v63, %v13148_v57  ;;  %v13154_v40 = vld [vmem:[#allocation127_spill] sm:$0xff] }
 0x5f5   : > { %v13155_v9 = vmax.f32 %v13153_v56, %v13154_v40  ;;  %v13156_v35 = vld [vmem:[#allocation111_spill] sm:$0xff] }
 0x5f6   : > { %13146 = vst [vmem:[#allocation231_spill] sm:$0xff] %v10263_v59  ;;  %3712 = vmax.xlane.f32.xlu1 %v13149_v51  ;;  %v13157_v51 = vld [vmem:[#allocation112_spill] sm:$0xff] }
 0x5f7   : > { %3691 = vmax.xlane.f32.xlu0 %v13152_v21  ;;  %v13158_v43 = vmax.f32 %v13156_v35, %v13157_v51 }
 0x5f8   : > { %v3653_v37 = vpop.xlane.xlu1 %3652 }
 0x5f9   : > { %v3744_v46 = vsub.f32 %v13057_v52, %v3653_v37  ;;  %v3745_v5 = vsub.f32 %v13058_v55, %v3653_v37 }
 0x5fa   : > { %v3650_v19 = vpop.xlane.xlu0 %3649  ;;  %3718 = vmax.xlane.f32.xlu1 %v13155_v9 }
 0x5fb   : > { %v3742_v11 = vsub.f32 %v13061_v45, %v3650_v19  ;;  %v3743_v59 = vsub.f32 %v13062_v27, %v3650_v19  ;;  %3697 = vmax.xlane.f32.xlu0 %v13158_v43  ;;  %v3814_v3 = vmul.f32 1.442695, %v3744_v46  ;;  %v3816_v21 = vmul.f32 1.442695, %v3745_v5  ;;  %v6301_v24 = vpop.f32.mrb[168].mxu0  ;;  %v13160_v45 = vld [vmem:[#allocation130_spill] sm:$0xff] }
 0x5fc   : > { %v6302_v52 = vpop.f32.mrb[169].mxu0  ;;  %v995_v62 = vpop.permute.xlu1 %994  ;;  %v13161_v27 = vld [vmem:[#allocation131_spill] sm:$0xff]  ;;  %v13164_v5 = vld [vmem:[#allocation116_spill] sm:$0xff] }
 0x5fd   : > { %v3810_v41 = vmul.f32 1.442695, %v3742_v11  ;;  %v3812_v20 = vmul.f32 1.442695, %v3743_v59  ;;  %7120 = vpow2.f32 %v3814_v3  ;;  %v10283_v55 = vadd.f32 %v6302_v52, %v6301_v24  ;;  %v6304_v9 = vpop.f32.mrb[170].mxu0  ;;  %1030 = vst.msk [vmem:[#allocation3 + $0x168] sm:$0xff] %vm870_vm0, %v995_v62 }
 0x5fe   : > { %v977_v37 = vpop.permute.xlu0 %976  ;;  %v13162_v19 = vmax.f32 %v13160_v45, %v13161_v27  ;;  %v13163_v43 = vld [vmem:[#allocation115_spill] sm:$0xff]  ;;  %v6305_v59 = vpop.f32.mrb[171].mxu0  ;;  %v13167_v11 = vld [vmem:[#allocation29_spill] sm:$0xff]  ;;  %v13168_v52 = vld [vmem:[#allocation134_spill] sm:$0xff] }
 0x5ff   : > { %13159 = vst [vmem:[#allocation121_spill] sm:$0xff] %v10283_v55  ;;  %7122 = vpow2.f32 %v3810_v41  ;;  %1021 = vst.msk [vmem:[#allocation3 + $0x120] sm:$0xff] %vm870_vm0, %v977_v37  ;;  %v13165_v46 = vmax.f32 %v13163_v43, %v13164_v5  ;;  %v10293_v3 = vadd.f32 %v6305_v59, %v6304_v9  ;;  %v13169_v62 = vmax.f32 %v13167_v11, %v13168_v52  ;;  %v13171_v41 = vld [vmem:[#allocation120_spill] sm:$0xff]  ;;  %v13173_v5 = vld [vmem:[#allocation90_spill] sm:$0xff] }
 0x600   : > { %3724 = vmax.xlane.f32.xlu1 %v13162_v19  ;;  %7124 = vpow2.f32 %v3812_v20  ;;  %v13170_v19 = vld [vmem:[#allocation119_spill] sm:$0xff]  ;;  %v13177_v9 = vld [vmem:[#allocation125_spill] sm:$0xff] }
 0x601   : > { %3703 = vmax.xlane.f32.xlu0 %v13165_v46  ;;  %13166 = vst [vmem:[#allocation122_spill] sm:$0xff] %v10293_v3  ;;  %7126 = vpow2.f32 %v3816_v21  ;;  %v13172_v55 = vmax.f32 %v13170_v19, %v13171_v41  ;;  %v13174_v46 = vld [vmem:[#allocation91_spill] sm:$0xff]  ;;  %v13176_v21 = vld [vmem:[#allocation124_spill] sm:$0xff] }
 0x602   : > { %v979_v24 = vpop.permute.xlu0 %978  ;;  %v13175_v43 = vmax.f32 %v13173_v5, %v13174_v46  ;;  %v13178_v59 = vmax.f32 %v13176_v21, %v13177_v9  ;;  %v13179_v3 = vld [vmem:[#allocation135_spill] sm:$0xff]  ;;  %v13180_v41 = vld [vmem:[#allocation136_spill] sm:$0xff] }
 0x603   : > { %1022 = vst.msk [vmem:[#allocation3 + $0x128] sm:$0xff] %vm870_vm0, %v979_v24  ;;  %v13181_v19 = vmax.f32 %v13179_v3, %v13180_v41  ;;  %v13182_v9 = vld [vmem:[#allocation128_spill] sm:$0xff]  ;;  %v13188_v3 = vld [vmem:[#allocation133_spill] sm:$0xff] }
 0x604   : > { %3730 = vmax.xlane.f32.xlu1 %v13169_v62  ;;  %v4072_v37 = vld [vmem:[#allocation3 + $0x168] sm:$0xff] }
 0x605   : > { %3709 = vmax.xlane.f32.xlu0 %v13172_v55 }
 0x606   : > { %v997_v27 = vpop.permute.xlu0 %996  ;;  %v4063_v20 = vld [vmem:[#allocation3 + $0x120] sm:$0xff] }
 0x607   : > { %1031 = vst.msk [vmem:[#allocation3 + $0x170] sm:$0xff] %vm870_vm0, %v997_v27  ;;  %6346 = vmatpush3.bf16.msra.mxu0 %v4063_v20  ;;  %v10309_v62 = vpop.eup %7120  ;;  %v13187_v27 = vld [vmem:[#allocation132_spill] sm:$0xff] }
 0x608   : > { %3733 = vmax.xlane.f32.xlu1 %v13175_v43  ;;  %6347 = vmatprep.subr.bf16.mxu0 %v4072_v37  ;;  %v13189_v5 = vmax.f32 %v13187_v27, %v13188_v3 }
 0x609   : > { %3715 = vmax.xlane.f32.xlu0 %v13178_v59  ;;  %v10311_v24 = vpop.eup %7122  ;;  %v13183_v59 = vld [vmem:[#allocation129_spill] sm:$0xff] }
 0x60a   : > { %v10313_v55 = vpop.eup %7124  ;;  %v4064_v43 = vld [vmem:[#allocation3 + $0x128] sm:$0xff]  ;;  %v13184_v20 = vmax.f32 %v13182_v9, %v13183_v59 }
 0x60b   : > { %v10320_v46 = vpop.eup %7126  ;;  %6348 = vmatpush3.bf16.msra.mxu0 %v4064_v43  ;;  %v10327_v37 = vadd.f32 %v10313_v55, %v10311_v24 }
 0x60c   : > { %3736 = vmax.xlane.f32.xlu1 %v13181_v19  ;;  %v10333_v19 = vadd.f32 %v10320_v46, %v10309_v62 }
 0x60d   : > { %3721 = vmax.xlane.f32.xlu0 %v13184_v20  ;;  %13185 = vst [vmem:[#allocation31_spill] sm:$0xff] %v10327_v37  ;;  %v13190_v20 = vld [vmem:[#allocation19_spill] sm:$0xff] }
 0x60e   : > { %13186 = vst [vmem:[#allocation126_spill] sm:$0xff] %v10333_v19  ;;  %v4073_v41 = vld [vmem:[#allocation3 + $0x170] sm:$0xff] }
 0x60f   : > { %6349 = vmatprep.subr.bf16.mxu0 %v4073_v41  ;;  %v13195_v41 = vld [vmem:[#allocation32_spill] sm:$0xff] }
 0x611   : > { %3727 = vmax.xlane.f32.xlu0 %v13189_v5 }
 0x61d   : > { %1033 = vrot.lane.b32.xlu1 %v13190_v20, %s7839_s12 }
 0x61f   : > { %v10340_v43 = vpop.f32.mrb[28].mxu1 }
 0x620   : > { %13191 = vst [vmem:[#allocation127_spill] sm:$0xff] %v10340_v43  ;;  %v10344_v37 = vpop.f32.mrb[29].mxu1 }
 0x621   : > { %1035 = vrot.lane.b32.xlu1 %v13007_v58, %s7839_s12  ;;  %13192 = vst [vmem:[#allocation111_spill] sm:$0xff] %v10344_v37  ;;  %v10348_v19 = vpop.f32.mrb[30].mxu1 }
 0x622   : > { %13193 = vst [vmem:[#allocation112_spill] sm:$0xff] %v10348_v19  ;;  %v10350_v59 = vpop.f32.mrb[31].mxu1 }
 0x623   : > { %13194 = vst [vmem:[#allocation130_spill] sm:$0xff] %v10350_v59 }
 0x627   : > { %1049 = vrot.lane.b32.xlu0 %v13195_v41, %s7839_s12 }
 0x62a   : > { %v6307_v20 = vpop.f32.mrb[172].mxu0 }
 0x62b   : > { %1051 = vrot.lane.b32.xlu0 %v13003_v28, %s7839_s12  ;;  %v6308_v58 = vpop.f32.mrb[173].mxu0 }
 0x62c   : > { %v10358_v3 = vadd.f32 %v6308_v58, %v6307_v20  ;;  %v6310_v27 = vpop.f32.mrb[174].mxu0 }
 0x62d   : > { %v6311_v9 = vpop.f32.mrb[175].mxu0  ;;  %v3656_v37 = vpop.xlane.xlu1 %3655 }
 0x62e   : > { %13196 = vst [vmem:[#allocation29_spill] sm:$0xff] %v10358_v3  ;;  %v10362_v21 = vadd.f32 %v6311_v9, %v6310_v27  ;;  %v3746_v5 = vsub.f32 %v13094_v30, %v3656_v37  ;;  %v3747_v43 = vsub.f32 %v13095_v10, %v3656_v37 }
 0x62f   : > { %1053 = vrot.lane.b32.xlu0 %v13010_v6, %s7839_s12 }
 0x630   : > { %13197 = vst [vmem:[#allocation134_spill] sm:$0xff] %v10362_v21  ;;  %v3818_v41 = vmul.f32 1.442695, %v3746_v5  ;;  %v3820_v59 = vmul.f32 1.442695, %v3747_v43 }
 0x631   : > { %v999_v19 = vpop.permute.xlu1 %998 }
 0x632   : > { %7128 = vpow2.f32 %v3818_v41  ;;  %1032 = vst.msk [vmem:[#allocation3 + $0x178] sm:$0xff] %vm870_vm0, %v999_v19 }
 0x633   : > { %7130 = vpow2.f32 %v3820_v59 }
 0x634   : > { %v6313_v28 = vpop.f32.mrb[176].mxu0 }
 0x635   : > { %v6314_v20 = vpop.f32.mrb[177].mxu0  ;;  %v983_v58 = vpop.permute.xlu1 %982 }
 0x636   : > { %v10367_v3 = vadd.f32 %v6314_v20, %v6313_v28  ;;  %v6316_v9 = vpop.f32.mrb[178].mxu0  ;;  %1024 = vst.msk [vmem:[#allocation3 + $0x138] sm:$0xff] %vm870_vm0, %v983_v58  ;;  %v13200_v20 = vld [vmem:[#allocation88_spill] sm:$0xff]  ;;  %v13201_v58 = vld [vmem:[#allocation89_spill] sm:$0xff] }
 0x637   : > { %v3659_v6 = vpop.xlane.xlu0 %3658  ;;  %v6317_v27 = vpop.f32.mrb[179].mxu0 }
 0x638   : > { %13198 = vst [vmem:[#allocation19_spill] sm:$0xff] %v10367_v3  ;;  %v3748_v30 = vsub.f32 %v13097_v32, %v3659_v6  ;;  %v3749_v10 = vsub.f32 %v13098_v14, %v3659_v6  ;;  %v10372_v37 = vadd.f32 %v6317_v27, %v6316_v9  ;;  %v13202_v3 = vmax.f32 %v13200_v20, %v13201_v58 }
 0x639   : > { %v4074_v14 = vld [vmem:[#allocation3 + $0x178] sm:$0xff] }
 0x63a   : > { %13199 = vst [vmem:[#allocation32_spill] sm:$0xff] %v10372_v37  ;;  %v3822_v43 = vmul.f32 1.442695, %v3748_v30  ;;  %v3824_v5 = vmul.f32 1.442695, %v3749_v10  ;;  %v13205_v37 = vld [vmem:[#allocation93_spill] sm:$0xff] }
 0x63b   : > { %v981_v19 = vpop.permute.xlu0 %980 }
 0x63c   : > { %7132 = vpow2.f32 %v3822_v43  ;;  %1023 = vst.msk [vmem:[#allocation3 + $0x130] sm:$0xff] %vm870_vm0, %v981_v19  ;;  %v7129_v59 = vpop.eup %7128  ;;  %v13204_v19 = vld [vmem:[#allocation139_spill] sm:$0xff] }
 0x63d   : > { %7134 = vpow2.f32 %v3824_v5  ;;  %v7131_v41 = vpop.eup %7130  ;;  %v4066_v30 = vld [vmem:[#allocation3 + $0x138] sm:$0xff]  ;;  %v13203_v5 = vpack.c.bf16 %v10193_v17, %v10188_v18  ;;  %v13206_v21 = vmax.f32 %v13204_v19, %v13205_v37 }
 0x63e   : > { %v10375_v28 = vadd.f32 %v7131_v41, %v7129_v59 }
 0x643   : > { %v4065_v32 = vld [vmem:[#allocation3 + $0x130] sm:$0xff] }
 0x644   : > { %6350 = vmatpush3.bf16.msra.mxu0 %v4065_v32  ;;  %v13208_v32 = vpack.c.bf16 %v10309_v62, %v10311_v24 }
 0x645   : > { %4594 = vmax.xlane.f32.xlu1 %v13202_v3  ;;  %6351 = vmatprep.subr.bf16.mxu0 %v4074_v14  ;;  %v13207_v3 = vpack.c.bf16 %v10320_v46, %v10313_v55 }
 0x646   : > { %v7133_v6 = vpop.eup %7132 }
 0x647   : > { %v7135_v9 = vpop.eup %7134  ;;  %v4030_v10 = vpack.c.bf16 %v7133_v6, %v7129_v59 }
 0x648   : > { %6352 = vmatpush3.bf16.msra.mxu0 %v4066_v30  ;;  %v4031_v27 = vpack.c.bf16 %v7135_v9, %v7131_v41  ;;  %v10380_v43 = vadd.f32 %v7135_v9, %v7133_v6 }
 0x64b   : > { %4108 = vmatmul.mubr.bf16.vlgmr.msra.gmra.mrb[192].mxu0 %v13203_v5 }
 0x64c   : > { %4115 = vmatprep.mubr.bf16.mxu0 %v13207_v3 }
 0x64e   : > { %4597 = vmax.xlane.f32.xlu0 %v13206_v21 }
 0x653   : > { %4116 = vmatmul.mubr.bf16.gmra.mrb[196].mxu0 %v13208_v32 }
 0x654   : > { %4123 = vmatprep.mubr.bf16.mxu0 %v4031_v27 }
 0x656   : > { %1055 = vrot.lane.b32.xlu1 %v13040_v49, %s7839_s12 }
 0x65a   : > { %1039 = vrot.lane.b32.xlu1 %v13041_v31, %s7839_s12 }
 0x65b   : > { %4124 = vmatmul.mubr.bf16.gmra.mrb[200].mxu0 %v4030_v10 }
 0x663   : > { %v6319_v18 = vpop.f32.mrb[180].mxu0 }
 0x664   : > { %1037 = vrot.lane.b32.xlu0 %v13038_v48, %s7839_s12  ;;  %v6320_v17 = vpop.f32.mrb[181].mxu0 }
 0x665   : > { %v10400_v21 = vadd.f32 %v6320_v17, %v6319_v18  ;;  %v6322_v46 = vpop.f32.mrb[182].mxu0 }
 0x666   : > { %v6323_v55 = vpop.f32.mrb[183].mxu0  ;;  %v3665_v24 = vpop.xlane.xlu1 %3664 }
 0x667   : > { %13209 = vst [vmem:[#allocation88_spill] sm:$0xff] %v10400_v21  ;;  %v10404_v62 = vadd.f32 %v6323_v55, %v6322_v46  ;;  %v3752_v49 = vsub.f32 %v9479_v34, %v3665_v24  ;;  %v3753_v31 = vsub.f32 %v9483_v38, %v3665_v24 }
 0x668   : > { %1057 = vrot.lane.b32.xlu0 %v13043_v33, %s7839_s12 }
 0x669   : > { %13210 = vst [vmem:[#allocation89_spill] sm:$0xff] %v10404_v62  ;;  %v3830_v59 = vmul.f32 1.442695, %v3752_v49  ;;  %v3832_v41 = vmul.f32 1.442695, %v3753_v31 }
 0x66a   : > { %v3677_v48 = vpop.xlane.xlu1 %3676 }
 0x66b   : > { %v6325_v14 = vpop.f32.mrb[184].mxu0  ;;  %7136 = vpow2.f32 %v3830_v59  ;;  %v3760_v30 = vsub.f32 %v9528_v7, %v3677_v48  ;;  %v3761_v10 = vsub.f32 %v9530_v44, %v3677_v48 }
 0x66c   : > { %v6326_v6 = vpop.f32.mrb[185].mxu0  ;;  %v3662_v9 = vpop.xlane.xlu0 %3661  ;;  %7138 = vpow2.f32 %v3832_v41 }
 0x66d   : > { %v10410_v33 = vadd.f32 %v6326_v6, %v6325_v14  ;;  %v3750_v27 = vsub.f32 %v9471_v61, %v3662_v9  ;;  %v3751_v34 = vsub.f32 %v9473_v26, %v3662_v9  ;;  %v6328_v5 = vpop.f32.mrb[186].mxu0  ;;  %v3846_v38 = vmul.f32 1.442695, %v3760_v30 }
 0x66e   : > { %v6329_v3 = vpop.f32.mrb[187].mxu0  ;;  %v3848_v17 = vmul.f32 1.442695, %v3761_v10  ;;  %v3683_v55 = vpop.xlane.xlu1 %3682 }
 0x66f   : > { %13211 = vst [vmem:[#allocation139_spill] sm:$0xff] %v10410_v33  ;;  %v3826_v32 = vmul.f32 1.442695, %v3750_v27  ;;  %v3828_v18 = vmul.f32 1.442695, %v3751_v34  ;;  %v10414_v46 = vadd.f32 %v6329_v3, %v6328_v5  ;;  %7140 = vpow2.f32 %v3846_v38 }
 0x670   : > { %v3668_v7 = vpop.xlane.xlu0 %3667  ;;  %v3764_v44 = vsub.f32 %v9551_v36, %v3683_v55  ;;  %v3765_v24 = vsub.f32 %v9555_v47, %v3683_v55 }
 0x671   : > { %13212 = vst [vmem:[#allocation93_spill] sm:$0xff] %v10414_v46  ;;  %7142 = vpow2.f32 %v3826_v32  ;;  %v3754_v61 = vsub.f32 %v9494_v53, %v3668_v7  ;;  %v3755_v26 = vsub.f32 %v13121_v25, %v3668_v7 }
 0x672   : > { %7144 = vpow2.f32 %v3828_v18  ;;  %v3854_v49 = vmul.f32 1.442695, %v3764_v44  ;;  %v3856_v41 = vmul.f32 1.442695, %v3765_v24  ;;  %v3689_v14 = vpop.xlane.xlu1 %3688 }
 0x673   : > { %7146 = vpow2.f32 %v3848_v17  ;;  %v3834_v31 = vmul.f32 1.442695, %v3754_v61  ;;  %v3836_v59 = vmul.f32 1.442695, %v3755_v26  ;;  %v3768_v6 = vsub.f32 %v9573_v60, %v3689_v14 }
 0x674   : > { %7148 = vpow2.f32 %v3854_v49  ;;  %v3671_v48 = vpop.xlane.xlu0 %3670  ;;  %v3769_v36 = vsub.f32 %v9575_v54, %v3689_v14  ;;  %v13215_v14 = vld [vmem:[#allocation141_spill] sm:$0xff] }
 0x675   : > { %7150 = vpow2.f32 %v3834_v31  ;;  %v3756_v47 = vsub.f32 %v9502_v1, %v3671_v48  ;;  %v3757_v53 = vsub.f32 %v13125_v29, %v3671_v48  ;;  %v7137_v9 = vpop.eup %7136  ;;  %v3862_v25 = vmul.f32 1.442695, %v3768_v6  ;;  %v6331_v10 = vpop.f32.mrb[188].mxu0  ;;  %v13216_v48 = vld [vmem:[#allocation144_spill] sm:$0xff] }
 0x676   : > { %7152 = vpow2.f32 %v3836_v59  ;;  %v3864_v30 = vmul.f32 1.442695, %v3769_v36  ;;  %v7139_v27 = vpop.eup %7138  ;;  %v6332_v38 = vpop.f32.mrb[189].mxu0  ;;  %v13217_v6 = vmax.f32 %v13215_v14, %v13216_v48 }
 0x677   : > { %7154 = vpow2.f32 %v3856_v41  ;;  %v3838_v34 = vmul.f32 1.442695, %v3756_v47  ;;  %v3840_v5 = vmul.f32 1.442695, %v3757_v53  ;;  %v3695_v3 = vpop.xlane.xlu1 %3694  ;;  %v10424_v60 = vadd.f32 %v6332_v38, %v6331_v10  ;;  %v6334_v32 = vpop.f32.mrb[190].mxu0 }
 0x678   : > { %7156 = vpow2.f32 %v3862_v25  ;;  %v3674_v54 = vpop.xlane.xlu0 %3673  ;;  %v3772_v1 = vsub.f32 %v9595_v50, %v3695_v3  ;;  %v3773_v29 = vsub.f32 %v9601_v12, %v3695_v3  ;;  %v6335_v55 = vpop.f32.mrb[191].mxu0  ;;  %v10430_v7 = vadd.f32 %v7139_v27, %v7137_v9 }
 0x679   : > { %13213 = vst [vmem:[#allocation232_spill] sm:$0xff] %v10424_v60  ;;  %7158 = vpow2.f32 %v3838_v34  ;;  %v3758_v18 = vsub.f32 %v13131_v15, %v3674_v54  ;;  %v3759_v17 = vsub.f32 %v13132_v23, %v3674_v54  ;;  %v10432_v44 = vpop.eup %7140  ;;  %v10434_v61 = vadd.f32 %v6335_v55, %v6334_v32  ;;  %v13248_v60 = vld [vmem:[#allocation129_spill] sm:$0xff] }
 0x67a   : > { %7160 = vpow2.f32 %v3840_v5  ;;  %v3870_v24 = vmul.f32 1.442695, %v3772_v1  ;;  %v3872_v31 = vmul.f32 1.442695, %v3773_v29 }
 0x67b   : > { %13214 = vst [vmem:[#allocation233_spill] sm:$0xff] %v10434_v61  ;;  %v7143_v26 = vpop.eup %7142  ;;  %7162 = vpow2.f32 %v3864_v30  ;;  %v3842_v49 = vmul.f32 1.442695, %v3758_v18  ;;  %v3844_v50 = vmul.f32 1.442695, %v3759_v17  ;;  %v3701_v12 = vpop.xlane.xlu1 %3700 }
 0x67c   : > { %v7145_v59 = vpop.eup %7144  ;;  %7164 = vpow2.f32 %v3870_v24  ;;  %v3680_v15 = vpop.xlane.xlu0 %3679  ;;  %v3776_v23 = vsub.f32 %v9617_v2, %v3701_v12  ;;  %v3777_v41 = vsub.f32 %v9623_v39, %v3701_v12  ;;  %v4032_v36 = vpack.c.bf16 %v7137_v9, %v7143_v26 }
 0x67d   : > { %v10441_v47 = vpop.eup %7146  ;;  %7166 = vpow2.f32 %v3842_v49  ;;  %v3762_v53 = vsub.f32 %v9543_v16, %v3680_v15  ;;  %v3763_v25 = vsub.f32 %v13135_v0, %v3680_v15  ;;  %v4033_v30 = vpack.c.bf16 %v7139_v27, %v7145_v59 }
 0x67e   : > { %4600 = vmax.xlane.f32.xlu1 %v13217_v6  ;;  %v10445_v10 = vpop.eup %7148  ;;  %7168 = vpow2.f32 %v3844_v50  ;;  %v3878_v34 = vmul.f32 1.442695, %v3776_v23  ;;  %v3880_v2 = vmul.f32 1.442695, %v3777_v41  ;;  %v10447_v5 = vadd.f32 %v7145_v59, %v7143_v26  ;;  %v13221_v6 = vld [vmem:[#allocation108_spill] sm:$0xff] }
 0x67f   : > { %v7151_v39 = vpop.eup %7150  ;;  %7170 = vpow2.f32 %v3872_v31  ;;  %v3850_v38 = vmul.f32 1.442695, %v3762_v53  ;;  %v3852_v3 = vmul.f32 1.442695, %v3763_v25  ;;  %4131 = vmatprep.mubr.bf16.mxu0 %v4033_v30  ;;  %v3707_v9 = vpop.xlane.xlu1 %3706  ;;  %v10451_v54 = vadd.f32 %v10441_v47, %v10432_v44  ;;  %v13222_v53 = vld [vmem:[#allocation145_spill] sm:$0xff]  ;;  %v13223_v25 = vld [vmem:[#allocation146_spill] sm:$0xff] }
 0x680   : > { %v7153_v16 = vpop.eup %7152  ;;  %7172 = vpow2.f32 %v3878_v34  ;;  %4132 = vmatmul.mubr.bf16.gmra.mrb[204].mxu0 %v4032_v36  ;;  %v3686_v0 = vpop.xlane.xlu0 %3685  ;;  %v3780_v27 = vsub.f32 %v9637_v8, %v3707_v9  ;;  %v3781_v32 = vsub.f32 %v9639_v4, %v3707_v9  ;;  %v13224_v30 = vmax.f32 %v13222_v53, %v13223_v25 }
 0x681   : > { %13218 = vst [vmem:[#allocation141_spill] sm:$0xff] %v10451_v54  ;;  %v10455_v1 = vpop.eup %7154  ;;  %7174 = vpow2.f32 %v3850_v38  ;;  %v3766_v29 = vsub.f32 %v13141_v13, %v3686_v0  ;;  %v3767_v18 = vsub.f32 %v13142_v22, %v3686_v0  ;;  %v10459_v17 = vadd.f32 %v7153_v16, %v7151_v39  ;;  %v13338_v54 = vld [vmem:[#allocation26_spill] sm:$0xff] }
 0x682   : > { %v10461_v55 = vpop.eup %7156  ;;  %7176 = vpow2.f32 %v3852_v3  ;;  %v3886_v24 = vmul.f32 1.442695, %v3780_v27  ;;  %v10465_v26 = vadd.f32 %v10455_v1, %v10445_v10  ;;  %v3888_v50 = vmul.f32 1.442695, %v3781_v32 }
 0x683   : > { %13219 = vst [vmem:[#allocation144_spill] sm:$0xff] %v10459_v17  ;;  %v7159_v8 = vpop.eup %7158  ;;  %7178 = vpow2.f32 %v3880_v2  ;;  %v3858_v4 = vmul.f32 1.442695, %v3766_v29  ;;  %v3860_v49 = vmul.f32 1.442695, %v3767_v18  ;;  %v3713_v31 = vpop.xlane.xlu1 %3712 }
 0x684   : > { %13220 = vst [vmem:[#allocation234_spill] sm:$0xff] %v10465_v26  ;;  %v7161_v12 = vpop.eup %7160  ;;  %7180 = vpow2.f32 %v3886_v24  ;;  %v3692_v13 = vpop.xlane.xlu0 %3691  ;;  %v3784_v22 = vsub.f32 %v13147_v63, %v3713_v31  ;;  %v3785_v59 = vsub.f32 %v13148_v57, %v3713_v31  ;;  %v4034_v15 = vpack.c.bf16 %v7159_v8, %v7151_v39  ;;  %v13335_v26 = vld [vmem:[#allocation209_spill] sm:$0xff] }
 0x685   : > { %v10469_v23 = vpop.eup %7162  ;;  %7182 = vpow2.f32 %v3858_v4  ;;  %v3770_v41 = vsub.f32 %v13150_v42, %v3692_v13  ;;  %v3771_v36 = vsub.f32 %v13221_v6, %v3692_v13  ;;  %v4035_v34 = vpack.c.bf16 %v7161_v12, %v7153_v16 }
 0x686   : > { %v10476_v2 = vpop.eup %7164  ;;  %7184 = vpow2.f32 %v3860_v49  ;;  %v3894_v38 = vmul.f32 1.442695, %v3784_v22  ;;  %v3896_v63 = vmul.f32 1.442695, %v3785_v59  ;;  %v10478_v3 = vadd.f32 %v7161_v12, %v7159_v8 }
 0x687   : > { %4603 = vmax.xlane.f32.xlu0 %v13224_v30  ;;  %v7167_v57 = vpop.eup %7166  ;;  %7186 = vpow2.f32 %v3888_v50  ;;  %v3866_v39 = vmul.f32 1.442695, %v3770_v41  ;;  %v3868_v9 = vmul.f32 1.442695, %v3771_v36  ;;  %4139 = vmatprep.mubr.bf16.mxu0 %v4035_v34  ;;  %v3719_v42 = vpop.xlane.xlu1 %3718  ;;  %v10482_v0 = vadd.f32 %v10469_v23, %v10461_v55  ;;  %v13229_v30 = vld [vmem:[#allocation115_spill] sm:$0xff] }
 0x688   : > { %v7169_v27 = vpop.eup %7168  ;;  %7188 = vpow2.f32 %v3894_v38  ;;  %4140 = vmatmul.mubr.bf16.gmra.mrb[208].mxu0 %v4034_v15  ;;  %v3698_v16 = vpop.xlane.xlu0 %3697  ;;  %v3788_v32 = vsub.f32 %v13153_v56, %v3719_v42  ;;  %v3789_v29 = vsub.f32 %v13154_v40, %v3719_v42  ;;  %v4036_v18 = vpack.c.bf16 %v10432_v44, %v7167_v57  ;;  %v13228_v15 = vld [vmem:[#allocation131_spill] sm:$0xff]  ;;  %v13230_v38 = vld [vmem:[#allocation116_spill] sm:$0xff] }
 0x689   : > { %13225 = vst [vmem:[#allocation108_spill] sm:$0xff] %v10482_v0  ;;  %v10487_v24 = vpop.eup %7170  ;;  %7190 = vpow2.f32 %v3866_v39  ;;  %v3774_v8 = vsub.f32 %v13156_v35, %v3698_v16  ;;  %v3775_v4 = vsub.f32 %v13157_v51, %v3698_v16  ;;  %v4037_v49 = vpack.c.bf16 %v10441_v47, %v7169_v27  ;;  %v13334_v0 = vld [vmem:[#allocation208_spill] sm:$0xff] }
 0x68a   : > { %v10492_v50 = vpop.eup %7172  ;;  %7192 = vpow2.f32 %v3868_v9  ;;  %v3902_v31 = vmul.f32 1.442695, %v3788_v32  ;;  %v3904_v12 = vmul.f32 1.442695, %v3789_v29  ;;  %v10494_v13 = vadd.f32 %v7169_v27, %v7167_v57  ;;  %v13231_v57 = vld [vmem:[#allocation37_spill] sm:$0xff] }
 0x68b   : > { %v10496_v56 = vpop.eup %7174  ;;  %7194 = vpow2.f32 %v3896_v63  ;;  %v3874_v40 = vmul.f32 1.442695, %v3774_v8  ;;  %v3876_v44 = vmul.f32 1.442695, %v3775_v4  ;;  %4147 = vmatprep.mubr.bf16.mxu0 %v4037_v49  ;;  %v10500_v35 = vadd.f32 %v10487_v24, %v10476_v2 }
 0x68c   : > { %13226 = vst [vmem:[#allocation145_spill] sm:$0xff] %v10494_v13  ;;  %v7177_v51 = vpop.eup %7176  ;;  %7196 = vpow2.f32 %v3902_v31  ;;  %v4038_v6 = vpack.c.bf16 %v10445_v10, %v10496_v56 }
 0x68d   : > { %v3725_v22 = vpop.xlane.xlu1 %3724  ;;  %13227 = vst [vmem:[#allocation146_spill] sm:$0xff] %v10500_v35  ;;  %v10506_v36 = vpop.eup %7178  ;;  %7198 = vpow2.f32 %v3874_v40  ;;  %v4039_v39 = vpack.c.bf16 %v10455_v1, %v7177_v51  ;;  %v10516_v27 = vadd.f32 %v7177_v51, %v10496_v56  ;;  %v13326_v35 = vld [vmem:[#allocation223_spill] sm:$0xff] }
 0x68e   : > { %v3704_v47 = vpop.xlane.xlu0 %3703  ;;  %v3792_v59 = vsub.f32 %v13160_v45, %v3725_v22  ;;  %v3793_v41 = vsub.f32 %v13228_v15, %v3725_v22  ;;  %v10513_v9 = vpop.eup %7180  ;;  %7200 = vpow2.f32 %v3876_v44  ;;  %v10522_v4 = vadd.f32 %v10506_v36, %v10492_v50  ;;  %v13236_v15 = vld [vmem:[#allocation25_spill] sm:$0xff] }
 0x68f   : > { %v3778_v34 = vsub.f32 %v13229_v30, %v3704_v47  ;;  %v3779_v63 = vsub.f32 %v13230_v38, %v3704_v47  ;;  %1059 = vrot.lane.b32.xlu1 %v13231_v57, %s7839_s12  ;;  %13232 = vst [vmem:[#allocation131_spill] sm:$0xff] %v10516_v27  ;;  %v10518_v16 = vpop.eup %7182  ;;  %7202 = vpow2.f32 %v3904_v12  ;;  %v13234_v12 = vld [vmem:[#allocation119_spill] sm:$0xff]  ;;  %v13235_v47 = vld [vmem:[#allocation120_spill] sm:$0xff] }
 0x690   : > { %v3910_v45 = vmul.f32 1.442695, %v3792_v59  ;;  %v3912_v42 = vmul.f32 1.442695, %v3793_v41  ;;  %13233 = vst [vmem:[#allocation115_spill] sm:$0xff] %v10522_v4  ;;  %v7185_v49 = vpop.eup %7184  ;;  %4148 = vmatmul.mubr.bf16.gmra.mrb[212].mxu0 %v4036_v18 }
 0x691   : > { %v3882_v32 = vmul.f32 1.442695, %v3778_v34  ;;  %v3884_v29 = vmul.f32 1.442695, %v3779_v63  ;;  %v3731_v8 = vpop.xlane.xlu1 %3730  ;;  %v10528_v22 = vpop.eup %7186  ;;  %4155 = vmatprep.mubr.bf16.mxu0 %v4039_v39  ;;  %v4041_v18 = vpack.c.bf16 %v10469_v23, %v7185_v49  ;;  %v10538_v30 = vadd.f32 %v7185_v49, %v10518_v16  ;;  %v13246_v49 = vld [vmem:[#allocation136_spill] sm:$0xff] }
 0x692   : > { %7204 = vpow2.f32 %v3910_v45  ;;  %v3710_v1 = vpop.xlane.xlu0 %3709  ;;  %v3796_v31 = vsub.f32 %v13167_v11, %v3731_v8  ;;  %v3797_v40 = vsub.f32 %v13168_v52, %v3731_v8  ;;  %v10535_v41 = vpop.eup %7188  ;;  %v10544_v39 = vadd.f32 %v10528_v22, %v10513_v9  ;;  %v13240_v8 = vld [vmem:[#allocation91_spill] sm:$0xff] }
 0x693   : > { %7206 = vpow2.f32 %v3882_v32  ;;  %v3782_v51 = vsub.f32 %v13234_v12, %v3710_v1  ;;  %v3783_v59 = vsub.f32 %v13235_v47, %v3710_v1  ;;  %1043 = vrot.lane.b32.xlu1 %v13236_v15, %s7839_s12  ;;  %13237 = vst [vmem:[#allocation116_spill] sm:$0xff] %v10538_v30  ;;  %v10540_v34 = vpop.eup %7190  ;;  %v13239_v32 = vld [vmem:[#allocation90_spill] sm:$0xff]  ;;  %v13242_v12 = vld [vmem:[#allocation125_spill] sm:$0xff] }
 0x694   : > { %7208 = vpow2.f32 %v3884_v29  ;;  %v3918_v11 = vmul.f32 1.442695, %v3796_v31  ;;  %v3920_v52 = vmul.f32 1.442695, %v3797_v40  ;;  %13238 = vst [vmem:[#allocation37_spill] sm:$0xff] %v10544_v39  ;;  %v10546_v45 = vpop.eup %7192  ;;  %v13322_v39 = vld [vmem:[#allocation64_spill] sm:$0xff] }
 0x695   : > { %7210 = vpow2.f32 %v3912_v42  ;;  %v3890_v38 = vmul.f32 1.442695, %v3782_v51  ;;  %v3892_v63 = vmul.f32 1.442695, %v3783_v59  ;;  %v3734_v57 = vpop.xlane.xlu1 %3733  ;;  %v10552_v31 = vpop.eup %7194  ;;  %v13241_v42 = vld [vmem:[#allocation124_spill] sm:$0xff] }
 0x696   : > { %7212 = vpow2.f32 %v3918_v11  ;;  %v3716_v23 = vpop.xlane.xlu0 %3715  ;;  %v3798_v29 = vsub.f32 %v13239_v32, %v3734_v57  ;;  %v3799_v1 = vsub.f32 %v13240_v8, %v3734_v57  ;;  %v10558_v59 = vpop.eup %7196  ;;  %v10562_v57 = vadd.f32 %v10546_v45, %v10540_v34 }
 0x697   : > { %7214 = vpow2.f32 %v3890_v38  ;;  %v3786_v40 = vsub.f32 %v13241_v42, %v3716_v23  ;;  %v3787_v51 = vsub.f32 %v13242_v12, %v3716_v23  ;;  %v10564_v32 = vpop.eup %7198  ;;  %v10568_v23 = vadd.f32 %v10552_v31, %v10535_v41 }
 0x698   : > { %7216 = vpow2.f32 %v3892_v63  ;;  %v3922_v15 = vmul.f32 1.442695, %v3798_v29  ;;  %v3924_v11 = vmul.f32 1.442695, %v3799_v1  ;;  %13243 = vst [vmem:[#allocation119_spill] sm:$0xff] %v10562_v57  ;;  %v10570_v12 = vpop.eup %7200  ;;  %4156 = vmatmul.mubr.bf16.gmra.mrb[216].mxu0 %v4038_v6  ;;  %v13245_v29 = vld [vmem:[#allocation135_spill] sm:$0xff] }
 0x699   : > { %7218 = vpow2.f32 %v3920_v52  ;;  %v3898_v38 = vmul.f32 1.442695, %v3786_v40  ;;  %v3900_v8 = vmul.f32 1.442695, %v3787_v51  ;;  %v3737_v42 = vpop.xlane.xlu1 %3736  ;;  %13244 = vst [vmem:[#allocation120_spill] sm:$0xff] %v10568_v23  ;;  %v10579_v40 = vpop.eup %7202  ;;  %v13247_v51 = vld [vmem:[#allocation128_spill] sm:$0xff]  ;;  %4163 = vmatprep.mubr.bf16.mxu0 %v4041_v18 }
 0x69a   : > { %7220 = vpow2.f32 %v3922_v15  ;;  %v3722_v63 = vpop.xlane.xlu0 %3721  ;;  %v3800_v1 = vsub.f32 %v13245_v29, %v3737_v42  ;;  %v3801_v47 = vsub.f32 %v13246_v49, %v3737_v42  ;;  %v10589_v49 = vadd.f32 %v10570_v12, %v10564_v32  ;;  %v13320_v23 = vld [vmem:[#allocation100_spill] sm:$0xff] }
 0x69b   : > { %7222 = vpow2.f32 %v3898_v38  ;;  %v3790_v44 = vsub.f32 %v13247_v51, %v3722_v63  ;;  %v3791_v33 = vsub.f32 %v13248_v60, %v3722_v63  ;;  %v13250_v60 = vld [vmem:[#allocation23_spill] sm:$0xff]  ;;  %v10597_v63 = vadd.f32 %v10579_v40, %v10558_v59  ;;  %v13253_v51 = vld [vmem:[#allocation133_spill] sm:$0xff] }
 0x69c   : > { %v10585_v56 = vpop.eup %7204  ;;  %7224 = vpow2.f32 %v3900_v8  ;;  %v3926_v6 = vmul.f32 1.442695, %v3800_v1  ;;  %v3928_v15 = vmul.f32 1.442695, %v3801_v47  ;;  %13249 = vst [vmem:[#allocation25_spill] sm:$0xff] %v10589_v49  ;;  %v13323_v49 = vld [vmem:[#allocation28_spill] sm:$0xff] }
 0x69d   : > { %v10591_v42 = vpop.eup %7206  ;;  %7226 = vpow2.f32 %v3924_v11  ;;  %v3906_v38 = vmul.f32 1.442695, %v3790_v44  ;;  %v3908_v29 = vmul.f32 1.442695, %v3791_v33  ;;  %1041 = vrot.lane.b32.xlu0 %v13250_v60, %s7839_s12  ;;  %v1034_v18 = vpop.permute.xlu1 %1033  ;;  %13251 = vst [vmem:[#allocation90_spill] sm:$0xff] %v10597_v63  ;;  %v13252_v33 = vld [vmem:[#allocation132_spill] sm:$0xff] }
 0x69e   : > { %v10599_v8 = vpop.eup %7208  ;;  %7228 = vpow2.f32 %v3926_v6  ;;  %v3728_v47 = vpop.xlane.xlu0 %3727  ;;  %1082 = vst.msk [vmem:[#allocation3 + $0x180] sm:$0xff] %vm870_vm0, %v1034_v18 }
 0x69f   : > { %v10604_v11 = vpop.eup %7210  ;;  %7230 = vpow2.f32 %v3906_v38  ;;  %v3794_v44 = vsub.f32 %v13252_v33, %v3728_v47  ;;  %v3795_v60 = vsub.f32 %v13253_v51, %v3728_v47  ;;  %v4047_v52 = vpack.c.bf16 %v10528_v22, %v10599_v8  ;;  %v13256_v47 = vld [vmem:[#allocation38_spill] sm:$0xff] }
 0x6a0   : > { %v10610_v10 = vpop.eup %7212  ;;  %7232 = vpow2.f32 %v3908_v29  ;;  %v10614_v6 = vadd.f32 %v10599_v8, %v10591_v42  ;;  %v10618_v18 = vadd.f32 %v10604_v11, %v10585_v56  ;;  %v13257_v29 = vpack.c.bf16 %v10461_v55, %v10518_v16 }
 0x6a1   : > { %v10620_v1 = vpop.eup %7214  ;;  %7234 = vpow2.f32 %v3928_v15  ;;  %v3914_v38 = vmul.f32 1.442695, %v3794_v44  ;;  %v3916_v33 = vmul.f32 1.442695, %v3795_v60  ;;  %1061 = vrot.lane.b32.xlu0 %v13256_v47, %s7839_s12  ;;  %v1036_v22 = vpop.permute.xlu1 %1035  ;;  %v13258_v15 = vpack.c.bf16 %v10487_v24, %v10546_v45 }
 0x6a2   : > { %13254 = vst [vmem:[#allocation91_spill] sm:$0xff] %v10614_v6  ;;  %13255 = vst [vmem:[#allocation124_spill] sm:$0xff] %v10618_v18  ;;  %v7217_v51 = vpop.eup %7216  ;;  %4164 = vmatmul.mubr.bf16.gmra.mrb[220].mxu0 %v13257_v29  ;;  %v1050_v8 = vpop.permute.xlu0 %1049  ;;  %v4048_v61 = vpack.c.bf16 %v10535_v41, %v10620_v1  ;;  %v13317_v18 = vld [vmem:[#allocation173_spill] sm:$0xff] }
 0x6a3   : > { %1083 = vst.msk [vmem:[#allocation3 + $0x188] sm:$0xff] %vm870_vm0, %v1036_v22  ;;  %v7219_v46 = vpop.eup %7218  ;;  %7236 = vpow2.f32 %v3914_v38  ;;  %1090 = vst.msk [vmem:[#allocation3 + $0x1c0] sm:$0xff] %vm870_vm0, %v1050_v8  ;;  %4171 = vmatprep.mubr.bf16.mxu0 %v13258_v15  ;;  %v4049_v44 = vpack.c.bf16 %v10552_v31, %v7217_v51  ;;  %v10636_v60 = vadd.f32 %v7217_v51, %v10620_v1  ;;  %v13319_v6 = vld [vmem:[#allocation69_spill] sm:$0xff] }
 0x6a4   : > { %v10638_v55 = vpop.eup %7220  ;;  %7238 = vpow2.f32 %v3916_v33  ;;  %v10641_v16 = vadd.f32 %v7219_v46, %v10610_v10 }
 0x6a5   : > { %13259 = vst [vmem:[#allocation125_spill] sm:$0xff] %v10636_v60  ;;  %v7223_v41 = vpop.eup %7222  ;;  %v5010_v62 = vld [vmem:[#allocation3 + $0x180] sm:$0xff] }
 0x6a6   : > { %13260 = vst [vmem:[#allocation135_spill] sm:$0xff] %v10641_v16  ;;  %v7225_v47 = vpop.eup %7224  ;;  %v1052_v38 = vpop.permute.xlu0 %1051  ;;  %v4050_v22 = vpack.c.bf16 %v10558_v59, %v7223_v41  ;;  %v13263_v59 = vpack.c.bf16 %v10476_v2, %v10540_v34 }
 0x6a7   : > { %v7227_v29 = vpop.eup %7226  ;;  %1091 = vst.msk [vmem:[#allocation3 + $0x1c8] sm:$0xff] %vm870_vm0, %v1052_v38  ;;  %v4051_v24 = vpack.c.bf16 %v10579_v40, %v7225_v47  ;;  %v10646_v45 = vadd.f32 %v7225_v47, %v7223_v41  ;;  %v13264_v47 = vpack.c.bf16 %v10506_v36, %v10570_v12 }
 0x6a8   : > { %v10648_v31 = vpop.eup %7228  ;;  %v10651_v1 = vadd.f32 %v7227_v29, %v10638_v55 }
 0x6a9   : > { %13261 = vst [vmem:[#allocation136_spill] sm:$0xff] %v10646_v45  ;;  %v7231_v33 = vpop.eup %7230 }
 0x6aa   : > { %13262 = vst [vmem:[#allocation128_spill] sm:$0xff] %v10651_v1  ;;  %v7233_v8 = vpop.eup %7232  ;;  %4172 = vmatmul.mubr.bf16.gmra.mrb[224].mxu0 %v13263_v59  ;;  %v1054_v15 = vpop.permute.xlu0 %1053  ;;  %v5018_v38 = vld [vmem:[#allocation3 + $0x1c0] sm:$0xff]  ;;  %v4052_v40 = vpack.c.bf16 %v10585_v56, %v7231_v33  ;;  %v5011_v16 = vld [vmem:[#allocation3 + $0x188] sm:$0xff] }
 0x6ab   : > { %v7235_v41 = vpop.eup %7234  ;;  %1092 = vst.msk [vmem:[#allocation3 + $0x1d0] sm:$0xff] %vm870_vm0, %v1054_v15  ;;  %4179 = vmatprep.mubr.bf16.mxu0 %v13264_v47  ;;  %6449 = vmatprep.subr.bf16.mxu0 %v5018_v38  ;;  %v4053_v51 = vpack.c.bf16 %v10604_v11, %v7233_v8  ;;  %v10664_v21 = vadd.f32 %v7233_v8, %v7231_v33  ;;  %v13270_v33 = vld [vmem:[#allocation48_spill] sm:$0xff] }
 0x6ac   : > { %6450 = vmatpush3.bf16.msra.mxu0 %v5010_v62  ;;  %v4057_v2 = vpack.c.bf16 %v7235_v41, %v7227_v29  ;;  %v10667_v34 = vadd.f32 %v7235_v41, %v10648_v31  ;;  %v13268_v11 = vpack.c.bf16 %v10492_v50, %v10564_v32  ;;  %v13269_v29 = vld [vmem:[#allocation149_spill] sm:$0xff]  ;;  %v13276_v50 = vld [vmem:[#allocation39_spill] sm:$0xff]  ;;  %v13277_v32 = vld [vmem:[#allocation30_spill] sm:$0xff] }
 0x6ad   : > { %13265 = vst [vmem:[#allocation129_spill] sm:$0xff] %v10664_v21  ;;  %v7237_v59 = vpop.eup %7236  ;;  %v13271_v8 = vmax.f32 %v13269_v29, %v13270_v33  ;;  %v13314_v21 = vld [vmem:[#allocation211_spill] sm:$0xff] }
 0x6ae   : > { %13266 = vst [vmem:[#allocation23_spill] sm:$0xff] %v10667_v34  ;;  %v7239_v56 = vpop.eup %7238  ;;  %v5019_v1 = vld [vmem:[#allocation3 + $0x1c8] sm:$0xff]  ;;  %v4054_v15 = vpack.c.bf16 %v10610_v10, %v7237_v59  ;;  %v13272_v10 = vpack.c.bf16 %v10513_v9, %v10591_v42  ;;  %v13311_v34 = vld [vmem:[#allocation169_spill] sm:$0xff] }
 0x6af   : > { %6451 = vmatprep.subr.bf16.mxu0 %v5019_v1  ;;  %v4055_v36 = vpack.c.bf16 %v7219_v46, %v7239_v56  ;;  %v10670_v12 = vadd.f32 %v7239_v56, %v7237_v59  ;;  %v13273_v46 = vld [vmem:[#allocation49_spill] sm:$0xff]  ;;  %v13274_v1 = vld [vmem:[#allocation151_spill] sm:$0xff] }
 0x6b0   : > { %6452 = vmatpush3.bf16.msra.mxu0 %v5011_v16  ;;  %v13275_v38 = vmax.f32 %v13273_v46, %v13274_v1 }
 0x6b1   : > { %13267 = vst [vmem:[#allocation132_spill] sm:$0xff] %v10670_v12 }
 0x6b2   : > { %4180 = vmatmul.mubr.bf16.gmra.mrb[228].mxu0 %v13268_v11  ;;  %v5020_v62 = vld [vmem:[#allocation3 + $0x1d0] sm:$0xff] }
 0x6b3   : > { %4187 = vmatprep.mubr.bf16.mxu0 %v4047_v52  ;;  %6453 = vmatprep.subr.bf16.mxu0 %v5020_v62 }
 0x6b7   : > { %4606 = vmax.xlane.f32.xlu1 %v13271_v8 }
 0x6ba   : > { %4188 = vmatmul.mubr.bf16.gmra.mrb[232].mxu0 %v13272_v10 }
 0x6bb   : > { %4195 = vmatprep.mubr.bf16.mxu0 %v4049_v44 }
 0x6c0   : > { %4609 = vmax.xlane.f32.xlu0 %v13275_v38 }
 0x6c2   : > { %4196 = vmatmul.mubr.bf16.gmra.mrb[236].mxu0 %v4048_v61  ;;  %v13278_v61 = vld [vmem:[#allocation27_spill] sm:$0xff] }
 0x6c3   : > { %4203 = vmatprep.mubr.bf16.mxu0 %v4051_v24 }
 0x6c8   : > { %1063 = vrot.lane.b32.xlu1 %v13276_v50, %s7839_s12  ;;  %v13280_v50 = vld [vmem:[#allocation155_spill] sm:$0xff] }
 0x6ca   : > { %4204 = vmatmul.mubr.bf16.gmra.mrb[240].mxu0 %v4050_v22 }
 0x6cb   : > { %4211 = vmatprep.mubr.bf16.mxu0 %v4053_v51 }
 0x6cc   : > { %1047 = vrot.lane.b32.xlu1 %v13277_v32, %s7839_s12  ;;  %v13281_v32 = vld [vmem:[#allocation156_spill] sm:$0xff] }
 0x6d2   : > { %4212 = vmatmul.mubr.bf16.gmra.mrb[244].mxu0 %v4052_v40  ;;  %v4595_v52 = vpop.xlane.xlu1 %4594 }
 0x6d3   : > { %4219 = vmatprep.mubr.bf16.mxu0 %v4055_v36  ;;  %v4689_v9 = vsub.f32 %v13200_v20, %v4595_v52  ;;  %v4690_v42 = vsub.f32 %v13201_v58, %v4595_v52  ;;  %v13282_v52 = vmax.f32 %v13280_v50, %v13281_v32 }
 0x6d5   : > { %v4753_v44 = vmul.f32 1.442695, %v4689_v9  ;;  %v4755_v16 = vmul.f32 1.442695, %v4690_v42  ;;  %v13283_v9 = vld [vmem:[#allocation165_spill] sm:$0xff]  ;;  %v13284_v42 = vld [vmem:[#allocation166_spill] sm:$0xff] }
 0x6d6   : > { %1045 = vrot.lane.b32.xlu0 %v13278_v61, %s7839_s12  ;;  %v1056_v24 = vpop.permute.xlu1 %1055  ;;  %v13287_v61 = vld [vmem:[#allocation154_spill] sm:$0xff] }
 0x6d7   : > { %7240 = vpow2.f32 %v4753_v44  ;;  %1093 = vst.msk [vmem:[#allocation3 + $0x1d8] sm:$0xff] %vm870_vm0, %v1056_v24  ;;  %v13285_v44 = vmax.f32 %v13283_v9, %v13284_v42 }
 0x6d8   : > { %7242 = vpow2.f32 %v4755_v16  ;;  %v13286_v16 = vld [vmem:[#allocation57_spill] sm:$0xff] }
 0x6d9   : > { %v13288_v24 = vmax.f32 %v13286_v16, %v13287_v61 }
 0x6da   : > { %4220 = vmatmul.mubr.bf16.gmra.mrb[248].mxu0 %v4054_v15  ;;  %v1040_v22 = vpop.permute.xlu1 %1039 }
 0x6db   : > { %4227 = vmatprep.mubr.bf16.mxu0 %v4057_v2  ;;  %v4598_v51 = vpop.xlane.xlu0 %4597  ;;  %1085 = vst.msk [vmem:[#allocation3 + $0x198] sm:$0xff] %vm870_vm0, %v1040_v22  ;;  %v13279_v2 = vpack.c.bf16 %v10648_v31, %v10638_v55  ;;  %v13289_v22 = vld [vmem:[#allocation20_spill] sm:$0xff] }
 0x6dc   : > { %v4691_v20 = vsub.f32 %v13204_v19, %v4598_v51  ;;  %v4692_v58 = vsub.f32 %v13205_v37, %v4598_v51  ;;  %v13290_v51 = vld [vmem:[#allocation170_spill] sm:$0xff] }
 0x6de   : > { %v4757_v40 = vmul.f32 1.442695, %v4691_v20  ;;  %v4759_v41 = vmul.f32 1.442695, %v4692_v58  ;;  %v5021_v19 = vld [vmem:[#allocation3 + $0x1d8] sm:$0xff]  ;;  %v13291_v20 = vmax.f32 %v13289_v22, %v13290_v51 }
 0x6df   : > { %v1038_v47 = vpop.permute.xlu0 %1037  ;;  %v13292_v58 = vld [vmem:[#allocation158_spill] sm:$0xff] }
 0x6e0   : > { %7244 = vpow2.f32 %v4757_v40  ;;  %1084 = vst.msk [vmem:[#allocation3 + $0x190] sm:$0xff] %vm870_vm0, %v1038_v47  ;;  %v13293_v40 = vld [vmem:[#allocation160_spill] sm:$0xff]  ;;  %v13295_v47 = vld [vmem:[#allocation174_spill] sm:$0xff] }
 0x6e1   : > { %v10697_v59 = vpop.eup %7240  ;;  %7246 = vpow2.f32 %v4759_v41  ;;  %v13294_v41 = vmax.f32 %v13292_v58, %v13293_v40 }
 0x6e2   : > { %v7243_v56 = vpop.eup %7242  ;;  %4228 = vmatmul.mubr.bf16.gmra.mrb[252].mxu0 %v13279_v2  ;;  %v5013_v10 = vld [vmem:[#allocation3 + $0x198] sm:$0xff] }
 0x6e3   : > { %v1058_v15 = vpop.permute.xlu0 %1057  ;;  %v10703_v36 = vadd.f32 %v7243_v56, %v10697_v59 }
 0x6e4   : > { %1094 = vst.msk [vmem:[#allocation3 + $0x1e0] sm:$0xff] %vm870_vm0, %v1058_v15  ;;  %v13298_v15 = vld [vmem:[#allocation161_spill] sm:$0xff] }
 0x6e7   : > { %v5012_v37 = vld [vmem:[#allocation3 + $0x190] sm:$0xff] }
 0x6e8   : > { %6454 = vmatpush3.bf16.msra.mxu0 %v5012_v37  ;;  %v13299_v37 = vld [vmem:[#allocation162_spill] sm:$0xff] }
 0x6e9   : > { %6455 = vmatprep.subr.bf16.mxu0 %v5021_v19  ;;  %v13300_v19 = vmax.f32 %v13298_v15, %v13299_v37 }
 0x6ea   : > { %v10706_v11 = vpop.eup %7244 }
 0x6eb   : > { %v7247_v62 = vpop.eup %7246  ;;  %v5022_v38 = vld [vmem:[#allocation3 + $0x1e0] sm:$0xff] }
 0x6ec   : > { %6456 = vmatpush3.bf16.msra.mxu0 %v5013_v10  ;;  %v4978_v55 = vpack.c.bf16 %v7247_v62, %v7243_v56  ;;  %v10711_v31 = vadd.f32 %v7247_v62, %v10706_v11  ;;  %v13296_v56 = vld [vmem:[#allocation175_spill] sm:$0xff]  ;;  %v13301_v62 = vld [vmem:[#allocation198_spill] sm:$0xff] }
 0x6ed   : > { %6457 = vmatprep.subr.bf16.mxu0 %v5022_v38  ;;  %v13297_v2 = vmax.f32 %v13295_v47, %v13296_v56  ;;  %v13302_v10 = vld [vmem:[#allocation199_spill] sm:$0xff] }
 0x6ee   : > { %5058 = vmatprep.mubr.bf16.mxu0 %v4978_v55  ;;  %v13303_v38 = vmax.f32 %v13301_v62, %v13302_v10  ;;  %v13304_v55 = vld [vmem:[#allocation54_spill] sm:$0xff] }
 0x6f0   : > { %4615 = vmax.xlane.f32.xlu1 %v13282_v52  ;;  %v13305_v52 = vld [vmem:[#allocation164_spill] sm:$0xff] }
 0x6f4   : > { %4627 = vmax.xlane.f32.xlu1 %v13285_v44  ;;  %v13306_v44 = vmax.f32 %v13304_v55, %v13305_v52 }
 0x6f5   : > { %4612 = vmax.xlane.f32.xlu0 %v13288_v24  ;;  %v13307_v24 = vld [vmem:[#allocation204_spill] sm:$0xff] }
 0x6f8   : > { %4633 = vmax.xlane.f32.xlu1 %v13291_v20  ;;  %v13308_v20 = vld [vmem:[#allocation205_spill] sm:$0xff] }
 0x6f9   : > { %4618 = vmax.xlane.f32.xlu0 %v13294_v41  ;;  %v13309_v8 = vmax.f32 %v13307_v24, %v13308_v20  ;;  %v13310_v41 = vld [vmem:[#allocation168_spill] sm:$0xff] }
 0x6fa   : > { %v13312_v12 = vmax.f32 %v13310_v41, %v13311_v34 }
 0x6fc   : > { %4639 = vmax.xlane.f32.xlu1 %v13297_v2  ;;  %v13313_v2 = vld [vmem:[#allocation210_spill] sm:$0xff] }
 0x6fd   : > { %4621 = vmax.xlane.f32.xlu0 %v13300_v19  ;;  %v13315_v45 = vmax.f32 %v13313_v2, %v13314_v21  ;;  %v13316_v19 = vld [vmem:[#allocation171_spill] sm:$0xff] }
 0x6fe   : > { %v13318_v63 = vmax.f32 %v13316_v19, %v13317_v18 }
 0x700   : > { %4645 = vmax.xlane.f32.xlu1 %v13303_v38 }
 0x701   : > { %4624 = vmax.xlane.f32.xlu0 %v13306_v44 }
 0x704   : > { %4651 = vmax.xlane.f32.xlu1 %v13309_v8  ;;  %v13321_v8 = vmax.f32 %v13319_v6, %v13320_v23 }
 0x705   : > { %4630 = vmax.xlane.f32.xlu0 %v13312_v12  ;;  %v13324_v12 = vmax.f32 %v13322_v39, %v13323_v49 }
 0x708   : > { %4657 = vmax.xlane.f32.xlu1 %v13315_v45 }
 0x709   : > { %4636 = vmax.xlane.f32.xlu0 %v13318_v63  ;;  %v13325_v63 = vld [vmem:[#allocation222_spill] sm:$0xff] }
 0x70a   : > { %v13327_v30 = vmax.f32 %v13325_v63, %v13326_v35  ;;  %v13364_v35 = vld [vmem:[#allocation75_spill] sm:$0xff] }
 0x70b   : > { %v4601_v38 = vpop.xlane.xlu1 %4600 }
 0x70c   : > { %v4693_v60 = vsub.f32 %v13215_v14, %v4601_v38  ;;  %v4694_v44 = vsub.f32 %v13216_v48, %v4601_v38  ;;  %4663 = vmax.xlane.f32.xlu1 %v13321_v8  ;;  %v13328_v14 = vld [vmem:[#allocation202_spill] sm:$0xff]  ;;  %v13329_v48 = vld [vmem:[#allocation203_spill] sm:$0xff] }
 0x70d   : > { %4642 = vmax.xlane.f32.xlu0 %v13324_v12  ;;  %v13330_v38 = vmax.f32 %v13328_v14, %v13329_v48  ;;  %v13331_v12 = vld [vmem:[#allocation229_spill] sm:$0xff] }
 0x70e   : > { %v4761_v57 = vmul.f32 1.442695, %v4693_v60  ;;  %v4763_v4 = vmul.f32 1.442695, %v4694_v44  ;;  %v13332_v60 = vld [vmem:[#allocation230_spill] sm:$0xff] }
 0x70f   : > { %v1060_v45 = vpop.permute.xlu1 %1059  ;;  %v13333_v44 = vmax.f32 %v13331_v12, %v13332_v60 }
 0x710   : > { %7248 = vpow2.f32 %v4761_v57  ;;  %1095 = vst.msk [vmem:[#allocation3 + $0x1e8] sm:$0xff] %vm870_vm0, %v1060_v45  ;;  %4669 = vmax.xlane.f32.xlu1 %v13327_v30  ;;  %v13336_v30 = vmax.f32 %v13334_v0, %v13335_v26 }
 0x711   : > { %7250 = vpow2.f32 %v4763_v4  ;;  %4648 = vmax.xlane.f32.xlu0 %v13330_v38  ;;  %v13337_v38 = vld [vmem:[#allocation105_spill] sm:$0xff] }
 0x712   : > { %v13339_v48 = vmax.f32 %v13337_v38, %v13338_v54  ;;  %v13351_v38 = vld [vmem:[#allocation76_spill] sm:$0xff] }
 0x713   : > { %v1044_v8 = vpop.permute.xlu1 %1043 }
 0x714   : > { %v4604_v27 = vpop.xlane.xlu0 %4603  ;;  %1087 = vst.msk [vmem:[#allocation3 + $0x1a8] sm:$0xff] %vm870_vm0, %v1044_v8  ;;  %4675 = vmax.xlane.f32.xlu1 %v13333_v44  ;;  %v13340_v8 = vld [vmem:[#allocation68_spill] sm:$0xff]  ;;  %v13341_v44 = vld [vmem:[#allocation99_spill] sm:$0xff] }
 0x715   : > { %v4695_v57 = vsub.f32 %v13222_v53, %v4604_v27  ;;  %v4696_v45 = vsub.f32 %v13223_v25, %v4604_v27  ;;  %4654 = vmax.xlane.f32.xlu0 %v13336_v30  ;;  %v13342_v60 = vmax.f32 %v13340_v8, %v13341_v44  ;;  %v13349_v44 = vld [vmem:[#allocation101_spill] sm:$0xff]  ;;  %v13350_v8 = vld [vmem:[#allocation74_spill] sm:$0xff] }
 0x716   : > { %v13352_v26 = vmax.f32 %v13350_v8, %v13351_v38  ;;  %v13357_v8 = vld [vmem:[#allocation103_spill] sm:$0xff] }
 0x717   : > { %v4765_v4 = vmul.f32 1.442695, %v4695_v57  ;;  %v4767_v13 = vmul.f32 1.442695, %v4696_v45  ;;  %v13343_v57 = vld [vmem:[#allocation112_spill] sm:$0xff]  ;;  %v13344_v45 = vld [vmem:[#allocation130_spill] sm:$0xff] }
 0x718   : > { %v1042_v17 = vpop.permute.xlu0 %1041  ;;  %4681 = vmax.xlane.f32.xlu1 %v13339_v48  ;;  %v13345_v30 = vmax.f32 %v13343_v57, %v13344_v45 }
 0x719   : > { %7252 = vpow2.f32 %v4765_v4  ;;  %1086 = vst.msk [vmem:[#allocation3 + $0x1a0] sm:$0xff] %vm870_vm0, %v1042_v17  ;;  %4660 = vmax.xlane.f32.xlu0 %v13342_v60  ;;  %v13346_v17 = vld [vmem:[#allocation219_spill] sm:$0xff]  ;;  %v13347_v4 = vld [vmem:[#allocation220_spill] sm:$0xff] }
 0x71a   : > { %v10783_v53 = vpop.eup %7248  ;;  %7254 = vpow2.f32 %v4767_v13  ;;  %v13348_v54 = vmax.f32 %v13346_v17, %v13347_v4  ;;  %v13355_v17 = vld [vmem:[#allocation78_spill] sm:$0xff] }
 0x71b   : > { %v10785_v25 = vpop.eup %7250 }
 0x71c   : > { %v1062_v27 = vpop.permute.xlu0 %1061  ;;  %4687 = vmax.xlane.f32.xlu1 %v13345_v30  ;;  %v4887_v48 = vadd.f32 %v10785_v25, %v10783_v53  ;;  %v5023_v30 = vld [vmem:[#allocation3 + $0x1e8] sm:$0xff] }
 0x71d   : > { %1096 = vst.msk [vmem:[#allocation3 + $0x1f0] sm:$0xff] %vm870_vm0, %v1062_v27  ;;  %4666 = vmax.xlane.f32.xlu0 %v13348_v54  ;;  %v13359_v54 = vld [vmem:[#allocation228_spill] sm:$0xff] }
 0x71e   : > { %v6353_v60 = vpop.f32.mrb[192].mxu0 }
 0x71f   : > { %v6354_v0 = vpop.f32.mrb[193].mxu0 }
 0x720   : > { %2983 = vadd.xlane.f32.xlu1 %v13349_v44  ;;  %v5014_v13 = vld [vmem:[#allocation3 + $0x1a0] sm:$0xff]  ;;  %v10800_v45 = vadd.f32 %v6354_v0, %v6353_v60  ;;  %v6356_v57 = vpop.f32.mrb[194].mxu0 }
 0x721   : > { %4672 = vmax.xlane.f32.xlu0 %v13352_v26  ;;  %6458 = vmatpush3.bf16.msra.mxu0 %v5014_v13  ;;  %v6357_v12 = vpop.f32.mrb[195].mxu0  ;;  %v5015_v26 = vld [vmem:[#allocation3 + $0x1a8] sm:$0xff]  ;;  %v13356_v13 = vld [vmem:[#allocation102_spill] sm:$0xff] }
 0x722   : > { %13353 = vst [vmem:[#allocation133_spill] sm:$0xff] %v10800_v45  ;;  %6459 = vmatprep.subr.bf16.mxu0 %v5023_v30  ;;  %v10808_v44 = vadd.f32 %v6357_v12, %v6356_v57  ;;  %v13358_v0 = vmax.f32 %v13356_v13, %v13357_v8  ;;  %v13360_v12 = vld [vmem:[#allocation127_spill] sm:$0xff]  ;;  %v13363_v13 = vld [vmem:[#allocation126_spill] sm:$0xff] }
 0x723   : > { %v10802_v27 = vpop.eup %7252  ;;  %v13361_v57 = vld [vmem:[#allocation111_spill] sm:$0xff] }
 0x724   : > { %v10804_v4 = vpop.eup %7254  ;;  %13354 = vst [vmem:[#allocation38_spill] sm:$0xff] %v10808_v44  ;;  %2989 = vadd.xlane.f32.xlu1 %v13355_v17  ;;  %v5024_v38 = vld [vmem:[#allocation3 + $0x1f0] sm:$0xff]  ;;  %v13362_v17 = vmax.f32 %v13360_v12, %v13361_v57 }
 0x725   : > { %4678 = vmax.xlane.f32.xlu0 %v13358_v0  ;;  %6460 = vmatpush3.bf16.msra.mxu0 %v5015_v26  ;;  %v4890_v60 = vadd.f32 %v10804_v4, %v10802_v27 }
 0x726   : > { %6461 = vmatprep.subr.bf16.mxu0 %v5024_v38  ;;  %v6359_v45 = vpop.f32.mrb[196].mxu0  ;;  %v13365_v38 = vld [vmem:[#allocation77_spill] sm:$0xff] }
 0x727   : > { %v6360_v44 = vpop.f32.mrb[197].mxu0 }
 0x728   : > { %3934 = vadd.xlane.f32.xlu1 %v13359_v54  ;;  %v10822_v14 = vadd.f32 %v6360_v44, %v6359_v45  ;;  %v6362_v8 = vpop.f32.mrb[198].mxu0  ;;  %v13366_v44 = vld [vmem:[#allocation227_spill] sm:$0xff] }
 0x729   : > { %4684 = vmax.xlane.f32.xlu0 %v13362_v17  ;;  %v6363_v0 = vpop.f32.mrb[199].mxu0 }
 0x72a   : > { %v10824_v26 = vadd.f32 %v6363_v0, %v6362_v8  ;;  %v13367_v8 = vld [vmem:[#allocation104_spill] sm:$0xff] }
 0x72c   : > { %3940 = vadd.xlane.f32.xlu1 %v13363_v13  ;;  %v13368_v13 = vld [vmem:[#allocation31_spill] sm:$0xff] }
 0x72d   : > { %2980 = vadd.xlane.f32.xlu0 %v13364_v35  ;;  %v13369_v35 = vld [vmem:[#allocation107_spill] sm:$0xff] }
 0x72e   : > { %v6365_v30 = vpop.f32.mrb[200].mxu0 }
 0x72f   : > { %v6366_v54 = vpop.f32.mrb[201].mxu0 }
 0x730   : > { %4885 = vadd.xlane.f32.xlu1 %v10711_v31  ;;  %v10830_v63 = vadd.f32 %v6366_v54, %v6365_v30  ;;  %v6368_v17 = vpop.f32.mrb[202].mxu0  ;;  %v13370_v30 = vld [vmem:[#allocation80_spill] sm:$0xff] }
 0x731   : > { %2986 = vadd.xlane.f32.xlu0 %v13365_v38  ;;  %v6369_v57 = vpop.f32.mrb[203].mxu0 }
 0x732   : > { %v10832_v45 = vadd.f32 %v6369_v57, %v6368_v17  ;;  %v13371_v17 = vld [vmem:[#allocation106_spill] sm:$0xff] }
 0x734   : > { %4891 = vadd.xlane.f32.xlu1 %v4890_v60 }
 0x735   : > { %3931 = vadd.xlane.f32.xlu0 %v13366_v44 }
 0x738   : > { %2995 = vadd.xlane.f32.xlu1 %v13367_v8 }
 0x739   : > { %3937 = vadd.xlane.f32.xlu0 %v13368_v13 }
 0x73c   : > { %3001 = vadd.xlane.f32.xlu1 %v13369_v35 }
 0x73d   : > { %4882 = vadd.xlane.f32.xlu0 %v10703_v36 }
 0x740   : > { %3946 = vadd.xlane.f32.xlu1 %v10380_v43 }
 0x741   : > { %4888 = vadd.xlane.f32.xlu0 %v4887_v48 }
 0x744   : > { %3952 = vadd.xlane.f32.xlu1 %v10430_v7  ;;  %v4607_v31 = vpop.xlane.xlu1 %4606 }
 0x745   : > { %2992 = vadd.xlane.f32.xlu0 %v13370_v30  ;;  %v4697_v60 = vsub.f32 %v13269_v29, %v4607_v31  ;;  %v4698_v57 = vsub.f32 %v13270_v33, %v4607_v31 }
 0x747   : > { %v4769_v0 = vmul.f32 1.442695, %v4697_v60  ;;  %v4771_v38 = vmul.f32 1.442695, %v4698_v57 }
 0x748   : > { %v1064_v54 = vpop.permute.xlu1 %1063 }
 0x749   : > { %7256 = vpow2.f32 %v4769_v0  ;;  %2998 = vadd.xlane.f32.xlu0 %v13371_v17  ;;  %1097 = vst.msk [vmem:[#allocation3 + $0x1f8] sm:$0xff] %vm870_vm0, %v1064_v54 }
 0x74a   : > { %7258 = vpow2.f32 %v4771_v38 }
 0x74c   : > { %v1048_v43 = vpop.permute.xlu1 %1047 }
 0x74d   : > { %v4610_v36 = vpop.xlane.xlu0 %4609  ;;  %3943 = vadd.xlane.f32.xlu0 %v10375_v28  ;;  %1089 = vst.msk [vmem:[#allocation3 + $0x1b8] sm:$0xff] %vm870_vm0, %v1048_v43 }
 0x74e   : > { %v4699_v7 = vsub.f32 %v13273_v46, %v4610_v36  ;;  %v4700_v29 = vsub.f32 %v13274_v1, %v4610_v36 }
 0x750   : > { %v4773_v33 = vmul.f32 1.442695, %v4699_v7  ;;  %v4775_v48 = vmul.f32 1.442695, %v4700_v29  ;;  %v5025_v0 = vld [vmem:[#allocation3 + $0x1f8] sm:$0xff] }
 0x751   : > { %v1046_v44 = vpop.permute.xlu0 %1045  ;;  %3949 = vadd.xlane.f32.xlu0 %v10447_v5 }
 0x752   : > { %7260 = vpow2.f32 %v4773_v33  ;;  %1088 = vst.msk [vmem:[#allocation3 + $0x1b0] sm:$0xff] %vm870_vm0, %v1046_v44 }
 0x753   : > { %v7257_v8 = vpop.eup %7256  ;;  %7262 = vpow2.f32 %v4775_v48  ;;  %v6371_v35 = vpop.f32.mrb[204].mxu0 }
 0x754   : > { %v7259_v13 = vpop.eup %7258  ;;  %v6372_v28 = vpop.f32.mrb[205].mxu0  ;;  %v5017_v43 = vld [vmem:[#allocation3 + $0x1b8] sm:$0xff] }
 0x755   : > { %v4893_v31 = vadd.f32 %v7259_v13, %v7257_v8  ;;  %v10852_v30 = vadd.f32 %v6372_v28, %v6371_v35  ;;  %v6374_v60 = vpop.f32.mrb[206].mxu0 }
 0x756   : > { %v6375_v46 = vpop.f32.mrb[207].mxu0 }
 0x757   : > { %4894 = vadd.xlane.f32.xlu0 %v4893_v31  ;;  %v10854_v1 = vadd.f32 %v6375_v46, %v6374_v60  ;;  %v13374_v31 = vpack.c.bf16 %v10706_v11, %v10697_v59 }
 0x759   : > { %v5016_v57 = vld [vmem:[#allocation3 + $0x1b0] sm:$0xff] }
 0x75a   : > { %6462 = vmatpush3.bf16.msra.mxu0 %v5016_v57 }
 0x75b   : > { %6463 = vmatprep.subr.bf16.mxu0 %v5025_v0  ;;  %v6377_v17 = vpop.f32.mrb[208].mxu0 }
 0x75c   : > { %v7261_v5 = vpop.eup %7260  ;;  %v6378_v36 = vpop.f32.mrb[209].mxu0 }
 0x75d   : > { %v7263_v38 = vpop.eup %7262  ;;  %v4981_v54 = vpack.c.bf16 %v7261_v5, %v7257_v8  ;;  %v10856_v33 = vadd.f32 %v6378_v36, %v6377_v17  ;;  %v6380_v48 = vpop.f32.mrb[210].mxu0  ;;  %v13375_v8 = vpack.c.bf16 %v10804_v4, %v10785_v25 }
 0x75e   : > { %6464 = vmatpush3.bf16.msra.mxu0 %v5017_v43  ;;  %v4896_v7 = vadd.f32 %v7263_v38, %v7261_v5  ;;  %v4982_v29 = vpack.c.bf16 %v7263_v38, %v7259_v13  ;;  %v6381_v44 = vpop.f32.mrb[211].mxu0  ;;  %v13378_v5 = vpack.c.bf16 %v10802_v27, %v10783_v53 }
 0x75f   : > { %13372 = vst [vmem:[#allocation149_spill] sm:$0xff] %v10856_v33  ;;  %v10858_v35 = vadd.f32 %v6381_v44, %v6380_v48  ;;  %v13450_v33 = vld [vmem:[#allocation195_spill] sm:$0xff] }
 0x760   : > { %4897 = vadd.xlane.f32.xlu1 %v4896_v7 }
 0x761   : > { %13373 = vst [vmem:[#allocation48_spill] sm:$0xff] %v10858_v35  ;;  %5059 = vmatmul.mubr.bf16.vlgmr.msra.gmra.mrb[0].mxu0 %v13374_v31 }
 0x762   : > { %5066 = vmatprep.mubr.bf16.mxu0 %v13375_v8 }
 0x763   : > { %v6383_v28 = vpop.f32.mrb[212].mxu0 }
 0x764   : > { %v6384_v60 = vpop.f32.mrb[213].mxu0 }
 0x765   : > { %v10866_v46 = vadd.f32 %v6384_v60, %v6383_v28  ;;  %v6386_v13 = vpop.f32.mrb[214].mxu0 }
 0x766   : > { %v6387_v57 = vpop.f32.mrb[215].mxu0 }
 0x767   : > { %13376 = vst [vmem:[#allocation49_spill] sm:$0xff] %v10866_v46  ;;  %v10868_v0 = vadd.f32 %v6387_v57, %v6386_v13  ;;  %v13449_v46 = vld [vmem:[#allocation194_spill] sm:$0xff] }
 0x769   : > { %13377 = vst [vmem:[#allocation151_spill] sm:$0xff] %v10868_v0  ;;  %5067 = vmatmul.mubr.bf16.gmra.mrb[4].mxu0 %v13378_v5 }
 0x76a   : > { %5074 = vmatprep.mubr.bf16.mxu0 %v4982_v29 }
 0x76b   : > { %v6389_v38 = vpop.f32.mrb[216].mxu0 }
 0x76c   : > { %v6390_v59 = vpop.f32.mrb[217].mxu0 }
 0x76d   : > { %v10873_v11 = vadd.f32 %v6390_v59, %v6389_v38  ;;  %v6392_v17 = vpop.f32.mrb[218].mxu0 }
 0x76e   : > { %v6393_v25 = vpop.f32.mrb[219].mxu0 }
 0x76f   : > { %13379 = vst [vmem:[#allocation39_spill] sm:$0xff] %v10873_v11  ;;  %v10875_v4 = vadd.f32 %v6393_v25, %v6392_v17 }
 0x771   : > { %13380 = vst [vmem:[#allocation30_spill] sm:$0xff] %v10875_v4  ;;  %5075 = vmatmul.mubr.bf16.gmra.mrb[8].mxu0 %v4981_v54 }
 0x775   : > { %v6395_v43 = vpop.f32.mrb[220].mxu0 }
 0x776   : > { %v6396_v36 = vpop.f32.mrb[221].mxu0 }
 0x777   : > { %v10877_v7 = vadd.f32 %v6396_v36, %v6395_v43  ;;  %v6398_v48 = vpop.f32.mrb[222].mxu0 }
 0x778   : > { %v6399_v44 = vpop.f32.mrb[223].mxu0 }
 0x779   : > { %13381 = vst [vmem:[#allocation27_spill] sm:$0xff] %v10877_v7  ;;  %v10879_v31 = vadd.f32 %v6399_v44, %v6398_v48 }
 0x77b   : > { %13382 = vst [vmem:[#allocation155_spill] sm:$0xff] %v10879_v31 }
 0x77d   : > { %v6401_v53 = vpop.f32.mrb[224].mxu0  ;;  %v4616_v27 = vpop.xlane.xlu1 %4615 }
 0x77e   : > { %v6402_v29 = vpop.f32.mrb[225].mxu0  ;;  %v4703_v8 = vsub.f32 %v13280_v50, %v4616_v27  ;;  %v4704_v28 = vsub.f32 %v13281_v32, %v4616_v27 }
 0x77f   : > { %v10883_v60 = vadd.f32 %v6402_v29, %v6401_v53  ;;  %v6404_v13 = vpop.f32.mrb[226].mxu0 }
 0x780   : > { %v4781_v57 = vmul.f32 1.442695, %v4703_v8  ;;  %v4783_v54 = vmul.f32 1.442695, %v4704_v28  ;;  %v6405_v5 = vpop.f32.mrb[227].mxu0 }
 0x781   : > { %13383 = vst [vmem:[#allocation156_spill] sm:$0xff] %v10883_v60  ;;  %v10885_v38 = vadd.f32 %v6405_v5, %v6404_v13  ;;  %v4628_v59 = vpop.xlane.xlu1 %4627 }
 0x782   : > { %7264 = vpow2.f32 %v4781_v57  ;;  %v4613_v17 = vpop.xlane.xlu0 %4612  ;;  %v4711_v25 = vsub.f32 %v13283_v9, %v4628_v59  ;;  %v4712_v43 = vsub.f32 %v13284_v42, %v4628_v59 }
 0x783   : > { %13384 = vst [vmem:[#allocation165_spill] sm:$0xff] %v10885_v38  ;;  %7266 = vpow2.f32 %v4783_v54  ;;  %v4701_v50 = vsub.f32 %v13286_v16, %v4613_v17  ;;  %v4702_v32 = vsub.f32 %v13287_v61, %v4613_v17 }
 0x784   : > { %v4797_v36 = vmul.f32 1.442695, %v4711_v25  ;;  %v4799_v48 = vmul.f32 1.442695, %v4712_v43 }
 0x785   : > { %v4777_v44 = vmul.f32 1.442695, %v4701_v50  ;;  %v4779_v53 = vmul.f32 1.442695, %v4702_v32  ;;  %v6407_v27 = vpop.f32.mrb[228].mxu0  ;;  %v4634_v29 = vpop.xlane.xlu1 %4633 }
 0x786   : > { %7268 = vpow2.f32 %v4797_v36  ;;  %v6408_v8 = vpop.f32.mrb[229].mxu0  ;;  %v4619_v28 = vpop.xlane.xlu0 %4618  ;;  %v4715_v13 = vsub.f32 %v13289_v22, %v4634_v29  ;;  %v4716_v9 = vsub.f32 %v13290_v51, %v4634_v29 }
 0x787   : > { %7270 = vpow2.f32 %v4777_v44  ;;  %v10893_v42 = vadd.f32 %v6408_v8, %v6407_v27  ;;  %v4705_v16 = vsub.f32 %v13292_v58, %v4619_v28  ;;  %v4706_v61 = vsub.f32 %v13293_v40, %v4619_v28  ;;  %v6410_v57 = vpop.f32.mrb[230].mxu0 }
 0x788   : > { %7272 = vpow2.f32 %v4779_v53  ;;  %v4805_v54 = vmul.f32 1.442695, %v4715_v13  ;;  %v4807_v5 = vmul.f32 1.442695, %v4716_v9  ;;  %v6411_v59 = vpop.f32.mrb[231].mxu0 }
 0x789   : > { %13385 = vst [vmem:[#allocation166_spill] sm:$0xff] %v10893_v42  ;;  %7274 = vpow2.f32 %v4799_v48  ;;  %v4785_v17 = vmul.f32 1.442695, %v4705_v16  ;;  %v4787_v25 = vmul.f32 1.442695, %v4706_v61  ;;  %v10897_v43 = vadd.f32 %v6411_v59, %v6410_v57  ;;  %v4640_v22 = vpop.xlane.xlu1 %4639 }
 0x78a   : > { %7276 = vpow2.f32 %v4805_v54  ;;  %v4622_v51 = vpop.xlane.xlu0 %4621  ;;  %v4719_v50 = vsub.f32 %v13295_v47, %v4640_v22  ;;  %v4720_v32 = vsub.f32 %v13296_v56, %v4640_v22 }
 0x78b   : > { %13386 = vst [vmem:[#allocation57_spill] sm:$0xff] %v10897_v43  ;;  %7278 = vpow2.f32 %v4785_v17  ;;  %v4707_v58 = vsub.f32 %v13298_v15, %v4622_v51  ;;  %v4708_v40 = vsub.f32 %v13299_v37, %v4622_v51 }
 0x78c   : > { %v10903_v36 = vpop.eup %7264  ;;  %7280 = vpow2.f32 %v4787_v25  ;;  %v4813_v48 = vmul.f32 1.442695, %v4719_v50  ;;  %v4815_v44 = vmul.f32 1.442695, %v4720_v32 }
 0x78d   : > { %v7267_v53 = vpop.eup %7266  ;;  %7282 = vpow2.f32 %v4807_v5  ;;  %v4789_v27 = vmul.f32 1.442695, %v4707_v58  ;;  %v4791_v29 = vmul.f32 1.442695, %v4708_v40  ;;  %v6413_v8 = vpop.f32.mrb[232].mxu0 }
 0x78e   : > { %v4646_v28 = vpop.xlane.xlu1 %4645  ;;  %7284 = vpow2.f32 %v4813_v48  ;;  %v6414_v47 = vpop.f32.mrb[233].mxu0  ;;  %v4902_v37 = vadd.f32 %v7267_v53, %v10903_v36 }
 0x78f   : > { %v4625_v13 = vpop.xlane.xlu0 %4624  ;;  %v4723_v56 = vsub.f32 %v13301_v62, %v4646_v28  ;;  %v4724_v15 = vsub.f32 %v13302_v10, %v4646_v28  ;;  %7286 = vpow2.f32 %v4789_v27  ;;  %v10908_v9 = vadd.f32 %v6414_v47, %v6413_v8  ;;  %v6416_v57 = vpop.f32.mrb[234].mxu0  ;;  %v13389_v47 = vld [vmem:[#allocation110_spill] sm:$0xff] }
 0x790   : > { %v4709_v16 = vsub.f32 %v13304_v55, %v4625_v13  ;;  %v4710_v61 = vsub.f32 %v13305_v52, %v4625_v13  ;;  %v10912_v54 = vpop.eup %7268  ;;  %7288 = vpow2.f32 %v4791_v29  ;;  %v6417_v17 = vpop.f32.mrb[235].mxu0  ;;  %4903 = vadd.xlane.f32.xlu1 %v4902_v37 }
 0x791   : > { %13387 = vst [vmem:[#allocation154_spill] sm:$0xff] %v10908_v9  ;;  %v4821_v5 = vmul.f32 1.442695, %v4723_v56  ;;  %v4823_v59 = vmul.f32 1.442695, %v4724_v15  ;;  %v7271_v62 = vpop.eup %7270  ;;  %7290 = vpow2.f32 %v4815_v44  ;;  %v10914_v22 = vadd.f32 %v6417_v17, %v6416_v57 }
 0x792   : > { %v4793_v10 = vmul.f32 1.442695, %v4709_v16  ;;  %v4795_v25 = vmul.f32 1.442695, %v4710_v61  ;;  %v4652_v51 = vpop.xlane.xlu1 %4651  ;;  %v7273_v50 = vpop.eup %7272  ;;  %v4983_v55 = vpack.c.bf16 %v10903_v36, %v7271_v62 }
 0x793   : > { %13388 = vst [vmem:[#allocation20_spill] sm:$0xff] %v10914_v22  ;;  %7292 = vpow2.f32 %v4821_v5  ;;  %v4631_v52 = vpop.xlane.xlu0 %4630  ;;  %v4727_v32 = vsub.f32 %v13307_v24, %v4652_v51  ;;  %v4728_v58 = vsub.f32 %v13308_v20, %v4652_v51  ;;  %v10919_v40 = vpop.eup %7274  ;;  %v4899_v27 = vadd.f32 %v7273_v50, %v7271_v62 }
 0x794   : > { %7294 = vpow2.f32 %v4793_v10  ;;  %v4713_v48 = vsub.f32 %v13310_v41, %v4631_v52  ;;  %v4714_v44 = vsub.f32 %v13311_v34, %v4631_v52  ;;  %v10923_v29 = vpop.eup %7276  ;;  %v4984_v36 = vpack.c.bf16 %v7267_v53, %v7273_v50  ;;  %3007 = vadd.xlane.f32.xlu1 %v13389_v47 }
 0x795   : > { %7296 = vpow2.f32 %v4795_v25  ;;  %v4829_v8 = vmul.f32 1.442695, %v4727_v32  ;;  %v4831_v28 = vmul.f32 1.442695, %v4728_v58  ;;  %v10926_v13 = vpop.eup %7278  ;;  %v6419_v56 = vpop.f32.mrb[236].mxu0  ;;  %4900 = vadd.xlane.f32.xlu0 %v4899_v27  ;;  %v10930_v34 = vadd.f32 %v10919_v40, %v10912_v54 }
 0x796   : > { %7298 = vpow2.f32 %v4823_v59  ;;  %v4801_v24 = vmul.f32 1.442695, %v4713_v48  ;;  %v4803_v20 = vmul.f32 1.442695, %v4714_v44  ;;  %v4658_v15 = vpop.xlane.xlu1 %4657  ;;  %v7281_v41 = vpop.eup %7280  ;;  %5082 = vmatprep.mubr.bf16.mxu0 %v4984_v36 }
 0x797   : > { %7300 = vpow2.f32 %v4829_v8  ;;  %v6420_v37 = vpop.f32.mrb[237].mxu0  ;;  %v4637_v16 = vpop.xlane.xlu0 %4636  ;;  %v4731_v53 = vsub.f32 %v13313_v2, %v4658_v15  ;;  %v4732_v61 = vsub.f32 %v13314_v21, %v4658_v15  ;;  %5083 = vmatmul.mubr.bf16.gmra.mrb[12].mxu0 %v4983_v55  ;;  %v13391_v2 = vld [vmem:[#allocation114_spill] sm:$0xff]  ;;  %v10944_v21 = vadd.f32 %v7281_v41, %v10926_v13 }
 0x798   : > { %v10934_v57 = vpop.eup %7282  ;;  %7302 = vpow2.f32 %v4801_v24  ;;  %v10936_v5 = vadd.f32 %v6420_v37, %v6419_v56  ;;  %v4717_v59 = vsub.f32 %v13316_v19, %v4637_v16  ;;  %v4718_v17 = vsub.f32 %v13317_v18, %v4637_v16  ;;  %v6422_v62 = vpop.f32.mrb[238].mxu0  ;;  %3013 = vadd.xlane.f32.xlu1 %v13391_v2  ;;  %v13393_v19 = vld [vmem:[#allocation109_spill] sm:$0xff] }
 0x799   : > { %v10940_v10 = vpop.eup %7284  ;;  %7304 = vpow2.f32 %v4803_v20  ;;  %v4837_v25 = vmul.f32 1.442695, %v4731_v53  ;;  %v4839_v51 = vmul.f32 1.442695, %v4732_v61  ;;  %v6423_v50 = vpop.f32.mrb[239].mxu0  ;;  %3004 = vadd.xlane.f32.xlu0 %v13393_v19  ;;  %v13394_v61 = vld [vmem:[#allocation113_spill] sm:$0xff] }
 0x79a   : > { %13390 = vst [vmem:[#allocation170_spill] sm:$0xff] %v10936_v5  ;;  %v7287_v52 = vpop.eup %7286  ;;  %7306 = vpow2.f32 %v4831_v28  ;;  %v4809_v32 = vmul.f32 1.442695, %v4717_v59  ;;  %v4811_v55 = vmul.f32 1.442695, %v4718_v17  ;;  %v10946_v58 = vadd.f32 %v6423_v50, %v6422_v62  ;;  %v4664_v18 = vpop.xlane.xlu1 %4663  ;;  %v13395_v62 = vld [vmem:[#allocation222_spill] sm:$0xff] }
 0x79b   : > { %v7289_v48 = vpop.eup %7288  ;;  %v4985_v44 = vpack.c.bf16 %v7287_v52, %v10926_v13  ;;  %7308 = vpow2.f32 %v4837_v25  ;;  %v4643_v27 = vpop.xlane.xlu0 %4642  ;;  %v4735_v8 = vsub.f32 %v13319_v6, %v4664_v18  ;;  %v4736_v36 = vsub.f32 %v13320_v23, %v4664_v18  ;;  %v13399_v19 = vld [vmem:[#allocation203_spill] sm:$0xff] }
 0x79c   : > { %13392 = vst [vmem:[#allocation158_spill] sm:$0xff] %v10946_v58  ;;  %v10952_v47 = vpop.eup %7290  ;;  %7310 = vpow2.f32 %v4809_v32  ;;  %v4721_v28 = vsub.f32 %v13322_v39, %v4643_v27  ;;  %v4722_v24 = vsub.f32 %v13323_v49, %v4643_v27  ;;  %v4986_v20 = vpack.c.bf16 %v7289_v48, %v7281_v41  ;;  %3958 = vadd.xlane.f32.xlu1 %v10478_v3  ;;  %v13398_v32 = vld [vmem:[#allocation202_spill] sm:$0xff] }
 0x79d   : > { %v10956_v56 = vpop.eup %7292  ;;  %7312 = vpow2.f32 %v4811_v55  ;;  %v4845_v15 = vmul.f32 1.442695, %v4735_v8  ;;  %v4847_v37 = vmul.f32 1.442695, %v4736_v36  ;;  %v4908_v13 = vadd.f32 %v7289_v48, %v7287_v52  ;;  %v6425_v53 = vpop.f32.mrb[240].mxu0  ;;  %3010 = vadd.xlane.f32.xlu0 %v13394_v61  ;;  %v13402_v61 = vld [vmem:[#allocation144_spill] sm:$0xff] }
 0x79e   : > { %v10959_v16 = vpop.eup %7294  ;;  %7314 = vpow2.f32 %v4839_v51  ;;  %v4817_v23 = vmul.f32 1.442695, %v4721_v28  ;;  %v4819_v6 = vmul.f32 1.442695, %v4722_v24  ;;  %5090 = vmatprep.mubr.bf16.mxu0 %v4986_v20  ;;  %v4670_v39 = vpop.xlane.xlu1 %4669  ;;  %v10964_v49 = vadd.f32 %v10934_v57, %v10923_v29  ;;  %v13396_v51 = vld [vmem:[#allocation223_spill] sm:$0xff]  ;;  %v13400_v24 = vld [vmem:[#allocation141_spill] sm:$0xff] }
 0x79f   : > { %v7297_v41 = vpop.eup %7296  ;;  %v4987_v59 = vpack.c.bf16 %v10912_v54, %v10959_v16  ;;  %7316 = vpow2.f32 %v4845_v15  ;;  %v6426_v3 = vpop.f32.mrb[241].mxu0  ;;  %v4739_v25 = vsub.f32 %v13395_v62, %v4670_v39  ;;  %v4740_v50 = vsub.f32 %v13396_v51, %v4670_v39  ;;  %5091 = vmatmul.mubr.bf16.gmra.mrb[16].mxu0 %v4985_v44  ;;  %v13403_v62 = vld [vmem:[#allocation229_spill] sm:$0xff]  ;;  %v13423_v58 = vld [vmem:[#allocation94_spill] sm:$0xff] }
 0x7a0   : > { %v4649_v17 = vpop.xlane.xlu0 %4648  ;;  %v10970_v2 = vpop.eup %7298  ;;  %7318 = vpow2.f32 %v4817_v23  ;;  %v10972_v52 = vadd.f32 %v6426_v3, %v6425_v53  ;;  %3964 = vadd.xlane.f32.xlu1 %v13400_v24  ;;  %v4988_v20 = vpack.c.bf16 %v10919_v40, %v7297_v41  ;;  %v13404_v40 = vld [vmem:[#allocation230_spill] sm:$0xff]  ;;  %v4911_v24 = vadd.f32 %v7297_v41, %v10959_v16 }
 0x7a1   : > { %v4725_v55 = vsub.f32 %v13398_v32, %v4649_v17  ;;  %v4726_v18 = vsub.f32 %v13399_v19, %v4649_v17  ;;  %v6428_v48 = vpop.f32.mrb[242].mxu0  ;;  %v10976_v27 = vpop.eup %7300  ;;  %7320 = vpow2.f32 %v4819_v6  ;;  %v4853_v8 = vmul.f32 1.442695, %v4739_v25  ;;  %3955 = vadd.xlane.f32.xlu0 %v13402_v61 }
 0x7a2   : > { %13397 = vst [vmem:[#allocation160_spill] sm:$0xff] %v10972_v52  ;;  %v4855_v36 = vmul.f32 1.442695, %v4740_v50  ;;  %v6429_v28 = vpop.f32.mrb[243].mxu0  ;;  %v10980_v15 = vpop.eup %7302  ;;  %7322 = vpow2.f32 %v4847_v37  ;;  %5098 = vmatprep.mubr.bf16.mxu0 %v4988_v20  ;;  %v13405_v37 = vld [vmem:[#allocation208_spill] sm:$0xff] }
 0x7a3   : > { %v4825_v23 = vmul.f32 1.442695, %v4725_v55  ;;  %v4827_v44 = vmul.f32 1.442695, %v4726_v18  ;;  %v10982_v53 = vadd.f32 %v6429_v28, %v6428_v48  ;;  %v4676_v39 = vpop.xlane.xlu1 %4675  ;;  %v7305_v3 = vpop.eup %7304  ;;  %7324 = vpow2.f32 %v4853_v8  ;;  %v13406_v55 = vld [vmem:[#allocation209_spill] sm:$0xff] }
 0x7a4   : > { %v4655_v17 = vpop.xlane.xlu0 %4654  ;;  %v4743_v25 = vsub.f32 %v13403_v62, %v4676_v39  ;;  %v4744_v51 = vsub.f32 %v13404_v40, %v4676_v39  ;;  %v10989_v50 = vpop.eup %7306  ;;  %v4990_v18 = vpack.c.bf16 %v10934_v57, %v7305_v3  ;;  %4909 = vadd.xlane.f32.xlu1 %v4908_v13  ;;  %v13407_v62 = vld [vmem:[#allocation145_spill] sm:$0xff] }
 0x7a5   : > { %13401 = vst [vmem:[#allocation174_spill] sm:$0xff] %v10982_v53  ;;  %7326 = vpow2.f32 %v4825_v23  ;;  %v4729_v32 = vsub.f32 %v13405_v37, %v4655_v17  ;;  %v4730_v19 = vsub.f32 %v13406_v55, %v4655_v17  ;;  %v10994_v48 = vpop.eup %7308  ;;  %v6431_v23 = vpop.f32.mrb[244].mxu0  ;;  %3961 = vadd.xlane.f32.xlu0 %v13407_v62  ;;  %v11001_v17 = vadd.f32 %v7305_v3, %v10980_v15  ;;  %v13411_v3 = vld [vmem:[#allocation68_spill] sm:$0xff]  ;;  %v13412_v62 = vld [vmem:[#allocation99_spill] sm:$0xff] }
 0x7a6   : > { %7328 = vpow2.f32 %v4827_v44  ;;  %v4861_v28 = vmul.f32 1.442695, %v4743_v25  ;;  %v4863_v8 = vmul.f32 1.442695, %v4744_v51  ;;  %v10997_v20 = vpop.eup %7310  ;;  %v6432_v13 = vpop.f32.mrb[245].mxu0  ;;  %v13408_v25 = vld [vmem:[#allocation105_spill] sm:$0xff] }
 0x7a7   : > { %7330 = vpow2.f32 %v4855_v36  ;;  %v4833_v61 = vmul.f32 1.442695, %v4729_v32  ;;  %v4835_v39 = vmul.f32 1.442695, %v4730_v19  ;;  %v4682_v40 = vpop.xlane.xlu1 %4681  ;;  %v11003_v57 = vpop.eup %7312  ;;  %v13409_v36 = vld [vmem:[#allocation26_spill] sm:$0xff]  ;;  %v11011_v55 = vadd.f32 %v6432_v13, %v6431_v23  ;;  %5099 = vmatmul.mubr.bf16.gmra.mrb[20].mxu0 %v4987_v59 }
 0x7a8   : > { %7332 = vpow2.f32 %v4861_v28  ;;  %v4661_v41 = vpop.xlane.xlu0 %4660  ;;  %v4747_v51 = vsub.f32 %v13408_v25, %v4682_v40  ;;  %v4748_v37 = vsub.f32 %v13409_v36, %v4682_v40  ;;  %v11009_v32 = vpop.eup %7314  ;;  %5106 = vmatprep.mubr.bf16.mxu0 %v4990_v18  ;;  %4915 = vadd.xlane.f32.xlu1 %v10930_v34 }
 0x7a9   : > { %7334 = vpow2.f32 %v4833_v61  ;;  %13410 = vst [vmem:[#allocation175_spill] sm:$0xff] %v11011_v55  ;;  %v4733_v19 = vsub.f32 %v13411_v3, %v4661_v41  ;;  %v4734_v44 = vsub.f32 %v13412_v62, %v4661_v41  ;;  %v6434_v28 = vpop.f32.mrb[246].mxu0  ;;  %v11018_v6 = vpop.eup %7316  ;;  %v4992_v61 = vpack.c.bf16 %v10952_v47, %v11003_v57  ;;  %4906 = vadd.xlane.f32.xlu0 %v10944_v21  ;;  %v13414_v41 = vld [vmem:[#allocation112_spill] sm:$0xff] }
 0x7aa   : > { %7336 = vpow2.f32 %v4835_v39  ;;  %v4869_v25 = vmul.f32 1.442695, %v4747_v51  ;;  %v4871_v40 = vmul.f32 1.442695, %v4748_v37  ;;  %v6435_v36 = vpop.f32.mrb[247].mxu0  ;;  %v11023_v23 = vpop.eup %7318  ;;  %v13415_v37 = vld [vmem:[#allocation130_spill] sm:$0xff] }
 0x7ab   : > { %7338 = vpow2.f32 %v4863_v8  ;;  %v4841_v54 = vmul.f32 1.442695, %v4733_v19  ;;  %v4843_v16 = vmul.f32 1.442695, %v4734_v44  ;;  %v11025_v59 = vadd.f32 %v6435_v36, %v6434_v28  ;;  %v4688_v13 = vpop.xlane.xlu1 %4687  ;;  %v11028_v39 = vpop.eup %7320  ;;  %v13416_v8 = vld [vmem:[#allocation219_spill] sm:$0xff]  ;;  %v13417_v19 = vld [vmem:[#allocation220_spill] sm:$0xff] }
 0x7ac   : > { %7340 = vpow2.f32 %v4869_v25  ;;  %v4667_v34 = vpop.xlane.xlu0 %4666  ;;  %v4751_v51 = vsub.f32 %v13414_v41, %v4688_v13  ;;  %v4752_v3 = vsub.f32 %v13415_v37, %v4688_v13  ;;  %v11034_v62 = vpop.eup %7322  ;;  %v11045_v13 = vadd.f32 %v10952_v47, %v10940_v10 }
 0x7ad   : > { %13413 = vst [vmem:[#allocation161_spill] sm:$0xff] %v11025_v59  ;;  %7342 = vpow2.f32 %v4841_v54  ;;  %v4737_v44 = vsub.f32 %v13416_v8, %v4667_v34  ;;  %v4738_v28 = vsub.f32 %v13417_v19, %v4667_v34  ;;  %v11040_v36 = vpop.eup %7324  ;;  %v13418_v59 = vld [vmem:[#allocation118_spill] sm:$0xff]  ;;  %v6437_v34 = vpop.f32.mrb[248].mxu0  ;;  %4912 = vadd.xlane.f32.xlu0 %v4911_v24  ;;  %v11065_v24 = vadd.f32 %v11028_v39, %v11023_v23 }
 0x7ae   : > { %7344 = vpow2.f32 %v4843_v16  ;;  %v4877_v18 = vmul.f32 1.442695, %v4751_v51  ;;  %v4879_v25 = vmul.f32 1.442695, %v4752_v3  ;;  %3019 = vadd.xlane.f32.xlu1 %v13418_v59  ;;  %v11053_v16 = vadd.f32 %v11003_v57, %v10997_v20  ;;  %v6438_v47 = vpop.f32.mrb[249].mxu0  ;;  %v13422_v59 = vld [vmem:[#allocation76_spill] sm:$0xff] }
 0x7af   : > { %v11047_v41 = vpop.eup %7326  ;;  %7346 = vpow2.f32 %v4871_v40  ;;  %v4849_v54 = vmul.f32 1.442695, %v4737_v44  ;;  %v4851_v37 = vmul.f32 1.442695, %v4738_v28  ;;  %v11049_v8 = vpop.xlane.xlu1 %2983  ;;  %v11061_v40 = vadd.f32 %v10970_v2, %v10956_v56 }
 0x7b0   : > { %v11055_v51 = vpop.eup %7328  ;;  %7348 = vpow2.f32 %v4877_v18  ;;  %v4673_v3 = vpop.xlane.xlu0 %4672  ;;  %v11069_v57 = vadd.f32 %v6438_v47, %v6437_v34  ;;  %v13420_v19 = vpack.c.bf16 %v10923_v29, %v10980_v15  ;;  %v13421_v18 = vld [vmem:[#allocation74_spill] sm:$0xff]  ;;  %v11083_v34 = vadd.f32 %v10989_v50, %v10976_v27  ;;  %v13425_v47 = vld [vmem:[#allocation117_spill] sm:$0xff] }
 0x7b1   : > { %v11067_v44 = vpop.eup %7330  ;;  %7350 = vpow2.f32 %v4849_v54  ;;  %v4741_v28 = vsub.f32 %v13421_v18, %v4673_v3  ;;  %v4742_v21 = vsub.f32 %v13422_v59, %v4673_v3  ;;  %v6440_v55 = vpop.f32.mrb[250].mxu0  ;;  %v11087_v29 = vadd.f32 %v11055_v51, %v11047_v41  ;;  %3016 = vadd.xlane.f32.xlu0 %v13425_v47 }
 0x7b2   : > { %13419 = vst [vmem:[#allocation162_spill] sm:$0xff] %v11069_v57  ;;  %5107 = vmatmul.mubr.bf16.gmra.mrb[24].mxu0 %v13420_v19  ;;  %v11076_v53 = vpop.eup %7332  ;;  %7352 = vpow2.f32 %v4851_v37  ;;  %v6441_v52 = vpop.f32.mrb[251].mxu0  ;;  %3025 = vadd.xlane.f32.xlu1 %v13423_v58  ;;  %v11100_v54 = vadd.f32 %v11009_v32, %v10994_v48  ;;  %v11121_v22 = vadd.f32 %v11067_v44, %v11040_v36 }
 0x7b3   : > { %5114 = vmatprep.mubr.bf16.mxu0 %v4992_v61  ;;  %v11089_v15 = vpop.eup %7334  ;;  %7354 = vpow2.f32 %v4879_v25  ;;  %v4857_v59 = vmul.f32 1.442695, %v4741_v28  ;;  %v4859_v37 = vmul.f32 1.442695, %v4742_v21  ;;  %v11091_v61 = vadd.f32 %v6441_v52, %v6440_v55  ;;  %v2990_v58 = vpop.xlane.xlu1 %2989  ;;  %v13426_v52 = vld [vmem:[#allocation102_spill] sm:$0xff]  ;;  %v13427_v28 = vld [vmem:[#allocation103_spill] sm:$0xff] }
 0x7b4   : > { %v11094_v3 = vpop.eup %7336  ;;  %v4679_v18 = vpop.xlane.xlu0 %4678  ;;  %v11104_v25 = vadd.f32 %v11034_v62, %v11018_v6  ;;  %v13433_v43 = vpack.c.bf16 %v10970_v2, %v11028_v39  ;;  %v13436_v39 = vld [vmem:[#allocation131_spill] sm:$0xff] }
 0x7b5   : > { %13424 = vst [vmem:[#allocation198_spill] sm:$0xff] %v11091_v61  ;;  %v11106_v21 = vpop.eup %7338  ;;  %7356 = vpow2.f32 %v4857_v59  ;;  %v4745_v55 = vsub.f32 %v13426_v52, %v4679_v18  ;;  %v4746_v47 = vsub.f32 %v13427_v28, %v4679_v18  ;;  %v13428_v61 = vld [vmem:[#allocation234_spill] sm:$0xff]  ;;  %v11117_v5 = vadd.f32 %v11094_v3, %v11089_v15  ;;  %v6443_v57 = vpop.f32.mrb[252].mxu0 }
 0x7b6   : > { %v11112_v19 = vpop.eup %7340  ;;  %7358 = vpow2.f32 %v4859_v37  ;;  %3970 = vadd.xlane.f32.xlu1 %v13428_v61  ;;  %v11125_v59 = vadd.f32 %v11106_v21, %v11076_v53  ;;  %v13429_v37 = vld [vmem:[#allocation123_spill] sm:$0xff]  ;;  %v6444_v42 = vpop.f32.mrb[253].mxu0 }
 0x7b7   : > { %v11127_v18 = vpop.eup %7342  ;;  %v4865_v52 = vmul.f32 1.442695, %v4745_v55  ;;  %v4867_v28 = vmul.f32 1.442695, %v4746_v47  ;;  %3022 = vadd.xlane.f32.xlu0 %v13429_v37  ;;  %v3935_v61 = vpop.xlane.xlu1 %3934  ;;  %v11136_v31 = vadd.f32 %v6444_v42, %v6443_v57  ;;  %v13431_v55 = vpack.c.bf16 %v10940_v10, %v10997_v20  ;;  %v13432_v37 = vld [vmem:[#allocation111_spill] sm:$0xff] }
 0x7b8   : > { %v11130_v9 = vpop.eup %7344  ;;  %v4685_v38 = vpop.xlane.xlu0 %4684 }
 0x7b9   : > { %v11134_v60 = vpop.eup %7346  ;;  %7360 = vpow2.f32 %v4865_v52  ;;  %13430 = vst [vmem:[#allocation199_spill] sm:$0xff] %v11136_v31  ;;  %v4749_v47 = vsub.f32 %v13360_v12, %v4685_v38  ;;  %v4750_v7 = vsub.f32 %v13432_v37, %v4685_v38  ;;  %v6446_v4 = vpop.f32.mrb[254].mxu0  ;;  %v13434_v52 = vld [vmem:[#allocation108_spill] sm:$0xff]  ;;  %v11153_v10 = vadd.f32 %v11130_v9, %v11127_v18  ;;  %v13445_v31 = vld [vmem:[#allocation190_spill] sm:$0xff] }
 0x7ba   : > { %5115 = vmatmul.mubr.bf16.gmra.mrb[28].mxu0 %v13431_v55  ;;  %v11143_v11 = vpop.eup %7348  ;;  %7362 = vpow2.f32 %v4867_v28  ;;  %v6447_v0 = vpop.f32.mrb[255].mxu0  ;;  %3976 = vadd.xlane.f32.xlu1 %v13434_v52  ;;  %v11157_v12 = vadd.f32 %v11134_v60, %v11112_v19 }
 0x7bb   : > { %5122 = vmatprep.mubr.bf16.mxu0 %v13433_v43  ;;  %v11159_v38 = vpop.eup %7350  ;;  %7364 = vrcp.f32 %v11049_v8  ;;  %v4873_v2 = vmul.f32 1.442695, %v4749_v47  ;;  %v4875_v43 = vmul.f32 1.442695, %v4750_v7  ;;  %v11162_v20 = vadd.f32 %v6447_v0, %v6446_v4  ;;  %3967 = vadd.xlane.f32.xlu0 %v13436_v39  ;;  %v3941_v57 = vpop.xlane.xlu1 %3940 }
 0x7bc   : > { %v11165_v28 = vpop.eup %7352  ;;  %7366 = vrcp.f32 %v2990_v58  ;;  %v2981_v37 = vpop.xlane.xlu0 %2980  ;;  %v13437_v58 = vld [vmem:[#allocation116_spill] sm:$0xff] }
 0x7bd   : > { %13435 = vst [vmem:[#allocation54_spill] sm:$0xff] %v11162_v20  ;;  %v11169_v52 = vpop.eup %7354  ;;  %7368 = vpow2.f32 %v4873_v2  ;;  %v11175_v0 = vadd.f32 %v11165_v28, %v11159_v38 }
 0x7be   : > { %7370 = vpow2.f32 %v4875_v43  ;;  %4921 = vadd.xlane.f32.xlu1 %v10964_v49  ;;  %v11180_v4 = vadd.f32 %v11169_v52, %v11143_v11  ;;  %v13438_v49 = vpack.c.bf16 %v10956_v56, %v11023_v23 }
 0x7bf   : > { %v11182_v7 = vpop.eup %7356  ;;  %7372 = vrcp.f32 %v2981_v37  ;;  %3973 = vadd.xlane.f32.xlu0 %v13437_v58  ;;  %v11185_v47 = vpop.xlane.xlu1 %4885  ;;  %v13439_v58 = vpack.c.bf16 %v10989_v50, %v11055_v51  ;;  %v13442_v50 = vpack.c.bf16 %v10976_v27, %v11047_v41  ;;  %v13447_v27 = vld [vmem:[#allocation191_spill] sm:$0xff] }
 0x7c0   : > { %v11187_v2 = vpop.eup %7358  ;;  %v2987_v55 = vpop.xlane.xlu0 %2986 }
 0x7c1   : > { %7374 = vrcp.f32 %v2987_v55  ;;  %v11198_v37 = vadd.f32 %v11187_v2, %v11182_v7 }
 0x7c2   : > { %5123 = vmatmul.mubr.bf16.gmra.mrb[32].mxu0 %v13438_v49  ;;  %4927 = vadd.xlane.f32.xlu1 %v11045_v13  ;;  %7376 = vrcp.f32 %v3935_v61  ;;  %v13441_v61 = vld [vmem:[#allocation142_spill] sm:$0xff] }
 0x7c3   : > { %5130 = vmatprep.mubr.bf16.mxu0 %v13439_v58  ;;  %v11204_v39 = vpop.eup %7360  ;;  %4918 = vadd.xlane.f32.xlu0 %v11001_v17  ;;  %v11211_v49 = vpop.xlane.xlu1 %4891 }
 0x7c4   : > { %v11207_v56 = vpop.eup %7362  ;;  %v3932_v55 = vpop.xlane.xlu0 %3931  ;;  %13440 = vst [vmem:[#allocation164_spill] sm:$0xff] %v11211_v49 }
 0x7c5   : > { %v7365_v43 = vpop.eup %7364  ;;  %7378 = vrcp.f32 %v3932_v55  ;;  %v11217_v13 = vadd.f32 %v11207_v56, %v11204_v39  ;;  %v13444_v55 = vld [vmem:[#allocation176_spill] sm:$0xff] }
 0x7c6   : > { %v7367_v51 = vpop.eup %7366  ;;  %3031 = vadd.xlane.f32.xlu1 %v13441_v61  ;;  %7380 = vrcp.f32 %v3941_v57  ;;  %v11244_v41 = vmul.f32 %v7365_v43, %v13447_v27 }
 0x7c7   : > { %v11220_v17 = vpop.eup %7368  ;;  %4924 = vadd.xlane.f32.xlu0 %v11053_v16  ;;  %v13443_v16 = vpack.c.bf16 %v11009_v32, %v11094_v3  ;;  %v2996_v42 = vpop.xlane.xlu1 %2995  ;;  %v11253_v32 = vmul.f32 %v7367_v51, %v13450_v33  ;;  %v13454_v33 = vld [vmem:[#allocation38_spill] sm:$0xff]  ;;  %v13455_v3 = vpack.c.bf16 %v10994_v48, %v11089_v15 }
 0x7c8   : > { %v11223_v58 = vpop.eup %7370  ;;  %v3938_v23 = vpop.xlane.xlu0 %3937 }
 0x7c9   : > { %v7373_v8 = vpop.eup %7372  ;;  %7382 = vrcp.f32 %v3938_v23  ;;  %v11234_v57 = vadd.f32 %v11223_v58, %v11220_v17 }
 0x7ca   : > { %5131 = vmatmul.mubr.bf16.gmra.mrb[36].mxu0 %v13442_v50  ;;  %3037 = vadd.xlane.f32.xlu1 %v13444_v55  ;;  %v11241_v20 = vmul.f32 %v7373_v8, %v13445_v31  ;;  %v13448_v50 = vld [vmem:[#allocation148_spill] sm:$0xff]  ;;  %v13451_v31 = vld [vmem:[#allocation146_spill] sm:$0xff]  ;;  %v13457_v8 = vld [vmem:[#allocation115_spill] sm:$0xff]  ;;  %7384 = vrcp.f32 %v2996_v42 }
 0x7cb   : > { %5138 = vmatprep.mubr.bf16.mxu0 %v13443_v16  ;;  %v7375_v23 = vpop.eup %7374  ;;  %3028 = vadd.xlane.f32.xlu0 %v13448_v50  ;;  %v13452_v16 = vld [vmem:[#allocation152_spill] sm:$0xff]  ;;  %v3002_v27 = vpop.xlane.xlu1 %3001 }
 0x7cc   : > { %13446 = vst [vmem:[#allocation204_spill] sm:$0xff] %v11241_v20  ;;  %v11247_v61 = vpop.xlane.xlu0 %4882  ;;  %v11250_v35 = vmul.f32 %v7375_v23, %v13449_v46  ;;  %v7377_v55 = vpop.eup %7376  ;;  %v13453_v46 = vld [vmem:[#allocation133_spill] sm:$0xff] }
 0x7cd   : > { %v11267_v51 = vmul.f32 %v7377_v55, %v13454_v33  ;;  %v13466_v33 = vpack.c.bf16 %v11106_v21, %v11187_v2  ;;  %v13544_v21 = vld [vmem:[#allocation166_spill] sm:$0xff] }
 0x7ce   : > { %3982 = vadd.xlane.f32.xlu1 %v13451_v31  ;;  %v13456_v31 = vpack.c.bf16 %v11034_v62, %v11130_v9  ;;  %v13459_v62 = vld [vmem:[#allocation25_spill] sm:$0xff] }
 0x7cf   : > { %v7379_v43 = vpop.eup %7378  ;;  %3034 = vadd.xlane.f32.xlu0 %v13452_v16  ;;  %v3947_v15 = vpop.xlane.xlu1 %3946 }
 0x7d0   : > { %v11261_v50 = vpop.xlane.xlu0 %4888  ;;  %v11264_v23 = vmul.f32 %v7379_v43, %v13453_v46  ;;  %v7381_v49 = vpop.eup %7380  ;;  %v13458_v43 = vld [vmem:[#allocation119_spill] sm:$0xff] }
 0x7d1   : > { %v11283_v48 = vmul.f32 %v7381_v49, %v10824_v26  ;;  %v13462_v49 = vld [vmem:[#allocation179_spill] sm:$0xff] }
 0x7d2   : > { %5139 = vmatmul.mubr.bf16.gmra.mrb[40].mxu0 %v13455_v3  ;;  %3988 = vadd.xlane.f32.xlu1 %v13457_v8  ;;  %v4300_v16 = vpack.c.bf16 %v11267_v51, %v11264_v23  ;;  %v13460_v3 = vpack.c.bf16 %v11018_v6, %v11127_v18  ;;  %v13463_v18 = vld [vmem:[#allocation65_spill] sm:$0xff] }
 0x7d3   : > { %5146 = vmatprep.mubr.bf16.mxu0 %v13456_v31  ;;  %v7383_v20 = vpop.eup %7382  ;;  %3979 = vadd.xlane.f32.xlu0 %v13458_v43  ;;  %v3953_v26 = vpop.xlane.xlu1 %3952  ;;  %v13467_v31 = vld [vmem:[#allocation36_spill] sm:$0xff] }
 0x7d4   : > { %v2993_v55 = vpop.xlane.xlu0 %2992  ;;  %v11280_v46 = vmul.f32 %v7383_v20, %v10822_v14  ;;  %v13461_v14 = vpack.c.bf16 %v11067_v44, %v11165_v28  ;;  %v7385_v20 = vpop.eup %7384  ;;  %v13464_v44 = vld [vmem:[#allocation98_spill] sm:$0xff] }
 0x7d5   : > { %7386 = vrcp.f32 %v2993_v55  ;;  %v11303_v28 = vmul.f32 %v7385_v20, %v13464_v44  ;;  %v13468_v55 = vld [vmem:[#allocation181_spill] sm:$0xff] }
 0x7d6   : > { %4933 = vadd.xlane.f32.xlu1 %v11061_v40  ;;  %v4301_v9 = vpack.c.bf16 %v11283_v48, %v11280_v46  ;;  %7388 = vrcp.f32 %v3002_v27 }
 0x7d7   : > { %3985 = vadd.xlane.f32.xlu0 %v13459_v62 }
 0x7d8   : > { %v2999_v42 = vpop.xlane.xlu0 %2998 }
 0x7d9   : > { %7390 = vrcp.f32 %v2999_v42  ;;  %v13470_v42 = vld [vmem:[#allocation201_spill] sm:$0xff] }
 0x7da   : > { %5147 = vmatmul.mubr.bf16.gmra.mrb[44].mxu0 %v13460_v3  ;;  %4939 = vadd.xlane.f32.xlu1 %v11083_v34  ;;  %7392 = vrcp.f32 %v3947_v15  ;;  %v13469_v15 = vld [vmem:[#allocation200_spill] sm:$0xff] }
 0x7db   : > { %5154 = vmatprep.mubr.bf16.mxu0 %v13461_v14  ;;  %4930 = vadd.xlane.f32.xlu0 %v11065_v24  ;;  %v13465_v24 = vpack.c.bf16 %v11040_v36, %v11159_v38  ;;  %v13471_v38 = vld [vmem:[#allocation37_spill] sm:$0xff]  ;;  %v13472_v14 = vld [vmem:[#allocation183_spill] sm:$0xff] }
 0x7dc   : > { %v3944_v40 = vpop.xlane.xlu0 %3943 }
 0x7dd   : > { %7394 = vrcp.f32 %v3944_v40 }
 0x7de   : > { %3043 = vadd.xlane.f32.xlu1 %v13462_v49  ;;  %7396 = vrcp.f32 %v3953_v26  ;;  %v13473_v49 = vpack.c.bf16 %v11076_v53, %v11182_v7  ;;  %v13477_v53 = vld [vmem:[#allocation125_spill] sm:$0xff]  ;;  %v13478_v7 = vpack.c.bf16 %v11112_v19, %v11204_v39  ;;  %v13483_v19 = vld [vmem:[#allocation192_spill] sm:$0xff]  ;;  %v13484_v39 = vld [vmem:[#allocation90_spill] sm:$0xff] }
 0x7df   : > { %v7387_v8 = vpop.eup %7386  ;;  %4936 = vadd.xlane.f32.xlu0 %v11087_v29 }
 0x7e0   : > { %v3950_v6 = vpop.xlane.xlu0 %3949  ;;  %v11300_v27 = vmul.f32 %v7387_v8, %v13463_v18  ;;  %v7389_v34 = vpop.eup %7388  ;;  %v13474_v8 = vpack.c.bf16 %v11134_v60, %v11207_v56  ;;  %v13479_v56 = vpack.c.bf16 %v11169_v52, %v11223_v58  ;;  %v13485_v52 = vld [vmem:[#allocation193_spill] sm:$0xff]  ;;  %v13486_v58 = vld [vmem:[#allocation124_spill] sm:$0xff] }
 0x7e1   : > { %7398 = vrcp.f32 %v3950_v6  ;;  %v11319_v3 = vmul.f32 %v7389_v34, %v13470_v42  ;;  %v13475_v6 = vld [vmem:[#allocation120_spill] sm:$0xff] }
 0x7e2   : > { %5155 = vmatmul.mubr.bf16.gmra.mrb[48].mxu0 %v13465_v24  ;;  %3049 = vadd.xlane.f32.xlu1 %v13467_v31  ;;  %v13492_v24 = vld [vmem:[#allocation135_spill] sm:$0xff]  ;;  %v13494_v31 = vld [vmem:[#allocation82_spill] sm:$0xff] }
 0x7e3   : > { %5162 = vmatprep.mubr.bf16.mxu0 %v13466_v33  ;;  %v7391_v43 = vpop.eup %7390  ;;  %3040 = vadd.xlane.f32.xlu0 %v13468_v55  ;;  %v13493_v33 = vld [vmem:[#allocation218_spill] sm:$0xff] }
 0x7e4   : > { %v11316_v62 = vmul.f32 %v7391_v43, %v13469_v15  ;;  %v7393_v36 = vpop.eup %7392  ;;  %v13495_v43 = vld [vmem:[#allocation132_spill] sm:$0xff] }
 0x7e5   : > { %v11329_v40 = vmul.f32 %v7393_v36, %v10832_v45  ;;  %v13498_v15 = vld [vmem:[#allocation128_spill] sm:$0xff] }
 0x7e6   : > { %3994 = vadd.xlane.f32.xlu1 %v13471_v38  ;;  %v13499_v38 = vld [vmem:[#allocation84_spill] sm:$0xff] }
 0x7e7   : > { %v7395_v2 = vpop.eup %7394  ;;  %3046 = vadd.xlane.f32.xlu0 %v13472_v14 }
 0x7e8   : > { %v11326_v26 = vmul.f32 %v7395_v2, %v10830_v63  ;;  %v7397_v20 = vpop.eup %7396  ;;  %v13476_v63 = vld [vmem:[#allocation91_spill] sm:$0xff] }
 0x7e9   : > { %v11345_v34 = vmul.f32 %v7397_v20, %v10854_v1  ;;  %v13481_v1 = vpack.c.bf16 %v11143_v11, %v11220_v17  ;;  %v13489_v11 = vld [vmem:[#allocation197_spill] sm:$0xff]  ;;  %v13491_v17 = vld [vmem:[#allocation196_spill] sm:$0xff]  ;;  %v13500_v20 = vld [vmem:[#allocation83_spill] sm:$0xff] }
 0x7ea   : > { %5163 = vmatmul.mubr.bf16.gmra.mrb[52].mxu0 %v13473_v49  ;;  %4000 = vadd.xlane.f32.xlu1 %v13475_v6 }
 0x7eb   : > { %5170 = vmatprep.mubr.bf16.mxu0 %v13474_v8  ;;  %v7399_v44 = vpop.eup %7398  ;;  %3991 = vadd.xlane.f32.xlu0 %v13476_v63  ;;  %v13501_v8 = vld [vmem:[#allocation86_spill] sm:$0xff] }
 0x7ec   : > { %v11342_v45 = vmul.f32 %v7399_v44, %v10852_v30  ;;  %v13480_v30 = vld [vmem:[#allocation189_spill] sm:$0xff] }
 0x7ee   : > { %4945 = vadd.xlane.f32.xlu1 %v11100_v54  ;;  %v13482_v54 = vld [vmem:[#allocation215_spill] sm:$0xff] }
 0x7ef   : > { %3997 = vadd.xlane.f32.xlu0 %v13477_v53  ;;  %v13503_v53 = vld [vmem:[#allocation85_spill] sm:$0xff] }
 0x7f2   : > { %5171 = vmatmul.mubr.bf16.gmra.mrb[56].mxu0 %v13478_v7  ;;  %4951 = vadd.xlane.f32.xlu1 %v11104_v25  ;;  %v13487_v25 = vld [vmem:[#allocation136_spill] sm:$0xff] }
 0x7f3   : > { %5178 = vmatprep.mubr.bf16.mxu0 %v13479_v56  ;;  %4942 = vadd.xlane.f32.xlu0 %v11117_v5  ;;  %v13488_v5 = vld [vmem:[#allocation129_spill] sm:$0xff]  ;;  %v13504_v56 = vld [vmem:[#allocation206_spill] sm:$0xff] }
 0x7f6   : > { %3055 = vadd.xlane.f32.xlu1 %v13480_v30 }
 0x7f7   : > { %4948 = vadd.xlane.f32.xlu0 %v11153_v10  ;;  %v13490_v10 = vld [vmem:[#allocation217_spill] sm:$0xff] }
 0x7fa   : > { %5179 = vmatmul.mubr.bf16.gmra.mrb[60].mxu0 %v13481_v1  ;;  %3061 = vadd.xlane.f32.xlu1 %v13482_v54  ;;  %v13505_v1 = vld [vmem:[#allocation207_spill] sm:$0xff] }
 0x7fb   : > { %3052 = vadd.xlane.f32.xlu0 %v13483_v19  ;;  %v13506_v19 = vld [vmem:[#allocation40_spill] sm:$0xff] }
 0x7fe   : > { %4006 = vadd.xlane.f32.xlu1 %v13484_v39 }
 0x7ff   : > { %3058 = vadd.xlane.f32.xlu0 %v13485_v52 }
 0x802   : > { %4012 = vadd.xlane.f32.xlu1 %v13486_v58  ;;  %v13507_v58 = vld [vmem:[#allocation87_spill] sm:$0xff] }
 0x803   : > { %4003 = vadd.xlane.f32.xlu0 %v13487_v25 }
 0x806   : > { %4957 = vadd.xlane.f32.xlu1 %v11121_v22  ;;  %v11381_v22 = vpop.xlane.xlu1 %4897 }
 0x807   : > { %4009 = vadd.xlane.f32.xlu0 %v13488_v5 }
 0x80a   : > { %4963 = vadd.xlane.f32.xlu1 %v11125_v59  ;;  %v13496_v59 = vld [vmem:[#allocation23_spill] sm:$0xff] }
 0x80b   : > { %4954 = vadd.xlane.f32.xlu0 %v11175_v0  ;;  %v13497_v0 = vld [vmem:[#allocation81_spill] sm:$0xff] }
 0x80e   : > { %3067 = vadd.xlane.f32.xlu1 %v13489_v11 }
 0x80f   : > { %4960 = vadd.xlane.f32.xlu0 %v11198_v37  ;;  %v11388_v37 = vpop.xlane.xlu0 %4894 }
 0x812   : > { %3073 = vadd.xlane.f32.xlu1 %v13490_v10  ;;  %v13508_v10 = vld [vmem:[#allocation164_spill] sm:$0xff] }
 0x813   : > { %3064 = vadd.xlane.f32.xlu0 %v13491_v17 }
 0x816   : > { %4018 = vadd.xlane.f32.xlu1 %v13492_v24 }
 0x817   : > { %3070 = vadd.xlane.f32.xlu0 %v13493_v33 }
 0x81a   : > { %2017 = vadd.xlane.f32.xlu1 %v13494_v31  ;;  %v13509_v31 = vld [vmem:[#allocation212_spill] sm:$0xff] }
 0x81b   : > { %4015 = vadd.xlane.f32.xlu0 %v13495_v43 }
 0x81d   : > { %v11386_v55 = vpop.xlane.xlu1 %4903 }
 0x81e   : > { %4024 = vadd.xlane.f32.xlu1 %v13496_v59  ;;  %v13510_v59 = vld [vmem:[#allocation213_spill] sm:$0xff] }
 0x81f   : > { %2014 = vadd.xlane.f32.xlu0 %v13497_v0 }
 0x821   : > { %v3008_v42 = vpop.xlane.xlu1 %3007 }
 0x822   : > { %4969 = vadd.xlane.f32.xlu1 %v11157_v12  ;;  %v11392_v36 = vpop.xlane.xlu0 %4900  ;;  %7400 = vrcp.f32 %v3008_v42 }
 0x823   : > { %4021 = vadd.xlane.f32.xlu0 %v13498_v15 }
 0x825   : > { %v3014_v2 = vpop.xlane.xlu1 %3013 }
 0x826   : > { %2023 = vadd.xlane.f32.xlu1 %v13499_v38  ;;  %v3005_v14 = vpop.xlane.xlu0 %3004 }
 0x827   : > { %4966 = vadd.xlane.f32.xlu0 %v11217_v13  ;;  %7402 = vrcp.f32 %v3005_v14  ;;  %v13511_v14 = vld [vmem:[#allocation42_spill] sm:$0xff] }
 0x828   : > { %7404 = vrcp.f32 %v3014_v2 }
 0x829   : > { %v3959_v49 = vpop.xlane.xlu1 %3958 }
 0x82a   : > { %4975 = vadd.xlane.f32.xlu1 %v11180_v4  ;;  %v3011_v12 = vpop.xlane.xlu0 %3010  ;;  %v13502_v4 = vld [vmem:[#allocation41_spill] sm:$0xff] }
 0x82b   : > { %2020 = vadd.xlane.f32.xlu0 %v13500_v20  ;;  %7406 = vrcp.f32 %v3011_v12  ;;  %v13512_v12 = vld [vmem:[#allocation92_spill] sm:$0xff] }
 0x82c   : > { %7408 = vrcp.f32 %v11185_v47  ;;  %v7401_v44 = vpop.eup %7400 }
 0x82d   : > { %7410 = vrcp.f32 %v3959_v49  ;;  %v3965_v6 = vpop.xlane.xlu1 %3964 }
 0x82e   : > { %2029 = vadd.xlane.f32.xlu1 %v13501_v8  ;;  %7412 = vrcp.f32 %v11247_v61  ;;  %v3956_v13 = vpop.xlane.xlu0 %3955 }
 0x82f   : > { %4972 = vadd.xlane.f32.xlu0 %v11234_v57  ;;  %7414 = vrcp.f32 %v3956_v13  ;;  %v11410_v57 = vmul.f32 %v7401_v44, %v13505_v1 }
 0x830   : > { %7416 = vrcp.f32 %v3965_v6 }
 0x831   : > { %v7403_v63 = vpop.eup %7402  ;;  %v11404_v7 = vpop.xlane.xlu1 %4909 }
 0x832   : > { %2035 = vadd.xlane.f32.xlu1 %v13502_v4  ;;  %v3962_v47 = vpop.xlane.xlu0 %3961  ;;  %v11407_v30 = vmul.f32 %v7403_v63, %v13504_v56  ;;  %v7405_v54 = vpop.eup %7404  ;;  %v13513_v4 = vld [vmem:[#allocation149_spill] sm:$0xff]  ;;  %v13514_v63 = vld [vmem:[#allocation48_spill] sm:$0xff] }
 0x833   : > { %2026 = vadd.xlane.f32.xlu0 %v13503_v53  ;;  %7418 = vrcp.f32 %v3962_v47  ;;  %v11425_v0 = vmul.f32 %v7405_v54, %v13510_v59  ;;  %v13515_v54 = vld [vmem:[#allocation97_spill] sm:$0xff] }
 0x834   : > { %v6465_v61 = vpop.f32.mrb[0].mxu0  ;;  %7420 = vrcp.f32 %v13508_v10 }
 0x835   : > { %v7407_v52 = vpop.eup %7406  ;;  %v6466_v25 = vpop.f32.mrb[1].mxu0  ;;  %7422 = vrcp.f32 %v11261_v50 }
 0x836   : > { %2041 = vadd.xlane.f32.xlu1 %v13506_v19  ;;  %v11416_v5 = vpop.xlane.xlu1 %4915  ;;  %v7409_v11 = vpop.eup %7408  ;;  %v6467_v24 = vadd.f32 %v6466_v25, %v6465_v61  ;;  %v11422_v43 = vmul.f32 %v7407_v52, %v13509_v31  ;;  %7424 = vrcp.f32 %v11388_v37  ;;  %v13516_v52 = vld [vmem:[#allocation95_spill] sm:$0xff] }
 0x837   : > { %2032 = vadd.xlane.f32.xlu0 %v13507_v58  ;;  %v11419_v17 = vpop.xlane.xlu0 %4906  ;;  %v6468_v33 = vpop.f32.mrb[2].mxu0  ;;  %v13518_v31 = vld [vmem:[#allocation151_spill] sm:$0xff] }
 0x838   : > { %v7411_v15 = vpop.eup %7410  ;;  %v6469_v42 = vpop.f32.mrb[3].mxu0 }
 0x839   : > { %v7413_v38 = vpop.eup %7412  ;;  %v6470_v2 = vadd.f32 %v6469_v42, %v6468_v33  ;;  %v11442_v53 = vmul.f32 %v7411_v15, %v13514_v63 }
 0x83a   : > { %2047 = vadd.xlane.f32.xlu1 %v13511_v14  ;;  %v7415_v49 = vpop.eup %7414  ;;  %v11432_v6 = vmul.f32 %v7413_v38, %v6467_v24  ;;  %v13517_v24 = vld [vmem:[#allocation49_spill] sm:$0xff]  ;;  %v13527_v14 = vld [vmem:[#allocation39_spill] sm:$0xff] }
 0x83b   : > { %2038 = vadd.xlane.f32.xlu0 %v13512_v12  ;;  %v3020_v8 = vpop.xlane.xlu1 %3019  ;;  %v11434_v13 = vmul.f32 %v7409_v11, %v6470_v2  ;;  %v11436_v44 = vpop.xlane.xlu0 %4912  ;;  %v11439_v50 = vmul.f32 %v7415_v49, %v13513_v4  ;;  %v13519_v2 = vld [vmem:[#allocation45_spill] sm:$0xff] }
 0x83c   : > { %v7417_v47 = vpop.eup %7416  ;;  %v6471_v1 = vpop.f32.mrb[4].mxu0  ;;  %7426 = vrcp.f32 %v3020_v8 }
 0x83d   : > { %v5251_v56 = vpack.c.bf16 %v11434_v13, %v11432_v6  ;;  %v7419_v19 = vpop.eup %7418  ;;  %v6472_v58 = vpop.f32.mrb[5].mxu0  ;;  %7428 = vrcp.f32 %v11381_v22  ;;  %v11456_v59 = vmul.f32 %v7417_v47, %v13518_v31  ;;  %v13520_v22 = vld [vmem:[#allocation96_spill] sm:$0xff] }
 0x83e   : > { %2053 = vadd.xlane.f32.xlu1 %v13515_v54  ;;  %v6473_v10 = vadd.f32 %v6472_v58, %v6471_v1  ;;  %v6474_v37 = vpop.f32.mrb[6].mxu0  ;;  %v11453_v33 = vmul.f32 %v7419_v19, %v13517_v24  ;;  %v7421_v42 = vpop.eup %7420  ;;  %v13521_v54 = vld [vmem:[#allocation44_spill] sm:$0xff] }
 0x83f   : > { %2044 = vadd.xlane.f32.xlu0 %v13516_v52  ;;  %v3026_v25 = vpop.xlane.xlu1 %3025  ;;  %v3017_v11 = vpop.xlane.xlu0 %3016 }
 0x840   : > { %7430 = vrcp.f32 %v3017_v11  ;;  %v6475_v15 = vpop.f32.mrb[7].mxu0  ;;  %v7423_v49 = vpop.eup %7422 }
 0x841   : > { %v6476_v38 = vadd.f32 %v6475_v15, %v6474_v37  ;;  %7432 = vrcp.f32 %v3026_v25  ;;  %v11462_v8 = vmul.f32 %v7423_v49, %v6473_v10  ;;  %v7425_v58 = vpop.eup %7424 }
 0x842   : > { %2059 = vadd.xlane.f32.xlu1 %v13519_v2 }
 0x843   : > { %2050 = vadd.xlane.f32.xlu0 %v13520_v22  ;;  %v3971_v12 = vpop.xlane.xlu1 %3970  ;;  %v11464_v4 = vmul.f32 %v7421_v42, %v6476_v38 }
 0x844   : > { %v3023_v63 = vpop.xlane.xlu0 %3022  ;;  %v6477_v1 = vpop.f32.mrb[8].mxu0 }
 0x845   : > { %7434 = vrcp.f32 %v3023_v63  ;;  %v6478_v19 = vpop.f32.mrb[9].mxu0 }
 0x846   : > { %7436 = vrcp.f32 %v3971_v12  ;;  %v6479_v11 = vadd.f32 %v6478_v19, %v6477_v1  ;;  %v6480_v37 = vpop.f32.mrb[10].mxu0  ;;  %v7427_v24 = vpop.eup %7426  ;;  %v13522_v12 = vld [vmem:[#allocation214_spill] sm:$0xff] }
 0x847   : > { %2056 = vadd.xlane.f32.xlu0 %v13521_v54  ;;  %v3977_v52 = vpop.xlane.xlu1 %3976  ;;  %v6481_v10 = vpop.f32.mrb[11].mxu0  ;;  %v13523_v54 = vld [vmem:[#allocation216_spill] sm:$0xff] }
 0x848   : > { %v3968_v25 = vpop.xlane.xlu0 %3967  ;;  %v7429_v31 = vpop.eup %7428  ;;  %v6482_v15 = vadd.f32 %v6481_v10, %v6480_v37  ;;  %v11471_v2 = vmul.f32 %v7425_v58, %v6479_v11  ;;  %v11479_v1 = vmul.f32 %v7427_v24, %v13523_v54  ;;  %v13524_v10 = vld [vmem:[#allocation221_spill] sm:$0xff]  ;;  %v13526_v54 = vpack.c.bf16 %v11253_v32, %v11250_v35 }
 0x849   : > { %7438 = vrcp.f32 %v3968_v25 }
 0x84a   : > { %v7431_v42 = vpop.eup %7430  ;;  %7440 = vrcp.f32 %v3977_v52  ;;  %v11473_v49 = vmul.f32 %v7429_v31, %v6482_v15  ;;  %v13525_v15 = vld [vmem:[#allocation224_spill] sm:$0xff] }
 0x84b   : > { %v11469_v38 = vpop.xlane.xlu1 %4921  ;;  %v11476_v63 = vmul.f32 %v7431_v42, %v13522_v12  ;;  %v7433_v19 = vpop.eup %7432 }
 0x84c   : > { %v3974_v22 = vpop.xlane.xlu0 %3973  ;;  %v11493_v42 = vmul.f32 %v7433_v19, %v13525_v15  ;;  %v13540_v15 = vld [vmem:[#allocation156_spill] sm:$0xff] }
 0x84d   : > { %7442 = vrcp.f32 %v3974_v22 }
 0x84f   : > { %v7435_v37 = vpop.eup %7434  ;;  %v11485_v58 = vpop.xlane.xlu1 %4927 }
 0x850   : > { %v11487_v11 = vpop.xlane.xlu0 %4918  ;;  %v11490_v31 = vmul.f32 %v7435_v37, %v13524_v10  ;;  %v7437_v24 = vpop.eup %7436  ;;  %v13528_v37 = vld [vmem:[#allocation30_spill] sm:$0xff] }
 0x851   : > { %v11507_v10 = vmul.f32 %v7437_v24, %v13528_v37 }
 0x853   : > { %v7439_v12 = vpop.eup %7438  ;;  %5285 = vrot.lane.b32.xlu1 %v13526_v54, %s7839_s12  ;;  %v3032_v52 = vpop.xlane.xlu1 %3031  ;;  %v13529_v54 = vld [vmem:[#allocation27_spill] sm:$0xff] }
 0x854   : > { %v11501_v61 = vpop.xlane.xlu0 %4924  ;;  %v11504_v20 = vmul.f32 %v7439_v12, %v13527_v14  ;;  %v7441_v19 = vpop.eup %7440  ;;  %7444 = vrcp.f32 %v3032_v52  ;;  %v13530_v14 = vld [vmem:[#allocation155_spill] sm:$0xff] }
 0x855   : > { %v11519_v12 = vmul.f32 %v7441_v19, %v13530_v14  ;;  %v13535_v14 = vld [vmem:[#allocation226_spill] sm:$0xff] }
 0x857   : > { %v7443_v22 = vpop.eup %7442  ;;  %5331 = vrot.lane.b32.xlu1 %v4300_v16, %s7841_s1  ;;  %v3038_v35 = vpop.xlane.xlu1 %3037  ;;  %v13531_v16 = vld [vmem:[#allocation204_spill] sm:$0xff] }
 0x858   : > { %v3029_v32 = vpop.xlane.xlu0 %3028  ;;  %v11516_v39 = vmul.f32 %v7443_v22, %v13529_v54  ;;  %v13532_v52 = vpack.c.bf16 %v11244_v41, %v13531_v16  ;;  %v13533_v54 = vld [vmem:[#allocation225_spill] sm:$0xff] }
 0x859   : > { %7446 = vrcp.f32 %v3029_v32  ;;  %v6850_v16 = vld [vmem:[#allocation10 + $0x10] sm:$0xff]  }
 0x85a   : > { %7448 = vrcp.f32 %v3038_v35  ;;  %v6849_v35 = vld [vmem:[#allocation10 + $0x8] sm:$0xff]  }
 0x85b   : > { %5333 = vrot.lane.b32.xlu1 %v4301_v9, %s7841_s1  ;;  %v3983_v23 = vpop.xlane.xlu1 %3982  ;;  %v6848_v9 = vld [vmem:[#allocation10] sm:$0xff]  }
 0x85c   : > { %v3035_v51 = vpop.xlane.xlu0 %3034  ;;  %6633 = vmatprep.subr.bf16.mxu1 %v6848_v9 }
 0x85d   : > { %7450 = vrcp.f32 %v3035_v51  ;;  %5283 = vrot.lane.b32.xlu0 %v13532_v52, %s7839_s12  ;;  %6634 = vmatpush3.bf16.msra.mxu1 %v6848_v9 }
 0x85e   : > { %7452 = vrcp.f32 %v3983_v23  ;;  %v7445_v19 = vpop.eup %7444  ;;  %6635 = vmatprep.subr.bf16.mxu1 %v6849_v35 }
 0x85f   : > { %v3989_v22 = vpop.xlane.xlu1 %3988  ;;  %v11541_v23 = vmul.f32 %v7445_v19, %v13535_v14  ;;  %v13538_v19 = vld [vmem:[#allocation231_spill] sm:$0xff] }
 0x860   : > { %v3980_v37 = vpop.xlane.xlu0 %3979 }
 0x861   : > { %7454 = vrcp.f32 %v3980_v37  ;;  %5379 = vrot.lane.b32.xlu0 %v5251_v56, %s7840_s18  ;;  %6636 = vmatpush3.bf16.msra.mxu1 %v6849_v35 }
 0x862   : > { %7456 = vrcp.f32 %v3989_v22  ;;  %v13536_v22 = vld [vmem:[#allocation79_spill] sm:$0xff]  ;;  %6637 = vmatprep.subr.bf16.mxu1 %v6850_v16 }
 0x863   : > { %v7447_v46 = vpop.eup %7446  ;;  %v11535_v48 = vpop.xlane.xlu1 %4933 }
 0x864   : > { %v3986_v32 = vpop.xlane.xlu0 %3985  ;;  %v11538_v41 = vmul.f32 %v7447_v46, %v13533_v54  ;;  %v7449_v51 = vpop.eup %7448 }
 0x865   : > { %7458 = vrcp.f32 %v3986_v32  ;;  %v11555_v46 = vmul.f32 %v7449_v51, %v13538_v19  ;;  %6638 = vmatpush3.bf16.msra.mxu1 %v6850_v16 }
 0x866   : > { %13534 = vst [vmem:[#allocation205_spill] sm:$0xff] %v11538_v41  ;;  %7460 = vrcp.f32 %v11386_v55  ;;  %v13565_v41 = vld [vmem:[#allocation158_spill] sm:$0xff] }
 0x867   : > { %v7451_v13 = vpop.eup %7450  ;;  %7462 = vrcp.f32 %v11392_v36  ;;  %v11547_v56 = vpop.xlane.xlu1 %4939  ;;  %13539 = vst [vmem:[#allocation169_spill] sm:$0xff] %v11555_v46  ;;  %v6851_v36 = vld [vmem:[#allocation10 + $0x18] sm:$0xff]  }
 0x868   : > { %v11549_v52 = vpop.xlane.xlu0 %4930  ;;  %v11552_v37 = vmul.f32 %v7451_v13, %v13536_v22  ;;  %v7453_v55 = vpop.eup %7452  ;;  %v13542_v13 = vld [vmem:[#allocation165_spill] sm:$0xff]  ;;  %7464 = vrcp.f32 %v11404_v7  ;;  %6639 = vmatprep.subr.bf16.mxu1 %v6851_v36  ;;  %v13564_v46 = vld [vmem:[#allocation170_spill] sm:$0xff] }
 0x869   : > { %v11565_v22 = vmul.f32 %v7453_v55, %v13542_v13  ;;  %7466 = vrcp.f32 %v11419_v17  ;;  %v13546_v7 = vld [vmem:[#allocation57_spill] sm:$0xff]  ;;  %6640 = vmatpush3.bf16.msra.mxu1 %v6851_v36 }
 0x86a   : > { %13537 = vst [vmem:[#allocation168_spill] sm:$0xff] %v11552_v37  ;;  %v6483_v14 = vpop.f32.mrb[12].mxu0 }
 0x86b   : > { %v7455_v32 = vpop.eup %7454  ;;  %v3044_v54 = vpop.xlane.xlu1 %3043  ;;  %13543 = vst [vmem:[#allocation211_spill] sm:$0xff] %v11565_v22  ;;  %v13553_v22 = vld [vmem:[#allocation47_spill] sm:$0xff] }
 0x86c   : > { %v11559_v6 = vpop.xlane.xlu0 %4936  ;;  %v11562_v24 = vmul.f32 %v7455_v32, %v13540_v15  ;;  %v7457_v51 = vpop.eup %7456  ;;  %7468 = vrcp.f32 %v3044_v54 }
 0x86d   : > { %v6484_v35 = vpop.f32.mrb[13].mxu0  ;;  %v11575_v47 = vmul.f32 %v7457_v51, %v13546_v7 }
 0x86e   : > { %13541 = vst [vmem:[#allocation210_spill] sm:$0xff] %v11562_v24  ;;  %v6485_v19 = vadd.f32 %v6484_v35, %v6483_v14  ;;  %v6486_v9 = vpop.f32.mrb[14].mxu0 }
 0x86f   : > { %v7459_v18 = vpop.eup %7458  ;;  %v6487_v60 = vpop.f32.mrb[15].mxu0  ;;  %13547 = vst [vmem:[#allocation173_spill] sm:$0xff] %v11575_v47 }
 0x870   : > { %v3050_v15 = vpop.xlane.xlu1 %3049  ;;  %v7461_v32 = vpop.eup %7460  ;;  %v6488_v55 = vadd.f32 %v6487_v60, %v6486_v9  ;;  %v11572_v29 = vmul.f32 %v7459_v18, %v13544_v21 }
 0x871   : > { %v3041_v13 = vpop.xlane.xlu0 %3040  ;;  %v7463_v17 = vpop.eup %7462 }
 0x872   : > { %13545 = vst [vmem:[#allocation171_spill] sm:$0xff] %v11572_v29  ;;  %7470 = vrcp.f32 %v3041_v13  ;;  %v11577_v16 = vmul.f32 %v7463_v17, %v6485_v19  ;;  %v11579_v14 = vmul.f32 %v7461_v32, %v6488_v55  ;;  %v6489_v18 = vpop.f32.mrb[16].mxu0  ;;  %v7465_v32 = vpop.eup %7464 }
 0x873   : > { %7472 = vrcp.f32 %v3050_v15  ;;  %v6490_v9 = vpop.f32.mrb[17].mxu0  ;;  %v7467_v13 = vpop.eup %7466 }
 0x874   : > { %v3995_v35 = vpop.xlane.xlu1 %3994  ;;  %7474 = vrcp.f32 %v11416_v5  ;;  %v6491_v51 = vadd.f32 %v6490_v9, %v6489_v18  ;;  %v6492_v19 = vpop.f32.mrb[18].mxu0  ;;  %v13548_v9 = vld [vmem:[#allocation121_spill] sm:$0xff] }
 0x875   : > { %v3047_v60 = vpop.xlane.xlu0 %3046  ;;  %v6493_v36 = vpop.f32.mrb[19].mxu0 }
 0x876   : > { %7476 = vrcp.f32 %v3047_v60  ;;  %v6494_v15 = vadd.f32 %v6493_v36, %v6492_v19  ;;  %v7469_v17 = vpop.eup %7468  ;;  %v11587_v5 = vmul.f32 %v7467_v13, %v6491_v51  ;;  %v13550_v19 = vld [vmem:[#allocation122_spill] sm:$0xff] }
 0x877   : > { %7478 = vrcp.f32 %v11436_v44  ;;  %v11599_v36 = vmul.f32 %v7469_v17, %v13550_v19 }
 0x878   : > { %7480 = vrcp.f32 %v3995_v35  ;;  %v4001_v55 = vpop.xlane.xlu1 %4000  ;;  %v11589_v25 = vmul.f32 %v7465_v32, %v6494_v15 }
 0x879   : > { %v3992_v7 = vpop.xlane.xlu0 %3991  ;;  %13551 = vst [vmem:[#allocation100_spill] sm:$0xff] %v11599_v36 }
 0x87a   : > { %7482 = vrcp.f32 %v3992_v7  ;;  %v6495_v18 = vpop.f32.mrb[20].mxu0 }
 0x87b   : > { %7484 = vrcp.f32 %v4001_v55  ;;  %v6496_v51 = vpop.f32.mrb[21].mxu0 }
 0x87c   : > { %v7471_v54 = vpop.eup %7470  ;;  %v11591_v60 = vpop.xlane.xlu1 %4945  ;;  %v6497_v55 = vadd.f32 %v6496_v51, %v6495_v18  ;;  %v13556_v51 = vld [vmem:[#allocation134_spill] sm:$0xff] }
 0x87d   : > { %v3998_v35 = vpop.xlane.xlu0 %3997  ;;  %v11596_v21 = vmul.f32 %v7471_v54, %v13548_v9  ;;  %v7473_v7 = vpop.eup %7472  ;;  %v13552_v54 = vld [vmem:[#allocation46_spill] sm:$0xff] }
 0x87e   : > { %7486 = vrcp.f32 %v3998_v35  ;;  %v7475_v32 = vpop.eup %7474  ;;  %v6498_v13 = vpop.f32.mrb[22].mxu0  ;;  %v11615_v29 = vmul.f32 %v7473_v7, %v13556_v51  ;;  %v13559_v7 = vld [vmem:[#allocation154_spill] sm:$0xff] }
 0x87f   : > { %13549 = vst [vmem:[#allocation69_spill] sm:$0xff] %v11596_v21  ;;  %7488 = vrcp.f32 %v11469_v38  ;;  %v6499_v24 = vpop.f32.mrb[23].mxu0  ;;  %2062 = vadd.xlane.f32.xlu1 %v13552_v54  ;;  %v13554_v38 = vld [vmem:[#allocation29_spill] sm:$0xff]  ;;  %v6852_v54 = vld [vmem:[#allocation10 + $0x20] sm:$0xff]  }
 0x880   : > { %v7477_v44 = vpop.eup %7476  ;;  %7490 = vrcp.f32 %v11487_v11  ;;  %v11606_v9 = vpop.xlane.xlu1 %4951  ;;  %v6500_v19 = vadd.f32 %v6499_v24, %v6498_v13  ;;  %2065 = vadd.xlane.f32.xlu0 %v13553_v22  ;;  %13557 = vst [vmem:[#allocation28_spill] sm:$0xff] %v11615_v29  ;;  %v13558_v13 = vld [vmem:[#allocation43_spill] sm:$0xff]  ;;  %6641 = vmatprep.subr.bf16.mxu1 %v6852_v54 }
 0x881   : > { %v7479_v17 = vpop.eup %7478  ;;  %v11608_v35 = vpop.xlane.xlu0 %4942  ;;  %v11612_v18 = vmul.f32 %v7477_v44, %v13554_v38  ;;  %7492 = vrcp.f32 %v11485_v58  ;;  %6642 = vmatpush3.bf16.msra.mxu1 %v6852_v54 }
 0x882   : > { %v7481_v15 = vpop.eup %7480  ;;  %v11617_v21 = vmul.f32 %v7479_v17, %v6497_v55  ;;  %v11619_v11 = vmul.f32 %v7475_v32, %v6500_v19  ;;  %v13561_v32 = vld [vmem:[#allocation20_spill] sm:$0xff]  ;;  %7494 = vrcp.f32 %v11501_v61 }
 0x883   : > { %13555 = vst [vmem:[#allocation64_spill] sm:$0xff] %v11612_v18  ;;  %2068 = vadd.xlane.f32.xlu1 %v13558_v13  ;;  %v11632_v17 = vmul.f32 %v7481_v15, %v13561_v32  ;;  %v6853_v13 = vld [vmem:[#allocation10 + $0x28] sm:$0xff]  }
 0x884   : > { %v7483_v24 = vpop.eup %7482  ;;  %v3056_v47 = vpop.xlane.xlu1 %3055  ;;  %6643 = vmatprep.subr.bf16.mxu1 %v6853_v13 }
 0x885   : > { %v6501_v44 = vpop.f32.mrb[24].mxu0  ;;  %v11626_v38 = vpop.xlane.xlu0 %4948  ;;  %v11629_v55 = vmul.f32 %v7483_v24, %v13559_v7  ;;  %13562 = vst [vmem:[#allocation78_spill] sm:$0xff] %v11632_v17  ;;  %7496 = vrcp.f32 %v3056_v47  ;;  %v13563_v7 = vld [vmem:[#allocation50_spill] sm:$0xff]  ;;  %6644 = vmatpush3.bf16.msra.mxu1 %v6853_v13 }
 0x886   : > { %v7485_v19 = vpop.eup %7484  ;;  %v6502_v51 = vpop.f32.mrb[25].mxu0  ;;  %v6855_v13 = vld [vmem:[#allocation10 + $0x38] sm:$0xff]  }
 0x887   : > { %13560 = vst [vmem:[#allocation101_spill] sm:$0xff] %v11629_v55  ;;  %v6503_v36 = vadd.f32 %v6502_v51, %v6501_v44  ;;  %v6504_v22 = vpop.f32.mrb[26].mxu0  ;;  %2071 = vadd.xlane.f32.xlu1 %v13563_v7  ;;  %v11643_v61 = vmul.f32 %v7485_v19, %v13565_v41  ;;  %v6854_v51 = vld [vmem:[#allocation10 + $0x30] sm:$0xff]   ;;  %v13566_v55 = vld [vmem:[#allocation19_spill] sm:$0xff] }
 0x888   : > { %v7487_v29 = vpop.eup %7486  ;;  %v6505_v24 = vpop.f32.mrb[27].mxu0  ;;  %6645 = vmatprep.subr.bf16.mxu1 %v6854_v51 }
 0x889   : > { %v3062_v15 = vpop.xlane.xlu1 %3061  ;;  %v7489_v32 = vpop.eup %7488  ;;  %v6506_v37 = vadd.f32 %v6505_v24, %v6504_v22  ;;  %v11640_v54 = vmul.f32 %v7487_v29, %v13564_v46  ;;  %6646 = vmatpush3.bf16.msra.mxu1 %v6854_v51 }
 0x88a   : > { %v3053_v58 = vpop.xlane.xlu0 %3052  ;;  %v7491_v44 = vpop.eup %7490  ;;  %6647 = vmatprep.subr.bf16.mxu1 %v6855_v13 }
 0x88b   : > { %7498 = vrcp.f32 %v3053_v58  ;;  %v11645_v18 = vmul.f32 %v7491_v44, %v6503_v36  ;;  %v11647_v47 = vmul.f32 %v7489_v32, %v6506_v37  ;;  %v7493_v24 = vpop.eup %7492 }
 0x88c   : > { %7500 = vrcp.f32 %v3062_v15  ;;  %v7495_v58 = vpop.eup %7494 }
 0x88d   : > { %v4007_v22 = vpop.xlane.xlu1 %4006  ;;  %7502 = vrcp.f32 %v11535_v48  ;;  %v6507_v41 = vpop.f32.mrb[28].mxu0  ;;  %6648 = vmatpush3.bf16.msra.mxu1 %v6855_v13 }
 0x88e   : > { %v3059_v46 = vpop.xlane.xlu0 %3058  ;;  %v6508_v19 = vpop.f32.mrb[29].mxu0 }
 0x88f   : > { %7504 = vrcp.f32 %v3059_v46  ;;  %v6509_v37 = vadd.f32 %v6508_v19, %v6507_v41  ;;  %v6510_v36 = vpop.f32.mrb[30].mxu0  ;;  %v7497_v7 = vpop.eup %7496 }
 0x890   : > { %7506 = vrcp.f32 %v11549_v52  ;;  %v6511_v15 = vpop.f32.mrb[31].mxu0 }
 0x891   : > { %7508 = vrcp.f32 %v4007_v22  ;;  %v4013_v32 = vpop.xlane.xlu1 %4012  ;;  %v6512_v44 = vadd.f32 %v6511_v15, %v6510_v36  ;;  %v11655_v29 = vmul.f32 %v7495_v58, %v6509_v37  ;;  %v13568_v15 = vld [vmem:[#allocation32_spill] sm:$0xff] }
 0x892   : > { %v4004_v48 = vpop.xlane.xlu0 %4003  ;;  %v11667_v17 = vmul.f32 %v7497_v7, %v13568_v15 }
 0x893   : > { %7510 = vrcp.f32 %v4004_v48  ;;  %v11657_v46 = vmul.f32 %v7493_v24, %v6512_v44  ;;  %v13570_v44 = vpack.c.bf16 %v11464_v4, %v11462_v8  ;;  %v13574_v4 = vld [vmem:[#allocation89_spill] sm:$0xff] }
 0x894   : > { %7512 = vrcp.f32 %v4013_v32  ;;  %13569 = vst [vmem:[#allocation127_spill] sm:$0xff] %v11667_v17  ;;  %v13621_v17 = vld [vmem:[#allocation159_spill] sm:$0xff] }
 0x895   : > { %v7499_v51 = vpop.eup %7498  ;;  %v11659_v52 = vpop.xlane.xlu1 %4957 }
 0x896   : > { %v6513_v41 = vpop.f32.mrb[32].mxu0  ;;  %v4010_v19 = vpop.xlane.xlu0 %4009  ;;  %v11664_v36 = vmul.f32 %v7499_v51, %v13566_v55  ;;  %5381 = vrot.lane.b32.xlu0 %v13570_v44, %s7840_s18 }
 0x897   : > { %v7501_v13 = vpop.eup %7500  ;;  %7514 = vrcp.f32 %v4010_v19  ;;  %v6514_v37 = vpop.f32.mrb[33].mxu0 }
 0x898   : > { %13567 = vst [vmem:[#allocation228_spill] sm:$0xff] %v11664_v36  ;;  %v7503_v24 = vpop.eup %7502  ;;  %7516 = vrcp.f32 %v11547_v56  ;;  %v6515_v32 = vadd.f32 %v6514_v37, %v6513_v41  ;;  %v6516_v58 = vpop.f32.mrb[34].mxu0  ;;  %v13571_v56 = vpack.c.bf16 %v11303_v28, %v11300_v27  ;;  %v13572_v41 = vld [vmem:[#allocation88_spill] sm:$0xff]  ;;  %v11687_v37 = vmul.f32 %v7501_v13, %v13574_v4 }
 0x899   : > { %v7505_v48 = vpop.eup %7504  ;;  %7518 = vrcp.f32 %v11559_v6  ;;  %v6517_v7 = vpop.f32.mrb[35].mxu0 }
 0x89a   : > { %v11677_v51 = vpop.xlane.xlu1 %4963  ;;  %v7507_v19 = vpop.eup %7506  ;;  %v6518_v15 = vadd.f32 %v6517_v7, %v6516_v58  ;;  %5287 = vrot.lane.b32.xlu1 %v13571_v56, %s7839_s12  ;;  %v11684_v8 = vmul.f32 %v7505_v48, %v13572_v41  ;;  %13575 = vst [vmem:[#allocation75_spill] sm:$0xff] %v11687_v37  ;;  %v13576_v58 = vpack.c.bf16 %v11319_v3, %v11316_v62  ;;  %v13580_v3 = vld [vmem:[#allocation174_spill] sm:$0xff] }
 0x89b   : > { %v4955_v22 = vpop.xlane.xlu0 %4954  ;;  %v7509_v44 = vpop.eup %7508  ;;  %v11689_v55 = vmul.f32 %v7507_v19, %v6515_v32  ;;  %v13578_v32 = vld [vmem:[#allocation160_spill] sm:$0xff] }
 0x89c   : > { %13573 = vst [vmem:[#allocation126_spill] sm:$0xff] %v11684_v8  ;;  %v11691_v6 = vmul.f32 %v7503_v24, %v6518_v15  ;;  %5289 = vrot.lane.b32.xlu0 %v13576_v58, %s7839_s12  ;;  %v13577_v24 = vpack.c.bf16 %v11345_v34, %v11342_v45  ;;  %v11711_v19 = vmul.f32 %v7509_v44, %v13580_v3 }
 0x89d   : > { %v7511_v28 = vpop.eup %7510  ;;  %v6519_v13 = vpop.f32.mrb[36].mxu0 }
 0x89e   : > { %v3068_v7 = vpop.xlane.xlu1 %3067  ;;  %5337 = vrot.lane.b32.xlu1 %v13577_v24, %s7841_s1  ;;  %v11708_v62 = vmul.f32 %v7511_v28, %v13578_v32  ;;  %13581 = vst [vmem:[#allocation227_spill] sm:$0xff] %v11711_v19  ;;  %v7513_v15 = vpop.eup %7512 }
 0x89f   : > { %v11701_v56 = vpop.xlane.xlu0 %4960  ;;  %7520 = vrcp.f32 %v3068_v7  ;;  %v6520_v41 = vpop.f32.mrb[37].mxu0  ;;  %v13582_v7 = vpack.c.bf16 %v11329_v40, %v11326_v26 }
 0x8a0   : > { %13579 = vst [vmem:[#allocation77_spill] sm:$0xff] %v11708_v62  ;;  %7522 = vrcp.f32 %v11591_v60  ;;  %v6521_v4 = vadd.f32 %v6520_v41, %v6519_v13  ;;  %v6522_v58 = vpop.f32.mrb[38].mxu0  ;;  %v13583_v60 = vld [vmem:[#allocation175_spill] sm:$0xff]  ;;  %v13585_v41 = vld [vmem:[#allocation161_spill] sm:$0xff] }
 0x8a1   : > { %5335 = vrot.lane.b32.xlu0 %v13582_v7, %s7841_s1  ;;  %v7515_v34 = vpop.eup %7514  ;;  %7524 = vrcp.f32 %v11608_v35  ;;  %v6523_v28 = vpop.f32.mrb[39].mxu0  ;;  %v11725_v27 = vmul.f32 %v7513_v15, %v13585_v41  ;;  %v13587_v35 = vpack.c.bf16 %v11473_v49, %v11471_v2 }
 0x8a2   : > { %v3074_v44 = vpop.xlane.xlu1 %3073  ;;  %v7517_v24 = vpop.eup %7516  ;;  %v6524_v32 = vadd.f32 %v6523_v28, %v6522_v58  ;;  %v11722_v13 = vmul.f32 %v7515_v34, %v13583_v60  ;;  %v13588_v60 = vld [vmem:[#allocation93_spill] sm:$0xff] }
 0x8a3   : > { %v3065_v3 = vpop.xlane.xlu0 %3064  ;;  %7526 = vrcp.f32 %v3074_v44  ;;  %13586 = vst [vmem:[#allocation31_spill] sm:$0xff] %v11725_v27  ;;  %v7519_v26 = vpop.eup %7518 }
 0x8a4   : > { %13584 = vst [vmem:[#allocation104_spill] sm:$0xff] %v11722_v13  ;;  %7528 = vrcp.f32 %v3065_v3  ;;  %v11727_v40 = vmul.f32 %v7519_v26, %v6521_v4  ;;  %v11729_v7 = vmul.f32 %v7517_v24, %v6524_v32 }
 0x8a5   : > { %5383 = vrot.lane.b32.xlu0 %v13587_v35, %s7840_s18  ;;  %v6525_v15 = vpop.f32.mrb[40].mxu0 }
 0x8a6   : > { %v4019_v28 = vpop.xlane.xlu1 %4018  ;;  %v6526_v4 = vpop.f32.mrb[41].mxu0 }
 0x8a7   : > { %v3071_v44 = vpop.xlane.xlu0 %3070  ;;  %7530 = vrcp.f32 %v4019_v28  ;;  %v6527_v24 = vadd.f32 %v6526_v4, %v6525_v15  ;;  %v6528_v32 = vpop.f32.mrb[42].mxu0 }
 0x8a8   : > { %7532 = vrcp.f32 %v3071_v44  ;;  %v6529_v2 = vpop.f32.mrb[43].mxu0 }
 0x8a9   : > { %v7521_v3 = vpop.eup %7520  ;;  %7534 = vrcp.f32 %v11606_v9  ;;  %v6530_v35 = vadd.f32 %v6529_v2, %v6528_v32  ;;  %v13592_v2 = vld [vmem:[#allocation139_spill] sm:$0xff] }
 0x8aa   : > { %7536 = vrcp.f32 %v11626_v38  ;;  %v2018_v49 = vpop.xlane.xlu1 %2017  ;;  %v11742_v41 = vmul.f32 %v7521_v3, %v13588_v60  ;;  %v7523_v26 = vpop.eup %7522  ;;  %v13590_v38 = vld [vmem:[#allocation233_spill] sm:$0xff]  ;;  %v13594_v3 = vld [vmem:[#allocation198_spill] sm:$0xff] }
 0x8ab   : > { %v4016_v45 = vpop.xlane.xlu0 %4015  ;;  %v7525_v58 = vpop.eup %7524  ;;  %v11746_v48 = vmul.f32 %v7523_v26, %v6530_v35 }
 0x8ac   : > { %13589 = vst [vmem:[#allocation107_spill] sm:$0xff] %v11742_v41  ;;  %7538 = vrcp.f32 %v4016_v45  ;;  %v11744_v44 = vmul.f32 %v7525_v58, %v6527_v24 }
 0x8ad   : > { %v7527_v28 = vpop.eup %7526  ;;  %7540 = vrcp.f32 %v4955_v22  ;;  %v6531_v60 = vpop.f32.mrb[44].mxu0 }
 0x8ae   : > { %v7529_v9 = vpop.eup %7528  ;;  %7542 = vrcp.f32 %v2018_v49  ;;  %v4025_v15 = vpop.xlane.xlu1 %4024  ;;  %v11749_v4 = vmul.f32 %v7527_v28, %v13590_v38 }
 0x8af   : > { %v2015_v32 = vpop.xlane.xlu0 %2014  ;;  %7544 = vrcp.f32 %v4025_v15  ;;  %v11754_v45 = vmul.f32 %v7529_v9, %v13592_v2  ;;  %v6532_v22 = vpop.f32.mrb[45].mxu0  ;;  %v13596_v2 = vld [vmem:[#allocation232_spill] sm:$0xff] }
 0x8b0   : > { %13591 = vst [vmem:[#allocation80_spill] sm:$0xff] %v11749_v4  ;;  %7546 = vrcp.f32 %v2015_v32  ;;  %v6533_v24 = vadd.f32 %v6532_v22, %v6531_v60  ;;  %v6534_v26 = vpop.f32.mrb[46].mxu0  ;;  %v13600_v4 = vld [vmem:[#allocation54_spill] sm:$0xff] }
 0x8b1   : > { %13593 = vst [vmem:[#allocation106_spill] sm:$0xff] %v11754_v45  ;;  %v7531_v58 = vpop.eup %7530  ;;  %7548 = vrcp.f32 %v11659_v52  ;;  %v6535_v28 = vpop.f32.mrb[47].mxu0 }
 0x8b2   : > { %v7533_v35 = vpop.eup %7532  ;;  %v4970_v38 = vpop.xlane.xlu1 %4969  ;;  %v11760_v34 = vmul.f32 %v7531_v58, %v13594_v3  ;;  %v6536_v62 = vadd.f32 %v6535_v28, %v6534_v26 }
 0x8b3   : > { %v7535_v15 = vpop.eup %7534  ;;  %v4022_v9 = vpop.xlane.xlu0 %4021  ;;  %v11763_v32 = vmul.f32 %v7533_v35, %v13596_v2  ;;  %v13598_v35 = vld [vmem:[#allocation162_spill] sm:$0xff] }
 0x8b4   : > { %13595 = vst [vmem:[#allocation110_spill] sm:$0xff] %v11760_v34  ;;  %v7537_v19 = vpop.eup %7536  ;;  %7550 = vrcp.f32 %v4022_v9  ;;  %v11767_v22 = vmul.f32 %v7535_v15, %v6536_v62  ;;  %v13608_v34 = vld [vmem:[#allocation143_spill] sm:$0xff] }
 0x8b5   : > { %13597 = vst [vmem:[#allocation114_spill] sm:$0xff] %v11763_v32  ;;  %v11765_v60 = vmul.f32 %v7537_v19, %v6533_v24  ;;  %v6537_v58 = vpop.f32.mrb[48].mxu0 }
 0x8b6   : > { %v7539_v49 = vpop.eup %7538  ;;  %v2024_v45 = vpop.xlane.xlu1 %2023 }
 0x8b7   : > { %v7541_v41 = vpop.eup %7540  ;;  %v4967_v26 = vpop.xlane.xlu0 %4966  ;;  %7552 = vrcp.f32 %v2024_v45  ;;  %v11774_v28 = vmul.f32 %v7539_v49, %v13598_v35 }
 0x8b8   : > { %v7543_v9 = vpop.eup %7542  ;;  %7554 = vrcp.f32 %v11701_v56  ;;  %v6538_v62 = vpop.f32.mrb[49].mxu0  ;;  %v13603_v56 = vld [vmem:[#allocation137_spill] sm:$0xff] }
 0x8b9   : > { %13599 = vst [vmem:[#allocation109_spill] sm:$0xff] %v11774_v28  ;;  %v7545_v19 = vpop.eup %7544  ;;  %v6539_v24 = vadd.f32 %v6538_v62, %v6537_v58  ;;  %v6540_v15 = vpop.f32.mrb[50].mxu0  ;;  %7556 = vrcp.f32 %v11677_v51  ;;  %v13604_v58 = vld [vmem:[#allocation138_spill] sm:$0xff] }
 0x8ba   : > { %v7547_v52 = vpop.eup %7546  ;;  %v6541_v3 = vpop.f32.mrb[51].mxu0  ;;  %v11781_v45 = vmul.f32 %v7545_v19, %v13600_v4  ;;  %v11789_v62 = vmul.f32 %v7543_v9, %v13604_v58 }
 0x8bb   : > { %v4976_v32 = vpop.xlane.xlu1 %4975  ;;  %v11783_v49 = vmul.f32 %v7541_v41, %v6539_v24  ;;  %v6542_v35 = vadd.f32 %v6541_v3, %v6540_v15  ;;  %v2021_v13 = vpop.xlane.xlu0 %2020  ;;  %v11786_v27 = vmul.f32 %v7547_v52, %v13603_v56  ;;  %v13606_v52 = vld [vmem:[#allocation199_spill] sm:$0xff] }
 0x8bc   : > { %13601 = vst [vmem:[#allocation113_spill] sm:$0xff] %v11781_v45  ;;  %v7549_v36 = vpop.eup %7548  ;;  %7558 = vrcp.f32 %v2021_v13 }
 0x8bd   : > { %13602 = vst [vmem:[#allocation222_spill] sm:$0xff] %v11783_v49  ;;  %v11791_v2 = vmul.f32 %v7549_v36, %v6542_v35  ;;  %v6543_v3 = vpop.f32.mrb[52].mxu0 }
 0x8be   : > { %v7551_v28 = vpop.eup %7550  ;;  %v6544_v9 = vpop.f32.mrb[53].mxu0 }
 0x8bf   : > { %13605 = vst [vmem:[#allocation223_spill] sm:$0xff] %v11791_v2  ;;  %v2030_v4 = vpop.xlane.xlu1 %2029  ;;  %v4973_v19 = vpop.xlane.xlu0 %4972  ;;  %v11798_v24 = vmul.f32 %v7551_v28, %v13606_v52  ;;  %v6545_v13 = vadd.f32 %v6544_v9, %v6543_v3  ;;  %v13611_v3 = vld [vmem:[#allocation52_spill] sm:$0xff] }
 0x8c0   : > { %7560 = vrcp.f32 %v2030_v4  ;;  %v6546_v36 = vpop.f32.mrb[54].mxu0 }
 0x8c1   : > { %13607 = vst [vmem:[#allocation202_spill] sm:$0xff] %v11798_v24  ;;  %7562 = vrcp.f32 %v4967_v26  ;;  %v7553_v15 = vpop.eup %7552  ;;  %v6547_v58 = vpop.f32.mrb[55].mxu0  ;;  %v13610_v26 = vld [vmem:[#allocation51_spill] sm:$0xff]  ;;  %v13615_v24 = vld [vmem:[#allocation150_spill] sm:$0xff] }
 0x8c2   : > { %v7555_v56 = vpop.eup %7554  ;;  %7564 = vrcp.f32 %v4970_v38  ;;  %v11803_v41 = vmul.f32 %v7553_v15, %v13608_v34  ;;  %v6548_v4 = vadd.f32 %v6547_v58, %v6546_v36  ;;  %2074 = vadd.xlane.f32.xlu1 %v13610_v26  ;;  %v13613_v36 = vld [vmem:[#allocation56_spill] sm:$0xff] }
 0x8c3   : > { %v2036_v51 = vpop.xlane.xlu1 %2035  ;;  %v11805_v49 = vmul.f32 %v7555_v56, %v6545_v13  ;;  %v2027_v28 = vpop.xlane.xlu0 %2026 }
 0x8c4   : > { %7566 = vrcp.f32 %v2036_v51  ;;  %v7557_v52 = vpop.eup %7556  ;;  %2077 = vadd.xlane.f32.xlu0 %v13611_v3  ;;  %v13614_v51 = vld [vmem:[#allocation140_spill] sm:$0xff] }
 0x8c5   : > { %13609 = vst [vmem:[#allocation203_spill] sm:$0xff] %v11805_v49  ;;  %7568 = vrcp.f32 %v2027_v28  ;;  %v11809_v9 = vmul.f32 %v7557_v52, %v6548_v4  ;;  %v6549_v15 = vpop.f32.mrb[56].mxu0 }
 0x8c6   : > { %v7559_v35 = vpop.eup %7558  ;;  %7570 = vrcp.f32 %v4973_v19  ;;  %2080 = vadd.xlane.f32.xlu1 %v13613_v36  ;;  %v6550_v58 = vpop.f32.mrb[57].mxu0 }
 0x8c7   : > { %13612 = vst [vmem:[#allocation141_spill] sm:$0xff] %v11809_v9  ;;  %v2042_v38 = vpop.xlane.xlu1 %2041  ;;  %v2033_v13 = vpop.xlane.xlu0 %2032  ;;  %v11815_v56 = vmul.f32 %v7559_v35, %v13614_v51  ;;  %v6551_v26 = vadd.f32 %v6550_v58, %v6549_v15 }
 0x8c8   : > { %7572 = vrcp.f32 %v2042_v38  ;;  %v6552_v4 = vpop.f32.mrb[58].mxu0 }
 0x8c9   : > { %7574 = vrcp.f32 %v2033_v13  ;;  %v6553_v3 = vpop.f32.mrb[59].mxu0  ;;  %v13617_v13 = vld [vmem:[#allocation58_spill] sm:$0xff] }
 0x8ca   : > { %v7561_v28 = vpop.eup %7560  ;;  %7576 = vrcp.f32 %v4976_v32  ;;  %v6554_v36 = vadd.f32 %v6553_v3, %v6552_v4  ;;  %2083 = vadd.xlane.f32.xlu1 %v13617_v13  ;;  %v13619_v32 = vld [vmem:[#allocation153_spill] sm:$0xff]  ;;  %v13620_v4 = vld [vmem:[#allocation147_spill] sm:$0xff] }
 0x8cb   : > { %v7563_v52 = vpop.eup %7562  ;;  %v2048_v34 = vpop.xlane.xlu1 %2047  ;;  %v11820_v45 = vmul.f32 %v7561_v28, %v13615_v24 }
 0x8cc   : > { %v11822_v38 = vmul.f32 %v7563_v52, %v6551_v26  ;;  %v2039_v35 = vpop.xlane.xlu0 %2038  ;;  %7578 = vrcp.f32 %v2048_v34  ;;  %v7565_v51 = vpop.eup %7564 }
 0x8cd   : > { %7580 = vrcp.f32 %v2039_v35  ;;  %v11825_v58 = vmul.f32 %v7565_v51, %v6554_v36  ;;  %v6555_v28 = vpop.f32.mrb[60].mxu0 }
 0x8ce   : > { %13616 = vst [vmem:[#allocation144_spill] sm:$0xff] %v11822_v38  ;;  %v7567_v15 = vpop.eup %7566  ;;  %v6556_v3 = vpop.f32.mrb[61].mxu0 }
 0x8cf   : > { %13618 = vst [vmem:[#allocation229_spill] sm:$0xff] %v11825_v58  ;;  %v7569_v19 = vpop.eup %7568  ;;  %v2054_v2 = vpop.xlane.xlu1 %2053  ;;  %v11828_v49 = vmul.f32 %v7567_v15, %v13619_v32  ;;  %v6557_v36 = vadd.f32 %v6556_v3, %v6555_v28 }
 0x8d0   : > { %v2045_v26 = vpop.xlane.xlu0 %2044  ;;  %7582 = vrcp.f32 %v2054_v2  ;;  %v11833_v34 = vmul.f32 %v7569_v19, %v13620_v4  ;;  %v7571_v52 = vpop.eup %7570  ;;  %v13622_v4 = vld [vmem:[#allocation55_spill] sm:$0xff] }
 0x8d1   : > { %7584 = vrcp.f32 %v2045_v26  ;;  %v6558_v13 = vpop.f32.mrb[62].mxu0  ;;  %v11840_v38 = vmul.f32 %v7571_v52, %v6557_v36  ;;  %v13624_v36 = vld [vmem:[#allocation157_spill] sm:$0xff] }
 0x8d2   : > { %v7573_v35 = vpop.eup %7572  ;;  %v6559_v32 = vpop.f32.mrb[63].mxu0 }
 0x8d3   : > { %v7575_v15 = vpop.eup %7574  ;;  %v2060_v9 = vpop.xlane.xlu1 %2059  ;;  %v11838_v24 = vmul.f32 %v7573_v35, %v13621_v17  ;;  %v6560_v2 = vadd.f32 %v6559_v32, %v6558_v13  ;;  %v13623_v17 = vld [vmem:[#allocation163_spill] sm:$0xff] }
 0x8d4   : > { %v2051_v19 = vpop.xlane.xlu0 %2050  ;;  %7586 = vrcp.f32 %v2060_v9  ;;  %v11843_v26 = vmul.f32 %v7575_v15, %v13622_v4  ;;  %v7577_v58 = vpop.eup %7576 }
 0x8d5   : > { %7588 = vrcp.f32 %v2051_v19  ;;  %v11845_v3 = vmul.f32 %v7577_v58, %v6560_v2  ;;  %v13625_v2 = vpack.c.bf16 %v11579_v14, %v11577_v16  ;;  %v13626_v19 = vld [vmem:[#allocation33_spill] sm:$0xff]  ;;  %v13629_v58 = vpack.c.bf16 %v11410_v57, %v11407_v30 }
 0x8d6   : > { %v7579_v28 = vpop.eup %7578  ;;  %v2385_v51 = vpack.c.bf16 %v11828_v49, %v11843_v26  ;;  %v13633_v57 = vpack.c.bf16 %v11456_v59, %v11453_v33  ;;  %v13636_v33 = vpack.c.bf16 %v11589_v25, %v11587_v5  ;;  %v13637_v59 = vld [vmem:[#allocation61_spill] sm:$0xff] }
 0x8d7   : > { %v7581_v8 = vpop.eup %7580  ;;  %v5286_v37 = vpop.permute.xlu1 %5285  ;;  %v11850_v35 = vmul.f32 %v7579_v28, %v13623_v17  ;;  %v13627_v17 = vld [vmem:[#allocation53_spill] sm:$0xff] }
 0x8d8   : > { %v2057_v9 = vpop.xlane.xlu0 %2056  ;;  %v11855_v13 = vmul.f32 %v7581_v8, %v13624_v36  ;;  %v13628_v8 = vpack.c.bf16 %v11789_v62, %v11786_v27  ;;  %v13631_v27 = vld [vmem:[#allocation172_spill] sm:$0xff] }
 0x8d9   : > { %7590 = vrcp.f32 %v2057_v9 }
 0x8da   : > { %v7583_v15 = vpop.eup %7582  ;;  %5385 = vrot.lane.b32.xlu0 %v13625_v2, %s7840_s18 }
 0x8db   : > { %v7585_v32 = vpop.eup %7584  ;;  %v11864_v4 = vmul.f32 %v7583_v15, %v13626_v19  ;;  %v5332_v36 = vpop.permute.xlu1 %5331  ;;  %5291 = vrot.lane.b32.xlu1 %v13629_v58, %s7839_s12 }
 0x8dc   : > { %v5284_v28 = vpop.permute.xlu0 %5283  ;;  %v11867_v52 = vmul.f32 %v7585_v32, %v13627_v17  ;;  %v13630_v32 = vpack.c.bf16 %v11425_v0, %v11422_v43  ;;  %v13634_v17 = vpack.c.bf16 %v11442_v53, %v11439_v50  ;;  %v13640_v50 = vld [vmem:[#allocation67_spill] sm:$0xff] }
 0x8dd   : > { %v5413_v9 = vsel %vm870_vm0, %v13628_v8, %v5284_v28  ;;  %v13632_v28 = vld [vmem:[#allocation167_spill] sm:$0xff]  ;;  %v13635_v8 = vld [vmem:[#allocation34_spill] sm:$0xff] }
 0x8de   : > { %v7587_v16 = vpop.eup %7586  ;;  %v2387_v14 = vpack.c.bf16 %v11850_v35, %v11867_v52  ;;  %5293 = vrot.lane.b32.xlu0 %v13630_v32, %s7839_s12  ;;  %v5461_v2 = vsel %vm5459_vm1, %v5413_v9, %v5332_v36  ;;  %v13723_v52 = vld [vmem:[#allocation62_spill] sm:$0xff] }
 0x8df   : > { %v7589_v15 = vpop.eup %7588  ;;  %v11884_v62 = vmul.f32 %v7587_v16, %v13631_v27  ;;  %5341 = vrot.lane.b32.xlu1 %v13633_v57, %s7841_s1  ;;  %v13638_v16 = vld [vmem:[#allocation63_spill] sm:$0xff]  ;;  %v5334_v32 = vpop.permute.xlu1 %5333 }
 0x8e0   : > { %v5380_v19 = vpop.permute.xlu0 %5379  ;;  %v11888_v30 = vmul.f32 %v7589_v15, %v13632_v28  ;;  %v13639_v15 = vld [vmem:[#allocation66_spill] sm:$0xff] }
 0x8e1   : > { %v5494_v58 = vsel %vm5492_vm2, %v5461_v2, %v5380_v19  ;;  %v13641_v2 = vpack.c.bf16 %v11803_v41, %v11815_v56 }
 0x8e2   : > { %6649 = vmatprep.mubr.bf16.mxu1 %v5494_v58  ;;  %v2388_v43 = vpack.c.bf16 %v11864_v4, %v11888_v30  ;;  %5339 = vrot.lane.b32.xlu0 %v13634_v17, %s7841_s1 }
 0x8e3   : > { %v7591_v0 = vpop.eup %7590  ;;  %v5416_v19 = vsel %vm870_vm0, %v13641_v2, %v5286_v37  ;;  %v13643_v37 = vld [vmem:[#allocation177_spill] sm:$0xff]  ;;  %v13648_v2 = vld [vmem:[#allocation180_spill] sm:$0xff] }
 0x8e4   : > { %v11902_v9 = vmul.f32 %v7591_v0, %v13635_v8  ;;  %v5463_v5 = vsel %vm5459_vm1, %v5416_v19, %v5334_v32  ;;  %v13645_v32 = vpack.c.bf16 %v11820_v45, %v11833_v34 }
 0x8e6   : > { %v2389_v36 = vpack.c.bf16 %v11884_v62, %v11902_v9  ;;  %5387 = vrot.lane.b32.xlu0 %v13636_v33, %s7840_s18  ;;  %v13642_v33 = vpack.c.bf16 %v11619_v11, %v11617_v21  ;;  %v13727_v9 = vld [vmem:[#allocation22_spill] sm:$0xff] }
 0x903   : > { %2086 = vadd.xlane.f32.xlu1 %v13637_v59 }
 0x905   : > { %2089 = vadd.xlane.f32.xlu0 %v13638_v16  ;;  %v13644_v16 = vld [vmem:[#allocation178_spill] sm:$0xff] }
 0x907   : > { %2092 = vadd.xlane.f32.xlu1 %v13639_v15 }
 0x90b   : > { %2095 = vadd.xlane.f32.xlu1 %v13640_v50 }
 0x90c   : > { %v2063_v53 = vpop.xlane.xlu1 %2062 }
 0x90d   : > { %v2066_v27 = vpop.xlane.xlu0 %2065  ;;  %7592 = vrcp.f32 %v2063_v53  ;;  %v13646_v53 = vpack.c.bf16 %v11479_v1, %v11476_v63  ;;  %v13649_v63 = vpack.c.bf16 %v11519_v12, %v11516_v39  ;;  %v13652_v39 = vpack.c.bf16 %v11647_v47, %v11645_v18  ;;  %v13653_v12 = vld [vmem:[#allocation70_spill] sm:$0xff] }
 0x90e   : > { %7594 = vrcp.f32 %v2066_v27  ;;  %v13647_v27 = vpack.c.bf16 %v11493_v42, %v11490_v31  ;;  %v13650_v31 = vpack.c.bf16 %v11507_v10, %v11504_v20  ;;  %v13651_v42 = vld [vmem:[#allocation182_spill] sm:$0xff]  ;;  %v13656_v20 = vld [vmem:[#allocation73_spill] sm:$0xff] }
 0x910   : > { %v2069_v25 = vpop.xlane.xlu1 %2068 }
 0x911   : > { %v5382_v28 = vpop.permute.xlu0 %5381  ;;  %7596 = vrcp.f32 %v2069_v25 }
 0x912   : > { %v5497_v57 = vsel %vm5492_vm2, %v5463_v5, %v5382_v28 }
 0x913   : > { %6650 = vmatmul.mubr.bf16.vlgmr.msra.gmra.mrb[32].mxu1 %v5497_v57  ;;  %v13654_v57 = vld [vmem:[#allocation71_spill] sm:$0xff] }
 0x914   : > { %v2072_v58 = vpop.xlane.xlu1 %2071 }
 0x915   : > { %v5290_v0 = vpop.permute.xlu0 %5289  ;;  %7598 = vrcp.f32 %v2072_v58  ;;  %v13655_v58 = vld [vmem:[#allocation72_spill] sm:$0xff] }
 0x917   : > { %v7593_v17 = vpop.eup %7592 }
 0x918   : > { %v7595_v8 = vpop.eup %7594  ;;  %v5288_v41 = vpop.permute.xlu1 %5287  ;;  %v11925_v56 = vmul.f32 %v7593_v17, %v13643_v37 }
 0x919   : > { %v5336_v59 = vpop.permute.xlu0 %5335  ;;  %v11928_v15 = vmul.f32 %v7595_v8, %v13644_v16  ;;  %v5419_v50 = vsel %vm870_vm0, %v13645_v32, %v5288_v41 }
 0x91a   : > { %v5465_v34 = vsel %vm5459_vm1, %v5419_v50, %v5336_v59 }
 0x91b   : > { %5389 = vrot.lane.b32.xlu0 %v13642_v33, %s7840_s18  ;;  %v7597_v21 = vpop.eup %7596  ;;  %v2390_v11 = vpack.c.bf16 %v11928_v15, %v11925_v56  ;;  %v5422_v33 = vsel %vm870_vm0, %v2385_v51, %v5290_v0  ;;  %v13658_v51 = vld [vmem:[#allocation184_spill] sm:$0xff] }
 0x91c   : > { %5295 = vrot.lane.b32.xlu1 %v13646_v53, %s7839_s12  ;;  %v11945_v19 = vmul.f32 %v7597_v21, %v13648_v2  ;;  %v5338_v17 = vpop.permute.xlu1 %5337  ;;  %v13657_v53 = vpack.c.bf16 %v11657_v46, %v11655_v29  ;;  %v13659_v21 = vld [vmem:[#allocation185_spill] sm:$0xff]  ;;  %v13660_v2 = vpack.c.bf16 %v11838_v24, %v11855_v13 }
 0x91d   : > { %v5384_v45 = vpop.permute.xlu0 %5383  ;;  %v5467_v47 = vsel %vm5459_vm1, %v5422_v33, %v5338_v17  ;;  %v13673_v33 = vld [vmem:[#allocation60_spill] sm:$0xff] }
 0x91e   : > { %v5500_v1 = vsel %vm5492_vm2, %v5465_v34, %v5384_v45  ;;  %v13661_v34 = vld [vmem:[#allocation205_spill] sm:$0xff] }
 0x91f   : > { %5297 = vrot.lane.b32.xlu0 %v13647_v27, %s7839_s12  ;;  %v7599_v25 = vpop.eup %7598  ;;  %6653 = vmatprep.mubr.bf16.mxu1 %v5500_v1  ;;  %v13663_v1 = vld [vmem:[#allocation169_spill] sm:$0xff] }
 0x920   : > { %5345 = vrot.lane.b32.xlu1 %v13649_v63, %s7841_s1  ;;  %v11958_v5 = vmul.f32 %v7599_v25, %v13651_v42  ;;  %v13662_v63 = vpack.c.bf16 %v11541_v23, %v13661_v34  ;;  %v13664_v25 = vld [vmem:[#allocation168_spill] sm:$0xff]  ;;  %v13666_v42 = vld [vmem:[#allocation59_spill] sm:$0xff] }
 0x921   : > { %v13692_v34 = vld [vmem:[#allocation228_spill] sm:$0xff] }
 0x922   : > { %v2391_v28 = vpack.c.bf16 %v11958_v5, %v11945_v19 }
 0x923   : > { %5343 = vrot.lane.b32.xlu0 %v13650_v31, %s7841_s1  ;;  %v13665_v31 = vpack.c.bf16 %v13663_v1, %v13664_v25  ;;  %v13695_v1 = vld [vmem:[#allocation104_spill] sm:$0xff]  ;;  %v13698_v25 = vld [vmem:[#allocation77_spill] sm:$0xff] }
 0x927   : > { %5391 = vrot.lane.b32.xlu0 %v13652_v39, %s7840_s18 }
 0x944   : > { %2098 = vadd.xlane.f32.xlu1 %v13653_v12  ;;  %v13667_v12 = vld [vmem:[#allocation173_spill] sm:$0xff] }
 0x946   : > { %2101 = vadd.xlane.f32.xlu0 %v13654_v57  ;;  %v13668_v57 = vld [vmem:[#allocation171_spill] sm:$0xff] }
 0x947   : > { %v13669_v23 = vpack.c.bf16 %v13667_v12, %v13668_v57  ;;  %v13706_v57 = vld [vmem:[#allocation80_spill] sm:$0xff] }
 0x948   : > { %2104 = vadd.xlane.f32.xlu1 %v13655_v58 }
 0x94c   : > { %2107 = vadd.xlane.f32.xlu1 %v13656_v20  ;;  %v13670_v20 = vld [vmem:[#allocation211_spill] sm:$0xff] }
 0x94f   : > { %v2075_v10 = vpop.xlane.xlu1 %2074 }
 0x950   : > { %7600 = vrcp.f32 %v2075_v10  ;;  %v13671_v10 = vld [vmem:[#allocation210_spill] sm:$0xff] }
 0x951   : > { %v2078_v8 = vpop.xlane.xlu0 %2077 }
 0x952   : > { %7602 = vrcp.f32 %v2078_v8  ;;  %v13672_v8 = vpack.c.bf16 %v13670_v20, %v13671_v10  ;;  %v13710_v20 = vld [vmem:[#allocation106_spill] sm:$0xff] }
 0x953   : > { %v2081_v18 = vpop.xlane.xlu1 %2080 }
 0x954   : > { %7604 = vrcp.f32 %v2081_v18 }
 0x955   : > { %v5386_v41 = vpop.permute.xlu0 %5385 }
 0x956   : > { %v5503_v37 = vsel %vm5492_vm2, %v5467_v47, %v5386_v41  ;;  %v13674_v47 = vpack.c.bf16 %v11729_v7, %v11727_v40  ;;  %v13682_v40 = vpack.c.bf16 %v11643_v61, %v11640_v54  ;;  %v13683_v7 = vld [vmem:[#allocation78_spill] sm:$0xff]  ;;  %v13691_v61 = vld [vmem:[#allocation127_spill] sm:$0xff] }
 0x957   : > { %6654 = vmatmul.mubr.bf16.gmra.mrb[36].mxu1 %v5503_v37  ;;  %v2084_v59 = vpop.xlane.xlu1 %2083  ;;  %v13675_v37 = vpack.c.bf16 %v11691_v6, %v11689_v55  ;;  %v13686_v6 = vpack.c.bf16 %v11767_v22, %v11765_v60  ;;  %v13697_v22 = vld [vmem:[#allocation227_spill] sm:$0xff] }
 0x958   : > { %7606 = vrcp.f32 %v2084_v59  ;;  %v13676_v59 = vld [vmem:[#allocation28_spill] sm:$0xff] }
 0x959   : > { %v5294_v16 = vpop.permute.xlu0 %5293 }
 0x95a   : > { %v7601_v32 = vpop.eup %7600 }
 0x95b   : > { %v5292_v49 = vpop.permute.xlu1 %5291  ;;  %v11981_v26 = vmul.f32 %v7601_v32, %v13658_v51  ;;  %v13677_v32 = vld [vmem:[#allocation64_spill] sm:$0xff] }
 0x95c   : > { %v7603_v50 = vpop.eup %7602  ;;  %5393 = vrot.lane.b32.xlu0 %v13657_v53, %s7840_s18  ;;  %v5425_v45 = vsel %vm870_vm0, %v13660_v2, %v5292_v49  ;;  %v13679_v53 = vld [vmem:[#allocation100_spill] sm:$0xff]  ;;  %v13680_v49 = vld [vmem:[#allocation69_spill] sm:$0xff]  ;;  %v13688_v2 = vld [vmem:[#allocation75_spill] sm:$0xff] }
 0x95d   : > { %v5340_v0 = vpop.permute.xlu0 %5339  ;;  %v11984_v27 = vmul.f32 %v7603_v50, %v13659_v21  ;;  %5299 = vrot.lane.b32.xlu1 %v13662_v63, %s7839_s12  ;;  %v13678_v50 = vpack.c.bf16 %v13676_v59, %v13677_v32  ;;  %v13681_v51 = vpack.c.bf16 %v13679_v53, %v13680_v49  ;;  %v13687_v21 = vpack.c.bf16 %v11746_v48, %v11744_v44  ;;  %v13700_v44 = vld [vmem:[#allocation141_spill] sm:$0xff]  ;;  %v13720_v49 = vld [vmem:[#allocation144_spill] sm:$0xff] }
 0x95e   : > { %v7605_v29 = vpop.eup %7604  ;;  %v5469_v13 = vsel %vm5459_vm1, %v5425_v45, %v5340_v0  ;;  %v13684_v0 = vld [vmem:[#allocation101_spill] sm:$0xff]  ;;  %v13689_v45 = vld [vmem:[#allocation126_spill] sm:$0xff]  ;;  %v13693_v63 = vpack.c.bf16 %v13691_v61, %v13692_v34  ;;  %v13699_v48 = vpack.c.bf16 %v13697_v22, %v13698_v25 }
 0x95f   : > { %v2392_v46 = vpack.c.bf16 %v11984_v27, %v11981_v26  ;;  %v12001_v39 = vmul.f32 %v7605_v29, %v13666_v42  ;;  %v13685_v55 = vpack.c.bf16 %v13683_v7, %v13684_v0  ;;  %v13690_v54 = vpack.c.bf16 %v13688_v2, %v13689_v45  ;;  %v13694_v29 = vld [vmem:[#allocation31_spill] sm:$0xff]  ;;  %v13716_v59 = vld [vmem:[#allocation109_spill] sm:$0xff]  ;;  %v13724_v22 = vld [vmem:[#allocation186_spill] sm:$0xff] }
 0x960   : > { %5301 = vrot.lane.b32.xlu0 %v13665_v31, %s7839_s12  ;;  %v13696_v60 = vpack.c.bf16 %v13694_v29, %v13695_v1  ;;  %v13701_v31 = vld [vmem:[#allocation203_spill] sm:$0xff]  ;;  %v13719_v53 = vld [vmem:[#allocation229_spill] sm:$0xff] }
 0x961   : > { %v5388_v24 = vpop.permute.xlu0 %5387  ;;  %5349 = vrot.lane.b32.xlu1 %v13669_v23, %s7841_s1  ;;  %v13702_v42 = vpack.c.bf16 %v13700_v44, %v13701_v31  ;;  %v13707_v23 = vld [vmem:[#allocation114_spill] sm:$0xff] }
 0x962   : > { %v5506_v58 = vsel %vm5492_vm2, %v5469_v13, %v5388_v24  ;;  %v7607_v17 = vpop.eup %7606  ;;  %v13703_v24 = vld [vmem:[#allocation223_spill] sm:$0xff]  ;;  %v13704_v13 = vld [vmem:[#allocation222_spill] sm:$0xff] }
 0x963   : > { %6657 = vmatprep.mubr.bf16.mxu1 %v5506_v58  ;;  %v12014_v18 = vmul.f32 %v7607_v17, %v13673_v33  ;;  %v13705_v12 = vpack.c.bf16 %v13703_v24, %v13704_v13  ;;  %v13708_v58 = vpack.c.bf16 %v13706_v57, %v13707_v23  ;;  %v13709_v17 = vld [vmem:[#allocation107_spill] sm:$0xff]  ;;  %v13713_v33 = vld [vmem:[#allocation202_spill] sm:$0xff]  ;;  %v13725_v24 = vld [vmem:[#allocation21_spill] sm:$0xff] }
 0x964   : > { %5347 = vrot.lane.b32.xlu0 %v13672_v8, %s7841_s1  ;;  %v13711_v10 = vpack.c.bf16 %v13709_v17, %v13710_v20  ;;  %v13712_v8 = vld [vmem:[#allocation113_spill] sm:$0xff] }
 0x965   : > { %5397 = vrot.lane.b32.xlu1 %v13674_v47, %s7840_s18  ;;  %v2393_v41 = vpack.c.bf16 %v12014_v18, %v12001_v39  ;;  %v13714_v47 = vpack.c.bf16 %v13712_v8, %v13713_v33 }
 0x968   : > { %5395 = vrot.lane.b32.xlu0 %v13675_v37, %s7840_s18  ;;  %v13715_v37 = vld [vmem:[#allocation110_spill] sm:$0xff] }
 0x969   : > { %5305 = vrot.lane.b32.xlu1 %v13678_v50, %s7839_s12  ;;  %v13717_v32 = vpack.c.bf16 %v13715_v37, %v13716_v59  ;;  %v13718_v50 = vpack.c.bf16 %v11845_v3, %v11840_v38  ;;  %v13726_v59 = vld [vmem:[#allocation35_spill] sm:$0xff] }
 0x96c   : > { %5303 = vrot.lane.b32.xlu0 %v13681_v51, %s7839_s12  ;;  %v13721_v51 = vpack.c.bf16 %v13719_v53, %v13720_v49 }
 0x96d   : > { %5353 = vrot.lane.b32.xlu1 %v13682_v40, %s7841_s1  ;;  %v5342_v40 = vpop.permute.xlu1 %5341 }
 0x970   : > { %5351 = vrot.lane.b32.xlu0 %v13685_v55, %s7841_s1  ;;  %v5428_v55 = vsel %vm870_vm0, %v2387_v14, %v5294_v16 }
 0x971   : > { %5401 = vrot.lane.b32.xlu1 %v13686_v6, %s7840_s18 }
 0x974   : > { %5399 = vrot.lane.b32.xlu0 %v13687_v21, %s7840_s18  ;;  %v5471_v21 = vsel %vm5459_vm1, %v5428_v55, %v5342_v40 }
 0x975   : > { %5309 = vrot.lane.b32.xlu1 %v13690_v54, %s7839_s12 }
 0x978   : > { %5307 = vrot.lane.b32.xlu0 %v13693_v63, %s7839_s12  ;;  %v13722_v63 = vld [vmem:[#allocation24_spill] sm:$0xff] }
 0x979   : > { %5357 = vrot.lane.b32.xlu1 %v13696_v60, %s7841_s1 }
 0x97c   : > { %5355 = vrot.lane.b32.xlu0 %v13699_v48, %s7841_s1 }
 0x97d   : > { %5405 = vrot.lane.b32.xlu1 %v13702_v42, %s7840_s18 }
 0x980   : > { %5403 = vrot.lane.b32.xlu0 %v13705_v12, %s7840_s18 }
 0x981   : > { %5313 = vrot.lane.b32.xlu1 %v13708_v58, %s7839_s12 }
 0x984   : > { %5311 = vrot.lane.b32.xlu0 %v13711_v10, %s7839_s12  ;;  %s7744_s12 = scalar_lea.vmem %s7743_s19, 8192 }
 0x985   : > { %5361 = vrot.lane.b32.xlu1 %v13714_v47, %s7841_s1  ;;  %p7746_p5 = scmp.lt.s32.totalorder %s7744_s12, %s7738_s11 }
 0x987   : > { %p7747_p9 = por %p7746_p5, %p7745_p11 }
 0x988   : > { %5359 = vrot.lane.b32.xlu0 %v13717_v32, %s7841_s1 }
 0x989   : > { %5409 = vrot.lane.b32.xlu1 %v13718_v50, %s7840_s18  ;;  %p7748_p0 = pnand %p7747_p9, %p7741_p10 }
 0x98c   : > { %5407 = vrot.lane.b32.xlu0 %v13721_v51, %s7840_s18 }
 0x990   : > { %v2087_v7 = vpop.xlane.xlu1 %2086 }
 0x991   : > { %7608 = vrcp.f32 %v2087_v7 }
 0x992   : > { %v2090_v0 = vpop.xlane.xlu0 %2089 }
 0x993   : > { %7610 = vrcp.f32 %v2090_v0 }
 0x994   : > { %v2093_v6 = vpop.xlane.xlu1 %2092 }
 0x995   : > { %7612 = vrcp.f32 %v2093_v6 }
 0x996   : > { %v5390_v38 = vpop.permute.xlu0 %5389 }
 0x997   : > { %v5509_v3 = vsel %vm5492_vm2, %v5471_v21, %v5390_v38  ;;  %v13729_v38 = vld [vmem:[#allocation188_spill] sm:$0xff] }
 0x998   : > { %6658 = vmatmul.mubr.bf16.gmra.mrb[40].mxu1 %v5509_v3  ;;  %v2096_v2 = vpop.xlane.xlu1 %2095 }
 0x999   : > { %7614 = vrcp.f32 %v2096_v2 }
 0x99a   : > { %v5298_v45 = vpop.permute.xlu0 %5297 }
 0x99b   : > { %v7609_v54 = vpop.eup %7608  ;;  %v5434_v57 = vsel %vm870_vm0, %v2389_v36, %v5298_v45 }
 0x99c   : > { %v5296_v34 = vpop.permute.xlu1 %5295  ;;  %v12105_v29 = vmul.f32 %v7609_v54, %v13722_v63  ;;  %v12158_v54 = vld [vmem:[%s12321_s6] ss:$0 sm:$0xff] }
 0x99d   : > { %v7611_v61 = vpop.eup %7610  ;;  %v5431_v16 = vsel %vm870_vm0, %v2388_v43, %v5296_v34 }
 0x99e   : > { %v5344_v35 = vpop.permute.xlu0 %5343  ;;  %v12108_v14 = vmul.f32 %v7611_v61, %v13723_v52 }
 0x99f   : > { %v7613_v1 = vpop.eup %7612  ;;  %v5473_v44 = vsel %vm5459_vm1, %v5431_v16, %v5344_v35 }
 0x9a0   : > { %v2394_v60 = vpack.c.bf16 %v12108_v14, %v12105_v29  ;;  %v12117_v25 = vmul.f32 %v7613_v1, %v13724_v22  ;;  %v5346_v30 = vpop.permute.xlu1 %5345 }
 0x9a1   : > { %v5475_v58 = vsel %vm5459_vm1, %v5434_v57, %v5346_v30 }
 0x9a2   : > { %v5392_v48 = vpop.permute.xlu0 %5391 }
 0x9a3   : > { %v5512_v31 = vsel %vm5492_vm2, %v5473_v44, %v5392_v48  ;;  %v7615_v42 = vpop.eup %7614 }
 0x9a4   : > { %6661 = vmatprep.mubr.bf16.mxu1 %v5512_v31  ;;  %v12122_v13 = vmul.f32 %v7615_v42, %v13725_v24 }
 0x9a6   : > { %v2395_v4 = vpack.c.bf16 %v12122_v13, %v12117_v25 }
 0x9d1   : > { %v2099_v43 = vpop.xlane.xlu1 %2098 }
 0x9d2   : > { %7616 = vrcp.f32 %v2099_v43 }
 0x9d3   : > { %v2102_v12 = vpop.xlane.xlu0 %2101 }
 0x9d4   : > { %7618 = vrcp.f32 %v2102_v12 }
 0x9d5   : > { %v2105_v23 = vpop.xlane.xlu1 %2104 }
 0x9d6   : > { %7620 = vrcp.f32 %v2105_v23 }
 0x9d7   : > { %v5394_v17 = vpop.permute.xlu0 %5393 }
 0x9d8   : > { %v5515_v20 = vsel %vm5492_vm2, %v5475_v58, %v5394_v17 }
 0x9d9   : > { %6662 = vmatmul.mubr.bf16.gmra.mrb[44].mxu1 %v5515_v20  ;;  %v2108_v10 = vpop.xlane.xlu1 %2107 }
 0x9da   : > { %7622 = vrcp.f32 %v2108_v10 }
 0x9db   : > { %v5302_v8 = vpop.permute.xlu0 %5301 }
 0x9dc   : > { %v7617_v33 = vpop.eup %7616  ;;  %v5440_v6 = vsel %vm870_vm0, %v2391_v28, %v5302_v8 }
 0x9dd   : > { %v5300_v37 = vpop.permute.xlu1 %5299  ;;  %v12133_v32 = vmul.f32 %v7617_v33, %v13726_v59 }
 0x9de   : > { %v7619_v47 = vpop.eup %7618  ;;  %v5437_v50 = vsel %vm870_vm0, %v2390_v11, %v5300_v37  ;;  %v13728_v11 = vld [vmem:[#allocation187_spill] sm:$0xff] }
 0x9df   : > { %v5348_v62 = vpop.permute.xlu0 %5347  ;;  %v12136_v36 = vmul.f32 %v7619_v47, %v13727_v9 }
 0x9e0   : > { %v7621_v51 = vpop.eup %7620  ;;  %v5477_v7 = vsel %vm5459_vm1, %v5437_v50, %v5348_v62 }
 0x9e1   : > { %v2396_v53 = vpack.c.bf16 %v12136_v36, %v12133_v32  ;;  %v5350_v49 = vpop.permute.xlu1 %5349  ;;  %v2380_v21 = vmul.f32 %v7621_v51, %v13728_v11 }
 0x9e2   : > { %v5479_v56 = vsel %vm5459_vm1, %v5440_v6, %v5350_v49 }
 0x9e3   : > { %v5396_v40 = vpop.permute.xlu0 %5395 }
 0x9e4   : > { %v5518_v0 = vsel %vm5492_vm2, %v5477_v7, %v5396_v40  ;;  %v7623_v55 = vpop.eup %7622 }
 0x9e5   : > { %6665 = vmatprep.mubr.bf16.mxu1 %v5518_v0  ;;  %v5398_v15 = vpop.permute.xlu1 %5397  ;;  %v2381_v3 = vmul.f32 %v7623_v55, %v13729_v38 }
 0x9e6   : > { %v5521_v45 = vsel %vm5492_vm2, %v5479_v56, %v5398_v15  ;;  %v6651_v5 = vpop.f32.mrb[32].mxu1 }
 0x9e7   : > { %v5304_v2 = vpop.permute.xlu0 %5303  ;;  %6666 = vmatmul.mubr.bf16.gmra.mrb[48].mxu1 %v5521_v45  ;;  %v2397_v19 = vpack.c.bf16 %v2381_v3, %v2380_v21  ;;  %v5655_v28 = vadd.f32 %v6651_v5, %v12158_v54  ;;  %v5646_v61 = vpop.f32.mrb[33].mxu1 }
 0x9e8   : > { %v5647_v63 = vadd.f32 %v12158_v54, %v5646_v61  ;;  %v6652_v52 = vpop.f32.mrb[34].mxu1  ;;  %v5443_v48 = vsel %vm870_vm0, %v2392_v46, %v5304_v2 }
 0x9e9   : > { %v5306_v34 = vpop.permute.xlu1 %5305  ;;  %5775 = vst [vmem:[%s12162_s10 + $0x10] sm:$0xff] %v5655_v28  ;;  %v5658_v16 = vadd.f32 %v6652_v52, %v12158_v54  ;;  %v5649_v1 = vpop.f32.mrb[35].mxu1 }
 0x9ea   : > { %5773 = vst [vmem:[%s12162_s10] sm:$0xff] %v5647_v63  ;;  %v5650_v22 = vadd.f32 %v12158_v54, %v5649_v1  ;;  %v5446_v30 = vsel %vm870_vm0, %v2393_v41, %v5306_v34 }
 0x9eb   : > { %v5352_v35 = vpop.permute.xlu0 %5351  ;;  %5776 = vst [vmem:[%s12162_s10 + $0x18] sm:$0xff] %v5658_v16 }
 0x9ec   : > { %v5481_v31 = vsel %vm5459_vm1, %v5443_v48, %v5352_v35  ;;  %5774 = vst [vmem:[%s12162_s10 + $0x8] sm:$0xff] %v5650_v22 }
 0x9ed   : > { %v5354_v44 = vpop.permute.xlu1 %5353 }
 0x9ee   : > { %v5483_v43 = vsel %vm5459_vm1, %v5446_v30, %v5354_v44 }
 0x9ef   : > { %v5400_v42 = vpop.permute.xlu0 %5399 }
 0x9f0   : > { %v5524_v24 = vsel %vm5492_vm2, %v5481_v31, %v5400_v42 }
 0x9f1   : > { %6669 = vmatprep.mubr.bf16.mxu1 %v5524_v24  ;;  %v5402_v12 = vpop.permute.xlu1 %5401 }
 0x9f2   : > { %v5527_v27 = vsel %vm5492_vm2, %v5483_v43, %v5402_v12 }
 0x9f3   : > { %v5308_v26 = vpop.permute.xlu0 %5307  ;;  %6670 = vmatmul.mubr.bf16.gmra.mrb[52].mxu1 %v5527_v27 }
 0x9f4   : > { %v5449_v23 = vsel %vm870_vm0, %v2394_v60, %v5308_v26 }
 0x9f5   : > { %v5310_v46 = vpop.permute.xlu1 %5309 }
 0x9f6   : > { %v5452_v17 = vsel %vm870_vm0, %v2395_v4, %v5310_v46 }
 0x9f7   : > { %v5356_v57 = vpop.permute.xlu0 %5355 }
 0x9f8   : > { %v5485_v39 = vsel %vm5459_vm1, %v5449_v23, %v5356_v57 }
 0x9f9   : > { %v5358_v58 = vpop.permute.xlu1 %5357 }
 0x9fa   : > { %v5487_v20 = vsel %vm5459_vm1, %v5452_v17, %v5358_v58 }
 0x9fb   : > { %v5404_v18 = vpop.permute.xlu0 %5403 }
 0x9fc   : > { %v5530_v41 = vsel %vm5492_vm2, %v5485_v39, %v5404_v18 }
 0x9fd   : > { %6673 = vmatprep.mubr.bf16.mxu1 %v5530_v41  ;;  %v5406_v10 = vpop.permute.xlu1 %5405 }
 0x9fe   : > { %v5533_v29 = vsel %vm5492_vm2, %v5487_v20, %v5406_v10 }
 0x9ff   : > { %v5312_v8 = vpop.permute.xlu0 %5311  ;;  %6674 = vmatmul.mubr.bf16.gmra.mrb[56].mxu1 %v5533_v29 }
 0xa00   : > { %v5455_v33 = vsel %vm870_vm0, %v2396_v53, %v5312_v8 }
 0xa01   : > { %v5314_v14 = vpop.permute.xlu1 %5313 }
 0xa02   : > { %v5458_v37 = vsel %vm870_vm0, %v2397_v19, %v5314_v14 }
 0xa03   : > { %v5360_v60 = vpop.permute.xlu0 %5359 }
 0xa04   : > { %v5489_v25 = vsel %vm5459_vm1, %v5455_v33, %v5360_v60 }
 0xa05   : > { %v5362_v47 = vpop.permute.xlu1 %5361 }
 0xa06   : > { %v5491_v59 = vsel %vm5459_vm1, %v5458_v37, %v5362_v47 }
 0xa07   : > { %v5408_v13 = vpop.permute.xlu0 %5407 }
 0xa08   : > { %v5536_v4 = vsel %vm5492_vm2, %v5489_v25, %v5408_v13 }
 0xa09   : > { %6677 = vmatprep.mubr.bf16.mxu1 %v5536_v4  ;;  %v5410_v62 = vpop.permute.xlu1 %5409 }
 0xa0a   : > { %v5539_v32 = vsel %vm5492_vm2, %v5491_v59, %v5410_v62 }
 0xa0b   : > { %6678 = vmatmul.mubr.bf16.gmra.mrb[60].mxu1 %v5539_v32 }
 0xa2a   : > { %v6655_v9 = vpop.f32.mrb[36].mxu1 }
 0xa2b   : > { %v5671_v36 = vadd.f32 %v6655_v9, %v12158_v54  ;;  %v5662_v50 = vpop.f32.mrb[37].mxu1 }
 0xa2c   : > { %v5663_v53 = vadd.f32 %v12158_v54, %v5662_v50  ;;  %v6656_v49 = vpop.f32.mrb[38].mxu1 }
 0xa2d   : > { %5779 = vst [vmem:[%s12162_s10 + $0x30] sm:$0xff] %v5671_v36  ;;  %v5674_v51 = vadd.f32 %v6656_v49, %v12158_v54  ;;  %v5665_v40 = vpop.f32.mrb[39].mxu1 }
 0xa2e   : > { %5777 = vst [vmem:[%s12162_s10 + $0x20] sm:$0xff] %v5663_v53  ;;  %v5666_v7 = vadd.f32 %v12158_v54, %v5665_v40 }
 0xa2f   : > { %5780 = vst [vmem:[%s12162_s10 + $0x38] sm:$0xff] %v5674_v51 }
 0xa30   : > { %5778 = vst [vmem:[%s12162_s10 + $0x28] sm:$0xff] %v5666_v7 }
 0xa6b   : > { %v6659_v0 = vpop.f32.mrb[40].mxu1 }
 0xa6c   : > { %v5687_v55 = vadd.f32 %v6659_v0, %v12158_v54  ;;  %v5678_v6 = vpop.f32.mrb[41].mxu1 }
 0xa6d   : > { %v5679_v56 = vadd.f32 %v12158_v54, %v5678_v6  ;;  %v6660_v15 = vpop.f32.mrb[42].mxu1 }
 0xa6e   : > { %5783 = vst [vmem:[%s12162_s10 + $0x50] sm:$0xff] %v5687_v55  ;;  %v5690_v11 = vadd.f32 %v6660_v15, %v12158_v54  ;;  %v5681_v21 = vpop.f32.mrb[43].mxu1 }
 0xa6f   : > { %5781 = vst [vmem:[%s12162_s10 + $0x40] sm:$0xff] %v5679_v56  ;;  %v5682_v38 = vadd.f32 %v12158_v54, %v5681_v21 }
 0xa70   : > { %5784 = vst [vmem:[%s12162_s10 + $0x58] sm:$0xff] %v5690_v11 }
 0xa71   : > { %5782 = vst [vmem:[%s12162_s10 + $0x48] sm:$0xff] %v5682_v38 }
 0xaac   : > { %v6663_v3 = vpop.f32.mrb[44].mxu1 }
 0xaad   : > { %v5703_v2 = vadd.f32 %v6663_v3, %v12158_v54  ;;  %v5694_v45 = vpop.f32.mrb[45].mxu1 }
 0xaae   : > { %v5695_v19 = vadd.f32 %v12158_v54, %v5694_v45  ;;  %v6664_v5 = vpop.f32.mrb[46].mxu1 }
 0xaaf   : > { %5787 = vst [vmem:[%s12162_s10 + $0x70] sm:$0xff] %v5703_v2  ;;  %v5706_v28 = vadd.f32 %v6664_v5, %v12158_v54  ;;  %v5697_v61 = vpop.f32.mrb[47].mxu1 }
 0xab0   : > { %5785 = vst [vmem:[%s12162_s10 + $0x60] sm:$0xff] %v5695_v19  ;;  %v5698_v34 = vadd.f32 %v12158_v54, %v5697_v61 }
 0xab1   : > { %5788 = vst [vmem:[%s12162_s10 + $0x78] sm:$0xff] %v5706_v28 }
 0xab2   : > { %5786 = vst [vmem:[%s12162_s10 + $0x68] sm:$0xff] %v5698_v34 }
 0xaba   : > { %v6667_v63 = vpop.f32.mrb[48].mxu1 }
 0xabb   : > { %v5719_v35 = vadd.f32 %v6667_v63, %v12158_v54  ;;  %v5710_v52 = vpop.f32.mrb[49].mxu1 }
 0xabc   : > { %v5711_v16 = vadd.f32 %v12158_v54, %v5710_v52  ;;  %v6668_v1 = vpop.f32.mrb[50].mxu1 }
 0xabd   : > { %5791 = vst [vmem:[%s12162_s10 + $0x90] sm:$0xff] %v5719_v35  ;;  %v5722_v22 = vadd.f32 %v6668_v1, %v12158_v54  ;;  %v5713_v48 = vpop.f32.mrb[51].mxu1 }
 0xabe   : > { %5789 = vst [vmem:[%s12162_s10 + $0x80] sm:$0xff] %v5711_v16  ;;  %v5714_v44 = vadd.f32 %v12158_v54, %v5713_v48 }
 0xabf   : > { %5792 = vst [vmem:[%s12162_s10 + $0x98] sm:$0xff] %v5722_v22 }
 0xac0   : > { %5790 = vst [vmem:[%s12162_s10 + $0x88] sm:$0xff] %v5714_v44 }
 0xac6   : > { %v6671_v31 = vpop.f32.mrb[52].mxu1 }
 0xac7   : > { %v5735_v42 = vadd.f32 %v6671_v31, %v12158_v54  ;;  %v5726_v24 = vpop.f32.mrb[53].mxu1 }
 0xac8   : > { %v5727_v30 = vadd.f32 %v12158_v54, %v5726_v24  ;;  %v6672_v43 = vpop.f32.mrb[54].mxu1 }
 0xac9   : > { %5795 = vst [vmem:[%s12162_s10 + $0xb0] sm:$0xff] %v5735_v42  ;;  %v5738_v12 = vadd.f32 %v6672_v43, %v12158_v54  ;;  %v5729_v26 = vpop.f32.mrb[55].mxu1 }
 0xaca   : > { %5793 = vst [vmem:[%s12162_s10 + $0xa0] sm:$0xff] %v5727_v30  ;;  %v5730_v27 = vadd.f32 %v12158_v54, %v5729_v26 }
 0xacb   : > { %5796 = vst [vmem:[%s12162_s10 + $0xb8] sm:$0xff] %v5738_v12 }
 0xacc   : > { %5794 = vst [vmem:[%s12162_s10 + $0xa8] sm:$0xff] %v5730_v27 }
 0xad2   : > { %v6675_v46 = vpop.f32.mrb[56].mxu1 }
 0xad3   : > { %v5751_v57 = vadd.f32 %v6675_v46, %v12158_v54  ;;  %v5742_v23 = vpop.f32.mrb[57].mxu1 }
 0xad4   : > { %v5743_v58 = vadd.f32 %v12158_v54, %v5742_v23  ;;  %v6676_v39 = vpop.f32.mrb[58].mxu1 }
 0xad5   : > { %5799 = vst [vmem:[%s12162_s10 + $0xd0] sm:$0xff] %v5751_v57  ;;  %v5754_v18 = vadd.f32 %v6676_v39, %v12158_v54  ;;  %v5745_v41 = vpop.f32.mrb[59].mxu1 }
 0xad6   : > { %5797 = vst [vmem:[%s12162_s10 + $0xc0] sm:$0xff] %v5743_v58  ;;  %v5746_v17 = vadd.f32 %v12158_v54, %v5745_v41 }
 0xad7   : > { %5800 = vst [vmem:[%s12162_s10 + $0xd8] sm:$0xff] %v5754_v18 }
 0xad8   : > { %5798 = vst [vmem:[%s12162_s10 + $0xc8] sm:$0xff] %v5746_v17 }
 0xade   : > { %v6679_v20 = vpop.f32.mrb[60].mxu1 }
 0xadf   : > { %v5767_v10 = vadd.f32 %v6679_v20, %v12158_v54  ;;  %v5758_v8 = vpop.f32.mrb[61].mxu1 }
 0xae0   : > { %v5759_v29 = vadd.f32 %v12158_v54, %v5758_v8  ;;  %v6680_v14 = vpop.f32.mrb[62].mxu1 }
 0xae1   : > { %5803 = vst [vmem:[%s12162_s10 + $0xf0] sm:$0xff] %v5767_v10  ;;  %v5770_v60 = vadd.f32 %v6680_v14, %v12158_v54  ;;  %v5761_v33 = vpop.f32.mrb[63].mxu1 }
 0xae2   : > { %5801 = vst [vmem:[%s12162_s10 + $0xe0] sm:$0xff] %v5759_v29  ;;  %v5762_v47 = vadd.f32 %v12158_v54, %v5761_v33 }
 0xae3   : > { %5804 = vst [vmem:[%s12162_s10 + $0xf8] sm:$0xff] %v5770_v60 }
 0xae4   : > { %5802 = vst [vmem:[%s12162_s10 + $0xe8] sm:$0xff] %v5762_v47 }
 0xae5   : > { %7751 = shalt.err (!%p7748_p0)
}
 0xae6   : > { %s7752_s18 = scalar_lea.hbm %s12260_s9, 4096  ;;  %s7756_s16 = scalar_lea.hbm %s13730_s15, 8192 }
 0xae7   : > { %p7753_p4 = scmp.ne.s32.totalorder %s12260_s9, %s7752_s18  ;;  %p7757_p12 = scmp.lt.u32.totalorder %s12260_s9, %s13730_s15 }
 0xae8   : > { %p7758_p1 = scmp.lt.u32.totalorder %s7756_s16, %s7752_s18  ;;  %p7760_p13 = scmp.lt.u32.totalorder %s7752_s18, %s12260_s9 }
 0xae9   : > { %p7754_p2 = pnand %p7753_p4, %p8045_p3 }
 0xaea   : > { %p7759_p7 = por %p7758_p1, %p7757_p12 }
 0xaeb   : > { %p7755_p8 = pneg %p7754_p2 }
 0xaec   : > { %p7761_p6 = por %p7760_p13, %p7759_p7 }
 0xaee   : > { %p7762_p10 = pnand %p7761_p6, %p7755_p8 }
 0xaf0   : > { %7765 = shalt.err (!%p7762_p10)
}
 0xaf1   : > { %s7843_s23 = smov 128   ;;  %s7844_s7 = smov 8  }
 0xaf2   : > { %6695 = dma.vmem_to_hbm [thread:$0]  (%p8045_p3), %s12262_s14, 4096, %s12260_s9, %s5806_s27, %s7843_s23, %s7843_s23, %s7844_s7  }
 0xaf3 PF: > { %s13731_s17 = sld [smem:[#allocation17_spill]]  ;;  %s13732_s11 = sld [smem:[#allocation18_spill]] }
 0xaf4   : > { %p13734_p5 = scmp.ge.s32.totalorder %s7828_s29, 2 }
 0xaf9   : > { %s5836_s13 = sand.u32 1, %s13731_s17   ;;  %p13733_p11 = scmp.ne.s32.totalorder %s13732_s11, 0 }
 0xafa   : > { %s5837_s19 = scalar_lea.sflag [#allocation6], %s5836_s13 }
 0xafb   : > { %p6712_p9 = pnand %p13734_p5, %p13733_p11 }
 0xafd   : > { %7803 = dma.done.wait (!%p6712_p9), %s5837_s19, 4096  }
 0xafe   : > { %7805 = vsyncadd (!%p6712_p9), %s5837_s19, 4294963200  ;;  %s25_s29 = sadd.s32 1, %s7828_s29   ;;  %s13735_s24 = smov %s7812_s25 }
 0xaff   : > { %p22_p0 = scmp.ge.s32.totalorder %s25_s29, 4   ;;  %s13736_s25 = smov %s7816_s26 }
 0xb00   : > { %s13737_s26 = smov %s8054_s8  ;;  %s13738_s27 = smov %s7824_s28 }
 0xb01   : > { %s13739_s28 = smov %s13741_s30  ;;  %24 = sbr.rel (!%p22_p0) target bundleno = 11 (0xb), region = 116 }
 0xb08   :  { %5842 = vsyncpa [#allocation5], 1 }
 0xb09   :  { %5844 = vsyncpa [#allocation5 + $0x1], 1 }
 0xb0a   :  { %5845 = vsyncpa [#allocation8], 1 }
 0xb0b   :  { %5846 = vsyncpa [#allocation11], 1 }
 0xb0c   :  { %5847 = vsyncpa [#allocation6], 1 }
 0xb0d   :  { %5849 = vsyncpa [#allocation6 + $0x1], 1 }

</bundles_post_ra>
